<compile_context>
chip_gen: v6e
topology: v6e:2x2x1
jax: 0.10.0
libtpu: 0.0.40
codegen_flags: <defaults>
</compile_context>

<pallas_src>
import numpy as np

import jax
import jax.numpy as jnp
from jax import lax
from jax.experimental import pallas as pl
from jax.experimental.pallas import tpu as pltpu


def _gelu_exact(x):
    # Exact (erf-based) GELU to match nn.GELU() default.  Abramowitz-Stegun 7.1.26 rational
    # approximation (|err| < 1.5e-7); pure VPU/EUP ops on TPU.
    inv_sqrt2 = 0.7071067811865476
    z = x * inv_sqrt2
    az = jnp.abs(z)
    t = 1.0 / (1.0 + 0.3275911 * az)
    poly = ((((1.061405429 * t - 1.453152027) * t + 1.421413741) * t
             - 0.284496736) * t + 0.254829592) * t
    erf_abs = 1.0 - poly * jnp.exp(-az * az)
    erf_z = jnp.where(z >= 0, erf_abs, -erf_abs)
    return 0.5 * x * (1.0 + erf_z)


def _repmixer_block_kernel(xin_ref, cp_ref, w3_ref, w7_ref,
                           wbd1_ref, bfc1_ref, wbd2_ref, o_ref, sb_ref):
    _, H, WP, L = o_ref.shape            # e.g. (1, 16, 8, 128)
    C = L // 2
    RP = H + 2                           # rows per column-phase slot of the x input
    HC = 4 if H % 4 == 0 else H          # ConvFFN row chunk (HC*WP rows per matmul)
    f32 = jnp.float32

    # Hoisted per-channel params: one sublane broadcast each, reused everywhere.
    cp = cp_ref[...]                                   # (3, 1, L)
    k1 = jnp.broadcast_to(cp[0], (WP, L))
    k3 = jnp.broadcast_to(cp[1], (WP, L))
    b_out = jnp.broadcast_to(cp[2], (WP, L))

    # ---------------- token mixer (folded):  y1 = x*k1 + dw3x3_eff(x) + k3 ----------------
    # xin holds 3 column-phase slots of row-padded x: slot dx, row r, pair s:
    #   xin[dx*RP + r, s, t*C+c] = Xpad_rows[r-1, 2s+t+dx-1, c]   (zero outside the image)
    conv3 = jnp.zeros((H, WP, L), f32)
    for dy in range(3):
        for dx in range(3):
            base = dx * RP + dy
            tap = xin_ref[0, base:base + H, :, :]      # aligned: offsets on untiled leading axis
            conv3 = conv3 + tap * w3_ref[dy, dx]       # (1,L) weight -> one sublane broadcast
    x_c = xin_ref[0, RP + 1:RP + 1 + H, :, :]          # center phase, center rows
    y1 = x_c * k1 + conv3 + k3                         # (H, WP, L)

    # ---- stage the 7 column-phases of y1 (zero-padded rows/cols) in VMEM for the dw7x7 ----
    # sb[dx, 3+h, s, t*C+c] = Y1pad_cols[h, 2s+t+dx-3, c]; rows [0,3) and [3+H, 6+H) are zero halo.
    y1_lo = y1[:, :, :C]          # even columns 2s
    y1_hi = y1[:, :, C:]          # odd  columns 2s+1

    def shift_pairs(a, m, lanes):
        # a[:, s+m, :] with zero fill outside [0, WP)
        if m == 0:
            return a
        z = jnp.zeros((H, abs(m), lanes), f32)
        if m > 0:
            return jnp.concatenate([a[:, m:, :], z], axis=1)
        return jnp.concatenate([z, a[:, :m, :]], axis=1)

    zrows = jnp.zeros((3, WP, L), f32)
    for dx in range(7):
        r = dx - 3
        if r % 2 == 0:                                 # even column shift: same phase
            s_r = shift_pairs(y1, r // 2, L)
        else:                                          # odd column shift: phase swap
            m = (r - 1) // 2
            s_r = jnp.concatenate([shift_pairs(y1_hi, m, C),
                                   shift_pairs(y1_lo, m + 1, C)], axis=-1)
        sb_ref[dx, 0:3] = zrows                        # halo re-zeroed every step (required)
        sb_ref[dx, 3:3 + H] = s_r
        sb_ref[dx, 3 + H:6 + H] = zrows

    # ---------------- depthwise 7x7 (BN folded into weights / fc1 bias) ----------------
    conv7 = jnp.zeros((H, WP, L), f32)
    for dy in range(7):                                # fully unrolled
        for dx in range(7):
            tap = sb_ref[dx, dy:dy + H, :, :]          # all offset-0 aligned reads
            conv7 = conv7 + tap * w7_ref[dy, dx]

    # ---------------- ConvFFN: row-chunked bf16 MXU matmuls (f32 accumulation) ----------------
    wbd1 = wbd1_ref[...]          # (L, 2*Hd) bf16 block-diagonal fc1 (paired layout preserved)
    wbd2 = wbd2_ref[...]          # (2*Hd, L) bf16 block-diagonal fc2 (layer-scale folded in)
    bfc1 = bfc1_ref[...]          # (1, 2*Hd) f32 (dw-BN bias folded through fc1)

    for h0 in range(0, H, HC):
        hm = conv7[h0:h0 + HC].reshape(HC * WP, L).astype(jnp.bfloat16)
        h1 = jnp.dot(hm, wbd1, preferred_element_type=f32) + bfc1
        h1 = _gelu_exact(h1)
        h2 = jnp.dot(h1.astype(jnp.bfloat16), wbd2, preferred_element_type=f32)
        y1_c = sb_ref[3, 3 + h0:3 + h0 + HC, :, :]     # re-read y1 rows from the r=0 slot
        o_ref[0, h0:h0 + HC] = (y1_c + h2.reshape(HC, WP, L) + b_out).astype(o_ref.dtype)


def prepare_params(p):
    """Fold all BN / branch / layer-scale algebra into kernel-ready tensors (run once)."""
    f32, bf16 = jnp.float32, jnp.bfloat16
    C, Hd = p["w_fc1"].shape
    L = 2 * C

    # token mixer:  y1 = x*k1 + dw3x3_{w3 * ls_mix * a_cb}(x) + k3
    k1 = 1.0 + p["ls_mix"] * (p["w_scale"] * p["a_sb"] + p["a_sk"] - p["a_n"])
    k3 = p["ls_mix"] * (p["b_cb"] + p["b_sb"] + p["b_sk"] - p["b_n"])
    # ConvFFN: out = y1 + GELU(dw7x7_{w7*a_dw}(y1) @ w_fc1 + bfc1_eff) @ (w_fc2*ls_blk) + ls_blk*b_fc2
    b_out = p["ls_blk"] * p["b_fc2"]

    cp = jnp.stack([k1, k3, b_out], axis=0).astype(f32)             # (3, C)
    cp = jnp.tile(cp, (1, 2)).reshape(3, 1, L)                      # paired 128-lane layout

    w3p = jnp.tile((p["w3"] * (p["ls_mix"] * p["a_cb"])).astype(f32),
                   (1, 1, 2)).reshape(3, 3, 1, L)
    w7p = jnp.tile((p["w7"] * p["a_dw"]).astype(f32),
                   (1, 1, 2)).reshape(7, 7, 1, L)

    w_fc1 = p["w_fc1"].astype(f32)
    w_fc2e = (p["w_fc2"] * p["ls_blk"][None, :]).astype(f32)
    bfc1_eff = p["b_dw"].astype(f32) @ w_fc1 + p["b_fc1"].astype(f32)

    # Block-diagonal pointwise weights: even/odd paired pixels share fc weights (keeps the
    # matmuls in the lane-dense paired layout); bf16 for the MXU, bias kept f32.
    wbd1 = (jnp.zeros((L, 2 * Hd), f32).at[:C, :Hd].set(w_fc1)
            .at[C:, Hd:].set(w_fc1)).astype(bf16)
    wbd2 = (jnp.zeros((2 * Hd, L), f32).at[:Hd, :C].set(w_fc2e)
            .at[Hd:, C:].set(w_fc2e)).astype(bf16)
    bfc1p = jnp.concatenate([bfc1_eff, bfc1_eff]).reshape(1, 2 * Hd).astype(f32)

    return dict(cp=cp, w3p=w3p, w7p=w7p, wbd1=wbd1, bfc1p=bfc1p, wbd2=wbd2)


def repmixer_block(x_nhwc, kp):
    """x_nhwc: (B, H, W, C) float32 with C == 64 and even W.  kp = prepare_params(params)."""
    B, H, W, C = x_nhwc.shape
    assert C == 64 and W % 2 == 0, "paired-lane kernel assumes 2*C == 128 lanes and even W"
    L, WP = 2 * C, W // 2
    Hd2 = kp["wbd1"].shape[1]
    f32 = jnp.float32

    # Three pre-phased (column shift -1 / 0 / +1), row-padded, pair-packed copies of x so every
    # 3x3 tap in the kernel is an offset-0 aligned read.  Fuses into a couple of ops under jit.
    xr = jnp.pad(x_nhwc.astype(f32), ((0, 0), (1, 1), (0, 0), (0, 0)))   # (B, H+2, W, C)

    def colshift(r):
        if r == 0:
            return xr
        if r > 0:
            return jnp.pad(xr[:, :, r:, :], ((0, 0), (0, 0), (0, r), (0, 0)))
        return jnp.pad(xr[:, :, :r, :], ((0, 0), (0, 0), (-r, 0), (0, 0)))

    xin = jnp.concatenate([colshift(dx - 1).reshape(B, H + 2, WP, L) for dx in range(3)],
                          axis=1)                                        # (B, 3*(H+2), WP, L)

    out = pl.pallas_call(
        _repmixer_block_kernel,
        out_shape=jax.ShapeDtypeStruct((B, H, WP, L), f32),
        grid=(B,),
        in_specs=[
            pl.BlockSpec((1, 3 * (H + 2), WP, L), lambda b: (b, 0, 0, 0)),  # phased x
            pl.BlockSpec((3, 1, L), lambda b: (0, 0, 0)),                   # k1 / k3 / b_out
            pl.BlockSpec((3, 3, 1, L), lambda b: (0, 0, 0, 0)),             # dw3x3 weights (eff)
            pl.BlockSpec((7, 7, 1, L), lambda b: (0, 0, 0, 0)),             # dw7x7 weights (eff)
            pl.BlockSpec((L, Hd2), lambda b: (0, 0)),                       # fc1 block-diag bf16
            pl.BlockSpec((1, Hd2), lambda b: (0, 0)),                       # fc1 bias (folded) f32
            pl.BlockSpec((Hd2, L), lambda b: (0, 0)),                       # fc2 block-diag bf16
        ],
        out_specs=pl.BlockSpec((1, H, WP, L), lambda b: (b, 0, 0, 0)),
        scratch_shapes=[
            pltpu.VMEM((7, H + 6, WP, L), f32),   # 7 column-phase slots of y1 (zero-padded rows)
        ],
        compiler_params=pltpu.CompilerParams(dimension_semantics=("parallel",)),
    )(xin, kp["cp"], kp["w3p"], kp["w7p"], kp["wbd1"], kp["bfc1p"], kp["wbd2"])

    return out.reshape(B, H, W, C)


# ---------------- pure-JAX reference (for correctness check) ----------------
def _depthwise_ref(x, w, pad):
    C = x.shape[-1]
    rhs = w[:, :, None, :]  # (kh, kw, 1, C)  HWIO with feature_group_count=C
    return lax.conv_general_dilated(
        x, rhs, window_strides=(1, 1), padding=[(pad, pad), (pad, pad)],
        dimension_numbers=("NHWC", "HWIO", "NHWC"), feature_group_count=C)


def ref_forward(x, p):
    conv3 = _depthwise_ref(x, p["w3"], 1) * p["a_cb"] + p["b_cb"]
    scale = (x * p["w_scale"]) * p["a_sb"] + p["b_sb"]
    skip = x * p["a_sk"] + p["b_sk"]
    mixer = conv3 + scale + skip
    norm = x * p["a_n"] + p["b_n"]
    y1 = x + p["ls_mix"] * (mixer - norm)

    conv7 = _depthwise_ref(y1, p["w7"], 3) * p["a_dw"] + p["b_dw"]
    h1 = jnp.einsum("bhwc,ck->bhwk", conv7, p["w_fc1"]) + p["b_fc1"]
    h1 = jax.nn.gelu(h1, approximate=False)
    h2 = jnp.einsum("bhwk,kc->bhwc", h1, p["w_fc2"]) + p["b_fc2"]
    return y1 + p["ls_blk"] * h2


# ---------------- deterministic synthetic parameter init ----------------
def _bn_affine(key, c, eps=1e-5):
    kg, kb, km, kv = jax.random.split(key, 4)
    gamma = 1.0 + 0.1 * jax.random.normal(kg, (c,), jnp.float32)
    beta = 0.1 * jax.random.normal(kb, (c,), jnp.float32)
    mean = 0.1 * jax.random.normal(km, (c,), jnp.float32)
    var = 0.5 + jax.random.uniform(kv, (c,), jnp.float32)
    a = gamma / jnp.sqrt(var + eps)
    b = beta - mean * a
    return a, b


def make_params(key, C, Hd):
    ks = jax.random.split(key, 14)
    a_cb, b_cb = _bn_affine(ks[0], C)
    a_sb, b_sb = _bn_affine(ks[1], C)
    a_sk, b_sk = _bn_affine(ks[2], C)
    a_n, b_n = _bn_affine(ks[3], C)
    a_dw, b_dw = _bn_affine(ks[4], C)
    p = dict(
        w3=0.1 * jax.random.normal(ks[5], (3, 3, C), jnp.float32),
        w_scale=0.1 * jax.random.normal(ks[6], (C,), jnp.float32),
        w7=0.05 * jax.random.normal(ks[7], (7, 7, C), jnp.float32),
        w_fc1=0.05 * jax.random.normal(ks[8], (C, Hd), jnp.float32),
        b_fc1=0.02 * jax.random.normal(ks[9], (Hd,), jnp.float32),
        w_fc2=0.05 * jax.random.normal(ks[10], (Hd, C), jnp.float32),
        b_fc2=0.02 * jax.random.normal(ks[11], (C,), jnp.float32),
        # layer scales: module inits at 1e-5; use non-trivial values so the check exercises them.
        ls_mix=0.5 + 0.5 * jax.random.uniform(ks[12], (C,), jnp.float32),
        ls_blk=0.5 + 0.5 * jax.random.uniform(ks[13], (C,), jnp.float32),
        a_cb=a_cb, b_cb=b_cb, a_sb=a_sb, b_sb=b_sb,
        a_sk=a_sk, b_sk=b_sk, a_n=a_n, b_n=b_n, a_dw=a_dw, b_dw=b_dw,
    )
    return p


if __name__ == "__main__":
    B, C, H, W = 2, 64, 16, 16          # dim=64, spatial 16x16
    mlp_ratio = 4.0
    Hd = int(C * mlp_ratio)

    key = jax.random.PRNGKey(0)
    kx, kparam = jax.random.split(key)
    params = make_params(kparam, C, Hd)

    x_nchw = jax.random.normal(kx, (B, C, H, W), jnp.float32)   # PyTorch layout
    x_nhwc = jnp.transpose(x_nchw, (0, 2, 3, 1))                # kernel layout

    kp = prepare_params(params)           # one-time weight folding, off the hot path
    fwd = jax.jit(repmixer_block)         # per-call x phasing fuses under jit

    out_nhwc = jax.block_until_ready(fwd(x_nhwc, kp))
    out_nchw = jnp.transpose(out_nhwc, (0, 3, 1, 2))            # back to NCHW

    ref_nhwc = ref_forward(x_nhwc, params)
    # Tolerance loosened vs. the all-f32 version because the ConvFFN matmuls now run with bf16
    # MXU inputs (f32 accumulation); the depthwise convs / residuals remain f32.
    np.testing.assert_allclose(np.asarray(out_nhwc), np.asarray(ref_nhwc),
                               rtol=1e-2, atol=2e-2)
    assert out_nchw.shape == (B, C, H, W)
    print("KERNEL_OK")
</pallas_src>

<mosaic_0001>
module attributes {stable_mosaic.version = 11 : i64} {
  func.func @_repmixer_block_kernel(%arg0: i32, %arg1: memref<1x54x8x128xf32, #tpu.memory_space<vmem>>, %arg2: memref<3x1x128xf32, #tpu.memory_space<vmem>>, %arg3: memref<3x3x1x128xf32, #tpu.memory_space<vmem>>, %arg4: memref<7x7x1x128xf32, #tpu.memory_space<vmem>>, %arg5: memref<128x512xbf16, #tpu.memory_space<vmem>>, %arg6: memref<1x512xf32, #tpu.memory_space<vmem>>, %arg7: memref<512x128xbf16, #tpu.memory_space<vmem>>, %arg8: memref<1x16x8x128xf32, #tpu.memory_space<vmem>>, %arg9: memref<7x22x8x128xf32, #tpu.memory_space<vmem>>) attributes {dimension_semantics = [#tpu.dimension_semantics<parallel>], iteration_bounds = array<i64: 2>, scalar_prefetch = 0 : i64, scratch_operands = 1 : i64, tpu.core_type = #tpu.core_type<tc>, window_params = [{transform_indices = @transform_0, window_bounds = array<i64: 1, 54, 8, 128>}, {pipeline_mode = #tpu.pipeline_mode<synchronous>, transform_indices = @transform_1, window_bounds = array<i64: 3, 1, 128>}, {pipeline_mode = #tpu.pipeline_mode<synchronous>, transform_indices = @transform_2, window_bounds = array<i64: 3, 3, 1, 128>}, {pipeline_mode = #tpu.pipeline_mode<synchronous>, transform_indices = @transform_3, window_bounds = array<i64: 7, 7, 1, 128>}, {pipeline_mode = #tpu.pipeline_mode<synchronous>, transform_indices = @transform_4, window_bounds = array<i64: 128, 512>}, {pipeline_mode = #tpu.pipeline_mode<synchronous>, transform_indices = @transform_5, window_bounds = array<i64: 1, 512>}, {pipeline_mode = #tpu.pipeline_mode<synchronous>, transform_indices = @transform_6, window_bounds = array<i64: 512, 128>}, {transform_indices = @transform_7, window_bounds = array<i64: 1, 16, 8, 128>}]} {
    %c0 = arith.constant 0 : index
    %c0_0 = arith.constant 0 : index
    %c0_1 = arith.constant 0 : index
    %0 = vector.load %arg2[%c0, %c0_0, %c0_1] : memref<3x1x128xf32, #tpu.memory_space<vmem>>, vector<3x1x128xf32>
    %1 = vector.extract_strided_slice %0 {offsets = [0, 0, 0], sizes = [1, 1, 128], strides = [1, 1, 1]} : vector<3x1x128xf32> to vector<1x1x128xf32>
    %2 = vector.shape_cast %1 : vector<1x1x128xf32> to vector<1x128xf32>
    %3 = vector.shape_cast %2 : vector<1x128xf32> to vector<1x128xf32>
    %4 = vector.broadcast %3 : vector<1x128xf32> to vector<8x128xf32>
    %5 = vector.extract_strided_slice %0 {offsets = [1, 0, 0], sizes = [1, 1, 128], strides = [1, 1, 1]} : vector<3x1x128xf32> to vector<1x1x128xf32>
    %6 = vector.shape_cast %5 : vector<1x1x128xf32> to vector<1x128xf32>
    %7 = vector.shape_cast %6 : vector<1x128xf32> to vector<1x128xf32>
    %8 = vector.broadcast %7 : vector<1x128xf32> to vector<8x128xf32>
    %9 = vector.extract_strided_slice %0 {offsets = [2, 0, 0], sizes = [1, 1, 128], strides = [1, 1, 1]} : vector<3x1x128xf32> to vector<1x1x128xf32>
    %10 = vector.shape_cast %9 : vector<1x1x128xf32> to vector<1x128xf32>
    %11 = vector.shape_cast %10 : vector<1x128xf32> to vector<1x128xf32>
    %12 = vector.broadcast %11 : vector<1x128xf32> to vector<8x128xf32>
    %cst = arith.constant 0.000000e+00 : f32
    %13 = vector.broadcast %cst : f32 to vector<16x8x128xf32>
    %c0_2 = arith.constant 0 : index
    %c0_3 = arith.constant 0 : index
    %c0_4 = arith.constant 0 : index
    %c0_5 = arith.constant 0 : index
    %14 = vector.load %arg1[%c0_2, %c0_3, %c0_4, %c0_5] : memref<1x54x8x128xf32, #tpu.memory_space<vmem>>, vector<1x16x8x128xf32>
    %15 = vector.shape_cast %14 : vector<1x16x8x128xf32> to vector<16x8x128xf32>
    %c0_6 = arith.constant 0 : index
    %c0_7 = arith.constant 0 : index
    %c0_8 = arith.constant 0 : index
    %c0_9 = arith.constant 0 : index
    %16 = vector.load %arg3[%c0_6, %c0_7, %c0_8, %c0_9] : memref<3x3x1x128xf32, #tpu.memory_space<vmem>>, vector<1x1x1x128xf32>
    %17 = vector.shape_cast %16 : vector<1x1x1x128xf32> to vector<1x128xf32>
    %18 = vector.shape_cast %17 : vector<1x128xf32> to vector<1x1x128xf32>
    %19 = vector.broadcast %18 : vector<1x1x128xf32> to vector<16x8x128xf32>
    %20 = arith.mulf %15, %19 : vector<16x8x128xf32>
    %21 = arith.addf %13, %20 : vector<16x8x128xf32>
    %c0_10 = arith.constant 0 : index
    %c18 = arith.constant 18 : index
    %c0_11 = arith.constant 0 : index
    %c0_12 = arith.constant 0 : index
    %22 = vector.load %arg1[%c0_10, %c18, %c0_11, %c0_12] : memref<1x54x8x128xf32, #tpu.memory_space<vmem>>, vector<1x16x8x128xf32>
    %23 = vector.shape_cast %22 : vector<1x16x8x128xf32> to vector<16x8x128xf32>
    %c0_13 = arith.constant 0 : index
    %c1 = arith.constant 1 : index
    %c0_14 = arith.constant 0 : index
    %c0_15 = arith.constant 0 : index
    %24 = vector.load %arg3[%c0_13, %c1, %c0_14, %c0_15] : memref<3x3x1x128xf32, #tpu.memory_space<vmem>>, vector<1x1x1x128xf32>
    %25 = vector.shape_cast %24 : vector<1x1x1x128xf32> to vector<1x128xf32>
    %26 = vector.shape_cast %25 : vector<1x128xf32> to vector<1x1x128xf32>
    %27 = vector.broadcast %26 : vector<1x1x128xf32> to vector<16x8x128xf32>
    %28 = arith.mulf %23, %27 : vector<16x8x128xf32>
    %29 = arith.addf %21, %28 : vector<16x8x128xf32>
    %c0_16 = arith.constant 0 : index
    %c36 = arith.constant 36 : index
    %c0_17 = arith.constant 0 : index
    %c0_18 = arith.constant 0 : index
    %30 = vector.load %arg1[%c0_16, %c36, %c0_17, %c0_18] : memref<1x54x8x128xf32, #tpu.memory_space<vmem>>, vector<1x16x8x128xf32>
    %31 = vector.shape_cast %30 : vector<1x16x8x128xf32> to vector<16x8x128xf32>
    %c0_19 = arith.constant 0 : index
    %c2 = arith.constant 2 : index
    %c0_20 = arith.constant 0 : index
    %c0_21 = arith.constant 0 : index
    %32 = vector.load %arg3[%c0_19, %c2, %c0_20, %c0_21] : memref<3x3x1x128xf32, #tpu.memory_space<vmem>>, vector<1x1x1x128xf32>
    %33 = vector.shape_cast %32 : vector<1x1x1x128xf32> to vector<1x128xf32>
    %34 = vector.shape_cast %33 : vector<1x128xf32> to vector<1x1x128xf32>
    %35 = vector.broadcast %34 : vector<1x1x128xf32> to vector<16x8x128xf32>
    %36 = arith.mulf %31, %35 : vector<16x8x128xf32>
    %37 = arith.addf %29, %36 : vector<16x8x128xf32>
    %c0_22 = arith.constant 0 : index
    %c1_23 = arith.constant 1 : index
    %c0_24 = arith.constant 0 : index
    %c0_25 = arith.constant 0 : index
    %38 = vector.load %arg1[%c0_22, %c1_23, %c0_24, %c0_25] : memref<1x54x8x128xf32, #tpu.memory_space<vmem>>, vector<1x16x8x128xf32>
    %39 = vector.shape_cast %38 : vector<1x16x8x128xf32> to vector<16x8x128xf32>
    %c1_26 = arith.constant 1 : index
    %c0_27 = arith.constant 0 : index
    %c0_28 = arith.constant 0 : index
    %c0_29 = arith.constant 0 : index
    %40 = vector.load %arg3[%c1_26, %c0_27, %c0_28, %c0_29] : memref<3x3x1x128xf32, #tpu.memory_space<vmem>>, vector<1x1x1x128xf32>
    %41 = vector.shape_cast %40 : vector<1x1x1x128xf32> to vector<1x128xf32>
    %42 = vector.shape_cast %41 : vector<1x128xf32> to vector<1x1x128xf32>
    %43 = vector.broadcast %42 : vector<1x1x128xf32> to vector<16x8x128xf32>
    %44 = arith.mulf %39, %43 : vector<16x8x128xf32>
    %45 = arith.addf %37, %44 : vector<16x8x128xf32>
    %c0_30 = arith.constant 0 : index
    %c19 = arith.constant 19 : index
    %c0_31 = arith.constant 0 : index
    %c0_32 = arith.constant 0 : index
    %46 = vector.load %arg1[%c0_30, %c19, %c0_31, %c0_32] : memref<1x54x8x128xf32, #tpu.memory_space<vmem>>, vector<1x16x8x128xf32>
    %47 = vector.shape_cast %46 : vector<1x16x8x128xf32> to vector<16x8x128xf32>
    %c1_33 = arith.constant 1 : index
    %c1_34 = arith.constant 1 : index
    %c0_35 = arith.constant 0 : index
    %c0_36 = arith.constant 0 : index
    %48 = vector.load %arg3[%c1_33, %c1_34, %c0_35, %c0_36] : memref<3x3x1x128xf32, #tpu.memory_space<vmem>>, vector<1x1x1x128xf32>
    %49 = vector.shape_cast %48 : vector<1x1x1x128xf32> to vector<1x128xf32>
    %50 = vector.shape_cast %49 : vector<1x128xf32> to vector<1x1x128xf32>
    %51 = vector.broadcast %50 : vector<1x1x128xf32> to vector<16x8x128xf32>
    %52 = arith.mulf %47, %51 : vector<16x8x128xf32>
    %53 = arith.addf %45, %52 : vector<16x8x128xf32>
    %c0_37 = arith.constant 0 : index
    %c37 = arith.constant 37 : index
    %c0_38 = arith.constant 0 : index
    %c0_39 = arith.constant 0 : index
    %54 = vector.load %arg1[%c0_37, %c37, %c0_38, %c0_39] : memref<1x54x8x128xf32, #tpu.memory_space<vmem>>, vector<1x16x8x128xf32>
    %55 = vector.shape_cast %54 : vector<1x16x8x128xf32> to vector<16x8x128xf32>
    %c1_40 = arith.constant 1 : index
    %c2_41 = arith.constant 2 : index
    %c0_42 = arith.constant 0 : index
    %c0_43 = arith.constant 0 : index
    %56 = vector.load %arg3[%c1_40, %c2_41, %c0_42, %c0_43] : memref<3x3x1x128xf32, #tpu.memory_space<vmem>>, vector<1x1x1x128xf32>
    %57 = vector.shape_cast %56 : vector<1x1x1x128xf32> to vector<1x128xf32>
    %58 = vector.shape_cast %57 : vector<1x128xf32> to vector<1x1x128xf32>
    %59 = vector.broadcast %58 : vector<1x1x128xf32> to vector<16x8x128xf32>
    %60 = arith.mulf %55, %59 : vector<16x8x128xf32>
    %61 = arith.addf %53, %60 : vector<16x8x128xf32>
    %c0_44 = arith.constant 0 : index
    %c2_45 = arith.constant 2 : index
    %c0_46 = arith.constant 0 : index
    %c0_47 = arith.constant 0 : index
    %62 = vector.load %arg1[%c0_44, %c2_45, %c0_46, %c0_47] : memref<1x54x8x128xf32, #tpu.memory_space<vmem>>, vector<1x16x8x128xf32>
    %63 = vector.shape_cast %62 : vector<1x16x8x128xf32> to vector<16x8x128xf32>
    %c2_48 = arith.constant 2 : index
    %c0_49 = arith.constant 0 : index
    %c0_50 = arith.constant 0 : index
    %c0_51 = arith.constant 0 : index
    %64 = vector.load %arg3[%c2_48, %c0_49, %c0_50, %c0_51] : memref<3x3x1x128xf32, #tpu.memory_space<vmem>>, vector<1x1x1x128xf32>
    %65 = vector.shape_cast %64 : vector<1x1x1x128xf32> to vector<1x128xf32>
    %66 = vector.shape_cast %65 : vector<1x128xf32> to vector<1x1x128xf32>
    %67 = vector.broadcast %66 : vector<1x1x128xf32> to vector<16x8x128xf32>
    %68 = arith.mulf %63, %67 : vector<16x8x128xf32>
    %69 = arith.addf %61, %68 : vector<16x8x128xf32>
    %c0_52 = arith.constant 0 : index
    %c20 = arith.constant 20 : index
    %c0_53 = arith.constant 0 : index
    %c0_54 = arith.constant 0 : index
    %70 = vector.load %arg1[%c0_52, %c20, %c0_53, %c0_54] : memref<1x54x8x128xf32, #tpu.memory_space<vmem>>, vector<1x16x8x128xf32>
    %71 = vector.shape_cast %70 : vector<1x16x8x128xf32> to vector<16x8x128xf32>
    %c2_55 = arith.constant 2 : index
    %c1_56 = arith.constant 1 : index
    %c0_57 = arith.constant 0 : index
    %c0_58 = arith.constant 0 : index
    %72 = vector.load %arg3[%c2_55, %c1_56, %c0_57, %c0_58] : memref<3x3x1x128xf32, #tpu.memory_space<vmem>>, vector<1x1x1x128xf32>
    %73 = vector.shape_cast %72 : vector<1x1x1x128xf32> to vector<1x128xf32>
    %74 = vector.shape_cast %73 : vector<1x128xf32> to vector<1x1x128xf32>
    %75 = vector.broadcast %74 : vector<1x1x128xf32> to vector<16x8x128xf32>
    %76 = arith.mulf %71, %75 : vector<16x8x128xf32>
    %77 = arith.addf %69, %76 : vector<16x8x128xf32>
    %c0_59 = arith.constant 0 : index
    %c38 = arith.constant 38 : index
    %c0_60 = arith.constant 0 : index
    %c0_61 = arith.constant 0 : index
    %78 = vector.load %arg1[%c0_59, %c38, %c0_60, %c0_61] : memref<1x54x8x128xf32, #tpu.memory_space<vmem>>, vector<1x16x8x128xf32>
    %79 = vector.shape_cast %78 : vector<1x16x8x128xf32> to vector<16x8x128xf32>
    %c2_62 = arith.constant 2 : index
    %c2_63 = arith.constant 2 : index
    %c0_64 = arith.constant 0 : index
    %c0_65 = arith.constant 0 : index
    %80 = vector.load %arg3[%c2_62, %c2_63, %c0_64, %c0_65] : memref<3x3x1x128xf32, #tpu.memory_space<vmem>>, vector<1x1x1x128xf32>
    %81 = vector.shape_cast %80 : vector<1x1x1x128xf32> to vector<1x128xf32>
    %82 = vector.shape_cast %81 : vector<1x128xf32> to vector<1x1x128xf32>
    %83 = vector.broadcast %82 : vector<1x1x128xf32> to vector<16x8x128xf32>
    %84 = arith.mulf %79, %83 : vector<16x8x128xf32>
    %85 = arith.addf %77, %84 : vector<16x8x128xf32>
    %c0_66 = arith.constant 0 : index
    %c19_67 = arith.constant 19 : index
    %c0_68 = arith.constant 0 : index
    %c0_69 = arith.constant 0 : index
    %86 = vector.load %arg1[%c0_66, %c19_67, %c0_68, %c0_69] : memref<1x54x8x128xf32, #tpu.memory_space<vmem>>, vector<1x16x8x128xf32>
    %87 = vector.shape_cast %86 : vector<1x16x8x128xf32> to vector<16x8x128xf32>
    %88 = vector.shape_cast %4 : vector<8x128xf32> to vector<1x8x128xf32>
    %89 = vector.broadcast %88 : vector<1x8x128xf32> to vector<16x8x128xf32>
    %90 = arith.mulf %87, %89 : vector<16x8x128xf32>
    %91 = arith.addf %90, %85 : vector<16x8x128xf32>
    %92 = vector.shape_cast %8 : vector<8x128xf32> to vector<1x8x128xf32>
    %93 = vector.broadcast %92 : vector<1x8x128xf32> to vector<16x8x128xf32>
    %94 = arith.addf %91, %93 : vector<16x8x128xf32>
    %95 = vector.extract_strided_slice %94 {offsets = [0, 0, 0], sizes = [16, 8, 64], strides = [1, 1, 1]} : vector<16x8x128xf32> to vector<16x8x64xf32>
    %96 = vector.extract_strided_slice %94 {offsets = [0, 0, 64], sizes = [16, 8, 64], strides = [1, 1, 1]} : vector<16x8x128xf32> to vector<16x8x64xf32>
    %cst_70 = arith.constant 0.000000e+00 : f32
    %97 = vector.broadcast %cst_70 : f32 to vector<3x8x128xf32>
    %cst_71 = arith.constant 0.000000e+00 : f32
    %98 = vector.broadcast %cst_71 : f32 to vector<16x2x64xf32>
    %99 = vector.extract_strided_slice %96 {offsets = [0, 0, 0], sizes = [16, 6, 64], strides = [1, 1, 1]} : vector<16x8x64xf32> to vector<16x6x64xf32>
    %100 = tpu.concatenate %98, %99 in 1 : vector<16x2x64xf32>, vector<16x6x64xf32> -> vector<16x8x64xf32>
    %cst_72 = arith.constant 0.000000e+00 : f32
    %101 = vector.broadcast %cst_72 : f32 to vector<16x1x64xf32>
    %102 = vector.extract_strided_slice %95 {offsets = [0, 0, 0], sizes = [16, 7, 64], strides = [1, 1, 1]} : vector<16x8x64xf32> to vector<16x7x64xf32>
    %103 = tpu.concatenate %101, %102 in 1 : vector<16x1x64xf32>, vector<16x7x64xf32> -> vector<16x8x64xf32>
    %104 = tpu.concatenate %100, %103 in 2 : vector<16x8x64xf32>, vector<16x8x64xf32> -> vector<16x8x128xf32>
    %c0_73 = arith.constant 0 : index
    %c0_74 = arith.constant 0 : index
    %c0_75 = arith.constant 0 : index
    %c0_76 = arith.constant 0 : index
    %105 = vector.load %arg9[%c0_73, %c0_74, %c0_75, %c0_76] : memref<7x22x8x128xf32, #tpu.memory_space<vmem>>, vector<1x3x8x128xf32>
    %106 = vector.shape_cast %105 : vector<1x3x8x128xf32> to vector<3x8x128xf32>
    %107 = vector.shape_cast %97 : vector<3x8x128xf32> to vector<1x3x8x128xf32>
    tpu.vector_store %arg9[%c0_73, %c0_74, %c0_75, %c0_76], %107 {strides = array<i32>} : memref<7x22x8x128xf32, #tpu.memory_space<vmem>>, vector<1x3x8x128xf32>,
    %c0_77 = arith.constant 0 : index
    %c3 = arith.constant 3 : index
    %c0_78 = arith.constant 0 : index
    %c0_79 = arith.constant 0 : index
    %108 = vector.load %arg9[%c0_77, %c3, %c0_78, %c0_79] : memref<7x22x8x128xf32, #tpu.memory_space<vmem>>, vector<1x16x8x128xf32>
    %109 = vector.shape_cast %108 : vector<1x16x8x128xf32> to vector<16x8x128xf32>
    %110 = vector.shape_cast %104 : vector<16x8x128xf32> to vector<1x16x8x128xf32>
    tpu.vector_store %arg9[%c0_77, %c3, %c0_78, %c0_79], %110 {strides = array<i32>} : memref<7x22x8x128xf32, #tpu.memory_space<vmem>>, vector<1x16x8x128xf32>,
    %c0_80 = arith.constant 0 : index
    %c19_81 = arith.constant 19 : index
    %c0_82 = arith.constant 0 : index
    %c0_83 = arith.constant 0 : index
    %111 = vector.load %arg9[%c0_80, %c19_81, %c0_82, %c0_83] : memref<7x22x8x128xf32, #tpu.memory_space<vmem>>, vector<1x3x8x128xf32>
    %112 = vector.shape_cast %111 : vector<1x3x8x128xf32> to vector<3x8x128xf32>
    %113 = vector.shape_cast %97 : vector<3x8x128xf32> to vector<1x3x8x128xf32>
    tpu.vector_store %arg9[%c0_80, %c19_81, %c0_82, %c0_83], %113 {strides = array<i32>} : memref<7x22x8x128xf32, #tpu.memory_space<vmem>>, vector<1x3x8x128xf32>,
    %cst_84 = arith.constant 0.000000e+00 : f32
    %114 = vector.broadcast %cst_84 : f32 to vector<16x1x128xf32>
    %115 = vector.extract_strided_slice %94 {offsets = [0, 0, 0], sizes = [16, 7, 128], strides = [1, 1, 1]} : vector<16x8x128xf32> to vector<16x7x128xf32>
    %116 = tpu.concatenate %114, %115 in 1 : vector<16x1x128xf32>, vector<16x7x128xf32> -> vector<16x8x128xf32>
    %c1_85 = arith.constant 1 : index
    %c0_86 = arith.constant 0 : index
    %c0_87 = arith.constant 0 : index
    %c0_88 = arith.constant 0 : index
    %117 = vector.load %arg9[%c1_85, %c0_86, %c0_87, %c0_88] : memref<7x22x8x128xf32, #tpu.memory_space<vmem>>, vector<1x3x8x128xf32>
    %118 = vector.shape_cast %117 : vector<1x3x8x128xf32> to vector<3x8x128xf32>
    %119 = vector.shape_cast %97 : vector<3x8x128xf32> to vector<1x3x8x128xf32>
    tpu.vector_store %arg9[%c1_85, %c0_86, %c0_87, %c0_88], %119 {strides = array<i32>} : memref<7x22x8x128xf32, #tpu.memory_space<vmem>>, vector<1x3x8x128xf32>,
    %c1_89 = arith.constant 1 : index
    %c3_90 = arith.constant 3 : index
    %c0_91 = arith.constant 0 : index
    %c0_92 = arith.constant 0 : index
    %120 = vector.load %arg9[%c1_89, %c3_90, %c0_91, %c0_92] : memref<7x22x8x128xf32, #tpu.memory_space<vmem>>, vector<1x16x8x128xf32>
    %121 = vector.shape_cast %120 : vector<1x16x8x128xf32> to vector<16x8x128xf32>
    %122 = vector.shape_cast %116 : vector<16x8x128xf32> to vector<1x16x8x128xf32>
    tpu.vector_store %arg9[%c1_89, %c3_90, %c0_91, %c0_92], %122 {strides = array<i32>} : memref<7x22x8x128xf32, #tpu.memory_space<vmem>>, vector<1x16x8x128xf32>,
    %c1_93 = arith.constant 1 : index
    %c19_94 = arith.constant 19 : index
    %c0_95 = arith.constant 0 : index
    %c0_96 = arith.constant 0 : index
    %123 = vector.load %arg9[%c1_93, %c19_94, %c0_95, %c0_96] : memref<7x22x8x128xf32, #tpu.memory_space<vmem>>, vector<1x3x8x128xf32>
    %124 = vector.shape_cast %123 : vector<1x3x8x128xf32> to vector<3x8x128xf32>
    %125 = vector.shape_cast %97 : vector<3x8x128xf32> to vector<1x3x8x128xf32>
    tpu.vector_store %arg9[%c1_93, %c19_94, %c0_95, %c0_96], %125 {strides = array<i32>} : memref<7x22x8x128xf32, #tpu.memory_space<vmem>>, vector<1x3x8x128xf32>,
    %cst_97 = arith.constant 0.000000e+00 : f32
    %126 = vector.broadcast %cst_97 : f32 to vector<16x1x64xf32>
    %127 = vector.extract_strided_slice %96 {offsets = [0, 0, 0], sizes = [16, 7, 64], strides = [1, 1, 1]} : vector<16x8x64xf32> to vector<16x7x64xf32>
    %128 = tpu.concatenate %126, %127 in 1 : vector<16x1x64xf32>, vector<16x7x64xf32> -> vector<16x8x64xf32>
    %129 = tpu.concatenate %128, %95 in 2 : vector<16x8x64xf32>, vector<16x8x64xf32> -> vector<16x8x128xf32>
    %c2_98 = arith.constant 2 : index
    %c0_99 = arith.constant 0 : index
    %c0_100 = arith.constant 0 : index
    %c0_101 = arith.constant 0 : index
    %130 = vector.load %arg9[%c2_98, %c0_99, %c0_100, %c0_101] : memref<7x22x8x128xf32, #tpu.memory_space<vmem>>, vector<1x3x8x128xf32>
    %131 = vector.shape_cast %130 : vector<1x3x8x128xf32> to vector<3x8x128xf32>
    %132 = vector.shape_cast %97 : vector<3x8x128xf32> to vector<1x3x8x128xf32>
    tpu.vector_store %arg9[%c2_98, %c0_99, %c0_100, %c0_101], %132 {strides = array<i32>} : memref<7x22x8x128xf32, #tpu.memory_space<vmem>>, vector<1x3x8x128xf32>,
    %c2_102 = arith.constant 2 : index
    %c3_103 = arith.constant 3 : index
    %c0_104 = arith.constant 0 : index
    %c0_105 = arith.constant 0 : index
    %133 = vector.load %arg9[%c2_102, %c3_103, %c0_104, %c0_105] : memref<7x22x8x128xf32, #tpu.memory_space<vmem>>, vector<1x16x8x128xf32>
    %134 = vector.shape_cast %133 : vector<1x16x8x128xf32> to vector<16x8x128xf32>
    %135 = vector.shape_cast %129 : vector<16x8x128xf32> to vector<1x16x8x128xf32>
    tpu.vector_store %arg9[%c2_102, %c3_103, %c0_104, %c0_105], %135 {strides = array<i32>} : memref<7x22x8x128xf32, #tpu.memory_space<vmem>>, vector<1x16x8x128xf32>,
    %c2_106 = arith.constant 2 : index
    %c19_107 = arith.constant 19 : index
    %c0_108 = arith.constant 0 : index
    %c0_109 = arith.constant 0 : index
    %136 = vector.load %arg9[%c2_106, %c19_107, %c0_108, %c0_109] : memref<7x22x8x128xf32, #tpu.memory_space<vmem>>, vector<1x3x8x128xf32>
    %137 = vector.shape_cast %136 : vector<1x3x8x128xf32> to vector<3x8x128xf32>
    %138 = vector.shape_cast %97 : vector<3x8x128xf32> to vector<1x3x8x128xf32>
    tpu.vector_store %arg9[%c2_106, %c19_107, %c0_108, %c0_109], %138 {strides = array<i32>} : memref<7x22x8x128xf32, #tpu.memory_space<vmem>>, vector<1x3x8x128xf32>,
    %c3_110 = arith.constant 3 : index
    %c0_111 = arith.constant 0 : index
    %c0_112 = arith.constant 0 : index
    %c0_113 = arith.constant 0 : index
    %139 = vector.load %arg9[%c3_110, %c0_111, %c0_112, %c0_113] : memref<7x22x8x128xf32, #tpu.memory_space<vmem>>, vector<1x3x8x128xf32>
    %140 = vector.shape_cast %139 : vector<1x3x8x128xf32> to vector<3x8x128xf32>
    %141 = vector.shape_cast %97 : vector<3x8x128xf32> to vector<1x3x8x128xf32>
    tpu.vector_store %arg9[%c3_110, %c0_111, %c0_112, %c0_113], %141 {strides = array<i32>} : memref<7x22x8x128xf32, #tpu.memory_space<vmem>>, vector<1x3x8x128xf32>,
    %c3_114 = arith.constant 3 : index
    %c3_115 = arith.constant 3 : index
    %c0_116 = arith.constant 0 : index
    %c0_117 = arith.constant 0 : index
    %142 = vector.load %arg9[%c3_114, %c3_115, %c0_116, %c0_117] : memref<7x22x8x128xf32, #tpu.memory_space<vmem>>, vector<1x16x8x128xf32>
    %143 = vector.shape_cast %142 : vector<1x16x8x128xf32> to vector<16x8x128xf32>
    %144 = vector.shape_cast %94 : vector<16x8x128xf32> to vector<1x16x8x128xf32>
    tpu.vector_store %arg9[%c3_114, %c3_115, %c0_116, %c0_117], %144 {strides = array<i32>} : memref<7x22x8x128xf32, #tpu.memory_space<vmem>>, vector<1x16x8x128xf32>,
    %c3_118 = arith.constant 3 : index
    %c19_119 = arith.constant 19 : index
    %c0_120 = arith.constant 0 : index
    %c0_121 = arith.constant 0 : index
    %145 = vector.load %arg9[%c3_118, %c19_119, %c0_120, %c0_121] : memref<7x22x8x128xf32, #tpu.memory_space<vmem>>, vector<1x3x8x128xf32>
    %146 = vector.shape_cast %145 : vector<1x3x8x128xf32> to vector<3x8x128xf32>
    %147 = vector.shape_cast %97 : vector<3x8x128xf32> to vector<1x3x8x128xf32>
    tpu.vector_store %arg9[%c3_118, %c19_119, %c0_120, %c0_121], %147 {strides = array<i32>} : memref<7x22x8x128xf32, #tpu.memory_space<vmem>>, vector<1x3x8x128xf32>,
    %cst_122 = arith.constant 0.000000e+00 : f32
    %148 = vector.broadcast %cst_122 : f32 to vector<16x1x64xf32>
    %149 = vector.extract_strided_slice %95 {offsets = [0, 1, 0], sizes = [16, 7, 64], strides = [1, 1, 1]} : vector<16x8x64xf32> to vector<16x7x64xf32>
    %150 = tpu.concatenate %149, %148 in 1 : vector<16x7x64xf32>, vector<16x1x64xf32> -> vector<16x8x64xf32>
    %151 = tpu.concatenate %96, %150 in 2 : vector<16x8x64xf32>, vector<16x8x64xf32> -> vector<16x8x128xf32>
    %c4 = arith.constant 4 : index
    %c0_123 = arith.constant 0 : index
    %c0_124 = arith.constant 0 : index
    %c0_125 = arith.constant 0 : index
    %152 = vector.load %arg9[%c4, %c0_123, %c0_124, %c0_125] : memref<7x22x8x128xf32, #tpu.memory_space<vmem>>, vector<1x3x8x128xf32>
    %153 = vector.shape_cast %152 : vector<1x3x8x128xf32> to vector<3x8x128xf32>
    %154 = vector.shape_cast %97 : vector<3x8x128xf32> to vector<1x3x8x128xf32>
    tpu.vector_store %arg9[%c4, %c0_123, %c0_124, %c0_125], %154 {strides = array<i32>} : memref<7x22x8x128xf32, #tpu.memory_space<vmem>>, vector<1x3x8x128xf32>,
    %c4_126 = arith.constant 4 : index
    %c3_127 = arith.constant 3 : index
    %c0_128 = arith.constant 0 : index
    %c0_129 = arith.constant 0 : index
    %155 = vector.load %arg9[%c4_126, %c3_127, %c0_128, %c0_129] : memref<7x22x8x128xf32, #tpu.memory_space<vmem>>, vector<1x16x8x128xf32>
    %156 = vector.shape_cast %155 : vector<1x16x8x128xf32> to vector<16x8x128xf32>
    %157 = vector.shape_cast %151 : vector<16x8x128xf32> to vector<1x16x8x128xf32>
    tpu.vector_store %arg9[%c4_126, %c3_127, %c0_128, %c0_129], %157 {strides = array<i32>} : memref<7x22x8x128xf32, #tpu.memory_space<vmem>>, vector<1x16x8x128xf32>,
    %c4_130 = arith.constant 4 : index
    %c19_131 = arith.constant 19 : index
    %c0_132 = arith.constant 0 : index
    %c0_133 = arith.constant 0 : index
    %158 = vector.load %arg9[%c4_130, %c19_131, %c0_132, %c0_133] : memref<7x22x8x128xf32, #tpu.memory_space<vmem>>, vector<1x3x8x128xf32>
    %159 = vector.shape_cast %158 : vector<1x3x8x128xf32> to vector<3x8x128xf32>
    %160 = vector.shape_cast %97 : vector<3x8x128xf32> to vector<1x3x8x128xf32>
    tpu.vector_store %arg9[%c4_130, %c19_131, %c0_132, %c0_133], %160 {strides = array<i32>} : memref<7x22x8x128xf32, #tpu.memory_space<vmem>>, vector<1x3x8x128xf32>,
    %cst_134 = arith.constant 0.000000e+00 : f32
    %161 = vector.broadcast %cst_134 : f32 to vector<16x1x128xf32>
    %162 = vector.extract_strided_slice %94 {offsets = [0, 1, 0], sizes = [16, 7, 128], strides = [1, 1, 1]} : vector<16x8x128xf32> to vector<16x7x128xf32>
    %163 = tpu.concatenate %162, %161 in 1 : vector<16x7x128xf32>, vector<16x1x128xf32> -> vector<16x8x128xf32>
    %c5 = arith.constant 5 : index
    %c0_135 = arith.constant 0 : index
    %c0_136 = arith.constant 0 : index
    %c0_137 = arith.constant 0 : index
    %164 = vector.load %arg9[%c5, %c0_135, %c0_136, %c0_137] : memref<7x22x8x128xf32, #tpu.memory_space<vmem>>, vector<1x3x8x128xf32>
    %165 = vector.shape_cast %164 : vector<1x3x8x128xf32> to vector<3x8x128xf32>
    %166 = vector.shape_cast %97 : vector<3x8x128xf32> to vector<1x3x8x128xf32>
    tpu.vector_store %arg9[%c5, %c0_135, %c0_136, %c0_137], %166 {strides = array<i32>} : memref<7x22x8x128xf32, #tpu.memory_space<vmem>>, vector<1x3x8x128xf32>,
    %c5_138 = arith.constant 5 : index
    %c3_139 = arith.constant 3 : index
    %c0_140 = arith.constant 0 : index
    %c0_141 = arith.constant 0 : index
    %167 = vector.load %arg9[%c5_138, %c3_139, %c0_140, %c0_141] : memref<7x22x8x128xf32, #tpu.memory_space<vmem>>, vector<1x16x8x128xf32>
    %168 = vector.shape_cast %167 : vector<1x16x8x128xf32> to vector<16x8x128xf32>
    %169 = vector.shape_cast %163 : vector<16x8x128xf32> to vector<1x16x8x128xf32>
    tpu.vector_store %arg9[%c5_138, %c3_139, %c0_140, %c0_141], %169 {strides = array<i32>} : memref<7x22x8x128xf32, #tpu.memory_space<vmem>>, vector<1x16x8x128xf32>,
    %c5_142 = arith.constant 5 : index
    %c19_143 = arith.constant 19 : index
    %c0_144 = arith.constant 0 : index
    %c0_145 = arith.constant 0 : index
    %170 = vector.load %arg9[%c5_142, %c19_143, %c0_144, %c0_145] : memref<7x22x8x128xf32, #tpu.memory_space<vmem>>, vector<1x3x8x128xf32>
    %171 = vector.shape_cast %170 : vector<1x3x8x128xf32> to vector<3x8x128xf32>
    %172 = vector.shape_cast %97 : vector<3x8x128xf32> to vector<1x3x8x128xf32>
    tpu.vector_store %arg9[%c5_142, %c19_143, %c0_144, %c0_145], %172 {strides = array<i32>} : memref<7x22x8x128xf32, #tpu.memory_space<vmem>>, vector<1x3x8x128xf32>,
    %cst_146 = arith.constant 0.000000e+00 : f32
    %173 = vector.broadcast %cst_146 : f32 to vector<16x1x64xf32>
    %174 = vector.extract_strided_slice %96 {offsets = [0, 1, 0], sizes = [16, 7, 64], strides = [1, 1, 1]} : vector<16x8x64xf32> to vector<16x7x64xf32>
    %175 = tpu.concatenate %174, %173 in 1 : vector<16x7x64xf32>, vector<16x1x64xf32> -> vector<16x8x64xf32>
    %cst_147 = arith.constant 0.000000e+00 : f32
    %176 = vector.broadcast %cst_147 : f32 to vector<16x2x64xf32>
    %177 = vector.extract_strided_slice %95 {offsets = [0, 2, 0], sizes = [16, 6, 64], strides = [1, 1, 1]} : vector<16x8x64xf32> to vector<16x6x64xf32>
    %178 = tpu.concatenate %177, %176 in 1 : vector<16x6x64xf32>, vector<16x2x64xf32> -> vector<16x8x64xf32>
    %179 = tpu.concatenate %175, %178 in 2 : vector<16x8x64xf32>, vector<16x8x64xf32> -> vector<16x8x128xf32>
    %c6 = arith.constant 6 : index
    %c0_148 = arith.constant 0 : index
    %c0_149 = arith.constant 0 : index
    %c0_150 = arith.constant 0 : index
    %180 = vector.load %arg9[%c6, %c0_148, %c0_149, %c0_150] : memref<7x22x8x128xf32, #tpu.memory_space<vmem>>, vector<1x3x8x128xf32>
    %181 = vector.shape_cast %180 : vector<1x3x8x128xf32> to vector<3x8x128xf32>
    %182 = vector.shape_cast %97 : vector<3x8x128xf32> to vector<1x3x8x128xf32>
    tpu.vector_store %arg9[%c6, %c0_148, %c0_149, %c0_150], %182 {strides = array<i32>} : memref<7x22x8x128xf32, #tpu.memory_space<vmem>>, vector<1x3x8x128xf32>,
    %c6_151 = arith.constant 6 : index
    %c3_152 = arith.constant 3 : index
    %c0_153 = arith.constant 0 : index
    %c0_154 = arith.constant 0 : index
    %183 = vector.load %arg9[%c6_151, %c3_152, %c0_153, %c0_154] : memref<7x22x8x128xf32, #tpu.memory_space<vmem>>, vector<1x16x8x128xf32>
    %184 = vector.shape_cast %183 : vector<1x16x8x128xf32> to vector<16x8x128xf32>
    %185 = vector.shape_cast %179 : vector<16x8x128xf32> to vector<1x16x8x128xf32>
    tpu.vector_store %arg9[%c6_151, %c3_152, %c0_153, %c0_154], %185 {strides = array<i32>} : memref<7x22x8x128xf32, #tpu.memory_space<vmem>>, vector<1x16x8x128xf32>,
    %c6_155 = arith.constant 6 : index
    %c19_156 = arith.constant 19 : index
    %c0_157 = arith.constant 0 : index
    %c0_158 = arith.constant 0 : index
    %186 = vector.load %arg9[%c6_155, %c19_156, %c0_157, %c0_158] : memref<7x22x8x128xf32, #tpu.memory_space<vmem>>, vector<1x3x8x128xf32>
    %187 = vector.shape_cast %186 : vector<1x3x8x128xf32> to vector<3x8x128xf32>
    %188 = vector.shape_cast %97 : vector<3x8x128xf32> to vector<1x3x8x128xf32>
    tpu.vector_store %arg9[%c6_155, %c19_156, %c0_157, %c0_158], %188 {strides = array<i32>} : memref<7x22x8x128xf32, #tpu.memory_space<vmem>>, vector<1x3x8x128xf32>,
    %cst_159 = arith.constant 0.000000e+00 : f32
    %189 = vector.broadcast %cst_159 : f32 to vector<16x8x128xf32>
    %c0_160 = arith.constant 0 : index
    %c0_161 = arith.constant 0 : index
    %c0_162 = arith.constant 0 : index
    %c0_163 = arith.constant 0 : index
    %190 = vector.load %arg9[%c0_160, %c0_161, %c0_162, %c0_163] : memref<7x22x8x128xf32, #tpu.memory_space<vmem>>, vector<1x16x8x128xf32>
    %191 = vector.shape_cast %190 : vector<1x16x8x128xf32> to vector<16x8x128xf32>
    %c0_164 = arith.constant 0 : index
    %c0_165 = arith.constant 0 : index
    %c0_166 = arith.constant 0 : index
    %c0_167 = arith.constant 0 : index
    %192 = vector.load %arg4[%c0_164, %c0_165, %c0_166, %c0_167] : memref<7x7x1x128xf32, #tpu.memory_space<vmem>>, vector<1x1x1x128xf32>
    %193 = vector.shape_cast %192 : vector<1x1x1x128xf32> to vector<1x128xf32>
    %194 = vector.shape_cast %193 : vector<1x128xf32> to vector<1x1x128xf32>
    %195 = vector.broadcast %194 : vector<1x1x128xf32> to vector<16x8x128xf32>
    %196 = arith.mulf %191, %195 : vector<16x8x128xf32>
    %197 = arith.addf %189, %196 : vector<16x8x128xf32>
    %c1_168 = arith.constant 1 : index
    %c0_169 = arith.constant 0 : index
    %c0_170 = arith.constant 0 : index
    %c0_171 = arith.constant 0 : index
    %198 = vector.load %arg9[%c1_168, %c0_169, %c0_170, %c0_171] : memref<7x22x8x128xf32, #tpu.memory_space<vmem>>, vector<1x16x8x128xf32>
    %199 = vector.shape_cast %198 : vector<1x16x8x128xf32> to vector<16x8x128xf32>
    %c0_172 = arith.constant 0 : index
    %c1_173 = arith.constant 1 : index
    %c0_174 = arith.constant 0 : index
    %c0_175 = arith.constant 0 : index
    %200 = vector.load %arg4[%c0_172, %c1_173, %c0_174, %c0_175] : memref<7x7x1x128xf32, #tpu.memory_space<vmem>>, vector<1x1x1x128xf32>
    %201 = vector.shape_cast %200 : vector<1x1x1x128xf32> to vector<1x128xf32>
    %202 = vector.shape_cast %201 : vector<1x128xf32> to vector<1x1x128xf32>
    %203 = vector.broadcast %202 : vector<1x1x128xf32> to vector<16x8x128xf32>
    %204 = arith.mulf %199, %203 : vector<16x8x128xf32>
    %205 = arith.addf %197, %204 : vector<16x8x128xf32>
    %c2_176 = arith.constant 2 : index
    %c0_177 = arith.constant 0 : index
    %c0_178 = arith.constant 0 : index
    %c0_179 = arith.constant 0 : index
    %206 = vector.load %arg9[%c2_176, %c0_177, %c0_178, %c0_179] : memref<7x22x8x128xf32, #tpu.memory_space<vmem>>, vector<1x16x8x128xf32>
    %207 = vector.shape_cast %206 : vector<1x16x8x128xf32> to vector<16x8x128xf32>
    %c0_180 = arith.constant 0 : index
    %c2_181 = arith.constant 2 : index
    %c0_182 = arith.constant 0 : index
    %c0_183 = arith.constant 0 : index
    %208 = vector.load %arg4[%c0_180, %c2_181, %c0_182, %c0_183] : memref<7x7x1x128xf32, #tpu.memory_space<vmem>>, vector<1x1x1x128xf32>
    %209 = vector.shape_cast %208 : vector<1x1x1x128xf32> to vector<1x128xf32>
    %210 = vector.shape_cast %209 : vector<1x128xf32> to vector<1x1x128xf32>
    %211 = vector.broadcast %210 : vector<1x1x128xf32> to vector<16x8x128xf32>
    %212 = arith.mulf %207, %211 : vector<16x8x128xf32>
    %213 = arith.addf %205, %212 : vector<16x8x128xf32>
    %c3_184 = arith.constant 3 : index
    %c0_185 = arith.constant 0 : index
    %c0_186 = arith.constant 0 : index
    %c0_187 = arith.constant 0 : index
    %214 = vector.load %arg9[%c3_184, %c0_185, %c0_186, %c0_187] : memref<7x22x8x128xf32, #tpu.memory_space<vmem>>, vector<1x16x8x128xf32>
    %215 = vector.shape_cast %214 : vector<1x16x8x128xf32> to vector<16x8x128xf32>
    %c0_188 = arith.constant 0 : index
    %c3_189 = arith.constant 3 : index
    %c0_190 = arith.constant 0 : index
    %c0_191 = arith.constant 0 : index
    %216 = vector.load %arg4[%c0_188, %c3_189, %c0_190, %c0_191] : memref<7x7x1x128xf32, #tpu.memory_space<vmem>>, vector<1x1x1x128xf32>
    %217 = vector.shape_cast %216 : vector<1x1x1x128xf32> to vector<1x128xf32>
    %218 = vector.shape_cast %217 : vector<1x128xf32> to vector<1x1x128xf32>
    %219 = vector.broadcast %218 : vector<1x1x128xf32> to vector<16x8x128xf32>
    %220 = arith.mulf %215, %219 : vector<16x8x128xf32>
    %221 = arith.addf %213, %220 : vector<16x8x128xf32>
    %c4_192 = arith.constant 4 : index
    %c0_193 = arith.constant 0 : index
    %c0_194 = arith.constant 0 : index
    %c0_195 = arith.constant 0 : index
    %222 = vector.load %arg9[%c4_192, %c0_193, %c0_194, %c0_195] : memref<7x22x8x128xf32, #tpu.memory_space<vmem>>, vector<1x16x8x128xf32>
    %223 = vector.shape_cast %222 : vector<1x16x8x128xf32> to vector<16x8x128xf32>
    %c0_196 = arith.constant 0 : index
    %c4_197 = arith.constant 4 : index
    %c0_198 = arith.constant 0 : index
    %c0_199 = arith.constant 0 : index
    %224 = vector.load %arg4[%c0_196, %c4_197, %c0_198, %c0_199] : memref<7x7x1x128xf32, #tpu.memory_space<vmem>>, vector<1x1x1x128xf32>
    %225 = vector.shape_cast %224 : vector<1x1x1x128xf32> to vector<1x128xf32>
    %226 = vector.shape_cast %225 : vector<1x128xf32> to vector<1x1x128xf32>
    %227 = vector.broadcast %226 : vector<1x1x128xf32> to vector<16x8x128xf32>
    %228 = arith.mulf %223, %227 : vector<16x8x128xf32>
    %229 = arith.addf %221, %228 : vector<16x8x128xf32>
    %c5_200 = arith.constant 5 : index
    %c0_201 = arith.constant 0 : index
    %c0_202 = arith.constant 0 : index
    %c0_203 = arith.constant 0 : index
    %230 = vector.load %arg9[%c5_200, %c0_201, %c0_202, %c0_203] : memref<7x22x8x128xf32, #tpu.memory_space<vmem>>, vector<1x16x8x128xf32>
    %231 = vector.shape_cast %230 : vector<1x16x8x128xf32> to vector<16x8x128xf32>
    %c0_204 = arith.constant 0 : index
    %c5_205 = arith.constant 5 : index
    %c0_206 = arith.constant 0 : index
    %c0_207 = arith.constant 0 : index
    %232 = vector.load %arg4[%c0_204, %c5_205, %c0_206, %c0_207] : memref<7x7x1x128xf32, #tpu.memory_space<vmem>>, vector<1x1x1x128xf32>
    %233 = vector.shape_cast %232 : vector<1x1x1x128xf32> to vector<1x128xf32>
    %234 = vector.shape_cast %233 : vector<1x128xf32> to vector<1x1x128xf32>
    %235 = vector.broadcast %234 : vector<1x1x128xf32> to vector<16x8x128xf32>
    %236 = arith.mulf %231, %235 : vector<16x8x128xf32>
    %237 = arith.addf %229, %236 : vector<16x8x128xf32>
    %c6_208 = arith.constant 6 : index
    %c0_209 = arith.constant 0 : index
    %c0_210 = arith.constant 0 : index
    %c0_211 = arith.constant 0 : index
    %238 = vector.load %arg9[%c6_208, %c0_209, %c0_210, %c0_211] : memref<7x22x8x128xf32, #tpu.memory_space<vmem>>, vector<1x16x8x128xf32>
    %239 = vector.shape_cast %238 : vector<1x16x8x128xf32> to vector<16x8x128xf32>
    %c0_212 = arith.constant 0 : index
    %c6_213 = arith.constant 6 : index
    %c0_214 = arith.constant 0 : index
    %c0_215 = arith.constant 0 : index
    %240 = vector.load %arg4[%c0_212, %c6_213, %c0_214, %c0_215] : memref<7x7x1x128xf32, #tpu.memory_space<vmem>>, vector<1x1x1x128xf32>
    %241 = vector.shape_cast %240 : vector<1x1x1x128xf32> to vector<1x128xf32>
    %242 = vector.shape_cast %241 : vector<1x128xf32> to vector<1x1x128xf32>
    %243 = vector.broadcast %242 : vector<1x1x128xf32> to vector<16x8x128xf32>
    %244 = arith.mulf %239, %243 : vector<16x8x128xf32>
    %245 = arith.addf %237, %244 : vector<16x8x128xf32>
    %c0_216 = arith.constant 0 : index
    %c1_217 = arith.constant 1 : index
    %c0_218 = arith.constant 0 : index
    %c0_219 = arith.constant 0 : index
    %246 = vector.load %arg9[%c0_216, %c1_217, %c0_218, %c0_219] : memref<7x22x8x128xf32, #tpu.memory_space<vmem>>, vector<1x16x8x128xf32>
    %247 = vector.shape_cast %246 : vector<1x16x8x128xf32> to vector<16x8x128xf32>
    %c1_220 = arith.constant 1 : index
    %c0_221 = arith.constant 0 : index
    %c0_222 = arith.constant 0 : index
    %c0_223 = arith.constant 0 : index
    %248 = vector.load %arg4[%c1_220, %c0_221, %c0_222, %c0_223] : memref<7x7x1x128xf32, #tpu.memory_space<vmem>>, vector<1x1x1x128xf32>
    %249 = vector.shape_cast %248 : vector<1x1x1x128xf32> to vector<1x128xf32>
    %250 = vector.shape_cast %249 : vector<1x128xf32> to vector<1x1x128xf32>
    %251 = vector.broadcast %250 : vector<1x1x128xf32> to vector<16x8x128xf32>
    %252 = arith.mulf %247, %251 : vector<16x8x128xf32>
    %253 = arith.addf %245, %252 : vector<16x8x128xf32>
    %c1_224 = arith.constant 1 : index
    %c1_225 = arith.constant 1 : index
    %c0_226 = arith.constant 0 : index
    %c0_227 = arith.constant 0 : index
    %254 = vector.load %arg9[%c1_224, %c1_225, %c0_226, %c0_227] : memref<7x22x8x128xf32, #tpu.memory_space<vmem>>, vector<1x16x8x128xf32>
    %255 = vector.shape_cast %254 : vector<1x16x8x128xf32> to vector<16x8x128xf32>
    %c1_228 = arith.constant 1 : index
    %c1_229 = arith.constant 1 : index
    %c0_230 = arith.constant 0 : index
    %c0_231 = arith.constant 0 : index
    %256 = vector.load %arg4[%c1_228, %c1_229, %c0_230, %c0_231] : memref<7x7x1x128xf32, #tpu.memory_space<vmem>>, vector<1x1x1x128xf32>
    %257 = vector.shape_cast %256 : vector<1x1x1x128xf32> to vector<1x128xf32>
    %258 = vector.shape_cast %257 : vector<1x128xf32> to vector<1x1x128xf32>
    %259 = vector.broadcast %258 : vector<1x1x128xf32> to vector<16x8x128xf32>
    %260 = arith.mulf %255, %259 : vector<16x8x128xf32>
    %261 = arith.addf %253, %260 : vector<16x8x128xf32>
    %c2_232 = arith.constant 2 : index
    %c1_233 = arith.constant 1 : index
    %c0_234 = arith.constant 0 : index
    %c0_235 = arith.constant 0 : index
    %262 = vector.load %arg9[%c2_232, %c1_233, %c0_234, %c0_235] : memref<7x22x8x128xf32, #tpu.memory_space<vmem>>, vector<1x16x8x128xf32>
    %263 = vector.shape_cast %262 : vector<1x16x8x128xf32> to vector<16x8x128xf32>
    %c1_236 = arith.constant 1 : index
    %c2_237 = arith.constant 2 : index
    %c0_238 = arith.constant 0 : index
    %c0_239 = arith.constant 0 : index
    %264 = vector.load %arg4[%c1_236, %c2_237, %c0_238, %c0_239] : memref<7x7x1x128xf32, #tpu.memory_space<vmem>>, vector<1x1x1x128xf32>
    %265 = vector.shape_cast %264 : vector<1x1x1x128xf32> to vector<1x128xf32>
    %266 = vector.shape_cast %265 : vector<1x128xf32> to vector<1x1x128xf32>
    %267 = vector.broadcast %266 : vector<1x1x128xf32> to vector<16x8x128xf32>
    %268 = arith.mulf %263, %267 : vector<16x8x128xf32>
    %269 = arith.addf %261, %268 : vector<16x8x128xf32>
    %c3_240 = arith.constant 3 : index
    %c1_241 = arith.constant 1 : index
    %c0_242 = arith.constant 0 : index
    %c0_243 = arith.constant 0 : index
    %270 = vector.load %arg9[%c3_240, %c1_241, %c0_242, %c0_243] : memref<7x22x8x128xf32, #tpu.memory_space<vmem>>, vector<1x16x8x128xf32>
    %271 = vector.shape_cast %270 : vector<1x16x8x128xf32> to vector<16x8x128xf32>
    %c1_244 = arith.constant 1 : index
    %c3_245 = arith.constant 3 : index
    %c0_246 = arith.constant 0 : index
    %c0_247 = arith.constant 0 : index
    %272 = vector.load %arg4[%c1_244, %c3_245, %c0_246, %c0_247] : memref<7x7x1x128xf32, #tpu.memory_space<vmem>>, vector<1x1x1x128xf32>
    %273 = vector.shape_cast %272 : vector<1x1x1x128xf32> to vector<1x128xf32>
    %274 = vector.shape_cast %273 : vector<1x128xf32> to vector<1x1x128xf32>
    %275 = vector.broadcast %274 : vector<1x1x128xf32> to vector<16x8x128xf32>
    %276 = arith.mulf %271, %275 : vector<16x8x128xf32>
    %277 = arith.addf %269, %276 : vector<16x8x128xf32>
    %c4_248 = arith.constant 4 : index
    %c1_249 = arith.constant 1 : index
    %c0_250 = arith.constant 0 : index
    %c0_251 = arith.constant 0 : index
    %278 = vector.load %arg9[%c4_248, %c1_249, %c0_250, %c0_251] : memref<7x22x8x128xf32, #tpu.memory_space<vmem>>, vector<1x16x8x128xf32>
    %279 = vector.shape_cast %278 : vector<1x16x8x128xf32> to vector<16x8x128xf32>
    %c1_252 = arith.constant 1 : index
    %c4_253 = arith.constant 4 : index
    %c0_254 = arith.constant 0 : index
    %c0_255 = arith.constant 0 : index
    %280 = vector.load %arg4[%c1_252, %c4_253, %c0_254, %c0_255] : memref<7x7x1x128xf32, #tpu.memory_space<vmem>>, vector<1x1x1x128xf32>
    %281 = vector.shape_cast %280 : vector<1x1x1x128xf32> to vector<1x128xf32>
    %282 = vector.shape_cast %281 : vector<1x128xf32> to vector<1x1x128xf32>
    %283 = vector.broadcast %282 : vector<1x1x128xf32> to vector<16x8x128xf32>
    %284 = arith.mulf %279, %283 : vector<16x8x128xf32>
    %285 = arith.addf %277, %284 : vector<16x8x128xf32>
    %c5_256 = arith.constant 5 : index
    %c1_257 = arith.constant 1 : index
    %c0_258 = arith.constant 0 : index
    %c0_259 = arith.constant 0 : index
    %286 = vector.load %arg9[%c5_256, %c1_257, %c0_258, %c0_259] : memref<7x22x8x128xf32, #tpu.memory_space<vmem>>, vector<1x16x8x128xf32>
    %287 = vector.shape_cast %286 : vector<1x16x8x128xf32> to vector<16x8x128xf32>
    %c1_260 = arith.constant 1 : index
    %c5_261 = arith.constant 5 : index
    %c0_262 = arith.constant 0 : index
    %c0_263 = arith.constant 0 : index
    %288 = vector.load %arg4[%c1_260, %c5_261, %c0_262, %c0_263] : memref<7x7x1x128xf32, #tpu.memory_space<vmem>>, vector<1x1x1x128xf32>
    %289 = vector.shape_cast %288 : vector<1x1x1x128xf32> to vector<1x128xf32>
    %290 = vector.shape_cast %289 : vector<1x128xf32> to vector<1x1x128xf32>
    %291 = vector.broadcast %290 : vector<1x1x128xf32> to vector<16x8x128xf32>
    %292 = arith.mulf %287, %291 : vector<16x8x128xf32>
    %293 = arith.addf %285, %292 : vector<16x8x128xf32>
    %c6_264 = arith.constant 6 : index
    %c1_265 = arith.constant 1 : index
    %c0_266 = arith.constant 0 : index
    %c0_267 = arith.constant 0 : index
    %294 = vector.load %arg9[%c6_264, %c1_265, %c0_266, %c0_267] : memref<7x22x8x128xf32, #tpu.memory_space<vmem>>, vector<1x16x8x128xf32>
    %295 = vector.shape_cast %294 : vector<1x16x8x128xf32> to vector<16x8x128xf32>
    %c1_268 = arith.constant 1 : index
    %c6_269 = arith.constant 6 : index
    %c0_270 = arith.constant 0 : index
    %c0_271 = arith.constant 0 : index
    %296 = vector.load %arg4[%c1_268, %c6_269, %c0_270, %c0_271] : memref<7x7x1x128xf32, #tpu.memory_space<vmem>>, vector<1x1x1x128xf32>
    %297 = vector.shape_cast %296 : vector<1x1x1x128xf32> to vector<1x128xf32>
    %298 = vector.shape_cast %297 : vector<1x128xf32> to vector<1x1x128xf32>
    %299 = vector.broadcast %298 : vector<1x1x128xf32> to vector<16x8x128xf32>
    %300 = arith.mulf %295, %299 : vector<16x8x128xf32>
    %301 = arith.addf %293, %300 : vector<16x8x128xf32>
    %c0_272 = arith.constant 0 : index
    %c2_273 = arith.constant 2 : index
    %c0_274 = arith.constant 0 : index
    %c0_275 = arith.constant 0 : index
    %302 = vector.load %arg9[%c0_272, %c2_273, %c0_274, %c0_275] : memref<7x22x8x128xf32, #tpu.memory_space<vmem>>, vector<1x16x8x128xf32>
    %303 = vector.shape_cast %302 : vector<1x16x8x128xf32> to vector<16x8x128xf32>
    %c2_276 = arith.constant 2 : index
    %c0_277 = arith.constant 0 : index
    %c0_278 = arith.constant 0 : index
    %c0_279 = arith.constant 0 : index
    %304 = vector.load %arg4[%c2_276, %c0_277, %c0_278, %c0_279] : memref<7x7x1x128xf32, #tpu.memory_space<vmem>>, vector<1x1x1x128xf32>
    %305 = vector.shape_cast %304 : vector<1x1x1x128xf32> to vector<1x128xf32>
    %306 = vector.shape_cast %305 : vector<1x128xf32> to vector<1x1x128xf32>
    %307 = vector.broadcast %306 : vector<1x1x128xf32> to vector<16x8x128xf32>
    %308 = arith.mulf %303, %307 : vector<16x8x128xf32>
    %309 = arith.addf %301, %308 : vector<16x8x128xf32>
    %c1_280 = arith.constant 1 : index
    %c2_281 = arith.constant 2 : index
    %c0_282 = arith.constant 0 : index
    %c0_283 = arith.constant 0 : index
    %310 = vector.load %arg9[%c1_280, %c2_281, %c0_282, %c0_283] : memref<7x22x8x128xf32, #tpu.memory_space<vmem>>, vector<1x16x8x128xf32>
    %311 = vector.shape_cast %310 : vector<1x16x8x128xf32> to vector<16x8x128xf32>
    %c2_284 = arith.constant 2 : index
    %c1_285 = arith.constant 1 : index
    %c0_286 = arith.constant 0 : index
    %c0_287 = arith.constant 0 : index
    %312 = vector.load %arg4[%c2_284, %c1_285, %c0_286, %c0_287] : memref<7x7x1x128xf32, #tpu.memory_space<vmem>>, vector<1x1x1x128xf32>
    %313 = vector.shape_cast %312 : vector<1x1x1x128xf32> to vector<1x128xf32>
    %314 = vector.shape_cast %313 : vector<1x128xf32> to vector<1x1x128xf32>
    %315 = vector.broadcast %314 : vector<1x1x128xf32> to vector<16x8x128xf32>
    %316 = arith.mulf %311, %315 : vector<16x8x128xf32>
    %317 = arith.addf %309, %316 : vector<16x8x128xf32>
    %c2_288 = arith.constant 2 : index
    %c2_289 = arith.constant 2 : index
    %c0_290 = arith.constant 0 : index
    %c0_291 = arith.constant 0 : index
    %318 = vector.load %arg9[%c2_288, %c2_289, %c0_290, %c0_291] : memref<7x22x8x128xf32, #tpu.memory_space<vmem>>, vector<1x16x8x128xf32>
    %319 = vector.shape_cast %318 : vector<1x16x8x128xf32> to vector<16x8x128xf32>
    %c2_292 = arith.constant 2 : index
    %c2_293 = arith.constant 2 : index
    %c0_294 = arith.constant 0 : index
    %c0_295 = arith.constant 0 : index
    %320 = vector.load %arg4[%c2_292, %c2_293, %c0_294, %c0_295] : memref<7x7x1x128xf32, #tpu.memory_space<vmem>>, vector<1x1x1x128xf32>
    %321 = vector.shape_cast %320 : vector<1x1x1x128xf32> to vector<1x128xf32>
    %322 = vector.shape_cast %321 : vector<1x128xf32> to vector<1x1x128xf32>
    %323 = vector.broadcast %322 : vector<1x1x128xf32> to vector<16x8x128xf32>
    %324 = arith.mulf %319, %323 : vector<16x8x128xf32>
    %325 = arith.addf %317, %324 : vector<16x8x128xf32>
    %c3_296 = arith.constant 3 : index
    %c2_297 = arith.constant 2 : index
    %c0_298 = arith.constant 0 : index
    %c0_299 = arith.constant 0 : index
    %326 = vector.load %arg9[%c3_296, %c2_297, %c0_298, %c0_299] : memref<7x22x8x128xf32, #tpu.memory_space<vmem>>, vector<1x16x8x128xf32>
    %327 = vector.shape_cast %326 : vector<1x16x8x128xf32> to vector<16x8x128xf32>
    %c2_300 = arith.constant 2 : index
    %c3_301 = arith.constant 3 : index
    %c0_302 = arith.constant 0 : index
    %c0_303 = arith.constant 0 : index
    %328 = vector.load %arg4[%c2_300, %c3_301, %c0_302, %c0_303] : memref<7x7x1x128xf32, #tpu.memory_space<vmem>>, vector<1x1x1x128xf32>
    %329 = vector.shape_cast %328 : vector<1x1x1x128xf32> to vector<1x128xf32>
    %330 = vector.shape_cast %329 : vector<1x128xf32> to vector<1x1x128xf32>
    %331 = vector.broadcast %330 : vector<1x1x128xf32> to vector<16x8x128xf32>
    %332 = arith.mulf %327, %331 : vector<16x8x128xf32>
    %333 = arith.addf %325, %332 : vector<16x8x128xf32>
    %c4_304 = arith.constant 4 : index
    %c2_305 = arith.constant 2 : index
    %c0_306 = arith.constant 0 : index
    %c0_307 = arith.constant 0 : index
    %334 = vector.load %arg9[%c4_304, %c2_305, %c0_306, %c0_307] : memref<7x22x8x128xf32, #tpu.memory_space<vmem>>, vector<1x16x8x128xf32>
    %335 = vector.shape_cast %334 : vector<1x16x8x128xf32> to vector<16x8x128xf32>
    %c2_308 = arith.constant 2 : index
    %c4_309 = arith.constant 4 : index
    %c0_310 = arith.constant 0 : index
    %c0_311 = arith.constant 0 : index
    %336 = vector.load %arg4[%c2_308, %c4_309, %c0_310, %c0_311] : memref<7x7x1x128xf32, #tpu.memory_space<vmem>>, vector<1x1x1x128xf32>
    %337 = vector.shape_cast %336 : vector<1x1x1x128xf32> to vector<1x128xf32>
    %338 = vector.shape_cast %337 : vector<1x128xf32> to vector<1x1x128xf32>
    %339 = vector.broadcast %338 : vector<1x1x128xf32> to vector<16x8x128xf32>
    %340 = arith.mulf %335, %339 : vector<16x8x128xf32>
    %341 = arith.addf %333, %340 : vector<16x8x128xf32>
    %c5_312 = arith.constant 5 : index
    %c2_313 = arith.constant 2 : index
    %c0_314 = arith.constant 0 : index
    %c0_315 = arith.constant 0 : index
    %342 = vector.load %arg9[%c5_312, %c2_313, %c0_314, %c0_315] : memref<7x22x8x128xf32, #tpu.memory_space<vmem>>, vector<1x16x8x128xf32>
    %343 = vector.shape_cast %342 : vector<1x16x8x128xf32> to vector<16x8x128xf32>
    %c2_316 = arith.constant 2 : index
    %c5_317 = arith.constant 5 : index
    %c0_318 = arith.constant 0 : index
    %c0_319 = arith.constant 0 : index
    %344 = vector.load %arg4[%c2_316, %c5_317, %c0_318, %c0_319] : memref<7x7x1x128xf32, #tpu.memory_space<vmem>>, vector<1x1x1x128xf32>
    %345 = vector.shape_cast %344 : vector<1x1x1x128xf32> to vector<1x128xf32>
    %346 = vector.shape_cast %345 : vector<1x128xf32> to vector<1x1x128xf32>
    %347 = vector.broadcast %346 : vector<1x1x128xf32> to vector<16x8x128xf32>
    %348 = arith.mulf %343, %347 : vector<16x8x128xf32>
    %349 = arith.addf %341, %348 : vector<16x8x128xf32>
    %c6_320 = arith.constant 6 : index
    %c2_321 = arith.constant 2 : index
    %c0_322 = arith.constant 0 : index
    %c0_323 = arith.constant 0 : index
    %350 = vector.load %arg9[%c6_320, %c2_321, %c0_322, %c0_323] : memref<7x22x8x128xf32, #tpu.memory_space<vmem>>, vector<1x16x8x128xf32>
    %351 = vector.shape_cast %350 : vector<1x16x8x128xf32> to vector<16x8x128xf32>
    %c2_324 = arith.constant 2 : index
    %c6_325 = arith.constant 6 : index
    %c0_326 = arith.constant 0 : index
    %c0_327 = arith.constant 0 : index
    %352 = vector.load %arg4[%c2_324, %c6_325, %c0_326, %c0_327] : memref<7x7x1x128xf32, #tpu.memory_space<vmem>>, vector<1x1x1x128xf32>
    %353 = vector.shape_cast %352 : vector<1x1x1x128xf32> to vector<1x128xf32>
    %354 = vector.shape_cast %353 : vector<1x128xf32> to vector<1x1x128xf32>
    %355 = vector.broadcast %354 : vector<1x1x128xf32> to vector<16x8x128xf32>
    %356 = arith.mulf %351, %355 : vector<16x8x128xf32>
    %357 = arith.addf %349, %356 : vector<16x8x128xf32>
    %c0_328 = arith.constant 0 : index
    %c3_329 = arith.constant 3 : index
    %c0_330 = arith.constant 0 : index
    %c0_331 = arith.constant 0 : index
    %358 = vector.load %arg9[%c0_328, %c3_329, %c0_330, %c0_331] : memref<7x22x8x128xf32, #tpu.memory_space<vmem>>, vector<1x16x8x128xf32>
    %359 = vector.shape_cast %358 : vector<1x16x8x128xf32> to vector<16x8x128xf32>
    %c3_332 = arith.constant 3 : index
    %c0_333 = arith.constant 0 : index
    %c0_334 = arith.constant 0 : index
    %c0_335 = arith.constant 0 : index
    %360 = vector.load %arg4[%c3_332, %c0_333, %c0_334, %c0_335] : memref<7x7x1x128xf32, #tpu.memory_space<vmem>>, vector<1x1x1x128xf32>
    %361 = vector.shape_cast %360 : vector<1x1x1x128xf32> to vector<1x128xf32>
    %362 = vector.shape_cast %361 : vector<1x128xf32> to vector<1x1x128xf32>
    %363 = vector.broadcast %362 : vector<1x1x128xf32> to vector<16x8x128xf32>
    %364 = arith.mulf %359, %363 : vector<16x8x128xf32>
    %365 = arith.addf %357, %364 : vector<16x8x128xf32>
    %c1_336 = arith.constant 1 : index
    %c3_337 = arith.constant 3 : index
    %c0_338 = arith.constant 0 : index
    %c0_339 = arith.constant 0 : index
    %366 = vector.load %arg9[%c1_336, %c3_337, %c0_338, %c0_339] : memref<7x22x8x128xf32, #tpu.memory_space<vmem>>, vector<1x16x8x128xf32>
    %367 = vector.shape_cast %366 : vector<1x16x8x128xf32> to vector<16x8x128xf32>
    %c3_340 = arith.constant 3 : index
    %c1_341 = arith.constant 1 : index
    %c0_342 = arith.constant 0 : index
    %c0_343 = arith.constant 0 : index
    %368 = vector.load %arg4[%c3_340, %c1_341, %c0_342, %c0_343] : memref<7x7x1x128xf32, #tpu.memory_space<vmem>>, vector<1x1x1x128xf32>
    %369 = vector.shape_cast %368 : vector<1x1x1x128xf32> to vector<1x128xf32>
    %370 = vector.shape_cast %369 : vector<1x128xf32> to vector<1x1x128xf32>
    %371 = vector.broadcast %370 : vector<1x1x128xf32> to vector<16x8x128xf32>
    %372 = arith.mulf %367, %371 : vector<16x8x128xf32>
    %373 = arith.addf %365, %372 : vector<16x8x128xf32>
    %c2_344 = arith.constant 2 : index
    %c3_345 = arith.constant 3 : index
    %c0_346 = arith.constant 0 : index
    %c0_347 = arith.constant 0 : index
    %374 = vector.load %arg9[%c2_344, %c3_345, %c0_346, %c0_347] : memref<7x22x8x128xf32, #tpu.memory_space<vmem>>, vector<1x16x8x128xf32>
    %375 = vector.shape_cast %374 : vector<1x16x8x128xf32> to vector<16x8x128xf32>
    %c3_348 = arith.constant 3 : index
    %c2_349 = arith.constant 2 : index
    %c0_350 = arith.constant 0 : index
    %c0_351 = arith.constant 0 : index
    %376 = vector.load %arg4[%c3_348, %c2_349, %c0_350, %c0_351] : memref<7x7x1x128xf32, #tpu.memory_space<vmem>>, vector<1x1x1x128xf32>
    %377 = vector.shape_cast %376 : vector<1x1x1x128xf32> to vector<1x128xf32>
    %378 = vector.shape_cast %377 : vector<1x128xf32> to vector<1x1x128xf32>
    %379 = vector.broadcast %378 : vector<1x1x128xf32> to vector<16x8x128xf32>
    %380 = arith.mulf %375, %379 : vector<16x8x128xf32>
    %381 = arith.addf %373, %380 : vector<16x8x128xf32>
    %c3_352 = arith.constant 3 : index
    %c3_353 = arith.constant 3 : index
    %c0_354 = arith.constant 0 : index
    %c0_355 = arith.constant 0 : index
    %382 = vector.load %arg9[%c3_352, %c3_353, %c0_354, %c0_355] : memref<7x22x8x128xf32, #tpu.memory_space<vmem>>, vector<1x16x8x128xf32>
    %383 = vector.shape_cast %382 : vector<1x16x8x128xf32> to vector<16x8x128xf32>
    %c3_356 = arith.constant 3 : index
    %c3_357 = arith.constant 3 : index
    %c0_358 = arith.constant 0 : index
    %c0_359 = arith.constant 0 : index
    %384 = vector.load %arg4[%c3_356, %c3_357, %c0_358, %c0_359] : memref<7x7x1x128xf32, #tpu.memory_space<vmem>>, vector<1x1x1x128xf32>
    %385 = vector.shape_cast %384 : vector<1x1x1x128xf32> to vector<1x128xf32>
    %386 = vector.shape_cast %385 : vector<1x128xf32> to vector<1x1x128xf32>
    %387 = vector.broadcast %386 : vector<1x1x128xf32> to vector<16x8x128xf32>
    %388 = arith.mulf %383, %387 : vector<16x8x128xf32>
    %389 = arith.addf %381, %388 : vector<16x8x128xf32>
    %c4_360 = arith.constant 4 : index
    %c3_361 = arith.constant 3 : index
    %c0_362 = arith.constant 0 : index
    %c0_363 = arith.constant 0 : index
    %390 = vector.load %arg9[%c4_360, %c3_361, %c0_362, %c0_363] : memref<7x22x8x128xf32, #tpu.memory_space<vmem>>, vector<1x16x8x128xf32>
    %391 = vector.shape_cast %390 : vector<1x16x8x128xf32> to vector<16x8x128xf32>
    %c3_364 = arith.constant 3 : index
    %c4_365 = arith.constant 4 : index
    %c0_366 = arith.constant 0 : index
    %c0_367 = arith.constant 0 : index
    %392 = vector.load %arg4[%c3_364, %c4_365, %c0_366, %c0_367] : memref<7x7x1x128xf32, #tpu.memory_space<vmem>>, vector<1x1x1x128xf32>
    %393 = vector.shape_cast %392 : vector<1x1x1x128xf32> to vector<1x128xf32>
    %394 = vector.shape_cast %393 : vector<1x128xf32> to vector<1x1x128xf32>
    %395 = vector.broadcast %394 : vector<1x1x128xf32> to vector<16x8x128xf32>
    %396 = arith.mulf %391, %395 : vector<16x8x128xf32>
    %397 = arith.addf %389, %396 : vector<16x8x128xf32>
    %c5_368 = arith.constant 5 : index
    %c3_369 = arith.constant 3 : index
    %c0_370 = arith.constant 0 : index
    %c0_371 = arith.constant 0 : index
    %398 = vector.load %arg9[%c5_368, %c3_369, %c0_370, %c0_371] : memref<7x22x8x128xf32, #tpu.memory_space<vmem>>, vector<1x16x8x128xf32>
    %399 = vector.shape_cast %398 : vector<1x16x8x128xf32> to vector<16x8x128xf32>
    %c3_372 = arith.constant 3 : index
    %c5_373 = arith.constant 5 : index
    %c0_374 = arith.constant 0 : index
    %c0_375 = arith.constant 0 : index
    %400 = vector.load %arg4[%c3_372, %c5_373, %c0_374, %c0_375] : memref<7x7x1x128xf32, #tpu.memory_space<vmem>>, vector<1x1x1x128xf32>
    %401 = vector.shape_cast %400 : vector<1x1x1x128xf32> to vector<1x128xf32>
    %402 = vector.shape_cast %401 : vector<1x128xf32> to vector<1x1x128xf32>
    %403 = vector.broadcast %402 : vector<1x1x128xf32> to vector<16x8x128xf32>
    %404 = arith.mulf %399, %403 : vector<16x8x128xf32>
    %405 = arith.addf %397, %404 : vector<16x8x128xf32>
    %c6_376 = arith.constant 6 : index
    %c3_377 = arith.constant 3 : index
    %c0_378 = arith.constant 0 : index
    %c0_379 = arith.constant 0 : index
    %406 = vector.load %arg9[%c6_376, %c3_377, %c0_378, %c0_379] : memref<7x22x8x128xf32, #tpu.memory_space<vmem>>, vector<1x16x8x128xf32>
    %407 = vector.shape_cast %406 : vector<1x16x8x128xf32> to vector<16x8x128xf32>
    %c3_380 = arith.constant 3 : index
    %c6_381 = arith.constant 6 : index
    %c0_382 = arith.constant 0 : index
    %c0_383 = arith.constant 0 : index
    %408 = vector.load %arg4[%c3_380, %c6_381, %c0_382, %c0_383] : memref<7x7x1x128xf32, #tpu.memory_space<vmem>>, vector<1x1x1x128xf32>
    %409 = vector.shape_cast %408 : vector<1x1x1x128xf32> to vector<1x128xf32>
    %410 = vector.shape_cast %409 : vector<1x128xf32> to vector<1x1x128xf32>
    %411 = vector.broadcast %410 : vector<1x1x128xf32> to vector<16x8x128xf32>
    %412 = arith.mulf %407, %411 : vector<16x8x128xf32>
    %413 = arith.addf %405, %412 : vector<16x8x128xf32>
    %c0_384 = arith.constant 0 : index
    %c4_385 = arith.constant 4 : index
    %c0_386 = arith.constant 0 : index
    %c0_387 = arith.constant 0 : index
    %414 = vector.load %arg9[%c0_384, %c4_385, %c0_386, %c0_387] : memref<7x22x8x128xf32, #tpu.memory_space<vmem>>, vector<1x16x8x128xf32>
    %415 = vector.shape_cast %414 : vector<1x16x8x128xf32> to vector<16x8x128xf32>
    %c4_388 = arith.constant 4 : index
    %c0_389 = arith.constant 0 : index
    %c0_390 = arith.constant 0 : index
    %c0_391 = arith.constant 0 : index
    %416 = vector.load %arg4[%c4_388, %c0_389, %c0_390, %c0_391] : memref<7x7x1x128xf32, #tpu.memory_space<vmem>>, vector<1x1x1x128xf32>
    %417 = vector.shape_cast %416 : vector<1x1x1x128xf32> to vector<1x128xf32>
    %418 = vector.shape_cast %417 : vector<1x128xf32> to vector<1x1x128xf32>
    %419 = vector.broadcast %418 : vector<1x1x128xf32> to vector<16x8x128xf32>
    %420 = arith.mulf %415, %419 : vector<16x8x128xf32>
    %421 = arith.addf %413, %420 : vector<16x8x128xf32>
    %c1_392 = arith.constant 1 : index
    %c4_393 = arith.constant 4 : index
    %c0_394 = arith.constant 0 : index
    %c0_395 = arith.constant 0 : index
    %422 = vector.load %arg9[%c1_392, %c4_393, %c0_394, %c0_395] : memref<7x22x8x128xf32, #tpu.memory_space<vmem>>, vector<1x16x8x128xf32>
    %423 = vector.shape_cast %422 : vector<1x16x8x128xf32> to vector<16x8x128xf32>
    %c4_396 = arith.constant 4 : index
    %c1_397 = arith.constant 1 : index
    %c0_398 = arith.constant 0 : index
    %c0_399 = arith.constant 0 : index
    %424 = vector.load %arg4[%c4_396, %c1_397, %c0_398, %c0_399] : memref<7x7x1x128xf32, #tpu.memory_space<vmem>>, vector<1x1x1x128xf32>
    %425 = vector.shape_cast %424 : vector<1x1x1x128xf32> to vector<1x128xf32>
    %426 = vector.shape_cast %425 : vector<1x128xf32> to vector<1x1x128xf32>
    %427 = vector.broadcast %426 : vector<1x1x128xf32> to vector<16x8x128xf32>
    %428 = arith.mulf %423, %427 : vector<16x8x128xf32>
    %429 = arith.addf %421, %428 : vector<16x8x128xf32>
    %c2_400 = arith.constant 2 : index
    %c4_401 = arith.constant 4 : index
    %c0_402 = arith.constant 0 : index
    %c0_403 = arith.constant 0 : index
    %430 = vector.load %arg9[%c2_400, %c4_401, %c0_402, %c0_403] : memref<7x22x8x128xf32, #tpu.memory_space<vmem>>, vector<1x16x8x128xf32>
    %431 = vector.shape_cast %430 : vector<1x16x8x128xf32> to vector<16x8x128xf32>
    %c4_404 = arith.constant 4 : index
    %c2_405 = arith.constant 2 : index
    %c0_406 = arith.constant 0 : index
    %c0_407 = arith.constant 0 : index
    %432 = vector.load %arg4[%c4_404, %c2_405, %c0_406, %c0_407] : memref<7x7x1x128xf32, #tpu.memory_space<vmem>>, vector<1x1x1x128xf32>
    %433 = vector.shape_cast %432 : vector<1x1x1x128xf32> to vector<1x128xf32>
    %434 = vector.shape_cast %433 : vector<1x128xf32> to vector<1x1x128xf32>
    %435 = vector.broadcast %434 : vector<1x1x128xf32> to vector<16x8x128xf32>
    %436 = arith.mulf %431, %435 : vector<16x8x128xf32>
    %437 = arith.addf %429, %436 : vector<16x8x128xf32>
    %c3_408 = arith.constant 3 : index
    %c4_409 = arith.constant 4 : index
    %c0_410 = arith.constant 0 : index
    %c0_411 = arith.constant 0 : index
    %438 = vector.load %arg9[%c3_408, %c4_409, %c0_410, %c0_411] : memref<7x22x8x128xf32, #tpu.memory_space<vmem>>, vector<1x16x8x128xf32>
    %439 = vector.shape_cast %438 : vector<1x16x8x128xf32> to vector<16x8x128xf32>
    %c4_412 = arith.constant 4 : index
    %c3_413 = arith.constant 3 : index
    %c0_414 = arith.constant 0 : index
    %c0_415 = arith.constant 0 : index
    %440 = vector.load %arg4[%c4_412, %c3_413, %c0_414, %c0_415] : memref<7x7x1x128xf32, #tpu.memory_space<vmem>>, vector<1x1x1x128xf32>
    %441 = vector.shape_cast %440 : vector<1x1x1x128xf32> to vector<1x128xf32>
    %442 = vector.shape_cast %441 : vector<1x128xf32> to vector<1x1x128xf32>
    %443 = vector.broadcast %442 : vector<1x1x128xf32> to vector<16x8x128xf32>
    %444 = arith.mulf %439, %443 : vector<16x8x128xf32>
    %445 = arith.addf %437, %444 : vector<16x8x128xf32>
    %c4_416 = arith.constant 4 : index
    %c4_417 = arith.constant 4 : index
    %c0_418 = arith.constant 0 : index
    %c0_419 = arith.constant 0 : index
    %446 = vector.load %arg9[%c4_416, %c4_417, %c0_418, %c0_419] : memref<7x22x8x128xf32, #tpu.memory_space<vmem>>, vector<1x16x8x128xf32>
    %447 = vector.shape_cast %446 : vector<1x16x8x128xf32> to vector<16x8x128xf32>
    %c4_420 = arith.constant 4 : index
    %c4_421 = arith.constant 4 : index
    %c0_422 = arith.constant 0 : index
    %c0_423 = arith.constant 0 : index
    %448 = vector.load %arg4[%c4_420, %c4_421, %c0_422, %c0_423] : memref<7x7x1x128xf32, #tpu.memory_space<vmem>>, vector<1x1x1x128xf32>
    %449 = vector.shape_cast %448 : vector<1x1x1x128xf32> to vector<1x128xf32>
    %450 = vector.shape_cast %449 : vector<1x128xf32> to vector<1x1x128xf32>
    %451 = vector.broadcast %450 : vector<1x1x128xf32> to vector<16x8x128xf32>
    %452 = arith.mulf %447, %451 : vector<16x8x128xf32>
    %453 = arith.addf %445, %452 : vector<16x8x128xf32>
    %c5_424 = arith.constant 5 : index
    %c4_425 = arith.constant 4 : index
    %c0_426 = arith.constant 0 : index
    %c0_427 = arith.constant 0 : index
    %454 = vector.load %arg9[%c5_424, %c4_425, %c0_426, %c0_427] : memref<7x22x8x128xf32, #tpu.memory_space<vmem>>, vector<1x16x8x128xf32>
    %455 = vector.shape_cast %454 : vector<1x16x8x128xf32> to vector<16x8x128xf32>
    %c4_428 = arith.constant 4 : index
    %c5_429 = arith.constant 5 : index
    %c0_430 = arith.constant 0 : index
    %c0_431 = arith.constant 0 : index
    %456 = vector.load %arg4[%c4_428, %c5_429, %c0_430, %c0_431] : memref<7x7x1x128xf32, #tpu.memory_space<vmem>>, vector<1x1x1x128xf32>
    %457 = vector.shape_cast %456 : vector<1x1x1x128xf32> to vector<1x128xf32>
    %458 = vector.shape_cast %457 : vector<1x128xf32> to vector<1x1x128xf32>
    %459 = vector.broadcast %458 : vector<1x1x128xf32> to vector<16x8x128xf32>
    %460 = arith.mulf %455, %459 : vector<16x8x128xf32>
    %461 = arith.addf %453, %460 : vector<16x8x128xf32>
    %c6_432 = arith.constant 6 : index
    %c4_433 = arith.constant 4 : index
    %c0_434 = arith.constant 0 : index
    %c0_435 = arith.constant 0 : index
    %462 = vector.load %arg9[%c6_432, %c4_433, %c0_434, %c0_435] : memref<7x22x8x128xf32, #tpu.memory_space<vmem>>, vector<1x16x8x128xf32>
    %463 = vector.shape_cast %462 : vector<1x16x8x128xf32> to vector<16x8x128xf32>
    %c4_436 = arith.constant 4 : index
    %c6_437 = arith.constant 6 : index
    %c0_438 = arith.constant 0 : index
    %c0_439 = arith.constant 0 : index
    %464 = vector.load %arg4[%c4_436, %c6_437, %c0_438, %c0_439] : memref<7x7x1x128xf32, #tpu.memory_space<vmem>>, vector<1x1x1x128xf32>
    %465 = vector.shape_cast %464 : vector<1x1x1x128xf32> to vector<1x128xf32>
    %466 = vector.shape_cast %465 : vector<1x128xf32> to vector<1x1x128xf32>
    %467 = vector.broadcast %466 : vector<1x1x128xf32> to vector<16x8x128xf32>
    %468 = arith.mulf %463, %467 : vector<16x8x128xf32>
    %469 = arith.addf %461, %468 : vector<16x8x128xf32>
    %c0_440 = arith.constant 0 : index
    %c5_441 = arith.constant 5 : index
    %c0_442 = arith.constant 0 : index
    %c0_443 = arith.constant 0 : index
    %470 = vector.load %arg9[%c0_440, %c5_441, %c0_442, %c0_443] : memref<7x22x8x128xf32, #tpu.memory_space<vmem>>, vector<1x16x8x128xf32>
    %471 = vector.shape_cast %470 : vector<1x16x8x128xf32> to vector<16x8x128xf32>
    %c5_444 = arith.constant 5 : index
    %c0_445 = arith.constant 0 : index
    %c0_446 = arith.constant 0 : index
    %c0_447 = arith.constant 0 : index
    %472 = vector.load %arg4[%c5_444, %c0_445, %c0_446, %c0_447] : memref<7x7x1x128xf32, #tpu.memory_space<vmem>>, vector<1x1x1x128xf32>
    %473 = vector.shape_cast %472 : vector<1x1x1x128xf32> to vector<1x128xf32>
    %474 = vector.shape_cast %473 : vector<1x128xf32> to vector<1x1x128xf32>
    %475 = vector.broadcast %474 : vector<1x1x128xf32> to vector<16x8x128xf32>
    %476 = arith.mulf %471, %475 : vector<16x8x128xf32>
    %477 = arith.addf %469, %476 : vector<16x8x128xf32>
    %c1_448 = arith.constant 1 : index
    %c5_449 = arith.constant 5 : index
    %c0_450 = arith.constant 0 : index
    %c0_451 = arith.constant 0 : index
    %478 = vector.load %arg9[%c1_448, %c5_449, %c0_450, %c0_451] : memref<7x22x8x128xf32, #tpu.memory_space<vmem>>, vector<1x16x8x128xf32>
    %479 = vector.shape_cast %478 : vector<1x16x8x128xf32> to vector<16x8x128xf32>
    %c5_452 = arith.constant 5 : index
    %c1_453 = arith.constant 1 : index
    %c0_454 = arith.constant 0 : index
    %c0_455 = arith.constant 0 : index
    %480 = vector.load %arg4[%c5_452, %c1_453, %c0_454, %c0_455] : memref<7x7x1x128xf32, #tpu.memory_space<vmem>>, vector<1x1x1x128xf32>
    %481 = vector.shape_cast %480 : vector<1x1x1x128xf32> to vector<1x128xf32>
    %482 = vector.shape_cast %481 : vector<1x128xf32> to vector<1x1x128xf32>
    %483 = vector.broadcast %482 : vector<1x1x128xf32> to vector<16x8x128xf32>
    %484 = arith.mulf %479, %483 : vector<16x8x128xf32>
    %485 = arith.addf %477, %484 : vector<16x8x128xf32>
    %c2_456 = arith.constant 2 : index
    %c5_457 = arith.constant 5 : index
    %c0_458 = arith.constant 0 : index
    %c0_459 = arith.constant 0 : index
    %486 = vector.load %arg9[%c2_456, %c5_457, %c0_458, %c0_459] : memref<7x22x8x128xf32, #tpu.memory_space<vmem>>, vector<1x16x8x128xf32>
    %487 = vector.shape_cast %486 : vector<1x16x8x128xf32> to vector<16x8x128xf32>
    %c5_460 = arith.constant 5 : index
    %c2_461 = arith.constant 2 : index
    %c0_462 = arith.constant 0 : index
    %c0_463 = arith.constant 0 : index
    %488 = vector.load %arg4[%c5_460, %c2_461, %c0_462, %c0_463] : memref<7x7x1x128xf32, #tpu.memory_space<vmem>>, vector<1x1x1x128xf32>
    %489 = vector.shape_cast %488 : vector<1x1x1x128xf32> to vector<1x128xf32>
    %490 = vector.shape_cast %489 : vector<1x128xf32> to vector<1x1x128xf32>
    %491 = vector.broadcast %490 : vector<1x1x128xf32> to vector<16x8x128xf32>
    %492 = arith.mulf %487, %491 : vector<16x8x128xf32>
    %493 = arith.addf %485, %492 : vector<16x8x128xf32>
    %c3_464 = arith.constant 3 : index
    %c5_465 = arith.constant 5 : index
    %c0_466 = arith.constant 0 : index
    %c0_467 = arith.constant 0 : index
    %494 = vector.load %arg9[%c3_464, %c5_465, %c0_466, %c0_467] : memref<7x22x8x128xf32, #tpu.memory_space<vmem>>, vector<1x16x8x128xf32>
    %495 = vector.shape_cast %494 : vector<1x16x8x128xf32> to vector<16x8x128xf32>
    %c5_468 = arith.constant 5 : index
    %c3_469 = arith.constant 3 : index
    %c0_470 = arith.constant 0 : index
    %c0_471 = arith.constant 0 : index
    %496 = vector.load %arg4[%c5_468, %c3_469, %c0_470, %c0_471] : memref<7x7x1x128xf32, #tpu.memory_space<vmem>>, vector<1x1x1x128xf32>
    %497 = vector.shape_cast %496 : vector<1x1x1x128xf32> to vector<1x128xf32>
    %498 = vector.shape_cast %497 : vector<1x128xf32> to vector<1x1x128xf32>
    %499 = vector.broadcast %498 : vector<1x1x128xf32> to vector<16x8x128xf32>
    %500 = arith.mulf %495, %499 : vector<16x8x128xf32>
    %501 = arith.addf %493, %500 : vector<16x8x128xf32>
    %c4_472 = arith.constant 4 : index
    %c5_473 = arith.constant 5 : index
    %c0_474 = arith.constant 0 : index
    %c0_475 = arith.constant 0 : index
    %502 = vector.load %arg9[%c4_472, %c5_473, %c0_474, %c0_475] : memref<7x22x8x128xf32, #tpu.memory_space<vmem>>, vector<1x16x8x128xf32>
    %503 = vector.shape_cast %502 : vector<1x16x8x128xf32> to vector<16x8x128xf32>
    %c5_476 = arith.constant 5 : index
    %c4_477 = arith.constant 4 : index
    %c0_478 = arith.constant 0 : index
    %c0_479 = arith.constant 0 : index
    %504 = vector.load %arg4[%c5_476, %c4_477, %c0_478, %c0_479] : memref<7x7x1x128xf32, #tpu.memory_space<vmem>>, vector<1x1x1x128xf32>
    %505 = vector.shape_cast %504 : vector<1x1x1x128xf32> to vector<1x128xf32>
    %506 = vector.shape_cast %505 : vector<1x128xf32> to vector<1x1x128xf32>
    %507 = vector.broadcast %506 : vector<1x1x128xf32> to vector<16x8x128xf32>
    %508 = arith.mulf %503, %507 : vector<16x8x128xf32>
    %509 = arith.addf %501, %508 : vector<16x8x128xf32>
    %c5_480 = arith.constant 5 : index
    %c5_481 = arith.constant 5 : index
    %c0_482 = arith.constant 0 : index
    %c0_483 = arith.constant 0 : index
    %510 = vector.load %arg9[%c5_480, %c5_481, %c0_482, %c0_483] : memref<7x22x8x128xf32, #tpu.memory_space<vmem>>, vector<1x16x8x128xf32>
    %511 = vector.shape_cast %510 : vector<1x16x8x128xf32> to vector<16x8x128xf32>
    %c5_484 = arith.constant 5 : index
    %c5_485 = arith.constant 5 : index
    %c0_486 = arith.constant 0 : index
    %c0_487 = arith.constant 0 : index
    %512 = vector.load %arg4[%c5_484, %c5_485, %c0_486, %c0_487] : memref<7x7x1x128xf32, #tpu.memory_space<vmem>>, vector<1x1x1x128xf32>
    %513 = vector.shape_cast %512 : vector<1x1x1x128xf32> to vector<1x128xf32>
    %514 = vector.shape_cast %513 : vector<1x128xf32> to vector<1x1x128xf32>
    %515 = vector.broadcast %514 : vector<1x1x128xf32> to vector<16x8x128xf32>
    %516 = arith.mulf %511, %515 : vector<16x8x128xf32>
    %517 = arith.addf %509, %516 : vector<16x8x128xf32>
    %c6_488 = arith.constant 6 : index
    %c5_489 = arith.constant 5 : index
    %c0_490 = arith.constant 0 : index
    %c0_491 = arith.constant 0 : index
    %518 = vector.load %arg9[%c6_488, %c5_489, %c0_490, %c0_491] : memref<7x22x8x128xf32, #tpu.memory_space<vmem>>, vector<1x16x8x128xf32>
    %519 = vector.shape_cast %518 : vector<1x16x8x128xf32> to vector<16x8x128xf32>
    %c5_492 = arith.constant 5 : index
    %c6_493 = arith.constant 6 : index
    %c0_494 = arith.constant 0 : index
    %c0_495 = arith.constant 0 : index
    %520 = vector.load %arg4[%c5_492, %c6_493, %c0_494, %c0_495] : memref<7x7x1x128xf32, #tpu.memory_space<vmem>>, vector<1x1x1x128xf32>
    %521 = vector.shape_cast %520 : vector<1x1x1x128xf32> to vector<1x128xf32>
    %522 = vector.shape_cast %521 : vector<1x128xf32> to vector<1x1x128xf32>
    %523 = vector.broadcast %522 : vector<1x1x128xf32> to vector<16x8x128xf32>
    %524 = arith.mulf %519, %523 : vector<16x8x128xf32>
    %525 = arith.addf %517, %524 : vector<16x8x128xf32>
    %c0_496 = arith.constant 0 : index
    %c6_497 = arith.constant 6 : index
    %c0_498 = arith.constant 0 : index
    %c0_499 = arith.constant 0 : index
    %526 = vector.load %arg9[%c0_496, %c6_497, %c0_498, %c0_499] : memref<7x22x8x128xf32, #tpu.memory_space<vmem>>, vector<1x16x8x128xf32>
    %527 = vector.shape_cast %526 : vector<1x16x8x128xf32> to vector<16x8x128xf32>
    %c6_500 = arith.constant 6 : index
    %c0_501 = arith.constant 0 : index
    %c0_502 = arith.constant 0 : index
    %c0_503 = arith.constant 0 : index
    %528 = vector.load %arg4[%c6_500, %c0_501, %c0_502, %c0_503] : memref<7x7x1x128xf32, #tpu.memory_space<vmem>>, vector<1x1x1x128xf32>
    %529 = vector.shape_cast %528 : vector<1x1x1x128xf32> to vector<1x128xf32>
    %530 = vector.shape_cast %529 : vector<1x128xf32> to vector<1x1x128xf32>
    %531 = vector.broadcast %530 : vector<1x1x128xf32> to vector<16x8x128xf32>
    %532 = arith.mulf %527, %531 : vector<16x8x128xf32>
    %533 = arith.addf %525, %532 : vector<16x8x128xf32>
    %c1_504 = arith.constant 1 : index
    %c6_505 = arith.constant 6 : index
    %c0_506 = arith.constant 0 : index
    %c0_507 = arith.constant 0 : index
    %534 = vector.load %arg9[%c1_504, %c6_505, %c0_506, %c0_507] : memref<7x22x8x128xf32, #tpu.memory_space<vmem>>, vector<1x16x8x128xf32>
    %535 = vector.shape_cast %534 : vector<1x16x8x128xf32> to vector<16x8x128xf32>
    %c6_508 = arith.constant 6 : index
    %c1_509 = arith.constant 1 : index
    %c0_510 = arith.constant 0 : index
    %c0_511 = arith.constant 0 : index
    %536 = vector.load %arg4[%c6_508, %c1_509, %c0_510, %c0_511] : memref<7x7x1x128xf32, #tpu.memory_space<vmem>>, vector<1x1x1x128xf32>
    %537 = vector.shape_cast %536 : vector<1x1x1x128xf32> to vector<1x128xf32>
    %538 = vector.shape_cast %537 : vector<1x128xf32> to vector<1x1x128xf32>
    %539 = vector.broadcast %538 : vector<1x1x128xf32> to vector<16x8x128xf32>
    %540 = arith.mulf %535, %539 : vector<16x8x128xf32>
    %541 = arith.addf %533, %540 : vector<16x8x128xf32>
    %c2_512 = arith.constant 2 : index
    %c6_513 = arith.constant 6 : index
    %c0_514 = arith.constant 0 : index
    %c0_515 = arith.constant 0 : index
    %542 = vector.load %arg9[%c2_512, %c6_513, %c0_514, %c0_515] : memref<7x22x8x128xf32, #tpu.memory_space<vmem>>, vector<1x16x8x128xf32>
    %543 = vector.shape_cast %542 : vector<1x16x8x128xf32> to vector<16x8x128xf32>
    %c6_516 = arith.constant 6 : index
    %c2_517 = arith.constant 2 : index
    %c0_518 = arith.constant 0 : index
    %c0_519 = arith.constant 0 : index
    %544 = vector.load %arg4[%c6_516, %c2_517, %c0_518, %c0_519] : memref<7x7x1x128xf32, #tpu.memory_space<vmem>>, vector<1x1x1x128xf32>
    %545 = vector.shape_cast %544 : vector<1x1x1x128xf32> to vector<1x128xf32>
    %546 = vector.shape_cast %545 : vector<1x128xf32> to vector<1x1x128xf32>
    %547 = vector.broadcast %546 : vector<1x1x128xf32> to vector<16x8x128xf32>
    %548 = arith.mulf %543, %547 : vector<16x8x128xf32>
    %549 = arith.addf %541, %548 : vector<16x8x128xf32>
    %c3_520 = arith.constant 3 : index
    %c6_521 = arith.constant 6 : index
    %c0_522 = arith.constant 0 : index
    %c0_523 = arith.constant 0 : index
    %550 = vector.load %arg9[%c3_520, %c6_521, %c0_522, %c0_523] : memref<7x22x8x128xf32, #tpu.memory_space<vmem>>, vector<1x16x8x128xf32>
    %551 = vector.shape_cast %550 : vector<1x16x8x128xf32> to vector<16x8x128xf32>
    %c6_524 = arith.constant 6 : index
    %c3_525 = arith.constant 3 : index
    %c0_526 = arith.constant 0 : index
    %c0_527 = arith.constant 0 : index
    %552 = vector.load %arg4[%c6_524, %c3_525, %c0_526, %c0_527] : memref<7x7x1x128xf32, #tpu.memory_space<vmem>>, vector<1x1x1x128xf32>
    %553 = vector.shape_cast %552 : vector<1x1x1x128xf32> to vector<1x128xf32>
    %554 = vector.shape_cast %553 : vector<1x128xf32> to vector<1x1x128xf32>
    %555 = vector.broadcast %554 : vector<1x1x128xf32> to vector<16x8x128xf32>
    %556 = arith.mulf %551, %555 : vector<16x8x128xf32>
    %557 = arith.addf %549, %556 : vector<16x8x128xf32>
    %c4_528 = arith.constant 4 : index
    %c6_529 = arith.constant 6 : index
    %c0_530 = arith.constant 0 : index
    %c0_531 = arith.constant 0 : index
    %558 = vector.load %arg9[%c4_528, %c6_529, %c0_530, %c0_531] : memref<7x22x8x128xf32, #tpu.memory_space<vmem>>, vector<1x16x8x128xf32>
    %559 = vector.shape_cast %558 : vector<1x16x8x128xf32> to vector<16x8x128xf32>
    %c6_532 = arith.constant 6 : index
    %c4_533 = arith.constant 4 : index
    %c0_534 = arith.constant 0 : index
    %c0_535 = arith.constant 0 : index
    %560 = vector.load %arg4[%c6_532, %c4_533, %c0_534, %c0_535] : memref<7x7x1x128xf32, #tpu.memory_space<vmem>>, vector<1x1x1x128xf32>
    %561 = vector.shape_cast %560 : vector<1x1x1x128xf32> to vector<1x128xf32>
    %562 = vector.shape_cast %561 : vector<1x128xf32> to vector<1x1x128xf32>
    %563 = vector.broadcast %562 : vector<1x1x128xf32> to vector<16x8x128xf32>
    %564 = arith.mulf %559, %563 : vector<16x8x128xf32>
    %565 = arith.addf %557, %564 : vector<16x8x128xf32>
    %c5_536 = arith.constant 5 : index
    %c6_537 = arith.constant 6 : index
    %c0_538 = arith.constant 0 : index
    %c0_539 = arith.constant 0 : index
    %566 = vector.load %arg9[%c5_536, %c6_537, %c0_538, %c0_539] : memref<7x22x8x128xf32, #tpu.memory_space<vmem>>, vector<1x16x8x128xf32>
    %567 = vector.shape_cast %566 : vector<1x16x8x128xf32> to vector<16x8x128xf32>
    %c6_540 = arith.constant 6 : index
    %c5_541 = arith.constant 5 : index
    %c0_542 = arith.constant 0 : index
    %c0_543 = arith.constant 0 : index
    %568 = vector.load %arg4[%c6_540, %c5_541, %c0_542, %c0_543] : memref<7x7x1x128xf32, #tpu.memory_space<vmem>>, vector<1x1x1x128xf32>
    %569 = vector.shape_cast %568 : vector<1x1x1x128xf32> to vector<1x128xf32>
    %570 = vector.shape_cast %569 : vector<1x128xf32> to vector<1x1x128xf32>
    %571 = vector.broadcast %570 : vector<1x1x128xf32> to vector<16x8x128xf32>
    %572 = arith.mulf %567, %571 : vector<16x8x128xf32>
    %573 = arith.addf %565, %572 : vector<16x8x128xf32>
    %c6_544 = arith.constant 6 : index
    %c6_545 = arith.constant 6 : index
    %c0_546 = arith.constant 0 : index
    %c0_547 = arith.constant 0 : index
    %574 = vector.load %arg9[%c6_544, %c6_545, %c0_546, %c0_547] : memref<7x22x8x128xf32, #tpu.memory_space<vmem>>, vector<1x16x8x128xf32>
    %575 = vector.shape_cast %574 : vector<1x16x8x128xf32> to vector<16x8x128xf32>
    %c6_548 = arith.constant 6 : index
    %c6_549 = arith.constant 6 : index
    %c0_550 = arith.constant 0 : index
    %c0_551 = arith.constant 0 : index
    %576 = vector.load %arg4[%c6_548, %c6_549, %c0_550, %c0_551] : memref<7x7x1x128xf32, #tpu.memory_space<vmem>>, vector<1x1x1x128xf32>
    %577 = vector.shape_cast %576 : vector<1x1x1x128xf32> to vector<1x128xf32>
    %578 = vector.shape_cast %577 : vector<1x128xf32> to vector<1x1x128xf32>
    %579 = vector.broadcast %578 : vector<1x1x128xf32> to vector<16x8x128xf32>
    %580 = arith.mulf %575, %579 : vector<16x8x128xf32>
    %581 = arith.addf %573, %580 : vector<16x8x128xf32>
    %c0_552 = arith.constant 0 : index
    %c0_553 = arith.constant 0 : index
    %582 = vector.load %arg5[%c0_552, %c0_553] : memref<128x512xbf16, #tpu.memory_space<vmem>>, vector<128x512xbf16>
    %c0_554 = arith.constant 0 : index
    %c0_555 = arith.constant 0 : index
    %583 = vector.load %arg7[%c0_554, %c0_555] : memref<512x128xbf16, #tpu.memory_space<vmem>>, vector<512x128xbf16>
    %c0_556 = arith.constant 0 : index
    %c0_557 = arith.constant 0 : index
    %584 = vector.load %arg6[%c0_556, %c0_557] : memref<1x512xf32, #tpu.memory_space<vmem>>, vector<1x512xf32>
    %585 = vector.extract_strided_slice %581 {offsets = [0, 0, 0], sizes = [4, 8, 128], strides = [1, 1, 1]} : vector<16x8x128xf32> to vector<4x8x128xf32>
    %586 = vector.shape_cast %585 : vector<4x8x128xf32> to vector<32x128xf32>
    %587 = arith.truncf %586 : vector<32x128xf32> to vector<32x128xbf16>
    %cst_558 = arith.constant dense<0.000000e+00> : vector<32x512xf32>
    %588 = tpu.matmul %587, %582, %cst_558 {dimension_numbers = #tpu.dot_dimension_numbers<[1], [0], [0], [1], [0, 0, 1, 1], [], []>} : vector<32x128xbf16>, vector<128x512xbf16>, vector<32x512xf32> -> vector<32x512xf32>
    %589 = vector.broadcast %584 : vector<1x512xf32> to vector<32x512xf32>
    %590 = arith.addf %588, %589 : vector<32x512xf32>
    %cst_559 = arith.constant 0.707106769 : f32
    %591 = vector.broadcast %cst_559 : f32 to vector<32x512xf32>
    %592 = arith.mulf %590, %591 : vector<32x512xf32>
    %593 = math.absf %592 : vector<32x512xf32>
    %cst_560 = arith.constant 0.327591091 : f32
    %594 = vector.broadcast %cst_560 : f32 to vector<32x512xf32>
    %595 = arith.mulf %594, %593 : vector<32x512xf32>
    %cst_561 = arith.constant 1.000000e+00 : f32
    %596 = vector.broadcast %cst_561 : f32 to vector<32x512xf32>
    %597 = arith.addf %596, %595 : vector<32x512xf32>
    %cst_562 = arith.constant 1.000000e+00 : f32
    %598 = vector.broadcast %cst_562 : f32 to vector<32x512xf32>
    %599 = arith.divf %598, %597 : vector<32x512xf32>
    %cst_563 = arith.constant 1.06140542 : f32
    %600 = vector.broadcast %cst_563 : f32 to vector<32x512xf32>
    %601 = arith.mulf %600, %599 : vector<32x512xf32>
    %cst_564 = arith.constant 1.45315206 : f32
    %602 = vector.broadcast %cst_564 : f32 to vector<32x512xf32>
    %603 = arith.subf %601, %602 : vector<32x512xf32>
    %604 = arith.mulf %603, %599 : vector<32x512xf32>
    %cst_565 = arith.constant 1.42141378 : f32
    %605 = vector.broadcast %cst_565 : f32 to vector<32x512xf32>
    %606 = arith.addf %604, %605 : vector<32x512xf32>
    %607 = arith.mulf %606, %599 : vector<32x512xf32>
    %cst_566 = arith.constant 0.284496725 : f32
    %608 = vector.broadcast %cst_566 : f32 to vector<32x512xf32>
    %609 = arith.subf %607, %608 : vector<32x512xf32>
    %610 = arith.mulf %609, %599 : vector<32x512xf32>
    %cst_567 = arith.constant 0.254829586 : f32
    %611 = vector.broadcast %cst_567 : f32 to vector<32x512xf32>
    %612 = arith.addf %610, %611 : vector<32x512xf32>
    %613 = arith.mulf %612, %599 : vector<32x512xf32>
    %cst_568 = arith.constant 0.000000e+00 : f32
    %614 = vector.broadcast %cst_568 : f32 to vector<32x512xf32>
    %615 = arith.subf %614, %593 : vector<32x512xf32>
    %616 = arith.mulf %615, %593 : vector<32x512xf32>
    %617 = math.exp %616 : vector<32x512xf32>
    %618 = arith.mulf %613, %617 : vector<32x512xf32>
    %cst_569 = arith.constant 1.000000e+00 : f32
    %619 = vector.broadcast %cst_569 : f32 to vector<32x512xf32>
    %620 = arith.subf %619, %618 : vector<32x512xf32>
    %cst_570 = arith.constant 0.000000e+00 : f32
    %621 = vector.broadcast %cst_570 : f32 to vector<32x512xf32>
    %622 = arith.cmpf oge, %592, %621 : vector<32x512xf32>
    %cst_571 = arith.constant 0.000000e+00 : f32
    %623 = vector.broadcast %cst_571 : f32 to vector<32x512xf32>
    %624 = arith.subf %623, %620 : vector<32x512xf32>
    %625 = arith.select %622, %620, %624 : vector<32x512xi1>, vector<32x512xf32>
    %cst_572 = arith.constant 5.000000e-01 : f32
    %626 = vector.broadcast %cst_572 : f32 to vector<32x512xf32>
    %627 = arith.mulf %626, %590 : vector<32x512xf32>
    %cst_573 = arith.constant 1.000000e+00 : f32
    %628 = vector.broadcast %cst_573 : f32 to vector<32x512xf32>
    %629 = arith.addf %628, %625 : vector<32x512xf32>
    %630 = arith.mulf %627, %629 : vector<32x512xf32>
    %631 = arith.truncf %630 : vector<32x512xf32> to vector<32x512xbf16>
    %cst_574 = arith.constant dense<0.000000e+00> : vector<32x128xf32>
    %632 = tpu.matmul %631, %583, %cst_574 {dimension_numbers = #tpu.dot_dimension_numbers<[1], [0], [0], [1], [0, 0, 1, 1], [], []>} : vector<32x512xbf16>, vector<512x128xbf16>, vector<32x128xf32> -> vector<32x128xf32>
    %c3_575 = arith.constant 3 : index
    %c3_576 = arith.constant 3 : index
    %c0_577 = arith.constant 0 : index
    %c0_578 = arith.constant 0 : index
    %633 = vector.load %arg9[%c3_575, %c3_576, %c0_577, %c0_578] : memref<7x22x8x128xf32, #tpu.memory_space<vmem>>, vector<1x4x8x128xf32>
    %634 = vector.shape_cast %633 : vector<1x4x8x128xf32> to vector<4x8x128xf32>
    %635 = vector.shape_cast %632 : vector<32x128xf32> to vector<4x8x128xf32>
    %636 = arith.addf %634, %635 : vector<4x8x128xf32>
    %637 = vector.shape_cast %12 : vector<8x128xf32> to vector<1x8x128xf32>
    %638 = vector.broadcast %637 : vector<1x8x128xf32> to vector<4x8x128xf32>
    %639 = arith.addf %636, %638 : vector<4x8x128xf32>
    %c0_579 = arith.constant 0 : index
    %c0_580 = arith.constant 0 : index
    %c0_581 = arith.constant 0 : index
    %c0_582 = arith.constant 0 : index
    %640 = vector.load %arg8[%c0_579, %c0_580, %c0_581, %c0_582] : memref<1x16x8x128xf32, #tpu.memory_space<vmem>>, vector<1x4x8x128xf32>
    %641 = vector.shape_cast %640 : vector<1x4x8x128xf32> to vector<4x8x128xf32>
    %642 = vector.shape_cast %639 : vector<4x8x128xf32> to vector<1x4x8x128xf32>
    tpu.vector_store %arg8[%c0_579, %c0_580, %c0_581, %c0_582], %642 {strides = array<i32>} : memref<1x16x8x128xf32, #tpu.memory_space<vmem>>, vector<1x4x8x128xf32>,
    %643 = vector.extract_strided_slice %581 {offsets = [4, 0, 0], sizes = [4, 8, 128], strides = [1, 1, 1]} : vector<16x8x128xf32> to vector<4x8x128xf32>
    %644 = vector.shape_cast %643 : vector<4x8x128xf32> to vector<32x128xf32>
    %645 = arith.truncf %644 : vector<32x128xf32> to vector<32x128xbf16>
    %cst_583 = arith.constant dense<0.000000e+00> : vector<32x512xf32>
    %646 = tpu.matmul %645, %582, %cst_583 {dimension_numbers = #tpu.dot_dimension_numbers<[1], [0], [0], [1], [0, 0, 1, 1], [], []>} : vector<32x128xbf16>, vector<128x512xbf16>, vector<32x512xf32> -> vector<32x512xf32>
    %647 = vector.broadcast %584 : vector<1x512xf32> to vector<32x512xf32>
    %648 = arith.addf %646, %647 : vector<32x512xf32>
    %cst_584 = arith.constant 0.707106769 : f32
    %649 = vector.broadcast %cst_584 : f32 to vector<32x512xf32>
    %650 = arith.mulf %648, %649 : vector<32x512xf32>
    %651 = math.absf %650 : vector<32x512xf32>
    %cst_585 = arith.constant 0.327591091 : f32
    %652 = vector.broadcast %cst_585 : f32 to vector<32x512xf32>
    %653 = arith.mulf %652, %651 : vector<32x512xf32>
    %cst_586 = arith.constant 1.000000e+00 : f32
    %654 = vector.broadcast %cst_586 : f32 to vector<32x512xf32>
    %655 = arith.addf %654, %653 : vector<32x512xf32>
    %cst_587 = arith.constant 1.000000e+00 : f32
    %656 = vector.broadcast %cst_587 : f32 to vector<32x512xf32>
    %657 = arith.divf %656, %655 : vector<32x512xf32>
    %cst_588 = arith.constant 1.06140542 : f32
    %658 = vector.broadcast %cst_588 : f32 to vector<32x512xf32>
    %659 = arith.mulf %658, %657 : vector<32x512xf32>
    %cst_589 = arith.constant 1.45315206 : f32
    %660 = vector.broadcast %cst_589 : f32 to vector<32x512xf32>
    %661 = arith.subf %659, %660 : vector<32x512xf32>
    %662 = arith.mulf %661, %657 : vector<32x512xf32>
    %cst_590 = arith.constant 1.42141378 : f32
    %663 = vector.broadcast %cst_590 : f32 to vector<32x512xf32>
    %664 = arith.addf %662, %663 : vector<32x512xf32>
    %665 = arith.mulf %664, %657 : vector<32x512xf32>
    %cst_591 = arith.constant 0.284496725 : f32
    %666 = vector.broadcast %cst_591 : f32 to vector<32x512xf32>
    %667 = arith.subf %665, %666 : vector<32x512xf32>
    %668 = arith.mulf %667, %657 : vector<32x512xf32>
    %cst_592 = arith.constant 0.254829586 : f32
    %669 = vector.broadcast %cst_592 : f32 to vector<32x512xf32>
    %670 = arith.addf %668, %669 : vector<32x512xf32>
    %671 = arith.mulf %670, %657 : vector<32x512xf32>
    %cst_593 = arith.constant 0.000000e+00 : f32
    %672 = vector.broadcast %cst_593 : f32 to vector<32x512xf32>
    %673 = arith.subf %672, %651 : vector<32x512xf32>
    %674 = arith.mulf %673, %651 : vector<32x512xf32>
    %675 = math.exp %674 : vector<32x512xf32>
    %676 = arith.mulf %671, %675 : vector<32x512xf32>
    %cst_594 = arith.constant 1.000000e+00 : f32
    %677 = vector.broadcast %cst_594 : f32 to vector<32x512xf32>
    %678 = arith.subf %677, %676 : vector<32x512xf32>
    %cst_595 = arith.constant 0.000000e+00 : f32
    %679 = vector.broadcast %cst_595 : f32 to vector<32x512xf32>
    %680 = arith.cmpf oge, %650, %679 : vector<32x512xf32>
    %cst_596 = arith.constant 0.000000e+00 : f32
    %681 = vector.broadcast %cst_596 : f32 to vector<32x512xf32>
    %682 = arith.subf %681, %678 : vector<32x512xf32>
    %683 = arith.select %680, %678, %682 : vector<32x512xi1>, vector<32x512xf32>
    %cst_597 = arith.constant 5.000000e-01 : f32
    %684 = vector.broadcast %cst_597 : f32 to vector<32x512xf32>
    %685 = arith.mulf %684, %648 : vector<32x512xf32>
    %cst_598 = arith.constant 1.000000e+00 : f32
    %686 = vector.broadcast %cst_598 : f32 to vector<32x512xf32>
    %687 = arith.addf %686, %683 : vector<32x512xf32>
    %688 = arith.mulf %685, %687 : vector<32x512xf32>
    %689 = arith.truncf %688 : vector<32x512xf32> to vector<32x512xbf16>
    %cst_599 = arith.constant dense<0.000000e+00> : vector<32x128xf32>
    %690 = tpu.matmul %689, %583, %cst_599 {dimension_numbers = #tpu.dot_dimension_numbers<[1], [0], [0], [1], [0, 0, 1, 1], [], []>} : vector<32x512xbf16>, vector<512x128xbf16>, vector<32x128xf32> -> vector<32x128xf32>
    %c3_600 = arith.constant 3 : index
    %c7 = arith.constant 7 : index
    %c0_601 = arith.constant 0 : index
    %c0_602 = arith.constant 0 : index
    %691 = vector.load %arg9[%c3_600, %c7, %c0_601, %c0_602] : memref<7x22x8x128xf32, #tpu.memory_space<vmem>>, vector<1x4x8x128xf32>
    %692 = vector.shape_cast %691 : vector<1x4x8x128xf32> to vector<4x8x128xf32>
    %693 = vector.shape_cast %690 : vector<32x128xf32> to vector<4x8x128xf32>
    %694 = arith.addf %692, %693 : vector<4x8x128xf32>
    %695 = vector.shape_cast %12 : vector<8x128xf32> to vector<1x8x128xf32>
    %696 = vector.broadcast %695 : vector<1x8x128xf32> to vector<4x8x128xf32>
    %697 = arith.addf %694, %696 : vector<4x8x128xf32>
    %c0_603 = arith.constant 0 : index
    %c4_604 = arith.constant 4 : index
    %c0_605 = arith.constant 0 : index
    %c0_606 = arith.constant 0 : index
    %698 = vector.load %arg8[%c0_603, %c4_604, %c0_605, %c0_606] : memref<1x16x8x128xf32, #tpu.memory_space<vmem>>, vector<1x4x8x128xf32>
    %699 = vector.shape_cast %698 : vector<1x4x8x128xf32> to vector<4x8x128xf32>
    %700 = vector.shape_cast %697 : vector<4x8x128xf32> to vector<1x4x8x128xf32>
    tpu.vector_store %arg8[%c0_603, %c4_604, %c0_605, %c0_606], %700 {strides = array<i32>} : memref<1x16x8x128xf32, #tpu.memory_space<vmem>>, vector<1x4x8x128xf32>,
    %701 = vector.extract_strided_slice %581 {offsets = [8, 0, 0], sizes = [4, 8, 128], strides = [1, 1, 1]} : vector<16x8x128xf32> to vector<4x8x128xf32>
    %702 = vector.shape_cast %701 : vector<4x8x128xf32> to vector<32x128xf32>
    %703 = arith.truncf %702 : vector<32x128xf32> to vector<32x128xbf16>
    %cst_607 = arith.constant dense<0.000000e+00> : vector<32x512xf32>
    %704 = tpu.matmul %703, %582, %cst_607 {dimension_numbers = #tpu.dot_dimension_numbers<[1], [0], [0], [1], [0, 0, 1, 1], [], []>} : vector<32x128xbf16>, vector<128x512xbf16>, vector<32x512xf32> -> vector<32x512xf32>
    %705 = vector.broadcast %584 : vector<1x512xf32> to vector<32x512xf32>
    %706 = arith.addf %704, %705 : vector<32x512xf32>
    %cst_608 = arith.constant 0.707106769 : f32
    %707 = vector.broadcast %cst_608 : f32 to vector<32x512xf32>
    %708 = arith.mulf %706, %707 : vector<32x512xf32>
    %709 = math.absf %708 : vector<32x512xf32>
    %cst_609 = arith.constant 0.327591091 : f32
    %710 = vector.broadcast %cst_609 : f32 to vector<32x512xf32>
    %711 = arith.mulf %710, %709 : vector<32x512xf32>
    %cst_610 = arith.constant 1.000000e+00 : f32
    %712 = vector.broadcast %cst_610 : f32 to vector<32x512xf32>
    %713 = arith.addf %712, %711 : vector<32x512xf32>
    %cst_611 = arith.constant 1.000000e+00 : f32
    %714 = vector.broadcast %cst_611 : f32 to vector<32x512xf32>
    %715 = arith.divf %714, %713 : vector<32x512xf32>
    %cst_612 = arith.constant 1.06140542 : f32
    %716 = vector.broadcast %cst_612 : f32 to vector<32x512xf32>
    %717 = arith.mulf %716, %715 : vector<32x512xf32>
    %cst_613 = arith.constant 1.45315206 : f32
    %718 = vector.broadcast %cst_613 : f32 to vector<32x512xf32>
    %719 = arith.subf %717, %718 : vector<32x512xf32>
    %720 = arith.mulf %719, %715 : vector<32x512xf32>
    %cst_614 = arith.constant 1.42141378 : f32
    %721 = vector.broadcast %cst_614 : f32 to vector<32x512xf32>
    %722 = arith.addf %720, %721 : vector<32x512xf32>
    %723 = arith.mulf %722, %715 : vector<32x512xf32>
    %cst_615 = arith.constant 0.284496725 : f32
    %724 = vector.broadcast %cst_615 : f32 to vector<32x512xf32>
    %725 = arith.subf %723, %724 : vector<32x512xf32>
    %726 = arith.mulf %725, %715 : vector<32x512xf32>
    %cst_616 = arith.constant 0.254829586 : f32
    %727 = vector.broadcast %cst_616 : f32 to vector<32x512xf32>
    %728 = arith.addf %726, %727 : vector<32x512xf32>
    %729 = arith.mulf %728, %715 : vector<32x512xf32>
    %cst_617 = arith.constant 0.000000e+00 : f32
    %730 = vector.broadcast %cst_617 : f32 to vector<32x512xf32>
    %731 = arith.subf %730, %709 : vector<32x512xf32>
    %732 = arith.mulf %731, %709 : vector<32x512xf32>
    %733 = math.exp %732 : vector<32x512xf32>
    %734 = arith.mulf %729, %733 : vector<32x512xf32>
    %cst_618 = arith.constant 1.000000e+00 : f32
    %735 = vector.broadcast %cst_618 : f32 to vector<32x512xf32>
    %736 = arith.subf %735, %734 : vector<32x512xf32>
    %cst_619 = arith.constant 0.000000e+00 : f32
    %737 = vector.broadcast %cst_619 : f32 to vector<32x512xf32>
    %738 = arith.cmpf oge, %708, %737 : vector<32x512xf32>
    %cst_620 = arith.constant 0.000000e+00 : f32
    %739 = vector.broadcast %cst_620 : f32 to vector<32x512xf32>
    %740 = arith.subf %739, %736 : vector<32x512xf32>
    %741 = arith.select %738, %736, %740 : vector<32x512xi1>, vector<32x512xf32>
    %cst_621 = arith.constant 5.000000e-01 : f32
    %742 = vector.broadcast %cst_621 : f32 to vector<32x512xf32>
    %743 = arith.mulf %742, %706 : vector<32x512xf32>
    %cst_622 = arith.constant 1.000000e+00 : f32
    %744 = vector.broadcast %cst_622 : f32 to vector<32x512xf32>
    %745 = arith.addf %744, %741 : vector<32x512xf32>
    %746 = arith.mulf %743, %745 : vector<32x512xf32>
    %747 = arith.truncf %746 : vector<32x512xf32> to vector<32x512xbf16>
    %cst_623 = arith.constant dense<0.000000e+00> : vector<32x128xf32>
    %748 = tpu.matmul %747, %583, %cst_623 {dimension_numbers = #tpu.dot_dimension_numbers<[1], [0], [0], [1], [0, 0, 1, 1], [], []>} : vector<32x512xbf16>, vector<512x128xbf16>, vector<32x128xf32> -> vector<32x128xf32>
    %c3_624 = arith.constant 3 : index
    %c11 = arith.constant 11 : index
    %c0_625 = arith.constant 0 : index
    %c0_626 = arith.constant 0 : index
    %749 = vector.load %arg9[%c3_624, %c11, %c0_625, %c0_626] : memref<7x22x8x128xf32, #tpu.memory_space<vmem>>, vector<1x4x8x128xf32>
    %750 = vector.shape_cast %749 : vector<1x4x8x128xf32> to vector<4x8x128xf32>
    %751 = vector.shape_cast %748 : vector<32x128xf32> to vector<4x8x128xf32>
    %752 = arith.addf %750, %751 : vector<4x8x128xf32>
    %753 = vector.shape_cast %12 : vector<8x128xf32> to vector<1x8x128xf32>
    %754 = vector.broadcast %753 : vector<1x8x128xf32> to vector<4x8x128xf32>
    %755 = arith.addf %752, %754 : vector<4x8x128xf32>
    %c0_627 = arith.constant 0 : index
    %c8 = arith.constant 8 : index
    %c0_628 = arith.constant 0 : index
    %c0_629 = arith.constant 0 : index
    %756 = vector.load %arg8[%c0_627, %c8, %c0_628, %c0_629] : memref<1x16x8x128xf32, #tpu.memory_space<vmem>>, vector<1x4x8x128xf32>
    %757 = vector.shape_cast %756 : vector<1x4x8x128xf32> to vector<4x8x128xf32>
    %758 = vector.shape_cast %755 : vector<4x8x128xf32> to vector<1x4x8x128xf32>
    tpu.vector_store %arg8[%c0_627, %c8, %c0_628, %c0_629], %758 {strides = array<i32>} : memref<1x16x8x128xf32, #tpu.memory_space<vmem>>, vector<1x4x8x128xf32>,
    %759 = vector.extract_strided_slice %581 {offsets = [12, 0, 0], sizes = [4, 8, 128], strides = [1, 1, 1]} : vector<16x8x128xf32> to vector<4x8x128xf32>
    %760 = vector.shape_cast %759 : vector<4x8x128xf32> to vector<32x128xf32>
    %761 = arith.truncf %760 : vector<32x128xf32> to vector<32x128xbf16>
    %cst_630 = arith.constant dense<0.000000e+00> : vector<32x512xf32>
    %762 = tpu.matmul %761, %582, %cst_630 {dimension_numbers = #tpu.dot_dimension_numbers<[1], [0], [0], [1], [0, 0, 1, 1], [], []>} : vector<32x128xbf16>, vector<128x512xbf16>, vector<32x512xf32> -> vector<32x512xf32>
    %763 = vector.broadcast %584 : vector<1x512xf32> to vector<32x512xf32>
    %764 = arith.addf %762, %763 : vector<32x512xf32>
    %cst_631 = arith.constant 0.707106769 : f32
    %765 = vector.broadcast %cst_631 : f32 to vector<32x512xf32>
    %766 = arith.mulf %764, %765 : vector<32x512xf32>
    %767 = math.absf %766 : vector<32x512xf32>
    %cst_632 = arith.constant 0.327591091 : f32
    %768 = vector.broadcast %cst_632 : f32 to vector<32x512xf32>
    %769 = arith.mulf %768, %767 : vector<32x512xf32>
    %cst_633 = arith.constant 1.000000e+00 : f32
    %770 = vector.broadcast %cst_633 : f32 to vector<32x512xf32>
    %771 = arith.addf %770, %769 : vector<32x512xf32>
    %cst_634 = arith.constant 1.000000e+00 : f32
    %772 = vector.broadcast %cst_634 : f32 to vector<32x512xf32>
    %773 = arith.divf %772, %771 : vector<32x512xf32>
    %cst_635 = arith.constant 1.06140542 : f32
    %774 = vector.broadcast %cst_635 : f32 to vector<32x512xf32>
    %775 = arith.mulf %774, %773 : vector<32x512xf32>
    %cst_636 = arith.constant 1.45315206 : f32
    %776 = vector.broadcast %cst_636 : f32 to vector<32x512xf32>
    %777 = arith.subf %775, %776 : vector<32x512xf32>
    %778 = arith.mulf %777, %773 : vector<32x512xf32>
    %cst_637 = arith.constant 1.42141378 : f32
    %779 = vector.broadcast %cst_637 : f32 to vector<32x512xf32>
    %780 = arith.addf %778, %779 : vector<32x512xf32>
    %781 = arith.mulf %780, %773 : vector<32x512xf32>
    %cst_638 = arith.constant 0.284496725 : f32
    %782 = vector.broadcast %cst_638 : f32 to vector<32x512xf32>
    %783 = arith.subf %781, %782 : vector<32x512xf32>
    %784 = arith.mulf %783, %773 : vector<32x512xf32>
    %cst_639 = arith.constant 0.254829586 : f32
    %785 = vector.broadcast %cst_639 : f32 to vector<32x512xf32>
    %786 = arith.addf %784, %785 : vector<32x512xf32>
    %787 = arith.mulf %786, %773 : vector<32x512xf32>
    %cst_640 = arith.constant 0.000000e+00 : f32
    %788 = vector.broadcast %cst_640 : f32 to vector<32x512xf32>
    %789 = arith.subf %788, %767 : vector<32x512xf32>
    %790 = arith.mulf %789, %767 : vector<32x512xf32>
    %791 = math.exp %790 : vector<32x512xf32>
    %792 = arith.mulf %787, %791 : vector<32x512xf32>
    %cst_641 = arith.constant 1.000000e+00 : f32
    %793 = vector.broadcast %cst_641 : f32 to vector<32x512xf32>
    %794 = arith.subf %793, %792 : vector<32x512xf32>
    %cst_642 = arith.constant 0.000000e+00 : f32
    %795 = vector.broadcast %cst_642 : f32 to vector<32x512xf32>
    %796 = arith.cmpf oge, %766, %795 : vector<32x512xf32>
    %cst_643 = arith.constant 0.000000e+00 : f32
    %797 = vector.broadcast %cst_643 : f32 to vector<32x512xf32>
    %798 = arith.subf %797, %794 : vector<32x512xf32>
    %799 = arith.select %796, %794, %798 : vector<32x512xi1>, vector<32x512xf32>
    %cst_644 = arith.constant 5.000000e-01 : f32
    %800 = vector.broadcast %cst_644 : f32 to vector<32x512xf32>
    %801 = arith.mulf %800, %764 : vector<32x512xf32>
    %cst_645 = arith.constant 1.000000e+00 : f32
    %802 = vector.broadcast %cst_645 : f32 to vector<32x512xf32>
    %803 = arith.addf %802, %799 : vector<32x512xf32>
    %804 = arith.mulf %801, %803 : vector<32x512xf32>
    %805 = arith.truncf %804 : vector<32x512xf32> to vector<32x512xbf16>
    %cst_646 = arith.constant dense<0.000000e+00> : vector<32x128xf32>
    %806 = tpu.matmul %805, %583, %cst_646 {dimension_numbers = #tpu.dot_dimension_numbers<[1], [0], [0], [1], [0, 0, 1, 1], [], []>} : vector<32x512xbf16>, vector<512x128xbf16>, vector<32x128xf32> -> vector<32x128xf32>
    %c3_647 = arith.constant 3 : index
    %c15 = arith.constant 15 : index
    %c0_648 = arith.constant 0 : index
    %c0_649 = arith.constant 0 : index
    %807 = vector.load %arg9[%c3_647, %c15, %c0_648, %c0_649] : memref<7x22x8x128xf32, #tpu.memory_space<vmem>>, vector<1x4x8x128xf32>
    %808 = vector.shape_cast %807 : vector<1x4x8x128xf32> to vector<4x8x128xf32>
    %809 = vector.shape_cast %806 : vector<32x128xf32> to vector<4x8x128xf32>
    %810 = arith.addf %808, %809 : vector<4x8x128xf32>
    %811 = vector.shape_cast %12 : vector<8x128xf32> to vector<1x8x128xf32>
    %812 = vector.broadcast %811 : vector<1x8x128xf32> to vector<4x8x128xf32>
    %813 = arith.addf %810, %812 : vector<4x8x128xf32>
    %c0_650 = arith.constant 0 : index
    %c12 = arith.constant 12 : index
    %c0_651 = arith.constant 0 : index
    %c0_652 = arith.constant 0 : index
    %814 = vector.load %arg8[%c0_650, %c12, %c0_651, %c0_652] : memref<1x16x8x128xf32, #tpu.memory_space<vmem>>, vector<1x4x8x128xf32>
    %815 = vector.shape_cast %814 : vector<1x4x8x128xf32> to vector<4x8x128xf32>
    %816 = vector.shape_cast %813 : vector<4x8x128xf32> to vector<1x4x8x128xf32>
    tpu.vector_store %arg8[%c0_650, %c12, %c0_651, %c0_652], %816 {strides = array<i32>} : memref<1x16x8x128xf32, #tpu.memory_space<vmem>>, vector<1x4x8x128xf32>,
    return
  }
  func.func @transform_0(%arg0: i32) -> (i32, i32, i32, i32) {
    %c0_i32 = arith.constant 0 : i32
    %c0_i32_0 = arith.constant 0 : i32
    %c0_i32_1 = arith.constant 0 : i32
    %c0_i32_2 = arith.constant 0 : i32
    return %arg0, %c0_i32, %c0_i32_0, %c0_i32_1 : i32, i32, i32, i32
  }
  func.func @transform_1(%arg0: i32) -> (i32, i32, i32) {
    %c0_i32 = arith.constant 0 : i32
    %c0_i32_0 = arith.constant 0 : i32
    %c0_i32_1 = arith.constant 0 : i32
    %c0_i32_2 = arith.constant 0 : i32
    return %c0_i32, %c0_i32_0, %c0_i32_1 : i32, i32, i32
  }
  func.func @transform_2(%arg0: i32) -> (i32, i32, i32, i32) {
    %c0_i32 = arith.constant 0 : i32
    %c0_i32_0 = arith.constant 0 : i32
    %c0_i32_1 = arith.constant 0 : i32
    %c0_i32_2 = arith.constant 0 : i32
    %c0_i32_3 = arith.constant 0 : i32
    return %c0_i32, %c0_i32_0, %c0_i32_1, %c0_i32_2 : i32, i32, i32, i32
  }
  func.func @transform_3(%arg0: i32) -> (i32, i32, i32, i32) {
    %c0_i32 = arith.constant 0 : i32
    %c0_i32_0 = arith.constant 0 : i32
    %c0_i32_1 = arith.constant 0 : i32
    %c0_i32_2 = arith.constant 0 : i32
    %c0_i32_3 = arith.constant 0 : i32
    return %c0_i32, %c0_i32_0, %c0_i32_1, %c0_i32_2 : i32, i32, i32, i32
  }
  func.func @transform_4(%arg0: i32) -> (i32, i32) {
    %c0_i32 = arith.constant 0 : i32
    %c0_i32_0 = arith.constant 0 : i32
    %c0_i32_1 = arith.constant 0 : i32
    return %c0_i32, %c0_i32_0 : i32, i32
  }
  func.func @transform_5(%arg0: i32) -> (i32, i32) {
    %c0_i32 = arith.constant 0 : i32
    %c0_i32_0 = arith.constant 0 : i32
    %c0_i32_1 = arith.constant 0 : i32
    return %c0_i32, %c0_i32_0 : i32, i32
  }
  func.func @transform_6(%arg0: i32) -> (i32, i32) {
    %c0_i32 = arith.constant 0 : i32
    %c0_i32_0 = arith.constant 0 : i32
    %c0_i32_1 = arith.constant 0 : i32
    return %c0_i32, %c0_i32_0 : i32, i32
  }
  func.func @transform_7(%arg0: i32) -> (i32, i32, i32, i32) {
    %c0_i32 = arith.constant 0 : i32
    %c0_i32_0 = arith.constant 0 : i32
    %c0_i32_1 = arith.constant 0 : i32
    %c0_i32_2 = arith.constant 0 : i32
    return %arg0, %c0_i32, %c0_i32_0, %c0_i32_1 : i32, i32, i32, i32
  }
}

</mosaic_0001>

<bundles_post_ra>
// kernel: repmixer_block.1
= control target key start
LH: loop header
LB: loop body
LE: loop exit
PB: predicated region body
PF: predicated region fallthrough
CT: control target
= control target key end

     0   :  { %s9049_s24 = smov 0   ;;  %s15432_s0 = inlined_call_operand.vmem [shape: f32[2,54,8,128], index: 0, kind: input, shape index: {}]   ;;  %s15433_s1 = inlined_call_operand.vmem [shape: f32[3,1,128], index: 1, kind: input, shape index: {}]   ;;  %s15434_s2 = inlined_call_operand.vmem [shape: f32[3,3,1,128], index: 2, kind: input, shape index: {}]   ;;  %s15435_s3 = inlined_call_operand.vmem [shape: f32[7,7,1,128], index: 3, kind: input, shape index: {}]   ;;  %s15436_s4 = inlined_call_operand.vmem [shape: bf16[128,512], index: 4, kind: input, shape index: {}]   ;;  %s15437_s5 = inlined_call_operand.vmem [shape: f32[1,512], index: 5, kind: input, shape index: {}]   ;;  %s15438_s6 = inlined_call_operand.vmem [shape: bf16[512,128], index: 6, kind: input, shape index: {}]   ;;  %s15439_s7 = inlined_call_operand.vmem [shape: f32[2,16,8,128], index: 7, kind: output, shape index: {}]  }
   0x1 LB: > { %s7604_s25 = sadd.s32 4294967295, %s9005_s24   ;;  %p7608_p0 = scmp.ge.s32.totalorder %s9005_s24, 1  ;;  %s9005_s24 = sphi %s9049_s24, %s17_s24  }
   0x2   : > { %p237_p1 = scmp.lt.s32.totalorder %s9005_s24, 3 }
   0x4   : > { %p238_p2 = pnand %p7608_p0, %p237_p1 }
   0x6   : > { %241 = sbr.rel (%p238_p2) target bundleno = 1827 (0x723), region = 48 }
   0xb   : > { %p269_p3 = scmp.lt.s32.totalorder %s7604_s25, 1  ;;  %v9063_v0 = vld [vmem:[%s15434_s2] ss:$0 sm:$0xff]  ;;  %v9068_v1 = vld [vmem:[%s15434_s2 + $0x1] ss:$0 sm:$0xff]  ;;  %vm983_vm0 = vcmask 1040384  }
   0xc   : > { %v9073_v2 = vld [vmem:[%s15434_s2 + $0x2] ss:$0 sm:$0xff]  ;;  %v9083_v3 = vld [vmem:[%s15434_s2 + $0x3] ss:$0 sm:$0xff]  ;;  %v9096_v12 = vld [vmem:[%s15434_s2 + $0x4] ss:$0 sm:$0xff] }
   0xd   : > { %s16311_s25 = smov (!%p269_p3, %s7604_s25), 1  ;;  %v9103_v16 = vld [vmem:[%s15434_s2 + $0x5] ss:$0 sm:$0xff]  ;;  %v9114_v24 = vld [vmem:[%s15434_s2 + $0x6] ss:$0 sm:$0xff]  ;;  %s9007_s8 = smov 64  }
   0xe   : > { %s8288_s26 = smul.u32 432, %s16311_s25  ;;  %v9122_v30 = vld [vmem:[%s15434_s2 + $0x7] ss:$0 sm:$0xff]  ;;  %v9133_v39 = vld [vmem:[%s15434_s2 + $0x8] ss:$0 sm:$0xff]  ;;  %vm1340_vm1 = vcmask 1046528  }
   0xf   : > { %v9150_v52 = vld [vmem:[%s15433_s1] ss:$0 sm:$0xff]  ;;  %vm1519_vm2 = vcmask 1045504   ;;  %vm934_vm3 = vcmask 1041408   ;;  %vm1064_vm4 = vcmask 523264   ;;  %s8063_s21 = sshll.u32 %s16311_s25, 7 }
  0x10   : > { %s9078_s12 = scalar_lea.vmem %s15432_s0, %s8288_s26  ;;  %s13761_s27 = scalar_lea.vmem %s15439_s7, %s8063_s21 }
  0x11   : > { %v283_v4 = vld [vmem:[%s9078_s12] sm:$0xff]  ;;  %v7613_v5 = vld [vmem:[%s9078_s12 + $0x90] sm:$0xff]  ;;  %v7649_v10 = vld [vmem:[%s9078_s12 + $0x8] sm:$0xff] }
  0x12   : > { %v7631_v6 = vld [vmem:[%s9078_s12 + $0x120] sm:$0xff]  ;;  %v306_v7 = vmul.f32 %v9063_v0, %v283_v4  ;;  %v363_v8 = vmul.f32 %v9068_v1, %v7613_v5  ;;  %v7667_v11 = vld [vmem:[%s9078_s12 + $0x98] sm:$0xff]  ;;  %v477_v14 = vmul.f32 %v9083_v3, %v7649_v10  ;;  %v7685_v15 = vld [vmem:[%s9078_s12 + $0x128] sm:$0xff]  ;;  %v307_v17 = vmul.f32 %v7649_v10, %v9063_v0 }
  0x13   : > { %v420_v9 = vmul.f32 %v9073_v2, %v7631_v6  ;;  %v364_v18 = vmul.f32 %v7667_v11, %v9068_v1  ;;  %v421_v19 = vmul.f32 %v7685_v15, %v9073_v2  ;;  %v534_v21 = vmul.f32 %v9096_v12, %v7667_v11  ;;  %v7703_v22 = vld [vmem:[%s9078_s12 + $0x10] sm:$0xff]  ;;  %v7721_v25 = vld [vmem:[%s9078_s12 + $0xa0] sm:$0xff]  ;;  %v7704_v36 = vld [vmem:[%s9078_s12 + $0x18] sm:$0xff] }
  0x14   : > { %v379_v13 = vadd.f32 %v363_v8, %v306_v7  ;;  %v591_v23 = vmul.f32 %v9103_v16, %v7685_v15  ;;  %v7739_v26 = vld [vmem:[%s9078_s12 + $0x130] sm:$0xff]  ;;  %v478_v28 = vmul.f32 %v7703_v22, %v9083_v3  ;;  %v308_v31 = vmul.f32 %v7703_v22, %v9063_v0  ;;  %v9139_v45 = vld [vmem:[%s9078_s12 + $0xa8] sm:$0xff]  ;;  %v7740_v48 = vld [vmem:[%s9078_s12 + $0x138] sm:$0xff] }
  0x15   : > { %v380_v27 = vadd.f32 %v364_v18, %v307_v17  ;;  %v365_v32 = vmul.f32 %v7721_v25, %v9068_v1  ;;  %v422_v33 = vmul.f32 %v7739_v26, %v9073_v2  ;;  %v535_v35 = vmul.f32 %v7721_v25, %v9096_v12  ;;  %v7705_v59 = vld [vmem:[%s9078_s12 + $0x20] sm:$0xff] }
  0x16   : > { %v436_v20 = vadd.f32 %v420_v9, %v379_v13  ;;  %v648_v38 = vmul.f32 %v9114_v24, %v7703_v22  ;;  %v479_v41 = vmul.f32 %v7704_v36, %v9083_v3  ;;  %v705_v42 = vmul.f32 %v9122_v30, %v7721_v25  ;;  %v9169_v18 = vld [vmem:[%s15433_s1 + $0x1] ss:$0 sm:$0xff] }
  0x17   : > { %v437_v34 = vadd.f32 %v421_v19, %v380_v27  ;;  %v381_v40 = vadd.f32 %v365_v32, %v308_v31  ;;  %v592_v44 = vmul.f32 %v7739_v26, %v9103_v16  ;;  %v309_v46 = vmul.f32 %v7704_v36, %v9063_v0 }
  0x18   : > { %v493_v29 = vadd.f32 %v477_v14, %v436_v20  ;;  %v536_v50 = vmul.f32 %v9139_v45, %v9096_v12  ;;  %v366_v51 = vmul.f32 %v9139_v45, %v9068_v1  ;;  %v762_v53 = vmul.f32 %v9133_v39, %v7739_v26  ;;  %v9163_v14 = vld [vmem:[%s9078_s12 + $0xb0] sm:$0xff] }
  0x19   : > { %v494_v43 = vadd.f32 %v478_v28, %v437_v34  ;;  %v438_v49 = vadd.f32 %v422_v33, %v381_v40  ;;  %v649_v55 = vmul.f32 %v9114_v24, %v7704_v36  ;;  %v593_v56 = vmul.f32 %v7740_v48, %v9103_v16  ;;  %v7706_v36 = vld [vmem:[%s9078_s12 + $0x28] sm:$0xff] }
  0x1a   : > { %v550_v37 = vadd.f32 %v534_v21, %v493_v29  ;;  %v382_v60 = vadd.f32 %v366_v51, %v309_v46  ;;  %v423_v61 = vmul.f32 %v7740_v48, %v9073_v2  ;;  %v706_v63 = vmul.f32 %v9122_v30, %v9139_v45  ;;  %v7741_v29 = vld [vmem:[%s9078_s12 + $0x140] sm:$0xff] }
  0x1b   : > { %v551_v54 = vadd.f32 %v535_v35, %v494_v43  ;;  %v495_v58 = vadd.f32 %v479_v41, %v438_v49  ;;  %v800_v5 = vmul.f32 %v9150_v52, %v7667_v11  ;;  %v763_v8 = vmul.f32 %v9133_v39, %v7740_v48 }
  0x1c   : > { %v607_v47 = vadd.f32 %v591_v23, %v550_v37  ;;  %v650_v9 = vmul.f32 %v9114_v24, %v7705_v59  ;;  %v439_v15 = vadd.f32 %v423_v61, %v382_v60  ;;  %v480_v17 = vmul.f32 %v7705_v59, %v9083_v3 }
  0x1d   : > { %v608_v62 = vadd.f32 %v592_v44, %v551_v54  ;;  %v552_v6 = vadd.f32 %v536_v50, %v495_v58  ;;  %v801_v19 = vmul.f32 %v9150_v52, %v7721_v25  ;;  %v707_v22 = vmul.f32 %v9122_v30, %v9163_v14 }
  0x1e   : > { %v664_v57 = vadd.f32 %v648_v38, %v607_v47  ;;  %v310_v23 = vmul.f32 %v7705_v59, %v9063_v0  ;;  %v367_v26 = vmul.f32 %v9163_v14, %v9068_v1  ;;  %v496_v31 = vadd.f32 %v480_v17, %v439_v15 }
  0x1f   : > { %v665_v7 = vadd.f32 %v649_v55, %v608_v62  ;;  %v609_v13 = vadd.f32 %v593_v56, %v552_v6  ;;  %v537_v25 = vmul.f32 %v9163_v14, %v9096_v12  ;;  %v764_v35 = vmul.f32 %v9133_v39, %v7741_v29 }
  0x20   : > { %v721_v4 = vadd.f32 %v705_v42, %v664_v57  ;;  %v383_v37 = vadd.f32 %v367_v26, %v310_v23  ;;  %v424_v38 = vmul.f32 %v7741_v29, %v9073_v2  ;;  %v594_v42 = vmul.f32 %v7741_v29, %v9103_v16  ;;  %v9213_v57 = vld [vmem:[%s9078_s12 + $0xb8] sm:$0xff] }
  0x21   : > { %v722_v11 = vadd.f32 %v706_v63, %v665_v7  ;;  %v666_v28 = vadd.f32 %v650_v9, %v609_v13  ;;  %v553_v41 = vadd.f32 %v537_v25, %v496_v31  ;;  %v802_v48 = vmul.f32 %v9150_v52, %v9139_v45  ;;  %v7742_v7 = vld [vmem:[%s9078_s12 + $0x148] sm:$0xff] }
  0x22   : > { %v778_v10 = vadd.f32 %v762_v53, %v721_v4  ;;  %v440_v49 = vadd.f32 %v424_v38, %v383_v37  ;;  %v481_v50 = vmul.f32 %v7706_v36, %v9083_v3  ;;  %v651_v54 = vmul.f32 %v9114_v24, %v7706_v36  ;;  %v7743_v37 = vld [vmem:[%s9078_s12 + $0x150] sm:$0xff] }
  0x23   : > { %v779_v21 = vadd.f32 %v763_v8, %v722_v11  ;;  %v723_v40 = vadd.f32 %v707_v22, %v666_v28  ;;  %v610_v53 = vadd.f32 %v594_v42, %v553_v41  ;;  %v538_v59 = vmul.f32 %v9213_v57, %v9096_v12 }
  0x24   : > { %v816_v20 = vadd.f32 %v800_v5, %v778_v10  ;;  %v497_v58 = vadd.f32 %v481_v50, %v440_v49  ;;  %v311_v60 = vmul.f32 %v7706_v36, %v9063_v0  ;;  %v368_v61 = vmul.f32 %v9213_v57, %v9068_v1  ;;  %v7707_v10 = vld [vmem:[%s9078_s12 + $0x30] sm:$0xff] }
  0x25   : > { %v817_v32 = vadd.f32 %v801_v19, %v779_v21  ;;  %v780_v51 = vadd.f32 %v764_v35, %v723_v40  ;;  %v667_v4 = vadd.f32 %v651_v54, %v610_v53  ;;  %v708_v5 = vmul.f32 %v9122_v30, %v9213_v57 }
  0x26   : > { %v9178_v27 = vadd.f32 %v9169_v18, %v816_v20  ;;  %v554_v8 = vadd.f32 %v538_v59, %v497_v58  ;;  %v595_v9 = vmul.f32 %v7742_v7, %v9103_v16  ;;  %v384_v13 = vadd.f32 %v368_v61, %v311_v60  ;;  %v9278_v58 = vld [vmem:[%s9078_s12 + $0xc8] sm:$0xff] }
  0x27   : > { %v9197_v47 = vadd.f32 %v9169_v18, %v817_v32  ;;  %v818_v63 = vadd.f32 %v802_v48, %v780_v51  ;;  %v425_v15 = vmul.f32 %v7742_v7, %v9073_v2  ;;  %v724_v11 = vadd.f32 %v708_v5, %v667_v4  ;;  %v9251_v32 = vld [vmem:[%s9078_s12 + $0xc0] sm:$0xff] }
  0x28   : > { %15708 = vst [vmem:[#allocation3_spill] sm:$0xff] %v9178_v27  ;;  %v951_v33 = vrot.slane %v9178_v27, 7  ;;  %v870_v34 = vrot.slane %v9178_v27, 6  ;;  %v1308_v44 = vrot.slane %v9178_v27, 1  ;;  %v1487_v46 = vrot.slane %v9178_v27, 2 }
  0x29   : > { %15709 = vst [vmem:[#allocation4_spill] sm:$0xff] %v9197_v47  ;;  %v952_v45 = vrot.slane %v9197_v47, 7  ;;  %v871_v62 = vrot.slane %v9197_v47, 6  ;;  %v9237_v17 = vadd.f32 %v9169_v18, %v818_v63  ;;  %v765_v19 = vmul.f32 %v9133_v39, %v7742_v7  ;;  %v7744_v7 = vld [vmem:[%s9078_s12 + $0x158] sm:$0xff] }
  0x2a   : > { %1130 = vrot.lane.b32.xlu1 %v951_v33, %s9007_s8  ;;  %886 = vrot.lane.b32.xlu0 %v870_v34, %s9007_s8  ;;  %v9192_v43 = vsel %vm983_vm0, 0.0, %v951_v33  ;;  %v9208_v55 = vsel %vm1340_vm1, %v1308_v44, 0.0  ;;  %v1520_v56 = vsel %vm1519_vm2, %v1487_v46, 0.0  ;;  %v1309_v20 = vrot.slane %v9197_v47, 1 }
  0x2b   : > { %v9227_v6 = vsel %vm983_vm0, 0.0, %v952_v45  ;;  %15710 = vst [vmem:[#allocation5_spill] sm:$0xff] %v9237_v17  ;;  %v1488_v21 = vrot.slane %v9197_v47, 2  ;;  %v611_v22 = vadd.f32 %v595_v9, %v554_v8  ;;  %v652_v23 = vmul.f32 %v9114_v24, %v7707_v10  ;;  %v7759_v8 = vld [vmem:[%s15435_s3] ss:$0 sm:$0xff] }
  0x2c   : > { %v441_v26 = vadd.f32 %v425_v15, %v384_v13  ;;  %v482_v28 = vmul.f32 %v7707_v10, %v9083_v3  ;;  %v953_v29 = vrot.slane %v9237_v17, 7  ;;  %v781_v31 = vadd.f32 %v765_v19, %v724_v11  ;;  %v7709_v11 = vld [vmem:[%s9078_s12 + $0x40] sm:$0xff] }
  0x2d   : > { %v803_v25 = vmul.f32 %v9150_v52, %v9163_v14  ;;  %v9254_v33 = vsel %vm1340_vm1, %v1309_v20, 0.0  ;;  %v1521_v34 = vsel %vm1519_vm2, %v1488_v21, 0.0  ;;  %v312_v35 = vmul.f32 %v7707_v10, %v9063_v0  ;;  %v9308_v21 = vld [vmem:[%s9078_s12 + $0xd0] sm:$0xff] }
  0x2e   : > { %1194 = vrot.lane.b32.xlu1 %v9178_v27, %s9007_s8  ;;  %1016 = vrot.lane.b32.xlu0 %v9192_v43, %s9007_s8  ;;  %v369_v36 = vmul.f32 %v9251_v32, %v9068_v1  ;;  %v668_v38 = vadd.f32 %v652_v23, %v611_v22  ;;  %v709_v40 = vmul.f32 %v9122_v30, %v9251_v32  ;;  %v872_v42 = vrot.slane %v9237_v17, 6 }
  0x2f   : > { %v498_v14 = vadd.f32 %v482_v28, %v441_v26  ;;  %v539_v41 = vmul.f32 %v9251_v32, %v9096_v12  ;;  %v9270_v44 = vsel %vm983_vm0, 0.0, %v953_v29  ;;  %v819_v46 = vadd.f32 %v803_v25, %v781_v31 }
  0x30   : > { %v385_v48 = vadd.f32 %v369_v36, %v312_v35  ;;  %v426_v49 = vmul.f32 %v7743_v37, %v9073_v2  ;;  %v1310_v50 = vrot.slane %v9237_v17, 1  ;;  %v725_v51 = vadd.f32 %v709_v40, %v668_v38  ;;  %v7745_v40 = vld [vmem:[%s9078_s12 + $0x160] sm:$0xff] }
  0x31   : > { %v766_v53 = vmul.f32 %v9133_v39, %v7743_v37  ;;  %v555_v54 = vadd.f32 %v539_v41, %v498_v14  ;;  %v1489_v59 = vrot.slane %v9237_v17, 2  ;;  %v9285_v60 = vadd.f32 %v9169_v18, %v819_v46  ;;  %v9331_v14 = vld [vmem:[%s15435_s3 + $0x3] ss:$0 sm:$0xff] }
  0x32   : > { %1373 = vrot.lane.b32.xlu0 %v9208_v55, %s9007_s8  ;;  %1552 = vrot.lane.b32.xlu1 %v1520_v56, %s9007_s8  ;;  %v596_v56 = vmul.f32 %v7743_v37, %v9103_v16  ;;  %v442_v63 = vadd.f32 %v426_v49, %v385_v48  ;;  %v9292_v5 = vsel %vm1340_vm1, %v1310_v50, 0.0  ;;  %v804_v10 = vmul.f32 %v9150_v52, %v9213_v57  ;;  %v9314_v57 = vld [vmem:[%s15435_s3 + $0x1] ss:$0 sm:$0xff] }
  0x33   : > { %15711 = vst [vmem:[#allocation6_spill] sm:$0xff] %v9285_v60  ;;  %v782_v9 = vadd.f32 %v766_v53, %v725_v51  ;;  %v1522_v19 = vsel %vm1519_vm2, %v1489_v59, 0.0  ;;  %v954_v20 = vrot.slane %v9285_v60, 7  ;;  %v427_v23 = vmul.f32 %v7744_v7, %v9073_v2  ;;  %v7710_v53 = vld [vmem:[%s9078_s12 + $0x48] sm:$0xff] }
  0x34   : > { %v612_v13 = vadd.f32 %v596_v56, %v555_v54  ;;  %v540_v28 = vmul.f32 %v9278_v58, %v9096_v12  ;;  %v314_v31 = vmul.f32 %v7709_v11, %v9063_v0  ;;  %v371_v25 = vmul.f32 %v9308_v21, %v9068_v1 }
  0x35   : > { %v873_v35 = vrot.slane %v9285_v60, 6  ;;  %v820_v36 = vadd.f32 %v804_v10, %v782_v9  ;;  %v710_v38 = vmul.f32 %v9122_v30, %v9278_v58  ;;  %v9337_v41 = vsel %vm983_vm0, 0.0, %v954_v20 }
  0x36   : > { %888 = vrot.lane.b32.xlu0 %v871_v62, %s9007_s8  ;;  %1018 = vrot.lane.b32.xlu1 %v9227_v6, %s9007_s8  ;;  %v370_v62 = vmul.f32 %v9278_v58, %v9068_v1  ;;  %v484_v46 = vmul.f32 %v7709_v11, %v9083_v3  ;;  %v1720_v48 = vmul.f32 0.0, %v9314_v57  ;;  %v597_v50 = vmul.f32 %v7744_v7, %v9103_v16 }
  0x37   : > { %v1311_v51 = vrot.slane %v9285_v60, 1  ;;  %v387_v54 = vadd.f32 %v371_v25, %v314_v31  ;;  %v428_v56 = vmul.f32 %v7745_v40, %v9073_v2  ;;  %v1490_v59 = vrot.slane %v9285_v60, 2  ;;  %v9375_v31 = vld [vmem:[%s15435_s3 + $0x5] ss:$0 sm:$0xff] }
  0x38   : > { %v541_v10 = vmul.f32 %v9308_v21, %v9096_v12 }
  0x39   : > { %v1523_v25 = vsel %vm1519_vm2, %v1490_v59, 0.0  ;;  %v9396_v59 = vld [vmem:[%s15435_s3 + $0x8] ss:$0 sm:$0xff] }
  0x3a   : > { %1132 = vrot.lane.b32.xlu0 %v952_v45, %s9007_s8  ;;  %1196 = vrot.lane.b32.xlu1 %v9197_v47, %s9007_s8  ;;  %v7708_v45 = vld [vmem:[%s9078_s12 + $0x38] sm:$0xff] }
  0x3b   : > { %v313_v61 = vmul.f32 %v7708_v45, %v9063_v0  ;;  %v483_v4 = vmul.f32 %v7708_v45, %v9083_v3  ;;  %v653_v15 = vmul.f32 %v9114_v24, %v7708_v45 }
  0x3d   : > { %v386_v22 = vadd.f32 %v370_v62, %v313_v61  ;;  %v499_v26 = vadd.f32 %v483_v4, %v442_v63  ;;  %v669_v37 = vadd.f32 %v653_v15, %v612_v13  ;;  %v9347_v61 = vadd.f32 %v9169_v18, %v820_v36  ;;  %v9351_v4 = vld [vmem:[%s9078_s12 + $0xd8] sm:$0xff]  ;;  %v7767_v15 = vld [vmem:[%s15435_s3 + $0x4] ss:$0 sm:$0xff] }
  0x3e   : > { %1375 = vrot.lane.b32.xlu0 %v9254_v33, %s9007_s8  ;;  %1554 = vrot.lane.b32.xlu1 %v1521_v34, %s9007_s8  ;;  %v1664_v34 = vmul.f32 0.0, %v7759_v8  ;;  %v767_v63 = vmul.f32 %v9133_v39, %v7744_v7  ;;  %v654_v8 = vmul.f32 %v9114_v24, %v7709_v11  ;;  %v1832_v13 = vmul.f32 0.0, %v9331_v14 }
  0x3f   : > { %v556_v49 = vadd.f32 %v540_v28, %v499_v26  ;;  %15712 = vst [vmem:[#allocation7_spill] sm:$0xff] %v9347_v61  ;;  %v726_v62 = vadd.f32 %v710_v38, %v669_v37  ;;  %v9367_v11 = vsel %vm1340_vm1, %v1311_v51, 0.0  ;;  %v805_v26 = vmul.f32 %v9150_v52, %v9251_v32 }
  0x40   : > { %15713 = vst [vmem:[#allocation8_spill] sm:$0xff] %v9367_v11  ;;  %v444_v28 = vadd.f32 %v428_v56, %v387_v54  ;;  %v955_v32 = vrot.slane %v9347_v61, 7  ;;  %v598_v38 = vmul.f32 %v7745_v40, %v9103_v16  ;;  %v1944_v56 = vmul.f32 0.0, %v9375_v31 }
  0x41   : > { %v613_v7 = vadd.f32 %v597_v50, %v556_v49 }
  0x42   : > { %890 = vrot.lane.b32.xlu0 %v872_v42, %s9007_s8  ;;  %1020 = vrot.lane.b32.xlu1 %v9270_v44, %s9007_s8  ;;  %v443_v42 = vadd.f32 %v427_v23, %v386_v22  ;;  %v372_v22 = vmul.f32 %v9351_v4, %v9068_v1  ;;  %v1736_v23 = vadd.f32 %v1720_v48, %v1664_v34 }
  0x43   : > { %v711_v34 = vmul.f32 %v9122_v30, %v9308_v21  ;;  %v670_v48 = vadd.f32 %v654_v8, %v613_v7  ;;  %v768_v8 = vmul.f32 %v9133_v39, %v7745_v40  ;;  %v655_v7 = vmul.f32 %v9114_v24, %v7710_v53 }
  0x44   : > { %v500_v9 = vadd.f32 %v484_v46, %v443_v42  ;;  %v7746_v42 = vld [vmem:[%s9078_s12 + $0x168] sm:$0xff]  ;;  %v1888_v46 = vmul.f32 0.0, %v7767_v15 }
  0x45   : > { %v429_v50 = vmul.f32 %v7746_v42, %v9073_v2 }
  0x46   : > { %1134 = vrot.lane.b32.xlu0 %v953_v29, %s9007_s8  ;;  %1198 = vrot.lane.b32.xlu1 %v9237_v17, %s9007_s8  ;;  %v7763_v29 = vld [vmem:[%s15435_s3 + $0x2] ss:$0 sm:$0xff]  ;;  %v557_v37 = vadd.f32 %v541_v10, %v500_v9  ;;  %v7711_v9 = vld [vmem:[%s9078_s12 + $0x50] sm:$0xff] }
  0x47   : > { %v1776_v45 = vmul.f32 0.0, %v7763_v29  ;;  %v485_v29 = vmul.f32 %v7710_v53, %v9083_v3  ;;  %v9404_v10 = vld [vmem:[%s15435_s3 + $0x7] ss:$0 sm:$0xff] }
  0x48   : > { %15714 = vst [vmem:[#allocation9_spill] sm:$0xff] %v9404_v10  ;;  %v614_v15 = vadd.f32 %v598_v38, %v557_v37  ;;  %v2057_v37 = vmul.f32 0.0, %v9404_v10 }
  0x49   : > { %v1792_v36 = vadd.f32 %v1776_v45, %v1736_v23  ;;  %v501_v54 = vadd.f32 %v485_v29, %v444_v28  ;;  %v7771_v45 = vld [vmem:[%s15435_s3 + $0x6] ss:$0 sm:$0xff]  ;;  %v486_v23 = vmul.f32 %v7711_v9, %v9083_v3 }
  0x4a   : > { %1377 = vrot.lane.b32.xlu0 %v9292_v5, %s9007_s8  ;;  %1556 = vrot.lane.b32.xlu1 %v1522_v19, %s9007_s8  ;;  %v315_v19 = vmul.f32 %v7710_v53, %v9063_v0  ;;  %v2000_v28 = vmul.f32 0.0, %v7771_v45  ;;  %v1491_v53 = vrot.slane %v9347_v61, 2  ;;  %v8301_v45 = vld [vmem:[%s15436_s4 + $0xec] ss:$16 sps:$4 sm:$0xff]  }
  0x4b   : > { %v1848_v51 = vadd.f32 %v1832_v13, %v1792_v36  ;;  %v9410_v13 = vsel %vm983_vm0, 0.0, %v955_v32  ;;  %v1312_v36 = vrot.slane %v9347_v61, 1  ;;  %4752 = vmatprep.subr.bf16.mxu1 %v8301_v45 }
  0x4c   : > { %v388_v49 = vadd.f32 %v372_v22, %v315_v19  ;;  %15715 = vst [vmem:[#allocation10_spill] sm:$0xff] %v9410_v13  ;;  %v727_v22 = vadd.f32 %v711_v34, %v670_v48  ;;  %v806_v34 = vmul.f32 %v9150_v52, %v9278_v58  ;;  %v712_v48 = vmul.f32 %v9122_v30, %v9351_v4  ;;  %v8299_v58 = vld [vmem:[%s15436_s4 + $0xe4] ss:$16 sps:$4 sm:$0xff]  }
  0x4d   : > { %v1904_v19 = vadd.f32 %v1888_v46, %v1848_v51  ;;  %v671_v46 = vadd.f32 %v655_v7, %v614_v15  ;;  %v656_v15 = vmul.f32 %v9114_v24, %v7711_v9  ;;  %4699 = vmatprep.subr.bf16.mxu0 %v8299_v58  ;;  %v9487_v58 = vld [vmem:[%s15435_s3 + $0x16] ss:$0 sm:$0xff] }
  0x4e   : > { %892 = vrot.lane.b32.xlu0 %v873_v35, %s9007_s8  ;;  %1022 = vrot.lane.b32.xlu1 %v9337_v41, %s9007_s8  ;;  %v783_v35 = vadd.f32 %v767_v63, %v726_v62  ;;  %v874_v62 = vrot.slane %v9347_v61, 6  ;;  %v445_v40 = vadd.f32 %v429_v50, %v388_v49  ;;  %v9434_v49 = vld [vmem:[%s9078_s12 + $0xe0] sm:$0xff]  ;;  %v2114_v50 = vmul.f32 0.0, %v9396_v59 }
  0x4f   : > { %v784_v51 = vadd.f32 %v768_v8, %v727_v22  ;;  %v9454_v8 = vsel %vm1340_vm1, %v1312_v36, 0.0  ;;  %v7747_v22 = vld [vmem:[%s9078_s12 + $0x170] sm:$0xff] }
  0x50   : > { %v821_v63 = vadd.f32 %v805_v26, %v783_v35  ;;  %v9417_v26 = vld [vmem:[%s15435_s3 + $0x9] ss:$0 sm:$0xff]  ;;  %v1960_v35 = vadd.f32 %v1944_v56, %v1904_v19  ;;  %15720 = vst [vmem:[#allocation15_spill] sm:$0xff] %v9454_v8  ;;  %v1524_v19 = vsel %vm1519_vm2, %v1491_v53, 0.0  ;;  %v8303_v36 = vld [vmem:[%s15436_s4 + $0xe0] ss:$16 sps:$4 sm:$0xff]  }
  0x51   : > { %15716 = vst [vmem:[#allocation11_spill] sm:$0xff] %v9417_v26  ;;  %v2171_v7 = vmul.f32 0.0, %v9417_v26  ;;  %v822_v53 = vadd.f32 %v806_v34, %v784_v51  ;;  %4700 = vmatpush1.bf16.msra.mxu0 %v8303_v36  ;;  %v8309_v36 = vld [vmem:[%s15436_s4 + $0xc0] ss:$16 sps:$4 sm:$0xff]  }
  0x52   : > { %1136 = vrot.lane.b32.xlu0 %v954_v20, %s9007_s8  ;;  %1200 = vrot.lane.b32.xlu1 %v9285_v60, %s9007_s8  ;;  %v542_v20 = vmul.f32 %v9351_v4, %v9096_v12  ;;  %v9429_v38 = vadd.f32 %v9169_v18, %v821_v63  ;;  %v9442_v56 = vadd.f32 %v2000_v28, %v1960_v35  ;;  %v9877_v60 = vld [vmem:[%s15433_s1] ss:$0 sm:$0xff] }
  0x53   : > { %v373_v35 = vmul.f32 %v9434_v49, %v9068_v1 }
  0x54   : > { %v558_v29 = vadd.f32 %v542_v20, %v501_v54  ;;  %15717 = vst [vmem:[#allocation12_spill] sm:$0xff] %v9429_v38  ;;  %v502_v54 = vadd.f32 %v486_v23, %v445_v40  ;;  %v543_v20 = vmul.f32 %v9434_v49, %v9096_v12  ;;  %15718 = vst [vmem:[#allocation13_spill] sm:$0xff] %v9442_v56  ;;  %v1313_v34 = vrot.slane %v9429_v38, 1 }
  0x55   : > { %v2073_v40 = vadd.f32 %v2057_v37, %v9442_v56  ;;  %v316_v23 = vmul.f32 %v7711_v9, %v9063_v0  ;;  %v9476_v9 = vld [vmem:[%s15435_s3 + $0xf] ss:$0 sm:$0xff]  ;;  %v9521_v56 = vadd.f32 %v9169_v18, %v822_v53 }
  0x56   : > { %1379 = vrot.lane.b32.xlu0 %v9367_v11, %s9007_s8  ;;  %1558 = vrot.lane.b32.xlu1 %v1523_v25, %s9007_s8  ;;  %v599_v25 = vmul.f32 %v7746_v42, %v9103_v16  ;;  %v559_v37 = vadd.f32 %v543_v20, %v502_v54  ;;  %v9491_v45 = vmul.f32 %v9476_v9, %v9192_v43  ;;  %v7712_v54 = vld [vmem:[%s9078_s12 + $0x58] sm:$0xff]  ;;  %v1492_v20 = vrot.slane %v9429_v38, 2 }
  0x57   : > { %v389_v28 = vadd.f32 %v373_v35, %v316_v23  ;;  %15724 = vst [vmem:[#allocation18_spill] sm:$0xff] %v9521_v56  ;;  %v657_v10 = vmul.f32 %v9114_v24, %v7712_v54  ;;  %v9540_v53 = vsel %vm1340_vm1, %v1313_v34, 0.0 }
  0x58   : > { %v615_v63 = vadd.f32 %v599_v25, %v558_v29  ;;  %v728_v29 = vadd.f32 %v712_v48, %v671_v46  ;;  %v769_v25 = vmul.f32 %v9133_v39, %v7746_v42  ;;  %v600_v42 = vmul.f32 %v7747_v22, %v9103_v16  ;;  %v9482_v48 = vld [vmem:[%s15435_s3 + $0xa] ss:$0 sm:$0xff]  ;;  %15721 = vst [vmem:[#allocation16_spill] sm:$0xff] %v9491_v45  ;;  %v8305_v45 = vld [vmem:[%s15436_s4 + $0xc4] ss:$16 sps:$4 sm:$0xff]  }
  0x59   : > { %v2130_v46 = vadd.f32 %v2114_v50, %v2073_v40  ;;  %v713_v50 = vmul.f32 %v9122_v30, %v9434_v49  ;;  %v807_v40 = vmul.f32 %v9150_v52, %v9308_v21  ;;  %v2228_v35 = vmul.f32 0.0, %v9482_v48  ;;  %4701 = vmatprep.subr.bf16.mxu0 %v8305_v45  ;;  %15727 = vst [vmem:[#allocation21_spill] sm:$0xff] %v9540_v53 }
  0x5a   : > { %894 = vrot.lane.b32.xlu0 %v874_v62, %s9007_s8  ;;  %1024 = vrot.lane.b32.xlu1 %v9410_v13, %s9007_s8  ;;  %v9449_v62 = vmul.f32 %v9396_v59, %v9192_v43  ;;  %v672_v51 = vadd.f32 %v656_v15, %v615_v63  ;;  %v8307_v63 = vld [vmem:[%s15436_s4 + $0xcc] ss:$16 sps:$4 sm:$0xff]   ;;  %v875_v15 = vrot.slane %v9429_v38, 6  ;;  %v785_v21 = vadd.f32 %v769_v25, %v728_v29  ;;  %v8310_v25 = vld [vmem:[%s15436_s4 + $0xc8] ss:$16 sps:$4 sm:$0xff]  }
  0x5b   : > { %v2187_v23 = vadd.f32 %v2171_v7, %v2130_v46  ;;  %v9525_v29 = vld [vmem:[%s9078_s12 + $0xe8] sm:$0xff]  ;;  %v9537_v46 = vmul.f32 %v9487_v58, %v9192_v43  ;;  %v808_v45 = vmul.f32 %v9150_v52, %v9351_v4  ;;  %4702 = vmatpush1.bf16.msra.mxu0 %v8309_v36  ;;  %v9828_v13 = vld [vmem:[%s9078_s12 + $0xf8] sm:$0xff] }
  0x5c   : > { %15719 = vst [vmem:[#allocation14_spill] sm:$0xff] %v9449_v62  ;;  %v430_v62 = vmul.f32 %v7747_v22, %v9073_v2  ;;  %v9530_v7 = vld [vmem:[%s15435_s3 + $0xb] ss:$0 sm:$0xff]  ;;  %v729_v24 = vadd.f32 %v713_v50, %v672_v51  ;;  %v823_v34 = vadd.f32 %v807_v40, %v785_v21  ;;  %v9557_v4 = vld [vmem:[%s15435_s3 + $0xc] ss:$0 sm:$0xff]  ;;  %v1493_v21 = vrot.slane %v9521_v56, 2 }
  0x5d   : > { %15725 = vst [vmem:[#allocation19_spill] sm:$0xff] %v9530_v7  ;;  %15726 = vst [vmem:[#allocation20_spill] sm:$0xff] %v9537_v46  ;;  %v2244_v51 = vadd.f32 %v2228_v35, %v2187_v23  ;;  %v2285_v50 = vmul.f32 0.0, %v9530_v7  ;;  %v8313_v40 = vld [vmem:[%s15436_s4 + $0xac] ss:$16 sps:$4 sm:$0xff]   ;;  %v317_v35 = vmul.f32 %v7712_v54, %v9063_v0 }
  0x5e   : > { %1138 = vrot.lane.b32.xlu0 %v955_v32, %s9007_s8  ;;  %1202 = vrot.lane.b32.xlu1 %v9347_v61, %s9007_s8  ;;  %v8304_v32 = vld [vmem:[%s15436_s4 + $0xe8] ss:$16 sps:$4 sm:$0xff]   ;;  %v487_v61 = vmul.f32 %v7712_v54, %v9083_v3  ;;  %v15729_v54 = vrot.slane %v9429_v38, 7 }
  0x5f   : > { %4753 = vmatpush1.bf16.msra.mxu1 %v8304_v32  ;;  %v15722_v32 = vrot.slane %v9429_v38, 7  ;;  %v8316_v0 = vld [vmem:[%s15436_s4 + $0xa8] ss:$16 sps:$4 sm:$0xff]  }
  0x60   : > { %4754 = vmatprep.subr.bf16.mxu1 %v8307_v63 }
  0x61   : > { %v9518_v26 = vsel %vm983_vm0, 0.0, %v15722_v32  ;;  %v1525_v32 = vsel %vm1519_vm2, %v1492_v20, 0.0 }
  0x62   : > { %1381 = vrot.lane.b32.xlu0 %v9454_v8, %s9007_s8  ;;  %1560 = vrot.lane.b32.xlu1 %v1524_v19, %s9007_s8  ;;  %15723 = vst [vmem:[#allocation17_spill] sm:$0xff] %v9518_v26  ;;  %v616_v19 = vadd.f32 %v600_v42, %v559_v37  ;;  %v770_v37 = vmul.f32 %v9133_v39, %v7747_v22  ;;  %v7748_v42 = vld [vmem:[%s9078_s12 + $0x178] sm:$0xff] }
  0x63   : > { %v446_v8 = vadd.f32 %v430_v62, %v389_v28  ;;  %v714_v22 = vmul.f32 %v9122_v30, %v9525_v29  ;;  %v15447_v62 = vrot.slane %v9521_v56, 7  ;;  %v1314_v28 = vrot.slane %v9521_v56, 1  ;;  %4755 = vmatpush1.bf16.msra.mxu1 %v8310_v25  ;;  %v8311_v30 = vld [vmem:[%s15436_s4 + $0xa4] ss:$16 sps:$4 sm:$0xff]  }
  0x64   : > { %v673_v20 = vadd.f32 %v657_v10, %v616_v19  ;;  %v771_v63 = vmul.f32 %v9133_v39, %v7748_v42  ;;  %v786_v23 = vadd.f32 %v770_v37, %v729_v24  ;;  %v8315_v39 = vld [vmem:[%s15436_s4 + $0xa0] ss:$16 sps:$4 sm:$0xff]   ;;  %v9577_v10 = vld [vmem:[%s15435_s3 + $0xd] ss:$0 sm:$0xff]  ;;  %v544_v19 = vmul.f32 %v9525_v29, %v9096_v12  ;;  %4703 = vmatprep.subr.bf16.mxu0 %v8311_v30 }
  0x65   : > { %15728 = vst [vmem:[#allocation22_spill] sm:$0xff] %v9577_v10  ;;  %v503_v36 = vadd.f32 %v487_v61, %v446_v8  ;;  %v374_v25 = vmul.f32 %v9525_v29, %v9068_v1  ;;  %v431_v24 = vmul.f32 %v7748_v42, %v9073_v2  ;;  %v9593_v12 = vadd.f32 %v9169_v18, %v823_v34  ;;  %v9600_v2 = vld [vmem:[%s15435_s3 + $0x10] ss:$0 sm:$0xff] }
  0x66   : > { %896 = vrot.lane.b32.xlu0 %v875_v15, %s9007_s8  ;;  %1026 = vrot.lane.b32.xlu1 %v9518_v26, %s9007_s8  ;;  %v809_v1 = vmul.f32 %v9150_v52, %v9434_v49  ;;  %15731 = vst [vmem:[#allocation24_spill] sm:$0xff] %v9600_v2  ;;  %v2301_v61 = vadd.f32 %v2285_v50, %v2244_v51  ;;  %v2342_v8 = vmul.f32 0.0, %v9557_v4  ;;  %v9606_v37 = vsel %vm983_vm0, 0.0, %v15447_v62  ;;  %v9614_v52 = vld [vmem:[%s15435_s3 + $0xe] ss:$0 sm:$0xff]  ;;  %v9617_v49 = vld [vmem:[%s9078_s12 + $0x60] sm:$0xff] }
  0x67   : > { %15730 = vst [vmem:[#allocation23_spill] sm:$0xff] %v9593_v12  ;;  %15732 = vst [vmem:[#allocation25_spill] sm:$0xff] %v9606_v37  ;;  %v9609_v30 = vsel %vm1340_vm1, %v1314_v28, 0.0  ;;  %v730_v34 = vadd.f32 %v714_v22, %v673_v20  ;;  %4756 = vmatprep.subr.bf16.mxu1 %v8313_v40  ;;  %v9620_v51 = vsel %vm1519_vm2, %v1493_v21, 0.0  ;;  %v9624_v50 = vmul.f32 %v9314_v57, %v9192_v43  ;;  %v8317_v20 = vld [vmem:[%s15436_s4 + $0x84] ss:$16 sps:$4 sm:$0xff]  }
  0x68   : > { %15733 = vst [vmem:[#allocation26_spill] sm:$0xff] %v9609_v30  ;;  %15734 = vst [vmem:[#allocation27_spill] sm:$0xff] %v9614_v52  ;;  %v2399_v28 = vmul.f32 0.0, %v9577_v10  ;;  %v488_v22 = vmul.f32 %v9617_v49, %v9083_v3  ;;  %4704 = vmatpush1.bf16.msra.mxu0 %v8315_v39  ;;  %v8319_v40 = vld [vmem:[%s15436_s4 + $0x8c] ss:$16 sps:$4 sm:$0xff]   ;;  %v824_v21 = vadd.f32 %v808_v45, %v786_v23  ;;  %4757 = vmatpush1.bf16.msra.mxu1 %v8316_v0 }
  0x69   : > { %15735 = vst [vmem:[#allocation28_spill] sm:$0xff] %v9624_v50  ;;  %v9638_v43 = vld [vmem:[%s15435_s3 + $0x11] ss:$0 sm:$0xff]  ;;  %v560_v3 = vadd.f32 %v544_v19, %v503_v36  ;;  %v601_v39 = vmul.f32 %v7748_v42, %v9103_v16  ;;  %v1315_v23 = vrot.slane %v9593_v12, 1  ;;  %v2358_v62 = vadd.f32 %v2342_v8, %v2301_v61  ;;  %v9662_v42 = vld [vmem:[%s15435_s3 + $0x13] ss:$0 sm:$0xff]  ;;  %4705 = vmatprep.subr.bf16.mxu0 %v8317_v20 }
  0x6a   : > { %1140 = vrot.lane.b32.xlu0 %v15729_v54, %s9007_s8  ;;  %1204 = vrot.lane.b32.xlu1 %v9429_v38, %s9007_s8  ;;  %v390_v54 = vadd.f32 %v374_v25, %v317_v35  ;;  %v9643_v35 = vld [vmem:[%s15435_s3 + $0x12] ss:$0 sm:$0xff]  ;;  %v2456_v15 = vmul.f32 0.0, %v9614_v52  ;;  %v1494_v10 = vrot.slane %v9593_v12, 2  ;;  %v787_v7 = vadd.f32 %v771_v63, %v730_v34  ;;  %v9676_v63 = vld [vmem:[%s15435_s3 + $0x14] ss:$0 sm:$0xff] }
  0x6b   : > { %15736 = vst [vmem:[#allocation29_spill] sm:$0xff] %v9643_v35  ;;  %v9654_v36 = vmul.f32 0.0, %v9476_v9  ;;  %v9657_v16 = vmul.f32 0.0, %v9600_v2  ;;  %v9668_v19 = vmul.f32 0.0, %v9638_v43  ;;  %15737 = vst [vmem:[#allocation30_spill] sm:$0xff] %v9676_v63  ;;  %4758 = vmatprep.subr.bf16.mxu1 %v8319_v40  ;;  %v617_v20 = vadd.f32 %v601_v39, %v560_v3 }
  0x6c   : > { %v447_v25 = vadd.f32 %v431_v24, %v390_v54  ;;  %v9671_v24 = vmul.f32 0.0, %v9643_v35  ;;  %v9681_v61 = vld [vmem:[%s15434_s2 + $0x4] ss:$0 sm:$0xff]  ;;  %v9687_v54 = vadd.f32 %v9169_v18, %v824_v21  ;;  %v8321_v45 = vld [vmem:[%s15436_s4 + $0x80] ss:$16 sps:$4 sm:$0xff]   ;;  %v15739_v21 = vrot.slane %v9521_v56, 6 }
  0x6d   : > { %v8322_v40 = vld [vmem:[%s15436_s4 + $0x88] ss:$16 sps:$4 sm:$0xff]   ;;  %v15740_v3 = vrot.slane %v9593_v12, 7  ;;  %v9713_v34 = vsel %vm1340_vm1, %v1315_v23, 0.0  ;;  %v9715_v35 = vadd.f32 %v2399_v28, %v2358_v62  ;;  %v9718_v46 = vmul.f32 0.0, %v9662_v42  ;;  %v7749_v28 = vld [vmem:[%s9078_s12 + $0x180] sm:$0xff]  ;;  %4706 = vmatpush1.bf16.msra.mxu0 %v8321_v45 }
  0x6e   : > { %1383 = vrot.lane.b32.xlu0 %v9540_v53, %s9007_s8  ;;  %1562 = vrot.lane.b32.xlu1 %v1525_v32, %s9007_s8  ;;  %v9665_v32 = vld [vmem:[%s9078_s12 + $0xf0] sm:$0xff]  ;;  %v504_v0 = vadd.f32 %v488_v22, %v447_v25  ;;  %15738 = vst [vmem:[#allocation31_spill] sm:$0xff] %v9687_v54  ;;  %v9692_v22 = vld [vmem:[%s15434_s2 + $0x6] ss:$0 sm:$0xff]  ;;  %15742 = vst [vmem:[#allocation33_spill] sm:$0xff] %v9713_v34  ;;  %v9726_v2 = vsel %vm1519_vm2, %v1494_v10, 0.0  ;;  %v825_v50 = vadd.f32 %v809_v1, %v787_v7 }
  0x6f   : > { %v545_v8 = vmul.f32 %v9681_v61, %v9665_v32  ;;  %v658_v25 = vmul.f32 %v9692_v22, %v9617_v49  ;;  %v9710_v39 = vsel %vm983_vm0, 0.0, %v15740_v3  ;;  %15743 = vst [vmem:[#allocation34_spill] sm:$0xff] %v9715_v35  ;;  %v9729_v3 = vmul.f32 0.0, %v9676_v63  ;;  %v9747_v7 = vld [vmem:[%s15434_s2 + $0x5] ss:$0 sm:$0xff]  ;;  %4759 = vmatpush1.bf16.msra.mxu1 %v8322_v40  ;;  %v7714_v40 = vld [vmem:[%s9078_s12 + $0x68] sm:$0xff] }
  0x70   : > { %15741 = vst [vmem:[#allocation32_spill] sm:$0xff] %v9710_v39  ;;  %v9733_v62 = vmul.f32 %v9331_v14, %v9178_v27  ;;  %v9738_v23 = vmul.f32 %v9482_v48, %v9178_v27  ;;  %v9742_v52 = vmul.f32 %v9638_v43, %v9178_v27  ;;  %v602_v1 = vmul.f32 %v9747_v7, %v7749_v28  ;;  %v8323_v45 = vld [vmem:[%s15436_s4 + $0x64] ss:$16 sps:$4 sm:$0xff]   ;;  %v8327_v63 = vld [vmem:[%s15436_s4 + $0x60] ss:$16 sps:$4 sm:$0xff]  }
  0x71   : > { %v561_v10 = vadd.f32 %v545_v8, %v504_v0  ;;  %v9761_v0 = vld [vmem:[%s15434_s2 + $0x7] ss:$0 sm:$0xff]  ;;  %v1495_v53 = vrot.slane %v9687_v54, 2  ;;  %v9786_v38 = vadd.f32 %v9169_v18, %v825_v50  ;;  %4707 = vmatprep.subr.bf16.mxu0 %v8323_v45  ;;  %v659_v50 = vmul.f32 %v9692_v22, %v7714_v40  ;;  %v8640_v45 = vld [vmem:[%s15434_s2 + $0x1] ss:$0 sm:$0xff] }
  0x72   : > { %898 = vrot.lane.b32.xlu0 %v15739_v21, %s9007_s8  ;;  %1028 = vrot.lane.b32.xlu1 %v9606_v37, %s9007_s8  ;;  %v9723_v21 = vld [vmem:[%s15435_s3 + $0x18] ss:$0 sm:$0xff]  ;;  %15745 = vst [vmem:[#allocation36_spill] sm:$0xff] %v9733_v62  ;;  %15746 = vst [vmem:[#allocation37_spill] sm:$0xff] %v9738_v23  ;;  %v715_v8 = vmul.f32 %v9761_v0, %v9665_v32  ;;  %v8325_v62 = vld [vmem:[%s15436_s4 + $0x6c] ss:$16 sps:$4 sm:$0xff]   ;;  %v9782_v37 = vmul.f32 %v9375_v31, %v9208_v55 }
  0x73   : > { %15744 = vst [vmem:[#allocation35_spill] sm:$0xff] %v9723_v21  ;;  %15747 = vst [vmem:[#allocation38_spill] sm:$0xff] %v9742_v52  ;;  %v9756_v23 = vmul.f32 %v9723_v21, %v9178_v27  ;;  %v674_v52 = vadd.f32 %v658_v25, %v617_v20  ;;  %v15749_v20 = vrot.slane %v9521_v56, 7  ;;  %v1316_v27 = vrot.slane %v9687_v54, 1  ;;  %4760 = vmatprep.subr.bf16.mxu1 %v8325_v62  ;;  %v8642_v62 = vld [vmem:[%s15434_s2 + $0x2] ss:$0 sm:$0xff] }
  0x74   : > { %15750 = vst [vmem:[#allocation40_spill] sm:$0xff] %v9782_v37  ;;  %15751 = vst [vmem:[#allocation41_spill] sm:$0xff] %v9786_v38  ;;  %v9794_v25 = vmul.f32 %v9662_v42, %v9208_v55  ;;  %v9802_v37 = vld [vmem:[%s15435_s3 + $0x1a] ss:$0 sm:$0xff]  ;;  %v618_v18 = vadd.f32 %v602_v1, %v561_v10  ;;  %v15755_v10 = vrot.slane %v9687_v54, 7  ;;  %4708 = vmatpush1.bf16.msra.mxu0 %v8327_v63 }
  0x75   : > { %15748 = vst [vmem:[#allocation39_spill] sm:$0xff] %v9756_v23  ;;  %v2472_v23 = vadd.f32 %v2456_v15, %v9715_v35  ;;  %v8328_v15 = vld [vmem:[%s15436_s4 + $0x68] ss:$16 sps:$4 sm:$0xff]   ;;  %15754 = vst [vmem:[#allocation44_spill] sm:$0xff] %v9802_v37  ;;  %v8329_v35 = vld [vmem:[%s15436_s4 + $0x44] ss:$16 sps:$4 sm:$0xff]   ;;  %v731_v26 = vadd.f32 %v715_v8, %v674_v52 }
  0x76   : > { %1142 = vrot.lane.b32.xlu0 %v15749_v20, %s9007_s8  ;;  %1206 = vrot.lane.b32.xlu1 %v9521_v56, %s9007_s8  ;;  %v9790_v20 = vmul.f32 %v9557_v4, %v9208_v55  ;;  %15753 = vst [vmem:[#allocation43_spill] sm:$0xff] %v9794_v25  ;;  %v375_v56 = vmul.f32 %v8640_v45, %v9665_v32  ;;  %v9819_v1 = vsel %vm983_vm0, 0.0, %v15755_v10  ;;  %v8331_v10 = vld [vmem:[%s15436_s4 + $0x4c] ss:$16 sps:$4 sm:$0xff]   ;;  %v9841_v52 = vsel %vm1340_vm1, %v1316_v27, 0.0 }
  0x77   : > { %15756 = vst [vmem:[#allocation45_spill] sm:$0xff] %v9819_v1  ;;  %v432_v45 = vmul.f32 %v8642_v62, %v7749_v28  ;;  %15757 = vst [vmem:[#allocation46_spill] sm:$0xff] %v9841_v52  ;;  %v2529_v8 = vadd.f32 %v9654_v36, %v2472_v23  ;;  %v8643_v63 = vld [vmem:[%s15434_s2 + $0x3] ss:$0 sm:$0xff]  ;;  %v9848_v62 = vsel %vm1519_vm2, %v1495_v53, 0.0  ;;  %v9857_v27 = vmul.f32 %v9314_v57, %v9227_v6 }
  0x78   : > { %15752 = vst [vmem:[#allocation42_spill] sm:$0xff] %v9790_v20  ;;  %v8639_v20 = vld [vmem:[%s15434_s2] ss:$0 sm:$0xff]  ;;  %4761 = vmatpush1.bf16.msra.mxu1 %v8328_v15  ;;  %v8334_v53 = vld [vmem:[%s15436_s4 + $0x48] ss:$16 sps:$4 sm:$0xff]   ;;  %v675_v23 = vadd.f32 %v659_v50, %v618_v18  ;;  %4709 = vmatprep.subr.bf16.mxu0 %v8329_v35  ;;  %v1317_v15 = vrot.slane %v9786_v38, 1  ;;  %v810_v36 = vmul.f32 %v9877_v60, %v9525_v29 }
  0x79   : > { %v318_v25 = vmul.f32 %v8639_v20, %v9617_v49  ;;  %v9824_v49 = vld [vmem:[%s15434_s2 + $0x8] ss:$0 sm:$0xff]  ;;  %v546_v18 = vmul.f32 %v9681_v61, %v9828_v13  ;;  %4762 = vmatprep.subr.bf16.mxu1 %v8331_v10  ;;  %v15758_v35 = vrot.slane %v9593_v12, 6  ;;  %v2586_v29 = vadd.f32 %v9657_v16, %v2529_v8  ;;  %v9921_v8 = vld [vmem:[%s15435_s3 + $0x1f] ss:$0 sm:$0xff] }
  0x7a   : > { %v772_v20 = vmul.f32 %v9824_v49, %v7749_v28  ;;  %1385 = vrot.lane.b32.xlu0 %v9609_v30, %s9007_s8  ;;  %1564 = vrot.lane.b32.xlu1 %v9620_v51, %s9007_s8  ;;  %v489_v28 = vmul.f32 %v8643_v63, %v7714_v40  ;;  %v9853_v51 = vmul.f32 %v9802_v37, %v9208_v55  ;;  %v9869_v55 = vld [vmem:[%s15435_s3 + $0x1d] ss:$0 sm:$0xff]  ;;  %v7750_v30 = vld [vmem:[%s9078_s12 + $0x188] sm:$0xff]  ;;  %v1496_v61 = vrot.slane %v9786_v38, 2 }
  0x7b   : > { %v391_v11 = vadd.f32 %v375_v56, %v318_v25  ;;  %v8333_v56 = vld [vmem:[%s15436_s4 + $0x40] ss:$16 sps:$4 sm:$0xff]   ;;  %v716_v40 = vmul.f32 %v9761_v0, %v9828_v13  ;;  %v9899_v50 = vmul.f32 %v9396_v59, %v9227_v6  ;;  %v9916_v16 = vmul.f32 %v9869_v55, %v9227_v6  ;;  %15763 = vst [vmem:[#allocation50_spill] sm:$0xff] %v9921_v8 }
  0x7c   : > { %v788_v63 = vadd.f32 %v772_v20, %v731_v26  ;;  %v8337_v26 = vld [vmem:[%s15436_s4 + $0x2c] ss:$16 sps:$4 sm:$0xff]   ;;  %4710 = vmatpush1.bf16.msra.mxu0 %v8333_v56  ;;  %4763 = vmatpush1.bf16.msra.mxu1 %v8334_v53  ;;  %v9939_v56 = vld [vmem:[%s15435_s3 + $0x21] ss:$0 sm:$0xff] }
  0x7d   : > { %v448_v25 = vadd.f32 %v432_v45, %v391_v11  ;;  %v8335_v11 = vld [vmem:[%s15436_s4 + $0x24] ss:$16 sps:$4 sm:$0xff]   ;;  %v15759_v45 = vrot.slane %v9786_v38, 7  ;;  %15762 = vst [vmem:[#allocation49_spill] sm:$0xff] %v9916_v16  ;;  %15765 = vst [vmem:[#allocation52_spill] sm:$0xff] %v9939_v56  ;;  %4764 = vmatprep.subr.bf16.mxu1 %v8337_v26 }
  0x7e   : > { %900 = vrot.lane.b32.xlu0 %v15758_v35, %s9007_s8  ;;  %1030 = vrot.lane.b32.xlu1 %v9710_v39, %s9007_s8  ;;  %v9908_v35 = vmul.f32 %v9476_v9, %v9227_v6  ;;  %v9912_v39 = vmul.f32 %v9487_v58, %v9227_v6  ;;  %v773_v6 = vmul.f32 %v9824_v49, %v7750_v30  ;;  %v8339_v26 = vld [vmem:[%s15436_s4 + $0x20] ss:$16 sps:$4 sm:$0xff]  }
  0x7f   : > { %v505_v20 = vadd.f32 %v489_v28, %v448_v25  ;;  %v9904_v10 = vsel %vm983_vm0, 0.0, %v15759_v45  ;;  %v9925_v28 = vmul.f32 %v9331_v14, %v9197_v47  ;;  %v9929_v25 = vmul.f32 %v9482_v48, %v9197_v47  ;;  %4711 = vmatprep.subr.bf16.mxu0 %v8335_v11 }
  0x80   : > { %15760 = vst [vmem:[#allocation47_spill] sm:$0xff] %v9904_v10  ;;  %15761 = vst [vmem:[#allocation48_spill] sm:$0xff] %v9912_v39  ;;  %v732_v45 = vadd.f32 %v716_v40, %v675_v23  ;;  %v826_v16 = vadd.f32 %v810_v36, %v788_v63  ;;  %v9934_v39 = vmul.f32 %v9638_v43, %v9197_v47  ;;  %v15766_v23 = vrot.slane %v9593_v12, 7 }
  0x81   : > { %15764 = vst [vmem:[#allocation51_spill] sm:$0xff] %v9925_v28  ;;  %v562_v53 = vadd.f32 %v546_v18, %v505_v20  ;;  %v603_v28 = vmul.f32 %v9747_v7, %v7750_v30  ;;  %v2643_v36 = vadd.f32 %v9668_v19, %v2586_v29  ;;  %v9949_v40 = vsel %vm1340_vm1, %v1317_v15, 0.0  ;;  %v7715_v7 = vld [vmem:[%s9078_s12 + $0x70] sm:$0xff]  ;;  %v8340_v29 = vld [vmem:[%s15436_s4 + $0x28] ss:$16 sps:$4 sm:$0xff]   ;;  %4712 = vmatpush1.bf16.msra.mxu0 %v8339_v26 }
  0x82   : > { %1144 = vrot.lane.b32.xlu0 %v15766_v23, %s9007_s8  ;;  %1208 = vrot.lane.b32.xlu1 %v9593_v12, %s9007_s8  ;;  %15767 = vst [vmem:[#allocation53_spill] sm:$0xff] %v9949_v40  ;;  %v9953_v63 = vmul.f32 %v9723_v21, %v9197_v47  ;;  %v9957_v30 = vmul.f32 %v9921_v8, %v9197_v47  ;;  %v8345_v26 = vld [vmem:[%s15436_s4] ss:$16 sps:$4 sm:$0xff]  }
  0x83   : > { %v9962_v18 = vmul.f32 %v9375_v31, %v9254_v33  ;;  %v9966_v19 = vmul.f32 %v9557_v4, %v9254_v33  ;;  %v9970_v15 = vmul.f32 %v9662_v42, %v9254_v33  ;;  %v9974_v11 = vmul.f32 %v9802_v37, %v9254_v33  ;;  %4765 = vmatpush1.bf16.msra.mxu1 %v8340_v29  ;;  %v8346_v29 = vld [vmem:[%s15436_s4 + $0x8] ss:$16 sps:$4 sm:$0xff]  }
  0x84   : > { %v9984_v20 = vmul.f32 %v9939_v56, %v9254_v33  ;;  %v9988_v23 = vmul.f32 %v9314_v57, %v9270_v44  ;;  %v789_v47 = vadd.f32 %v773_v6, %v732_v45  ;;  %v811_v12 = vmul.f32 %v9877_v60, %v9665_v32  ;;  %v7733_v6 = vld [vmem:[%s9078_s12 + $0x100] sm:$0xff] }
  0x85   : > { %15768 = vst [vmem:[#allocation54_spill] sm:$0xff] %v9966_v19  ;;  %15769 = vst [vmem:[#allocation55_spill] sm:$0xff] %v9970_v15  ;;  %v10000_v15 = vld [vmem:[%s15433_s1 + $0x1] ss:$0 sm:$0xff]  ;;  %v619_v45 = vadd.f32 %v603_v28, %v562_v53  ;;  %v660_v32 = vmul.f32 %v9692_v22, %v7715_v7  ;;  %v10021_v19 = vmul.f32 %v9476_v9, %v9270_v44  ;;  %v8341_v28 = vld [vmem:[%s15436_s4 + $0x4] ss:$16 sps:$4 sm:$0xff]  }
  0x86   : > { %15770 = vst [vmem:[#allocation56_spill] sm:$0xff] %v9974_v11  ;;  %15771 = vst [vmem:[#allocation57_spill] sm:$0xff] %v9984_v20  ;;  %v9995_v11 = vld [vmem:[%s15435_s3 + $0x24] ss:$0 sm:$0xff]  ;;  %v10003_v33 = vadd.f32 %v10000_v15, %v826_v16  ;;  %1387 = vrot.lane.b32.xlu0 %v9713_v34, %s9007_s8  ;;  %1566 = vrot.lane.b32.xlu1 %v9726_v2, %s9007_s8  ;;  %v2700_v20 = vadd.f32 %v9671_v24, %v2643_v36  ;;  %v10017_v16 = vsel %vm1519_vm2, %v1496_v61, 0.0 }
  0x87   : > { %15772 = vst [vmem:[#allocation58_spill] sm:$0xff] %v9988_v23  ;;  %v10007_v23 = vmul.f32 %v9396_v59, %v9270_v44  ;;  %v10025_v22 = vmul.f32 %v9487_v58, %v9270_v44  ;;  %v8343_v2 = vld [vmem:[%s15436_s4 + $0xc] ss:$16 sps:$4 sm:$0xff]   ;;  %v10035_v24 = vmul.f32 %v9869_v55, %v9270_v44  ;;  %v10039_v61 = vmul.f32 %v9995_v11, %v9270_v44  ;;  %v10052_v7 = vld [vmem:[%s15435_s3 + $0x26] ss:$0 sm:$0xff] }
  0x88   : > { %15773 = vst [vmem:[#allocation59_spill] sm:$0xff] %v10003_v33  ;;  %v10043_v53 = vmul.f32 %v9331_v14, %v9237_v17  ;;  %v10047_v36 = vmul.f32 %v9482_v48, %v9237_v17  ;;  %15778 = vst [vmem:[#allocation64_spill] sm:$0xff] %v10052_v7  ;;  %v827_v44 = vadd.f32 %v811_v12, %v789_v47  ;;  %4713 = vmatprep.subr.bf16.mxu0 %v8341_v28 }
  0x89   : > { %15774 = vst [vmem:[#allocation60_spill] sm:$0xff] %v10035_v24  ;;  %15775 = vst [vmem:[#allocation61_spill] sm:$0xff] %v10039_v61  ;;  %v10059_v34 = vmul.f32 %v9638_v43, %v9237_v17  ;;  %v1318_v12 = vrot.slane %v10003_v33, 1  ;;  %v717_v61 = vmul.f32 %v9761_v0, %v7733_v6  ;;  %4766 = vmatprep.subr.bf16.mxu1 %v8343_v2  ;;  %v15783_v28 = vrot.slane %v9687_v54, 6  ;;  %v7751_v0 = vld [vmem:[%s9078_s12 + $0x190] sm:$0xff] }
  0x8a   : > { %15776 = vst [vmem:[#allocation62_spill] sm:$0xff] %v10043_v53  ;;  %15777 = vst [vmem:[#allocation63_spill] sm:$0xff] %v10047_v36  ;;  %v10063_v53 = vmul.f32 %v9723_v21, %v9237_v17  ;;  %v10067_v36 = vmul.f32 %v9921_v8, %v9237_v17  ;;  %1032 = vrot.lane.b32.xlu1 %v9819_v1, %s9007_s8  ;;  %v2757_v47 = vadd.f32 %v9718_v46, %v2700_v20 }
  0x8b   : > { %15779 = vst [vmem:[#allocation65_spill] sm:$0xff] %v10059_v34  ;;  %v10077_v34 = vld [vmem:[%s15435_s3 + $0x28] ss:$0 sm:$0xff]  ;;  %902 = vrot.lane.b32.xlu0 %v15783_v28, %s9007_s8  ;;  %v10089_v24 = vmul.f32 %v10052_v7, %v9237_v17  ;;  %v10102_v6 = vmul.f32 %v9662_v42, %v9292_v5  ;;  %v10106_v46 = vmul.f32 %v9802_v37, %v9292_v5 }
  0x8c   : > { %15780 = vst [vmem:[#allocation66_spill] sm:$0xff] %v10063_v53  ;;  %15781 = vst [vmem:[#allocation67_spill] sm:$0xff] %v10067_v36  ;;  %v676_v53 = vadd.f32 %v660_v32, %v619_v45  ;;  %v1497_v36 = vrot.slane %v10003_v33, 2  ;;  %v10093_v45 = vmul.f32 %v9375_v31, %v9292_v5  ;;  %v10098_v32 = vmul.f32 %v9557_v4, %v9292_v5 }
  0x8d   : > { %15782 = vst [vmem:[#allocation68_spill] sm:$0xff] %v10077_v34  ;;  %15785 = vst [vmem:[#allocation70_spill] sm:$0xff] %v10102_v6  ;;  %v10110_v20 = vmul.f32 %v9939_v56, %v9292_v5  ;;  %4714 = vmatpush1.bf16.msra.mxu0 %v8345_v26  ;;  %v10114_v28 = vadd.f32 %v10000_v15, %v827_v44  ;;  %v10118_v17 = vmul.f32 %v10077_v34, %v9292_v5 }
  0x8e   : > { %15784 = vst [vmem:[#allocation69_spill] sm:$0xff] %v10098_v32  ;;  %15786 = vst [vmem:[#allocation71_spill] sm:$0xff] %v10106_v46  ;;  %v10122_v1 = vmul.f32 %v9314_v57, %v9337_v41  ;;  %4767 = vmatpush1.bf16.msra.mxu1 %v8346_v29  ;;  %v15791_v46 = vrot.slane %v10003_v33, 7  ;;  %v10130_v26 = vsel %vm1340_vm1, %v1318_v12, 0.0  ;;  %v733_v2 = vadd.f32 %v717_v61, %v676_v53 }
  0x8f   : > { %15787 = vst [vmem:[#allocation72_spill] sm:$0xff] %v10110_v20  ;;  %15788 = vst [vmem:[#allocation73_spill] sm:$0xff] %v10114_v28  ;;  %v774_v44 = vmul.f32 %v9824_v49, %v7751_v0  ;;  %v15794_v5 = vrot.slane %v9687_v54, 7  ;;  %1210 = vrot.lane.b32.xlu1 %v9687_v54, %s9007_s8  ;;  %v10139_v29 = vadd.f32 %v9729_v3, %v2757_v47  ;;  %v15800_v0 = vld [vmem:[#allocation6_spill] sm:$0xff]  ;;  %v15492_v54 = vmov 0  }
  0x90   : > { %15789 = vst [vmem:[#allocation74_spill] sm:$0xff] %v10118_v17  ;;  %15790 = vst [vmem:[#allocation75_spill] sm:$0xff] %v10122_v1  ;;  %v10127_v6 = vsel %vm983_vm0, 0.0, %v15791_v46  ;;  %v10142_v1 = vsel %vm1519_vm2, %v1497_v36, 0.0  ;;  %v10146_v12 = vmul.f32 %v9396_v59, %v9337_v41  ;;  %v10150_v49 = vmul.f32 %v9476_v9, %v9337_v41  ;;  %4731 = vmatprep.mubr.bf16.mxu0 %v15492_v54 }
  0x91   : > { %15792 = vst [vmem:[#allocation76_spill] sm:$0xff] %v10127_v6  ;;  %15793 = vst [vmem:[#allocation77_spill] sm:$0xff] %v10130_v26  ;;  %1146 = vrot.lane.b32.xlu0 %v15794_v5, %s9007_s8  ;;  %v10154_v61 = vmul.f32 %v9487_v58, %v9337_v41  ;;  %v10158_v53 = vmul.f32 %v9869_v55, %v9337_v41  ;;  %v10162_v3 = vmul.f32 %v9995_v11, %v9337_v41 }
  0x92   : > { %15795 = vst [vmem:[#allocation78_spill] sm:$0xff] %v10146_v12  ;;  %15796 = vst [vmem:[#allocation79_spill] sm:$0xff] %v10150_v49  ;;  %v812_v47 = vmul.f32 %v9877_v60, %v9828_v13  ;;  %v10169_v46 = vmul.f32 %v9331_v14, %v15800_v0  ;;  %v10173_v5 = vmul.f32 %v9482_v48, %v15800_v0  ;;  %4784 = vmatprep.mubr.bf16.mxu1 %v15492_v54  ;;  %v15807_v54 = vld [vmem:[#allocation8_spill] sm:$0xff]  ;;  %v15882_v12 = vld [vmem:[#allocation34_spill] sm:$0xff] }
  0x93   : > { %15797 = vst [vmem:[#allocation80_spill] sm:$0xff] %v10154_v61  ;;  %15798 = vst [vmem:[#allocation81_spill] sm:$0xff] %v10158_v53  ;;  %v790_v53 = vadd.f32 %v774_v44, %v733_v2  ;;  %v10179_v36 = vmul.f32 %v9638_v43, %v15800_v0  ;;  %v10183_v60 = vmul.f32 %v9723_v21, %v15800_v0  ;;  %1568 = vrot.lane.b32.xlu1 %v9848_v62, %s9007_s8  ;;  %v15881_v61 = vld [vmem:[#allocation13_spill] sm:$0xff] }
  0x94   : > { %15799 = vst [vmem:[#allocation82_spill] sm:$0xff] %v10162_v3  ;;  %15801 = vst [vmem:[#allocation83_spill] sm:$0xff] %v10169_v46  ;;  %v10187_v13 = vmul.f32 %v9921_v8, %v15800_v0  ;;  %v1319_v2 = vrot.slane %v10114_v28, 1  ;;  %v10196_v44 = vmul.f32 %v10052_v7, %v15800_v0  ;;  %v10200_v3 = vmul.f32 %v9375_v31, %v15807_v54 }
  0x95   : > { %15802 = vst [vmem:[#allocation84_spill] sm:$0xff] %v10173_v5  ;;  %15803 = vst [vmem:[#allocation85_spill] sm:$0xff] %v10179_v36  ;;  %1389 = vrot.lane.b32.xlu0 %v9841_v52, %s9007_s8  ;;  %v1498_v52 = vrot.slane %v10114_v28, 2  ;;  %v10210_v62 = vmul.f32 %v9662_v42, %v15807_v54  ;;  %v10214_v36 = vmul.f32 %v9802_v37, %v15807_v54  ;;  %v15816_v5 = vld [vmem:[#allocation10_spill] sm:$0xff] }
  0x96   : > { %15804 = vst [vmem:[#allocation86_spill] sm:$0xff] %v10183_v60  ;;  %15805 = vst [vmem:[#allocation87_spill] sm:$0xff] %v10187_v13  ;;  %v10204_v60 = vmul.f32 %v9557_v4, %v15807_v54  ;;  %v10227_v13 = vmul.f32 %v10077_v34, %v15807_v54  ;;  %v828_v46 = vadd.f32 %v812_v47, %v790_v53 }
  0x97   : > { %15806 = vst [vmem:[#allocation88_spill] sm:$0xff] %v10196_v44  ;;  %15808 = vst [vmem:[#allocation8_spill] sm:$0xff] %v10200_v3  ;;  %v15812_v44 = vrot.slane %v10114_v28, 7  ;;  %1034 = vrot.lane.b32.xlu1 %v9904_v10, %s9007_s8  ;;  %v10255_v53 = vmul.f32 %v9869_v55, %v15816_v5  ;;  %v10259_v47 = vmul.f32 %v9995_v11, %v15816_v5 }
  0x98   : > { %15809 = vst [vmem:[#allocation89_spill] sm:$0xff] %v10204_v60  ;;  %15810 = vst [vmem:[#allocation90_spill] sm:$0xff] %v10210_v62  ;;  %v10223_v60 = vmul.f32 %v9939_v56, %v15807_v54  ;;  %v10231_v62 = vmul.f32 %v9314_v57, %v15816_v5  ;;  %v10251_v57 = vsel %vm1340_vm1, %v1319_v2, 0.0 }
  0x99   : > { %15811 = vst [vmem:[#allocation91_spill] sm:$0xff] %v10214_v36  ;;  %v10219_v3 = vsel %vm983_vm0, 0.0, %v15812_v44  ;;  %15815 = vst [vmem:[#allocation94_spill] sm:$0xff] %v10227_v13  ;;  %v10235_v36 = vmul.f32 %v9396_v59, %v15816_v5  ;;  %v10239_v44 = vmul.f32 %v9476_v9, %v15816_v5  ;;  %v15821_v13 = vrot.slane %v9786_v38, 6 }
  0x9a   : > { %15813 = vst [vmem:[#allocation92_spill] sm:$0xff] %v10219_v3  ;;  %15814 = vst [vmem:[#allocation93_spill] sm:$0xff] %v10223_v60  ;;  %v10243_v60 = vmul.f32 %v9487_v58, %v15816_v5 }
  0x9b   : > { %15817 = vst [vmem:[#allocation10_spill] sm:$0xff] %v10231_v62  ;;  %15818 = vst [vmem:[#allocation95_spill] sm:$0xff] %v10235_v36  ;;  %904 = vrot.lane.b32.xlu0 %v15821_v13, %s9007_s8  ;;  %1212 = vrot.lane.b32.xlu1 %v9786_v38, %s9007_s8 }
  0x9c   : > { %15819 = vst [vmem:[#allocation96_spill] sm:$0xff] %v10239_v44  ;;  %15820 = vst [vmem:[#allocation97_spill] sm:$0xff] %v10243_v60  ;;  %v15825_v60 = vld [vmem:[#allocation7_spill] sm:$0xff] }
  0x9d   : > { %15822 = vst [vmem:[#allocation98_spill] sm:$0xff] %v10251_v57  ;;  %15823 = vst [vmem:[#allocation99_spill] sm:$0xff] %v10255_v53  ;;  %v10263_v44 = vmul.f32 %v9331_v14, %v15825_v60  ;;  %v10267_v13 = vmul.f32 %v9482_v48, %v15825_v60  ;;  %v10271_v2 = vmul.f32 %v9638_v43, %v15825_v60 }
  0x9e   : > { %15824 = vst [vmem:[#allocation100_spill] sm:$0xff] %v10259_v47  ;;  %v10275_v10 = vmul.f32 %v9723_v21, %v15825_v60  ;;  %v10279_v53 = vmul.f32 %v9921_v8, %v15825_v60  ;;  %v10283_v47 = vmul.f32 %v10052_v7, %v15825_v60  ;;  %v15883_v7 = vld [vmem:[#allocation11_spill] sm:$0xff] }
  0x9f   : > { %15826 = vst [vmem:[#allocation101_spill] sm:$0xff] %v10263_v44  ;;  %15827 = vst [vmem:[#allocation102_spill] sm:$0xff] %v10267_v13  ;;  %v15832_v44 = vld [vmem:[#allocation15_spill] sm:$0xff]  ;;  %1570 = vrot.lane.b32.xlu1 %v10017_v16, %s9007_s8 }
  0xa0   : > { %15828 = vst [vmem:[#allocation103_spill] sm:$0xff] %v10271_v2  ;;  %15829 = vst [vmem:[#allocation104_spill] sm:$0xff] %v10275_v10  ;;  %v10287_v36 = vmul.f32 %v9375_v31, %v15832_v44  ;;  %v10291_v13 = vmul.f32 %v9557_v4, %v15832_v44  ;;  %v10295_v2 = vmul.f32 %v9662_v42, %v15832_v44 }
  0xa1   : > { %15830 = vst [vmem:[#allocation105_spill] sm:$0xff] %v10279_v53  ;;  %15831 = vst [vmem:[#allocation106_spill] sm:$0xff] %v10283_v47  ;;  %v10298_v10 = vadd.f32 %v10000_v15, %v828_v46  ;;  %v10302_v53 = vmul.f32 %v9802_v37, %v15832_v44  ;;  %v10306_v47 = vmul.f32 %v9939_v56, %v15832_v44  ;;  %v10318_v15 = vsel %vm1519_vm2, %v1498_v52, 0.0  ;;  %v10323_v46 = vld [vmem:[%s15435_s3 + $0x1] ss:$0 sm:$0xff] }
  0xa2   : > { %15833 = vst [vmem:[#allocation15_spill] sm:$0xff] %v10287_v36  ;;  %15834 = vst [vmem:[#allocation107_spill] sm:$0xff] %v10291_v13  ;;  %v10310_v36 = vmul.f32 %v10077_v34, %v15832_v44  ;;  %v15840_v13 = vrot.slane %v9786_v38, 7  ;;  %v887_v34 = vpop.permute.xlu0 %886 }
  0xa3   : > { %15835 = vst [vmem:[#allocation108_spill] sm:$0xff] %v10295_v2  ;;  %15836 = vst [vmem:[#allocation109_spill] sm:$0xff] %v10298_v10  ;;  %1036 = vrot.lane.b32.xlu1 %v10127_v6, %s9007_s8 }
  0xa4   : > { %15837 = vst [vmem:[#allocation110_spill] sm:$0xff] %v10302_v53  ;;  %15838 = vst [vmem:[#allocation111_spill] sm:$0xff] %v10306_v47  ;;  %1148 = vrot.lane.b32.xlu0 %v15840_v13, %s9007_s8  ;;  %v15842_v47 = vld [vmem:[#allocation17_spill] sm:$0xff] }
  0xa5   : > { %15839 = vst [vmem:[#allocation112_spill] sm:$0xff] %v10310_v36  ;;  %15841 = vst [vmem:[#allocation113_spill] sm:$0xff] %v10323_v46  ;;  %v10327_v53 = vmul.f32 %v10323_v46, %v15842_v47  ;;  %v10331_v36 = vmul.f32 %v9396_v59, %v15842_v47  ;;  %v10335_v13 = vmul.f32 %v9476_v9, %v15842_v47 }
  0xa6   : > { %v10339_v52 = vmul.f32 %v9487_v58, %v15842_v47  ;;  %v10343_v38 = vmul.f32 %v9869_v55, %v15842_v47  ;;  %v10347_v2 = vmul.f32 %v9995_v11, %v15842_v47 }
  0xa7   : > { %15843 = vst [vmem:[#allocation114_spill] sm:$0xff] %v10327_v53  ;;  %15844 = vst [vmem:[#allocation115_spill] sm:$0xff] %v10331_v36  ;;  %v15849_v53 = vld [vmem:[#allocation12_spill] sm:$0xff]  ;;  %v1131_v36 = vpop.permute.xlu1 %1130  ;;  %1214 = vrot.lane.b32.xlu1 %v10003_v33, %s9007_s8 }
  0xa8   : > { %15845 = vst [vmem:[#allocation116_spill] sm:$0xff] %v10335_v13  ;;  %15846 = vst [vmem:[#allocation117_spill] sm:$0xff] %v10339_v52  ;;  %v10351_v62 = vmul.f32 %v9331_v14, %v15849_v53  ;;  %v10355_v13 = vmul.f32 %v9482_v48, %v15849_v53  ;;  %v10359_v52 = vmul.f32 %v9638_v43, %v15849_v53  ;;  %1391 = vrot.lane.b32.xlu0 %v9949_v40, %s9007_s8 }
  0xa9   : > { %15847 = vst [vmem:[#allocation118_spill] sm:$0xff] %v10343_v38  ;;  %15848 = vst [vmem:[#allocation119_spill] sm:$0xff] %v10347_v2  ;;  %v10363_v38 = vmul.f32 %v9723_v21, %v15849_v53  ;;  %v10367_v47 = vmul.f32 %v9921_v8, %v15849_v53  ;;  %v15855_v2 = vld [vmem:[#allocation21_spill] sm:$0xff]  ;;  %v1320_v14 = vrot.slane %v10298_v10, 1  ;;  %v15884_v8 = vld [vmem:[#allocation24_spill] sm:$0xff] }
  0xaa   : > { %15850 = vst [vmem:[#allocation120_spill] sm:$0xff] %v10351_v62  ;;  %15851 = vst [vmem:[#allocation121_spill] sm:$0xff] %v10355_v13  ;;  %v10372_v62 = vmul.f32 %v9375_v31, %v15855_v2  ;;  %v10376_v13 = vmul.f32 %v9557_v4, %v15855_v2  ;;  %v1499_v31 = vrot.slane %v10298_v10, 2  ;;  %v10391_v4 = vmul.f32 %v9802_v37, %v15855_v2  ;;  %v15861_v53 = vld [vmem:[#allocation25_spill] sm:$0xff] }
  0xab   : > { %15852 = vst [vmem:[#allocation122_spill] sm:$0xff] %v10359_v52  ;;  %15853 = vst [vmem:[#allocation123_spill] sm:$0xff] %v10363_v38  ;;  %v10380_v52 = vmul.f32 %v9662_v42, %v15855_v2  ;;  %v1178_v38 = vsel %vm983_vm0, 0.0, %v1131_v36  ;;  %v10395_v42 = vmul.f32 %v9939_v56, %v15855_v2  ;;  %v10399_v36 = vmul.f32 %v10323_v46, %v15861_v53  ;;  %v15880_v46 = vld [vmem:[#allocation28_spill] sm:$0xff] }
  0xac   : > { %15854 = vst [vmem:[#allocation124_spill] sm:$0xff] %v10367_v47  ;;  %15856 = vst [vmem:[#allocation125_spill] sm:$0xff] %v10372_v62  ;;  %v10403_v40 = vmul.f32 %v9396_v59, %v15861_v53  ;;  %v10407_v16 = vmul.f32 %v9476_v9, %v15861_v53  ;;  %v935_v2 = vsel %vm934_vm3, 0.0, %v887_v34  ;;  %v10423_v9 = vmul.f32 %v9487_v58, %v15861_v53  ;;  %v7849_v58 = vld [vmem:[%s15435_s3 + $0x2d] ss:$0 sm:$0xff] }
  0xad   : > { %15857 = vst [vmem:[#allocation126_spill] sm:$0xff] %v10376_v13  ;;  %15858 = vst [vmem:[#allocation127_spill] sm:$0xff] %v10380_v52  ;;  %v1017_v52 = vpop.permute.xlu0 %1016  ;;  %v15868_v13 = vrot.slane %v10298_v10, 7  ;;  %v10438_v59 = vmul.f32 %v9995_v11, %v15861_v53  ;;  %1572 = vrot.lane.b32.xlu1 %v10142_v1, %s9007_s8 }
  0xae   : > { %15859 = vst [vmem:[#allocation128_spill] sm:$0xff] %v10391_v4  ;;  %15860 = vst [vmem:[#allocation129_spill] sm:$0xff] %v10395_v42  ;;  %v10412_v4 = vld [vmem:[%s15435_s3 + $0x2b] ss:$0 sm:$0xff]  ;;  %v1195_v42 = vpop.permute.xlu1 %1194  ;;  %v1065_v34 = vsel %vm1064_vm4, %v935_v2, %v1017_v52  ;;  %v10450_v2 = vsel %vm1340_vm1, %v1320_v14, 0.0 }
  0xaf   : > { %15862 = vst [vmem:[#allocation130_spill] sm:$0xff] %v10399_v36  ;;  %15863 = vst [vmem:[#allocation131_spill] sm:$0xff] %v10403_v40  ;;  %v10418_v36 = vld [vmem:[%s15435_s3 + $0x15] ss:$0 sm:$0xff]  ;;  %v1242_v40 = vsel %vm1064_vm4, %v1178_v38, %v1195_v42  ;;  %v10434_v62 = vsel %vm983_vm0, 0.0, %v15868_v13  ;;  %v15871_v38 = vrot.slane %v10003_v33, 6  ;;  %v10457_v11 = vmul.f32 %v10412_v4, %v9337_v41 }
  0xb0   : > { %15864 = vst [vmem:[#allocation132_spill] sm:$0xff] %v10407_v16  ;;  %15865 = vst [vmem:[#allocation133_spill] sm:$0xff] %v10412_v4  ;;  %v10427_v16 = vmul.f32 %v9869_v55, %v15861_v53  ;;  %v7853_v55 = vld [vmem:[%s15435_s3 + $0x2f] ss:$0 sm:$0xff]  ;;  %v10453_v13 = vsel %vm1519_vm2, %v1499_v31, 0.0  ;;  %v10461_v52 = vmul.f32 %v10412_v4, %v15816_v5  ;;  %v15876_v41 = vld [vmem:[#allocation27_spill] sm:$0xff]  ;;  %v10486_v4 = vmul.f32 %v7849_v58, %v15800_v0 }
  0xb1   : > { %15866 = vst [vmem:[#allocation134_spill] sm:$0xff] %v10423_v9  ;;  %15869 = vst [vmem:[#allocation136_spill] sm:$0xff] %v10434_v62  ;;  %906 = vrot.lane.b32.xlu0 %v15871_v38, %s9007_s8  ;;  %v10466_v53 = vld [vmem:[%s15435_s3 + $0x17] ss:$0 sm:$0xff]  ;;  %v10471_v14 = vld [vmem:[%s15435_s3] ss:$0 sm:$0xff]  ;;  %v2854_v9 = vmul.f32 %v10418_v36, %v1065_v34  ;;  %v2173_v17 = vmul.f32 %v15883_v7, %v1242_v40  ;;  %v2571_v20 = vmul.f32 %v15884_v8, %v1242_v40 }
  0xb2   : > { %15867 = vst [vmem:[#allocation135_spill] sm:$0xff] %v10427_v16  ;;  %15870 = vst [vmem:[#allocation137_spill] sm:$0xff] %v10438_v59  ;;  %v1667_v31 = vmul.f32 %v10471_v14, %v1065_v34  ;;  %v15875_v38 = vld [vmem:[#allocation9_spill] sm:$0xff]  ;;  %v2457_v16 = vmul.f32 %v15876_v41, %v1065_v34  ;;  %v10482_v5 = vld [vmem:[%s15435_s3 + $0x2] ss:$0 sm:$0xff]  ;;  %v1553_v47 = vpop.permute.xlu1 %1552  ;;  %v2966_v0 = vmul.f32 %v10466_v53, %v1242_v40  ;;  %1038 = vrot.lane.b32.xlu1 %v10219_v3, %s9007_s8 }
  0xb3   : > { %15872 = vst [vmem:[#allocation138_spill] sm:$0xff] %v10450_v2  ;;  %15873 = vst [vmem:[#allocation139_spill] sm:$0xff] %v10457_v11  ;;  %v2059_v59 = vmul.f32 %v15875_v38, %v1065_v34  ;;  %v1374_v11 = vpop.permute.xlu0 %1373  ;;  %v10489_v38 = vmul.f32 %v7849_v58, %v15825_v60  ;;  %v10492_v34 = vmul.f32 %v7853_v55, %v15807_v54  ;;  %v15885_v54 = vrot.slane %v10003_v33, 7  ;;  %v10511_v7 = vld [vmem:[%s15435_s3 + $0x19] ss:$0 sm:$0xff] }
  0xb4   : > { %15874 = vst [vmem:[#allocation140_spill] sm:$0xff] %v10461_v52  ;;  %v1779_v52 = vmul.f32 %v10482_v5, %v1242_v40  ;;  %15877 = vst [vmem:[#allocation9_spill] sm:$0xff] %v10486_v4  ;;  %v1739_v6 = vadd.f32 %v15880_v46, %v1667_v31  ;;  %v2473_v56 = vadd.f32 %v2457_v16, %v15882_v12  ;;  %v15886_v46 = vld [vmem:[#allocation14_spill] sm:$0xff]  ;;  %v15888_v12 = vld [vmem:[#allocation20_spill] sm:$0xff]  ;;  %v15907_v3 = vrot.slane %v10114_v28, 7 }
  0xb5   : > { %15878 = vst [vmem:[#allocation27_spill] sm:$0xff] %v10489_v38  ;;  %15879 = vst [vmem:[#allocation141_spill] sm:$0xff] %v10492_v34  ;;  %v2075_v49 = vadd.f32 %v2059_v59, %v15881_v61  ;;  %v2870_v37 = vadd.f32 %v2854_v9, %v10139_v29  ;;  %v1421_v58 = vsel %vm1064_vm4, %v1195_v42, %v1374_v11  ;;  %1150 = vrot.lane.b32.xlu0 %v15885_v54, %s9007_s8  ;;  %v15887_v61 = vld [vmem:[#allocation16_spill] sm:$0xff]  ;;  %v10518_v40 = vld [vmem:[%s15435_s3 + $0x4] ss:$0 sm:$0xff] }
  0xb6   : > { %v1795_v60 = vadd.f32 %v1779_v52, %v1739_v6  ;;  %v2530_v59 = vadd.f32 %v15887_v61, %v2473_v56  ;;  %v1891_v6 = vmul.f32 %v10518_v40, %v1421_v58  ;;  %v1600_v29 = vsel %vm1064_vm4, %v1374_v11, %v1553_v47  ;;  %v10528_v42 = vld [vmem:[%s15435_s3 + $0x3] ss:$0 sm:$0xff]  ;;  %v15891_v9 = vld [vmem:[#allocation18_spill] sm:$0xff]  ;;  %v15893_v54 = vld [vmem:[#allocation36_spill] sm:$0xff]  ;;  %1216 = vrot.lane.b32.xlu1 %v10114_v28, %s9007_s8 }
  0xb7   : > { %v2132_v31 = vadd.f32 %v15886_v46, %v2075_v49  ;;  %v2926_v16 = vadd.f32 %v15888_v12, %v2870_v37  ;;  %v889_v56 = vpop.permute.xlu0 %888  ;;  %v1019_v49 = vpop.permute.xlu1 %1018  ;;  %v10523_v37 = vmul.f32 %v7853_v55, %v15832_v44  ;;  %15890 = vst [vmem:[#allocation13_spill] sm:$0xff] %v10528_v42  ;;  %v10532_v52 = vmul.f32 %v10528_v42, %v15891_v9  ;;  %v15894_v47 = vld [vmem:[#allocation19_spill] sm:$0xff]  ;;  %v15895_v34 = vld [vmem:[#allocation29_spill] sm:$0xff]  ;;  %v15898_v4 = vld [vmem:[#allocation38_spill] sm:$0xff] }
  0xb8   : > { %v1851_v46 = vadd.f32 %v15893_v54, %v1795_v60  ;;  %v2587_v12 = vadd.f32 %v2571_v20, %v2530_v59  ;;  %v2287_v11 = vmul.f32 %v15894_v47, %v1421_v58  ;;  %v2685_v38 = vmul.f32 %v15895_v34, %v1421_v58  ;;  %v15900_v59 = vld [vmem:[#allocation22_spill] sm:$0xff] }
  0xb9   : > { %15889 = vst [vmem:[#allocation28_spill] sm:$0xff] %v10523_v37  ;;  %15892 = vst [vmem:[#allocation34_spill] sm:$0xff] %v10532_v52  ;;  %v2189_v61 = vadd.f32 %v2173_v17, %v2132_v31  ;;  %v2982_v33 = vadd.f32 %v2966_v0, %v2926_v16  ;;  %v3078_v44 = vmul.f32 %v10511_v7, %v1421_v58  ;;  %1393 = vrot.lane.b32.xlu0 %v10130_v26, %s9007_s8  ;;  %v15897_v37 = vld [vmem:[#allocation37_spill] sm:$0xff]  ;;  %v15899_v17 = vld [vmem:[#allocation39_spill] sm:$0xff] }
  0xba   : > { %v10542_v55 = vmul.f32 %v9482_v48, %v15891_v9  ;;  %v2644_v60 = vadd.f32 %v15898_v4, %v2587_v12  ;;  %v1907_v0 = vadd.f32 %v1891_v6, %v1851_v46  ;;  %v10550_v31 = vld [vmem:[%s15435_s3 + $0x1b] ss:$0 sm:$0xff]  ;;  %v10557_v48 = vld [vmem:[%s15435_s3 + $0x6] ss:$0 sm:$0xff]  ;;  %v2401_v4 = vmul.f32 %v15900_v59, %v1600_v29  ;;  %v10572_v42 = vld [vmem:[%s15435_s3 + $0x1c] ss:$0 sm:$0xff]  ;;  %1574 = vrot.lane.b32.xlu1 %v10318_v15, %s9007_s8 }
  0xbb   : > { %v2246_v52 = vadd.f32 %v15897_v37, %v2189_v61  ;;  %v3038_v20 = vadd.f32 %v15899_v17, %v2982_v33  ;;  %v2003_v58 = vmul.f32 %v10557_v48, %v1600_v29  ;;  %v936_v33 = vsel %vm934_vm3, 0.0, %v889_v56  ;;  %v1133_v16 = vpop.permute.xlu0 %1132  ;;  %v1197_v6 = vpop.permute.xlu1 %1196  ;;  %v15902_v61 = vld [vmem:[#allocation40_spill] sm:$0xff]  ;;  %v15903_v17 = vld [vmem:[#allocation30_spill] sm:$0xff] }
  0xbc   : > { %15896 = vst [vmem:[#allocation11_spill] sm:$0xff] %v10542_v55  ;;  %v10564_v37 = vmul.f32 %v9638_v43, %v15891_v9  ;;  %v2701_v46 = vadd.f32 %v2685_v38, %v2644_v60  ;;  %v1963_v12 = vadd.f32 %v15902_v61, %v1907_v0  ;;  %v2799_v26 = vmul.f32 %v15903_v17, %v1600_v29 }
  0xbd   : > { %v2303_v54 = vadd.f32 %v2287_v11, %v2246_v52  ;;  %v3094_v1 = vadd.f32 %v3078_v44, %v3038_v20  ;;  %v3190_v55 = vmul.f32 %v10550_v31, %v1600_v29  ;;  %v1066_v56 = vsel %vm1064_vm4, %v936_v33, %v1019_v49  ;;  %v15905_v52 = vld [vmem:[#allocation42_spill] sm:$0xff]  ;;  %v15906_v44 = vld [vmem:[#allocation43_spill] sm:$0xff] }
  0xbe   : > { %15901 = vst [vmem:[#allocation24_spill] sm:$0xff] %v10564_v37  ;;  %v1179_v21 = vsel %vm983_vm0, 0.0, %v1133_v16  ;;  %v15904_v43 = vrot.slane %v10114_v28, 6  ;;  %v2019_v38 = vadd.f32 %v2003_v58, %v1963_v12  ;;  %v2758_v60 = vadd.f32 %v15906_v44, %v2701_v46  ;;  %v10588_v49 = vld [vmem:[%s15435_s3 + $0x7] ss:$0 sm:$0xff]  ;;  %1040 = vrot.lane.b32.xlu1 %v10434_v62, %s9007_s8  ;;  %v15950_v62 = vld [vmem:[#allocation78_spill] sm:$0xff] }
  0xbf   : > { %v2360_v11 = vadd.f32 %v15905_v52, %v2303_v54  ;;  %v3150_v29 = vadd.f32 %v9853_v51, %v3094_v1  ;;  %v1668_v20 = vmul.f32 %v10471_v14, %v1066_v56  ;;  %v2060_v0 = vmul.f32 %v10588_v49, %v1066_v56  ;;  %v1376_v16 = vpop.permute.xlu0 %1375  ;;  %v1555_v44 = vpop.permute.xlu1 %1554 }
  0xc0   : > { %908 = vrot.lane.b32.xlu0 %v15904_v43, %s9007_s8  ;;  %v2458_v58 = vmul.f32 %v15876_v41, %v1066_v56  ;;  %v2855_v33 = vmul.f32 %v10418_v36, %v1066_v56  ;;  %v2815_v46 = vadd.f32 %v2799_v26, %v2758_v60  ;;  %v3247_v1 = vmul.f32 %v10572_v42, %v1066_v56  ;;  %v10603_v26 = vld [vmem:[%s15435_s3 + $0x1e] ss:$0 sm:$0xff]  ;;  %v15908_v60 = vld [vmem:[#allocation48_spill] sm:$0xff] }
  0xc1   : > { %v2417_v54 = vadd.f32 %v2401_v4, %v2360_v11  ;;  %v3206_v51 = vadd.f32 %v3190_v55, %v3150_v29  ;;  %v1740_v61 = vadd.f32 %v9857_v27, %v1668_v20  ;;  %v2076_v12 = vadd.f32 %v2060_v0, %v2019_v38  ;;  %v10612_v55 = vld [vmem:[%s15435_s3 + $0x9] ss:$0 sm:$0xff]  ;;  %v15909_v20 = vld [vmem:[#allocation49_spill] sm:$0xff] }
  0xc2   : > { %v1243_v43 = vsel %vm1064_vm4, %v1179_v21, %v1197_v6  ;;  %v1422_v52 = vsel %vm1064_vm4, %v1197_v6, %v1376_v16  ;;  %v2871_v9 = vadd.f32 %v2855_v33, %v2815_v46  ;;  %v1601_v15 = vsel %vm1064_vm4, %v1376_v16, %v1555_v44  ;;  %v15912_v16 = vld [vmem:[#allocation54_spill] sm:$0xff]  ;;  %1218 = vrot.lane.b32.xlu1 %v10298_v10, %s9007_s8 }
  0xc3   : > { %v2474_v37 = vadd.f32 %v2458_v58, %v2417_v54  ;;  %v3263_v32 = vadd.f32 %v3247_v1, %v3206_v51  ;;  %v1780_v27 = vmul.f32 %v10482_v5, %v1243_v43  ;;  %v2133_v21 = vadd.f32 %v9899_v50, %v2076_v12  ;;  %v891_v56 = vpop.permute.xlu0 %890  ;;  %v10623_v50 = vld [vmem:[%s15435_s3 + $0x20] ss:$0 sm:$0xff] }
  0xc4   : > { %1152 = vrot.lane.b32.xlu0 %v15907_v3, %s9007_s8  ;;  %v2174_v3 = vmul.f32 %v10612_v55, %v1243_v43  ;;  %v2572_v4 = vmul.f32 %v15884_v8, %v1243_v43  ;;  %v2967_v6 = vmul.f32 %v10466_v53, %v1243_v43  ;;  %v2927_v29 = vadd.f32 %v15908_v60, %v2871_v9  ;;  %v15910_v9 = vld [vmem:[#allocation51_spill] sm:$0xff] }
  0xc5   : > { %v1796_v38 = vadd.f32 %v1780_v27, %v1740_v61  ;;  %v2531_v11 = vadd.f32 %v9908_v35, %v2474_v37  ;;  %v3320_v0 = vadd.f32 %v15909_v20, %v3263_v32  ;;  %v3361_v33 = vmul.f32 %v10603_v26, %v1243_v43 }
  0xc6   : > { %v2190_v58 = vadd.f32 %v2174_v3, %v2133_v21  ;;  %v1892_v54 = vmul.f32 %v10518_v40, %v1422_v52  ;;  %v2288_v46 = vmul.f32 %v15894_v47, %v1422_v52  ;;  %v2983_v37 = vadd.f32 %v2967_v6, %v2927_v29  ;;  %v1021_v47 = vpop.permute.xlu1 %1020  ;;  %1576 = vrot.lane.b32.xlu1 %v10453_v13, %s9007_s8  ;;  %v15920_v13 = vld [vmem:[#allocation62_spill] sm:$0xff] }
  0xc7   : > { %v2588_v35 = vadd.f32 %v2572_v4, %v2531_v11  ;;  %v1852_v51 = vadd.f32 %v15910_v9, %v1796_v38  ;;  %v2686_v32 = vmul.f32 %v15895_v34, %v1422_v52  ;;  %v3377_v1 = vadd.f32 %v3361_v33, %v3320_v0  ;;  %v10642_v4 = vld [vmem:[%s15435_s3 + $0x22] ss:$0 sm:$0xff]  ;;  %v1135_v11 = vpop.permute.xlu0 %1134  ;;  %v15915_v9 = vld [vmem:[#allocation57_spill] sm:$0xff] }
  0xc8   : > { %1395 = vrot.lane.b32.xlu0 %v10251_v57, %s9007_s8  ;;  %v2247_v61 = vadd.f32 %v9929_v25, %v2190_v58  ;;  %v3079_v12 = vmul.f32 %v10511_v7, %v1422_v52  ;;  %v3475_v43 = vmul.f32 %v10623_v50, %v1422_v52  ;;  %v3039_v21 = vadd.f32 %v9953_v63, %v2983_v37  ;;  %v15913_v33 = vld [vmem:[#allocation55_spill] sm:$0xff] }
  0xc9   : > { %v2645_v27 = vadd.f32 %v9934_v39, %v2588_v35  ;;  %v1908_v3 = vadd.f32 %v1892_v54, %v1852_v51  ;;  %v3434_v6 = vadd.f32 %v9957_v30, %v3377_v1  ;;  %v2004_v38 = vmul.f32 %v10557_v48, %v1601_v15  ;;  %v15951_v57 = vld [vmem:[#allocation79_spill] sm:$0xff] }
  0xca   : > { %v2304_v25 = vadd.f32 %v2288_v46, %v2247_v61  ;;  %v2402_v52 = vmul.f32 %v15900_v59, %v1601_v15  ;;  %v15911_v39 = vrot.slane %v10298_v10, 6  ;;  %v3095_v60 = vadd.f32 %v3079_v12, %v3039_v21  ;;  %v15914_v46 = vld [vmem:[#allocation56_spill] sm:$0xff]  ;;  %v1199_v12 = vpop.permute.xlu1 %1198 }
  0xcb   : > { %v2702_v63 = vadd.f32 %v2686_v32, %v2645_v27  ;;  %v1964_v29 = vadd.f32 %v9962_v18, %v1908_v3  ;;  %v2800_v20 = vmul.f32 %v15903_v17, %v1601_v15  ;;  %v3491_v30 = vadd.f32 %v3475_v43, %v3434_v6  ;;  %v10665_v32 = vld [vmem:[%s15435_s3 + $0x23] ss:$0 sm:$0xff] }
  0xcc   : > { %910 = vrot.lane.b32.xlu0 %v15911_v39, %s9007_s8  ;;  %v2361_v44 = vadd.f32 %v15912_v16, %v2304_v25  ;;  %v3191_v0 = vmul.f32 %v10550_v31, %v1601_v15  ;;  %v3589_v59 = vmul.f32 %v10642_v4, %v1601_v15  ;;  %v3151_v35 = vadd.f32 %v15914_v46, %v3095_v60 }
  0xcd   : > { %v2020_v58 = vadd.f32 %v2004_v38, %v1964_v29  ;;  %v2759_v54 = vadd.f32 %v15913_v33, %v2702_v63  ;;  %v937_v37 = vsel %vm934_vm3, 0.0, %v891_v56  ;;  %v3548_v51 = vadd.f32 %v15915_v9, %v3491_v30  ;;  %v1378_v38 = vpop.permute.xlu0 %1377  ;;  %v15918_v9 = vld [vmem:[#allocation60_spill] sm:$0xff] }
  0xce   : > { %v2418_v18 = vadd.f32 %v2402_v52, %v2361_v44  ;;  %v1067_v1 = vsel %vm1064_vm4, %v937_v37, %v1021_v47  ;;  %v1180_v61 = vsel %vm983_vm0, 0.0, %v1135_v11  ;;  %v15916_v43 = vrot.slane %v10298_v10, 7  ;;  %v15917_v52 = vld [vmem:[#allocation58_spill] sm:$0xff]  ;;  %v10688_v44 = vld [vmem:[%s15435_s3 + $0x25] ss:$0 sm:$0xff]  ;;  %v1557_v37 = vpop.permute.xlu1 %1556 }
  0xcf   : > { %v2816_v27 = vadd.f32 %v2800_v20, %v2759_v54  ;;  %v3207_v21 = vadd.f32 %v3191_v0, %v3151_v35  ;;  %v1669_v56 = vmul.f32 %v10471_v14, %v1067_v1  ;;  %v2061_v3 = vmul.f32 %v10588_v49, %v1067_v1 }
  0xd0   : > { %1154 = vrot.lane.b32.xlu0 %v15916_v43, %s9007_s8  ;;  %v3605_v15 = vadd.f32 %v3589_v59, %v3548_v51  ;;  %v2459_v6 = vmul.f32 %v15876_v41, %v1067_v1  ;;  %v2856_v47 = vmul.f32 %v10418_v36, %v1067_v1  ;;  %v3248_v25 = vmul.f32 %v10572_v42, %v1067_v1 }
  0xd1   : > { %v1741_v11 = vadd.f32 %v15917_v52, %v1669_v56  ;;  %v2077_v39 = vadd.f32 %v2061_v3, %v2020_v58  ;;  %v3646_v63 = vmul.f32 %v10665_v32, %v1067_v1  ;;  %v1244_v60 = vsel %vm1064_vm4, %v1180_v61, %v1199_v12  ;;  %v15919_v1 = vld [vmem:[#allocation61_spill] sm:$0xff]  ;;  %v893_v56 = vpop.permute.xlu0 %892  ;;  %v15921_v3 = vld [vmem:[#allocation63_spill] sm:$0xff] }
  0xd2   : > { %v2475_v29 = vadd.f32 %v2459_v6, %v2418_v18  ;;  %v2872_v20 = vadd.f32 %v2856_v47, %v2816_v27  ;;  %v3264_v30 = vadd.f32 %v3248_v25, %v3207_v21  ;;  %v1781_v16 = vmul.f32 %v10482_v5, %v1244_v60  ;;  %v15923_v52 = vld [vmem:[#allocation65_spill] sm:$0xff] }
  0xd3   : > { %v3662_v41 = vadd.f32 %v3646_v63, %v3605_v15  ;;  %v2134_v0 = vadd.f32 %v10007_v23, %v2077_v39  ;;  %v2175_v59 = vmul.f32 %v10612_v55, %v1244_v60  ;;  %v2573_v58 = vmul.f32 %v15884_v8, %v1244_v60  ;;  %v10707_v15 = vld [vmem:[%s15435_s3 + $0x27] ss:$0 sm:$0xff]  ;;  %v15924_v39 = vld [vmem:[#allocation66_spill] sm:$0xff] }
  0xd4   : > { %1397 = vrot.lane.b32.xlu0 %v10450_v2, %s9007_s8  ;;  %v1797_v33 = vadd.f32 %v1781_v16, %v1741_v11  ;;  %v2532_v54 = vadd.f32 %v10021_v19, %v2475_v29  ;;  %v2928_v46 = vadd.f32 %v10025_v22, %v2872_v20  ;;  %v2968_v35 = vmul.f32 %v10466_v53, %v1244_v60  ;;  %v15925_v29 = vld [vmem:[#allocation67_spill] sm:$0xff] }
  0xd5   : > { %v2191_v18 = vadd.f32 %v2175_v59, %v2134_v0  ;;  %v3321_v51 = vadd.f32 %v15918_v9, %v3264_v30  ;;  %v3362_v23 = vmul.f32 %v10603_v26, %v1244_v60  ;;  %v3719_v61 = vadd.f32 %v15919_v1, %v3662_v41  ;;  %15922 = vst [vmem:[#allocation14_spill] sm:$0xff] %v10707_v15  ;;  %v10720_v30 = vld [vmem:[%s15435_s3 + $0xb] ss:$0 sm:$0xff]  ;;  %v15926_v1 = vld [vmem:[#allocation69_spill] sm:$0xff] }
  0xd6   : > { %v2589_v43 = vadd.f32 %v2573_v58, %v2532_v54  ;;  %v2984_v8 = vadd.f32 %v2968_v35, %v2928_v46  ;;  %v3760_v27 = vmul.f32 %v10688_v44, %v1244_v60  ;;  %v1853_v21 = vadd.f32 %v15920_v13, %v1797_v33  ;;  %v1023_v33 = vpop.permute.xlu1 %1022 }
  0xd7   : > { %v3378_v19 = vadd.f32 %v3362_v23, %v3321_v51  ;;  %v2248_v22 = vadd.f32 %v15921_v3, %v2191_v18  ;;  %v1423_v6 = vsel %vm1064_vm4, %v1199_v12, %v1378_v38  ;;  %v10711_v47 = vsel %vm1064_vm4, %v1378_v38, %v1557_v37  ;;  %v1137_v23 = vpop.permute.xlu0 %1136 }
  0xd8   : > { %v3776_v25 = vadd.f32 %v3760_v27, %v3719_v61  ;;  %v2646_v11 = vadd.f32 %v15923_v52, %v2589_v43  ;;  %v3040_v63 = vadd.f32 %v15924_v39, %v2984_v8  ;;  %v1893_v60 = vmul.f32 %v10518_v40, %v1423_v6  ;;  %v15927_v43 = vld [vmem:[#allocation70_spill] sm:$0xff]  ;;  %v15928_v27 = vld [vmem:[#allocation71_spill] sm:$0xff] }
  0xd9   : > { %v3435_v20 = vadd.f32 %v15925_v29, %v3378_v19  ;;  %v2289_v16 = vmul.f32 %v10720_v30, %v1423_v6  ;;  %v2687_v12 = vmul.f32 %v15895_v34, %v1423_v6  ;;  %v3080_v38 = vmul.f32 %v10511_v7, %v1423_v6  ;;  %v15930_v19 = vld [vmem:[#allocation35_spill] sm:$0xff]  ;;  %v15933_v52 = vld [vmem:[#allocation50_spill] sm:$0xff] }
  0xda   : > { %v3833_v41 = vadd.f32 %v10089_v24, %v3776_v25  ;;  %v1909_v0 = vadd.f32 %v1893_v60, %v1853_v21  ;;  %v3476_v59 = vmul.f32 %v10623_v50, %v1423_v6  ;;  %v3874_v58 = vmul.f32 %v10707_v15, %v1423_v6  ;;  %v10734_v24 = vld [vmem:[%s15435_s3 + $0xd] ss:$0 sm:$0xff]  ;;  %v15929_v21 = vld [vmem:[#allocation18_spill] sm:$0xff] }
  0xdb   : > { %v2305_v54 = vadd.f32 %v2289_v16, %v2248_v22  ;;  %v2703_v46 = vadd.f32 %v2687_v12, %v2646_v11  ;;  %v3096_v35 = vadd.f32 %v3080_v38, %v3040_v63  ;;  %v2005_v37 = vmul.f32 %v10557_v48, %v10711_v47  ;;  %v15932_v6 = vld [vmem:[#allocation72_spill] sm:$0xff]  ;;  %v15935_v60 = vld [vmem:[#allocation74_spill] sm:$0xff] }
  0xdc   : > { %v3492_v18 = vadd.f32 %v3476_v59, %v3435_v20  ;;  %v3890_v9 = vadd.f32 %v3874_v58, %v3833_v41  ;;  %v1965_v34 = vadd.f32 %v10093_v45, %v1909_v0  ;;  %v2403_v51 = vmul.f32 %v10734_v24, %v10711_v47  ;;  %v15936_v20 = vld [vmem:[#allocation64_spill] sm:$0xff]  ;;  %v1201_v41 = vpop.permute.xlu1 %1200  ;;  %v10768_v0 = vld [vmem:[%s15435_s3 + $0x5] ss:$0 sm:$0xff]  ;;  %v15939_v59 = vld [vmem:[#allocation26_spill] sm:$0xff] }
  0xdd   : > { %v2362_v61 = vadd.f32 %v15926_v1, %v2305_v54  ;;  %v2760_v8 = vadd.f32 %v15927_v43, %v2703_v46  ;;  %v3152_v13 = vadd.f32 %v15928_v27, %v3096_v35  ;;  %v10743_v3 = vmul.f32 %v15930_v19, %v15929_v21  ;;  %15938 = vst [vmem:[#allocation19_spill] sm:$0xff] %v10768_v0  ;;  %v10809_v43 = vld [vmem:[%s15435_s3 + $0x13] ss:$0 sm:$0xff]  ;;  %v15945_v27 = vld [vmem:[#allocation44_spill] sm:$0xff]  ;;  %v15947_v19 = vld [vmem:[#allocation75_spill] sm:$0xff] }
  0xde   : > { %v2021_v45 = vadd.f32 %v2005_v37, %v1965_v34  ;;  %v2801_v22 = vmul.f32 %v15903_v17, %v10711_v47  ;;  %v10748_v25 = vadd.f32 %v15932_v6, %v3492_v18  ;;  %v10752_v11 = vmul.f32 %v15933_v52, %v15929_v21  ;;  %15943 = vst [vmem:[#allocation39_spill] sm:$0xff] %v10809_v43 }
  0xdf   : > { %15931 = vst [vmem:[#allocation16_spill] sm:$0xff] %v10743_v3  ;;  %v2419_v39 = vadd.f32 %v2403_v51, %v2362_v61  ;;  %v3192_v63 = vmul.f32 %v10550_v31, %v10711_v47  ;;  %v10757_v29 = vadd.f32 %v15935_v60, %v3890_v9  ;;  %v10761_v16 = vmul.f32 %v15936_v20, %v15929_v21 }
  0xe0   : > { %15934 = vst [vmem:[#allocation20_spill] sm:$0xff] %v10752_v11  ;;  %v2817_v12 = vadd.f32 %v2801_v22, %v2760_v8  ;;  %v938_v17 = vsel %vm934_vm3, 0.0, %v893_v56  ;;  %v1181_v38 = vsel %vm983_vm0, 0.0, %v1137_v23  ;;  %v10772_v58 = vmul.f32 %v10768_v0, %v15939_v59  ;;  %v10783_v56 = vld [vmem:[%s15435_s3 + $0xc] ss:$0 sm:$0xff]  ;;  %v1380_v23 = vpop.permute.xlu0 %1379 }
  0xe1   : > { %15937 = vst [vmem:[#allocation36_spill] sm:$0xff] %v10761_v16  ;;  %v3208_v54 = vadd.f32 %v3192_v63, %v3152_v13  ;;  %v10775_v46 = vsel %vm1064_vm4, %v938_v17, %v1023_v33  ;;  %v10778_v35 = vsel %vm1064_vm4, %v1181_v38, %v1201_v41  ;;  %15941 = vst [vmem:[#allocation37_spill] sm:$0xff] %v10783_v56  ;;  %v10796_v33 = vld [vmem:[%s15435_s3 + $0xe] ss:$0 sm:$0xff]  ;;  %v15985_v16 = vld [vmem:[#allocation102_spill] sm:$0xff] }
  0xe2   : > { %15940 = vst [vmem:[#allocation29_spill] sm:$0xff] %v10772_v58  ;;  %v10787_v37 = vmul.f32 %v10783_v56, %v15939_v59  ;;  %v1670_v18 = vmul.f32 %v10471_v14, %v10775_v46  ;;  %v2062_v9 = vmul.f32 %v10588_v49, %v10775_v46  ;;  %v2460_v34 = vmul.f32 %v10796_v33, %v10775_v46  ;;  %v15948_v38 = vld [vmem:[#allocation52_spill] sm:$0xff] }
  0xe3   : > { %v2857_v51 = vmul.f32 %v10418_v36, %v10775_v46  ;;  %v3249_v1 = vmul.f32 %v10572_v42, %v10775_v46  ;;  %v1782_v61 = vmul.f32 %v10482_v5, %v10778_v35  ;;  %v10813_v8 = vmul.f32 %v10809_v43, %v15939_v59  ;;  %v15966_v0 = vld [vmem:[#allocation8_spill] sm:$0xff] }
  0xe4   : > { %15942 = vst [vmem:[#allocation38_spill] sm:$0xff] %v10787_v37  ;;  %v10817_v13 = vmul.f32 %v15945_v27, %v15939_v59  ;;  %v1742_v22 = vadd.f32 %v15947_v19, %v1670_v18  ;;  %v2078_v6 = vadd.f32 %v2062_v9, %v2021_v45  ;;  %v2476_v52 = vadd.f32 %v2460_v34, %v2419_v39  ;;  %v10834_v45 = vld [vmem:[%s15435_s3 + $0x10] ss:$0 sm:$0xff]  ;;  %v1559_v34 = vpop.permute.xlu1 %1558 }
  0xe5   : > { %15944 = vst [vmem:[#allocation22_spill] sm:$0xff] %v10813_v8  ;;  %v2873_v63 = vadd.f32 %v2857_v51, %v2817_v12  ;;  %v3265_v60 = vadd.f32 %v3249_v1, %v3208_v54  ;;  %v2176_v20 = vmul.f32 %v10612_v55, %v10778_v35  ;;  %v10823_v17 = vsel %vm1064_vm4, %v1201_v41, %v1380_v23  ;;  %v15952_v12 = vld [vmem:[#allocation80_spill] sm:$0xff]  ;;  %v15953_v18 = vld [vmem:[#allocation81_spill] sm:$0xff]  ;;  %v895_v1 = vpop.permute.xlu0 %894 }
  0xe6   : > { %15946 = vst [vmem:[#allocation40_spill] sm:$0xff] %v10817_v13  ;;  %v10827_v2 = vmul.f32 %v15948_v38, %v15939_v59  ;;  %v1798_v10 = vadd.f32 %v1782_v61, %v1742_v22  ;;  %v2135_v27 = vadd.f32 %v15950_v62, %v2078_v6  ;;  %v2533_v28 = vadd.f32 %v15951_v57, %v2476_v52  ;;  %v15954_v61 = vld [vmem:[#allocation68_spill] sm:$0xff]  ;;  %v15957_v6 = vld [vmem:[#allocation113_spill] sm:$0xff]  ;;  %v15979_v13 = vld [vmem:[#allocation95_spill] sm:$0xff] }
  0xe7   : > { %v2574_v39 = vmul.f32 %v10834_v45, %v10778_v35  ;;  %v2929_v41 = vadd.f32 %v15952_v12, %v2873_v63  ;;  %v2969_v54 = vmul.f32 %v10466_v53, %v10778_v35  ;;  %v3322_v9 = vadd.f32 %v15953_v18, %v3265_v60  ;;  %v15956_v22 = vld [vmem:[#allocation32_spill] sm:$0xff]  ;;  %v15959_v12 = vld [vmem:[#allocation83_spill] sm:$0xff]  ;;  %v15963_v18 = vld [vmem:[#allocation85_spill] sm:$0xff] }
  0xe8   : > { %15949 = vst [vmem:[#allocation30_spill] sm:$0xff] %v10827_v2  ;;  %v3363_v62 = vmul.f32 %v10603_v26, %v10778_v35  ;;  %v2192_v57 = vadd.f32 %v2176_v20, %v2135_v27  ;;  %v10846_v19 = vmul.f32 %v15954_v61, %v15939_v59  ;;  %v10850_v52 = vmul.f32 %v15957_v6, %v15956_v22  ;;  %v10856_v60 = vld [vmem:[%s15435_s3 + $0x8] ss:$0 sm:$0xff] }
  0xe9   : > { %v2590_v51 = vadd.f32 %v2574_v39, %v2533_v28  ;;  %v2985_v63 = vadd.f32 %v2969_v54, %v2929_v41  ;;  %v1854_v21 = vadd.f32 %v15959_v12, %v1798_v10  ;;  %15960 = vst [vmem:[#allocation48_spill] sm:$0xff] %v10856_v60  ;;  %v10860_v28 = vmul.f32 %v10856_v60, %v15956_v22  ;;  %v15962_v27 = vld [vmem:[#allocation84_spill] sm:$0xff]  ;;  %v15964_v10 = vld [vmem:[#allocation86_spill] sm:$0xff]  ;;  %v10875_v12 = vld [vmem:[%s15435_s3 + $0x12] ss:$0 sm:$0xff]  ;;  %v1025_v60 = vpop.permute.xlu1 %1024 }
  0xea   : > { %15955 = vst [vmem:[#allocation42_spill] sm:$0xff] %v10846_v19  ;;  %15958 = vst [vmem:[#allocation43_spill] sm:$0xff] %v10850_v52  ;;  %v3379_v38 = vadd.f32 %v3363_v62, %v3322_v9  ;;  %v3590_v20 = vmul.f32 %v10642_v4, %v10711_v47  ;;  %v2249_v39 = vadd.f32 %v15962_v27, %v2192_v57  ;;  %v15965_v9 = vld [vmem:[#allocation87_spill] sm:$0xff]  ;;  %v15968_v19 = vld [vmem:[#allocation90_spill] sm:$0xff] }
  0xeb   : > { %15961 = vst [vmem:[#allocation49_spill] sm:$0xff] %v10860_v28  ;;  %v2647_v61 = vadd.f32 %v15963_v18, %v2590_v51  ;;  %v1894_v41 = vmul.f32 %v10518_v40, %v10823_v17  ;;  %v3041_v54 = vadd.f32 %v15964_v10, %v2985_v63  ;;  %v2290_v6 = vmul.f32 %v10720_v30, %v10823_v17 }
  0xec   : > { %v3436_v62 = vadd.f32 %v15965_v9, %v3379_v38  ;;  %v2688_v57 = vmul.f32 %v10875_v12, %v10823_v17  ;;  %v3606_v51 = vadd.f32 %v3590_v20, %v10748_v25  ;;  %v3081_v18 = vmul.f32 %v10511_v7, %v10823_v17  ;;  %v1139_v20 = vpop.permute.xlu0 %1138 }
  0xed   : > { %v1910_v27 = vadd.f32 %v1894_v41, %v1854_v21  ;;  %v3477_v63 = vmul.f32 %v10623_v50, %v10823_v17  ;;  %v3647_v38 = vmul.f32 %v10665_v32, %v10775_v46  ;;  %v2306_v10 = vadd.f32 %v2290_v6, %v2249_v39  ;;  %v15967_v41 = vld [vmem:[#allocation89_spill] sm:$0xff] }
  0xee   : > { %v2704_v9 = vadd.f32 %v2688_v57, %v2647_v61  ;;  %v10887_v59 = vsel %vm1064_vm4, %v1380_v23, %v1559_v34  ;;  %v3097_v43 = vadd.f32 %v3081_v18, %v3041_v54  ;;  %v10899_v23 = vld [vmem:[%s15435_s3 + $0xf] ss:$0 sm:$0xff]  ;;  %v10908_v54 = vld [vmem:[%s15435_s3 + $0x14] ss:$0 sm:$0xff] }
  0xef   : > { %v3493_v56 = vadd.f32 %v3477_v63, %v3436_v62  ;;  %v1966_v25 = vadd.f32 %v15966_v0, %v1910_v27  ;;  %v2006_v21 = vmul.f32 %v10557_v48, %v10887_v59  ;;  %v2363_v28 = vadd.f32 %v15967_v41, %v2306_v10  ;;  %15969 = vst [vmem:[#allocation51_spill] sm:$0xff] %v10899_v23  ;;  %v15972_v18 = vld [vmem:[#allocation93_spill] sm:$0xff]  ;;  %v1203_v41 = vpop.permute.xlu1 %1202 }
  0xf0   : > { %v2404_v52 = vmul.f32 %v10734_v24, %v10887_v59  ;;  %v2761_v39 = vadd.f32 %v15968_v19, %v2704_v9  ;;  %v10903_v34 = vmul.f32 %v10899_v23, %v15956_v22  ;;  %v3663_v0 = vadd.f32 %v3647_v38, %v3606_v51  ;;  %v15971_v19 = vld [vmem:[#allocation91_spill] sm:$0xff]  ;;  %v10922_v9 = vld [vmem:[%s15435_s3 + $0x16] ss:$0 sm:$0xff] }
  0xf1   : > { %v2022_v61 = vadd.f32 %v2006_v21, %v1966_v25  ;;  %v2802_v62 = vmul.f32 %v10908_v54, %v10887_v59  ;;  %v3153_v6 = vadd.f32 %v15971_v19, %v3097_v43  ;;  %v3193_v27 = vmul.f32 %v10550_v31, %v10887_v59  ;;  %15973 = vst [vmem:[#allocation55_spill] sm:$0xff] %v10922_v9 }
  0xf2   : > { %15970 = vst [vmem:[#allocation54_spill] sm:$0xff] %v10903_v34  ;;  %v2420_v57 = vadd.f32 %v2404_v52, %v2363_v28  ;;  %v3550_v63 = vadd.f32 %v15972_v18, %v3493_v56  ;;  %v3591_v51 = vmul.f32 %v10642_v4, %v10887_v59  ;;  %v939_v10 = vsel %vm934_vm3, 0.0, %v895_v1  ;;  %v10931_v52 = vld [vmem:[%s15435_s3 + $0x1d] ss:$0 sm:$0xff] }
  0xf3   : > { %v2818_v38 = vadd.f32 %v2802_v62, %v2761_v39  ;;  %v10926_v43 = vmul.f32 %v10922_v9, %v15956_v22  ;;  %15975 = vst [vmem:[#allocation57_spill] sm:$0xff] %v10931_v52  ;;  %v10935_v56 = vmul.f32 %v10931_v52, %v15956_v22  ;;  %v3209_v28 = vadd.f32 %v3193_v27, %v3153_v6  ;;  %v15977_v39 = vld [vmem:[#allocation82_spill] sm:$0xff]  ;;  %v1382_v9 = vpop.permute.xlu0 %1381 }
  0xf4   : > { %v3607_v1 = vadd.f32 %v3591_v51, %v3550_v63  ;;  %v10938_v25 = vsel %vm1064_vm4, %v939_v10, %v1025_v60  ;;  %v1182_v21 = vsel %vm983_vm0, 0.0, %v1139_v20  ;;  %v3720_v62 = vadd.f32 %v15977_v39, %v3663_v0  ;;  %v15978_v27 = vld [vmem:[#allocation10_spill] sm:$0xff] }
  0xf5   : > { %15974 = vst [vmem:[#allocation56_spill] sm:$0xff] %v10926_v43  ;;  %15976 = vst [vmem:[#allocation58_spill] sm:$0xff] %v10935_v56  ;;  %v1671_v19 = vmul.f32 %v10471_v14, %v10938_v25  ;;  %v2063_v18 = vmul.f32 %v10588_v49, %v10938_v25  ;;  %v2461_v52 = vmul.f32 %v10796_v33, %v10938_v25 }
  0xf6   : > { %v3761_v6 = vmul.f32 %v10688_v44, %v10778_v35  ;;  %v2858_v60 = vmul.f32 %v10418_v36, %v10938_v25  ;;  %v3250_v20 = vmul.f32 %v10572_v42, %v10938_v25  ;;  %v3648_v0 = vmul.f32 %v10665_v32, %v10938_v25 }
  0xf7   : > { %v1743_v63 = vadd.f32 %v15978_v27, %v1671_v19  ;;  %v2079_v51 = vadd.f32 %v2063_v18, %v2022_v61  ;;  %v2477_v10 = vadd.f32 %v2461_v52, %v2420_v57  ;;  %v10958_v39 = vsel %vm1064_vm4, %v1182_v21, %v1203_v41  ;;  %v15980_v19 = vld [vmem:[#allocation96_spill] sm:$0xff]  ;;  %v15981_v52 = vld [vmem:[#allocation97_spill] sm:$0xff] }
  0xf8   : > { %v2874_v23 = vadd.f32 %v2858_v60, %v2818_v38  ;;  %v3266_v56 = vadd.f32 %v3250_v20, %v3209_v28  ;;  %v3664_v43 = vadd.f32 %v3648_v0, %v3607_v1  ;;  %v10961_v34 = vsel %vm1064_vm4, %v1203_v41, %v1382_v9  ;;  %v15982_v1 = vld [vmem:[#allocation99_spill] sm:$0xff]  ;;  %v1561_v41 = vpop.permute.xlu1 %1560  ;;  %v15983_v20 = vld [vmem:[#allocation100_spill] sm:$0xff] }
  0xf9   : > { %v1783_v2 = vmul.f32 %v10482_v5, %v10958_v39  ;;  %v2136_v8 = vadd.f32 %v15979_v13, %v2079_v51  ;;  %v2177_v37 = vmul.f32 %v10612_v55, %v10958_v39  ;;  %v2534_v61 = vadd.f32 %v15980_v19, %v2477_v10 }
  0xfa   : > { %v2575_v57 = vmul.f32 %v10834_v45, %v10958_v39  ;;  %v2930_v38 = vadd.f32 %v15981_v52, %v2874_v23  ;;  %v2970_v28 = vmul.f32 %v10466_v53, %v10958_v39  ;;  %v3323_v21 = vadd.f32 %v15982_v1, %v3266_v56  ;;  %v15984_v52 = vld [vmem:[#allocation101_spill] sm:$0xff] }
  0xfb   : > { %v1799_v18 = vadd.f32 %v1783_v2, %v1743_v63  ;;  %v2193_v60 = vadd.f32 %v2177_v37, %v2136_v8  ;;  %v3364_v13 = vmul.f32 %v10603_v26, %v10958_v39  ;;  %v3721_v0 = vadd.f32 %v15983_v20, %v3664_v43  ;;  %v15986_v8 = vld [vmem:[#allocation103_spill] sm:$0xff]  ;;  %v15987_v63 = vld [vmem:[#allocation104_spill] sm:$0xff] }
  0xfc   : > { %v3777_v27 = vadd.f32 %v3761_v6, %v3720_v62  ;;  %v2591_v51 = vadd.f32 %v2575_v57, %v2534_v61  ;;  %v2986_v10 = vadd.f32 %v2970_v28, %v2930_v38  ;;  %v3762_v19 = vmul.f32 %v10688_v44, %v10958_v39  ;;  %v897_v62 = vpop.permute.xlu0 %896  ;;  %v15988_v6 = vld [vmem:[#allocation105_spill] sm:$0xff]  ;;  %v15989_v28 = vld [vmem:[#allocation106_spill] sm:$0xff]  ;;  %v1027_v20 = vpop.permute.xlu1 %1026 }
  0xfd   : > { %v3380_v23 = vadd.f32 %v3364_v13, %v3323_v21  ;;  %v1855_v58 = vadd.f32 %v15984_v52, %v1799_v18  ;;  %v2250_v11 = vadd.f32 %v15985_v16, %v2193_v60  ;;  %v1895_v2 = vmul.f32 %v10518_v40, %v10961_v34 }
  0xfe   : > { %v3778_v37 = vadd.f32 %v3762_v19, %v3721_v0  ;;  %v2648_v56 = vadd.f32 %v15986_v8, %v2591_v51  ;;  %v3042_v1 = vadd.f32 %v15987_v63, %v2986_v10  ;;  %v2291_v43 = vmul.f32 %v10720_v30, %v10961_v34  ;;  %v15990_v10 = vld [vmem:[#allocation15_spill] sm:$0xff]  ;;  %v15992_v63 = vld [vmem:[#allocation108_spill] sm:$0xff] }
  0xff   : > { %v3437_v61 = vadd.f32 %v15988_v6, %v3380_v23  ;;  %v1911_v57 = vadd.f32 %v1895_v2, %v1855_v58  ;;  %v2689_v38 = vmul.f32 %v10875_v12, %v10961_v34  ;;  %v3082_v16 = vmul.f32 %v10511_v7, %v10961_v34 }
 0x100   : > { %v3835_v21 = vadd.f32 %v15989_v28, %v3778_v37  ;;  %v2307_v18 = vadd.f32 %v2291_v43, %v2250_v11  ;;  %v3478_v60 = vmul.f32 %v10623_v50, %v10961_v34  ;;  %v3876_v13 = vmul.f32 %v10707_v15, %v10961_v34  ;;  %v15991_v11 = vld [vmem:[#allocation107_spill] sm:$0xff] }
 0x101   : > { %v2705_v0 = vadd.f32 %v2689_v38, %v2648_v56  ;;  %v3098_v51 = vadd.f32 %v3082_v16, %v3042_v1  ;;  %v10999_v58 = vsel %vm1064_vm4, %v1382_v9, %v1561_v41  ;;  %v1967_v19 = vadd.f32 %v15990_v10, %v1911_v57  ;;  %v15993_v1 = vld [vmem:[#allocation110_spill] sm:$0xff]  ;;  %v11014_v41 = vld [vmem:[%s15435_s3 + $0x29] ss:$0 sm:$0xff]  ;;  %v15995_v57 = vld [vmem:[#allocation111_spill] sm:$0xff]  ;;  %v1141_v16 = vpop.permute.xlu0 %1140 }
 0x102   : > { %v3494_v23 = vadd.f32 %v3478_v60, %v3437_v61  ;;  %v3892_v52 = vadd.f32 %v3876_v13, %v3835_v21  ;;  %v2007_v2 = vmul.f32 %v10557_v48, %v10999_v58  ;;  %v2364_v37 = vadd.f32 %v15991_v11, %v2307_v18  ;;  %15994 = vst [vmem:[#allocation60_spill] sm:$0xff] %v11014_v41  ;;  %v11024_v28 = vld [vmem:[%s15435_s3 + $0x24] ss:$0 sm:$0xff]  ;;  %v15998_v13 = vld [vmem:[#allocation112_spill] sm:$0xff]  ;;  %v1205_v11 = vpop.permute.xlu1 %1204 }
 0x103   : > { %v2405_v8 = vmul.f32 %v10734_v24, %v10999_v58  ;;  %v2762_v43 = vadd.f32 %v15992_v63, %v2705_v0  ;;  %v2803_v56 = vmul.f32 %v10908_v54, %v10999_v58  ;;  %v3154_v9 = vadd.f32 %v15993_v1, %v3098_v51  ;;  %15996 = vst [vmem:[#allocation61_spill] sm:$0xff] %v11024_v28  ;;  %v16000_v51 = vld [vmem:[#allocation133_spill] sm:$0xff]  ;;  %v16002_v63 = vld [vmem:[#allocation23_spill] sm:$0xff] }
 0x104   : > { %v2023_v6 = vadd.f32 %v2007_v2, %v1967_v19  ;;  %v3194_v61 = vmul.f32 %v10550_v31, %v10999_v58  ;;  %v11019_v38 = vadd.f32 %v15995_v57, %v3494_v23  ;;  %v11028_v21 = vmul.f32 %v11024_v28, %v15956_v22  ;;  %v16003_v1 = vld [vmem:[#allocation13_spill] sm:$0xff] }
 0x105   : > { %v2421_v18 = vadd.f32 %v2405_v8, %v2364_v37  ;;  %v2819_v60 = vadd.f32 %v2803_v56, %v2762_v43  ;;  %v11031_v0 = vadd.f32 %v15998_v13, %v3892_v52  ;;  %v11035_v10 = vmul.f32 %v16000_v51, %v15956_v22  ;;  %v16005_v8 = vld [vmem:[#allocation88_spill] sm:$0xff]  ;;  %v16006_v51 = vld [vmem:[#allocation114_spill] sm:$0xff]  ;;  %v1384_v28 = vpop.permute.xlu0 %1383 }
 0x106   : > { %15997 = vst [vmem:[#allocation62_spill] sm:$0xff] %v11028_v21  ;;  %v3210_v19 = vadd.f32 %v3194_v61, %v3154_v9  ;;  %v940_v23 = vsel %vm934_vm3, 0.0, %v897_v62  ;;  %v1183_v2 = vsel %vm983_vm0, 0.0, %v1141_v16  ;;  %v11041_v57 = vmul.f32 %v16003_v1, %v16002_v63  ;;  %v11055_v62 = vld [vmem:[%s15435_s3 + $0x2a] ss:$0 sm:$0xff]  ;;  %v16007_v21 = vld [vmem:[#allocation115_spill] sm:$0xff] }
 0x107   : > { %15999 = vst [vmem:[#allocation63_spill] sm:$0xff] %v11031_v0  ;;  %16001 = vst [vmem:[#allocation65_spill] sm:$0xff] %v11035_v10  ;;  %v3988_v37 = vmul.f32 %v11014_v41, %v10711_v47  ;;  %v3834_v52 = vadd.f32 %v16005_v8, %v3777_v27  ;;  %v11047_v43 = vsel %vm1064_vm4, %v940_v23, %v1027_v20 }
 0x108   : > { %16004 = vst [vmem:[#allocation66_spill] sm:$0xff] %v11041_v57  ;;  %v11050_v22 = vsel %vm1064_vm4, %v1183_v2, %v1205_v11  ;;  %v1672_v56 = vmul.f32 %v10471_v14, %v11047_v43  ;;  %v2064_v9 = vmul.f32 %v10588_v49, %v11047_v43  ;;  %v2462_v47 = vmul.f32 %v10796_v33, %v11047_v43 }
 0x109   : > { %v2859_v27 = vmul.f32 %v10418_v36, %v11047_v43  ;;  %v4004_v20 = vadd.f32 %v3988_v37, %v10757_v29  ;;  %v3875_v61 = vmul.f32 %v10707_v15, %v10823_v17  ;;  %v3251_v16 = vmul.f32 %v10572_v42, %v11047_v43  ;;  %v16008_v15 = vld [vmem:[#allocation116_spill] sm:$0xff] }
 0x10a   : > { %v1784_v13 = vmul.f32 %v10482_v5, %v11050_v22  ;;  %v1744_v23 = vadd.f32 %v16006_v51, %v1672_v56  ;;  %v2080_v2 = vadd.f32 %v2064_v9, %v2023_v6  ;;  %v2478_v1 = vadd.f32 %v2462_v47, %v2421_v18  ;;  %v16009_v6 = vld [vmem:[#allocation117_spill] sm:$0xff]  ;;  %v16010_v9 = vld [vmem:[#allocation118_spill] sm:$0xff] }
 0x10b   : > { %v2875_v8 = vadd.f32 %v2859_v27, %v2819_v60  ;;  %v4045_v0 = vmul.f32 %v11055_v62, %v10775_v46  ;;  %v3891_v57 = vadd.f32 %v3875_v61, %v3834_v52  ;;  %v3267_v29 = vadd.f32 %v3251_v16, %v3210_v19  ;;  %v1563_v52 = vpop.permute.xlu1 %1562  ;;  %v11095_v61 = vld [vmem:[%s15435_s3 + $0x2c] ss:$0 sm:$0xff]  ;;  %v16012_v16 = vld [vmem:[#allocation94_spill] sm:$0xff] }
 0x10c   : > { %v2178_v37 = vmul.f32 %v10612_v55, %v11050_v22  ;;  %v1800_v10 = vadd.f32 %v1784_v13, %v1744_v23  ;;  %v2137_v63 = vadd.f32 %v16007_v21, %v2080_v2  ;;  %v2535_v3 = vadd.f32 %v16008_v15, %v2478_v1  ;;  %16011 = vst [vmem:[#allocation67_spill] sm:$0xff] %v11095_v61  ;;  %v16013_v2 = vld [vmem:[#allocation120_spill] sm:$0xff] }
 0x10d   : > { %v2576_v56 = vmul.f32 %v10834_v45, %v11050_v22  ;;  %v2931_v18 = vadd.f32 %v16009_v6, %v2875_v8  ;;  %v2971_v60 = vmul.f32 %v10466_v53, %v11050_v22  ;;  %v3324_v46 = vadd.f32 %v16010_v9, %v3267_v29  ;;  %v899_v29 = vpop.permute.xlu0 %898  ;;  %v16017_v6 = vld [vmem:[#allocation124_spill] sm:$0xff] }
 0x10e   : > { %v3365_v19 = vmul.f32 %v10603_v26, %v11050_v22  ;;  %v11087_v47 = vadd.f32 %v4045_v0, %v4004_v20  ;;  %v2194_v27 = vadd.f32 %v2178_v37, %v2137_v63  ;;  %v11090_v15 = vsel %vm1064_vm4, %v1205_v11, %v1384_v28  ;;  %v16014_v20 = vld [vmem:[#allocation121_spill] sm:$0xff]  ;;  %v16016_v37 = vld [vmem:[#allocation123_spill] sm:$0xff] }
 0x10f   : > { %v2592_v21 = vadd.f32 %v2576_v56, %v2535_v3  ;;  %v3948_v13 = vadd.f32 %v16012_v16, %v3891_v57  ;;  %v2987_v51 = vadd.f32 %v2971_v60, %v2931_v18  ;;  %v1856_v1 = vadd.f32 %v16013_v2, %v1800_v10  ;;  %v16015_v3 = vld [vmem:[#allocation122_spill] sm:$0xff] }
 0x110   : > { %v3381_v23 = vadd.f32 %v3365_v19, %v3324_v46  ;;  %v3989_v0 = vmul.f32 %v11014_v41, %v10887_v59  ;;  %v2251_v63 = vadd.f32 %v16014_v20, %v2194_v27  ;;  %v1896_v11 = vmul.f32 %v10518_v40, %v11090_v15 }
 0x111   : > { %v2649_v8 = vadd.f32 %v16015_v3, %v2592_v21  ;;  %v3043_v56 = vadd.f32 %v16016_v37, %v2987_v51  ;;  %v2292_v57 = vmul.f32 %v10720_v30, %v11090_v15  ;;  %v2690_v10 = vmul.f32 %v10875_v12, %v11090_v15  ;;  %v16018_v3 = vld [vmem:[#allocation125_spill] sm:$0xff] }
 0x112   : > { %v3438_v9 = vadd.f32 %v16017_v6, %v3381_v23  ;;  %v11113_v18 = vmul.f32 %v11095_v61, %v10778_v35  ;;  %v1912_v60 = vadd.f32 %v1896_v11, %v1856_v1  ;;  %v3083_v46 = vmul.f32 %v10511_v7, %v11090_v15  ;;  %v1029_v23 = vpop.permute.xlu1 %1028  ;;  %v16019_v11 = vld [vmem:[#allocation126_spill] sm:$0xff] }
 0x113   : > { %v3479_v19 = vmul.f32 %v10623_v50, %v11090_v15  ;;  %v4005_v27 = vadd.f32 %v3989_v0, %v3948_v13  ;;  %v2308_v21 = vadd.f32 %v2292_v57, %v2251_v63  ;;  %v2706_v16 = vadd.f32 %v2690_v10, %v2649_v8  ;;  %v16020_v0 = vld [vmem:[#allocation127_spill] sm:$0xff]  ;;  %v16021_v8 = vld [vmem:[#allocation128_spill] sm:$0xff]  ;;  %v1143_v57 = vpop.permute.xlu0 %1142 }
 0x114   : > { %v11120_v51 = vsel %vm1064_vm4, %v1384_v28, %v1563_v52  ;;  %v3099_v2 = vadd.f32 %v3083_v46, %v3043_v56  ;;  %v1968_v37 = vadd.f32 %v16018_v3, %v1912_v60  ;;  %v4046_v1 = vmul.f32 %v11055_v62, %v10938_v25  ;;  %v16022_v25 = vld [vmem:[#allocation129_spill] sm:$0xff] }
 0x115   : > { %v3495_v20 = vadd.f32 %v3479_v19, %v3438_v9  ;;  %v2008_v35 = vmul.f32 %v10557_v48, %v11120_v51  ;;  %v2365_v6 = vadd.f32 %v16019_v11, %v2308_v21  ;;  %v2406_v13 = vmul.f32 %v10734_v24, %v11120_v51 }
 0x116   : > { %v2763_v63 = vadd.f32 %v16020_v0, %v2706_v16  ;;  %v2804_v52 = vmul.f32 %v10908_v54, %v11120_v51  ;;  %v3155_v56 = vadd.f32 %v16021_v8, %v3099_v2  ;;  %v3195_v9 = vmul.f32 %v10550_v31, %v11120_v51  ;;  %v16023_v0 = vld [vmem:[#allocation130_spill] sm:$0xff] }
 0x117   : > { %v2024_v28 = vadd.f32 %v2008_v35, %v1968_v37  ;;  %v4062_v10 = vadd.f32 %v4046_v1, %v4005_v27  ;;  %v2422_v60 = vadd.f32 %v2406_v13, %v2365_v6  ;;  %v3552_v46 = vadd.f32 %v16022_v25, %v3495_v20  ;;  %v1207_v20 = vpop.permute.xlu1 %1206  ;;  %v16024_v25 = vld [vmem:[#allocation139_spill] sm:$0xff] }
 0x118   : > { %v3593_v19 = vmul.f32 %v10642_v4, %v11120_v51  ;;  %v3592_v21 = vmul.f32 %v10642_v4, %v10999_v58  ;;  %v2820_v16 = vadd.f32 %v2804_v52, %v2763_v63  ;;  %v3211_v3 = vadd.f32 %v3195_v9, %v3155_v56 }
 0x119   : > { %v941_v37 = vsel %vm934_vm3, 0.0, %v899_v29  ;;  %v4160_v2 = vmul.f32 %v11095_v61, %v10958_v39  ;;  %v1184_v27 = vsel %vm983_vm0, 0.0, %v1143_v57  ;;  %v3649_v39 = vmul.f32 %v10665_v32, %v11047_v43 }
 0x11a   : > { %v3609_v35 = vadd.f32 %v3593_v19, %v3552_v46  ;;  %v11145_v31 = vsel %vm1064_vm4, %v941_v37, %v1029_v23  ;;  %v3608_v1 = vadd.f32 %v3592_v21, %v11019_v38  ;;  %v11165_v8 = vsel %vm1064_vm4, %v1184_v27, %v1207_v20  ;;  %v16026_v37 = vld [vmem:[#allocation132_spill] sm:$0xff]  ;;  %v16027_v27 = vld [vmem:[#allocation134_spill] sm:$0xff] }
 0x11b   : > { %v1673_v11 = vmul.f32 %v10471_v14, %v11145_v31  ;;  %v2065_v6 = vmul.f32 %v10588_v49, %v11145_v31  ;;  %v2463_v29 = vmul.f32 %v10796_v33, %v11145_v31  ;;  %v2860_v23 = vmul.f32 %v10418_v36, %v11145_v31 }
 0x11c   : > { %v3252_v13 = vmul.f32 %v10572_v42, %v11145_v31  ;;  %v3650_v38 = vmul.f32 %v10665_v32, %v11145_v31  ;;  %v4118_v46 = vadd.f32 %v16024_v25, %v11087_v47  ;;  %v1785_v36 = vmul.f32 %v10482_v5, %v11165_v8  ;;  %v16025_v42 = vld [vmem:[#allocation131_spill] sm:$0xff]  ;;  %v11184_v5 = vld [vmem:[%s15435_s3 + $0x2e] ss:$0 sm:$0xff] }
 0x11d   : > { %v1745_v14 = vadd.f32 %v16023_v0, %v1673_v11  ;;  %v2081_v63 = vadd.f32 %v2065_v6, %v2024_v28  ;;  %v2479_v52 = vadd.f32 %v2463_v29, %v2422_v60  ;;  %v2876_v56 = vadd.f32 %v2860_v23, %v2820_v16  ;;  %16029 = vst [vmem:[#allocation69_spill] sm:$0xff] %v11184_v5  ;;  %v16030_v23 = vld [vmem:[#allocation137_spill] sm:$0xff]  ;;  %v16032_v25 = vld [vmem:[#allocation140_spill] sm:$0xff] }
 0x11e   : > { %v3268_v9 = vadd.f32 %v3252_v13, %v3211_v3  ;;  %v3666_v57 = vadd.f32 %v3650_v38, %v3609_v35  ;;  %v2179_v21 = vmul.f32 %v10612_v55, %v11165_v8  ;;  %v2577_v60 = vmul.f32 %v10834_v45, %v11165_v8  ;;  %v16028_v35 = vld [vmem:[#allocation135_spill] sm:$0xff]  ;;  %v11192_v38 = vld [vmem:[%s15435_s3 + $0x30] ss:$0 sm:$0xff] }
 0x11f   : > { %v2138_v19 = vadd.f32 %v16025_v42, %v2081_v63  ;;  %v2536_v28 = vadd.f32 %v16026_v37, %v2479_v52  ;;  %v2932_v16 = vadd.f32 %v16027_v27, %v2876_v56  ;;  %v2972_v3 = vmul.f32 %v10466_v53, %v11165_v8  ;;  %16031 = vst [vmem:[#allocation70_spill] sm:$0xff] %v11192_v38  ;;  %v1386_v53 = vpop.permute.xlu0 %1385  ;;  %v16033_v37 = vld [vmem:[#allocation9_spill] sm:$0xff]  ;;  %v16035_v27 = vld [vmem:[#allocation11_spill] sm:$0xff] }
 0x120   : > { %v3325_v47 = vadd.f32 %v16028_v35, %v3268_v9  ;;  %v1801_v11 = vadd.f32 %v1785_v36, %v1745_v14  ;;  %v3366_v29 = vmul.f32 %v10603_v26, %v11165_v8  ;;  %v3723_v13 = vadd.f32 %v16030_v23, %v3666_v57  ;;  %v1565_v14 = vpop.permute.xlu1 %1564  ;;  %v16038_v35 = vld [vmem:[#allocation20_spill] sm:$0xff]  ;;  %v16040_v23 = vld [vmem:[#allocation27_spill] sm:$0xff] }
 0x121   : > { %v2195_v6 = vadd.f32 %v2179_v21, %v2138_v19  ;;  %v11194_v0 = vadd.f32 %v3649_v39, %v3608_v1  ;;  %v2593_v63 = vadd.f32 %v2577_v60, %v2536_v28  ;;  %v2988_v52 = vadd.f32 %v2972_v3, %v2932_v16  ;;  %v16034_v60 = vld [vmem:[#allocation34_spill] sm:$0xff] }
 0x122   : > { %v3764_v56 = vmul.f32 %v10688_v44, %v11165_v8  ;;  %v3382_v9 = vadd.f32 %v3366_v29, %v3325_v47  ;;  %v4119_v36 = vadd.f32 %v16032_v25, %v4062_v10  ;;  %v4175_v26 = vadd.f32 %v11113_v18, %v4118_v46  ;;  %v16036_v46 = vld [vmem:[#allocation24_spill] sm:$0xff] }
 0x123   : > { %v4273_v57 = vmul.f32 %v11184_v5, %v10823_v17  ;;  %v4274_v19 = vmul.f32 %v11184_v5, %v10961_v34  ;;  %v4387_v1 = vmul.f32 %v11192_v38, %v10887_v59  ;;  %v4388_v39 = vmul.f32 %v11192_v38, %v10999_v58  ;;  %v16037_v17 = vld [vmem:[#allocation16_spill] sm:$0xff] }
 0x124   : > { %v3780_v42 = vadd.f32 %v3764_v56, %v3723_v13  ;;  %v4176_v21 = vadd.f32 %v4160_v2, %v4119_v36  ;;  %v4232_v28 = vadd.f32 %v16033_v37, %v4175_v26  ;;  %v1857_v10 = vadd.f32 %v16034_v60, %v1801_v11  ;;  %v16039_v34 = vld [vmem:[#allocation36_spill] sm:$0xff]  ;;  %v901_v11 = vpop.permute.xlu0 %900  ;;  %v1031_v25 = vpop.permute.xlu1 %1030 }
 0x125   : > { %v2252_v18 = vadd.f32 %v16035_v27, %v2195_v6  ;;  %v2650_v16 = vadd.f32 %v16036_v46, %v2593_v63  ;;  %v3044_v3 = vadd.f32 %v16037_v17, %v2988_v52  ;;  %v3439_v47 = vadd.f32 %v16038_v35, %v3382_v9 }
 0x126   : > { %v3837_v29 = vadd.f32 %v16039_v34, %v3780_v42  ;;  %v4233_v59 = vadd.f32 %v16040_v23, %v4176_v21  ;;  %v4289_v13 = vadd.f32 %v4273_v57, %v4232_v28  ;;  %v11217_v56 = vsel %vm1064_vm4, %v1207_v20, %v1386_v53  ;;  %v16041_v20 = vld [vmem:[#allocation141_spill] sm:$0xff]  ;;  %v16043_v28 = vld [vmem:[#allocation28_spill] sm:$0xff]  ;;  %v16045_v34 = vld [vmem:[#allocation38_spill] sm:$0xff] }
 0x127   : > { %v11220_v2 = vsel %vm1064_vm4, %v1386_v53, %v1565_v14  ;;  %v1897_v6 = vmul.f32 %v10518_v40, %v11217_v56  ;;  %v2293_v63 = vmul.f32 %v10720_v30, %v11217_v56  ;;  %v2691_v52 = vmul.f32 %v10875_v12, %v11217_v56  ;;  %v16042_v14 = vld [vmem:[#allocation14_spill] sm:$0xff] }
 0x128   : > { %v3084_v9 = vmul.f32 %v10511_v7, %v11217_v56  ;;  %v4290_v36 = vadd.f32 %v4274_v19, %v4233_v59  ;;  %v4346_v26 = vadd.f32 %v16041_v20, %v4289_v13  ;;  %v3480_v53 = vmul.f32 %v10623_v50, %v11217_v56  ;;  %v16044_v7 = vld [vmem:[#allocation29_spill] sm:$0xff] }
 0x129   : > { %v3878_v57 = vmul.f32 %v16042_v14, %v11217_v56  ;;  %v1913_v40 = vadd.f32 %v1897_v6, %v1857_v10  ;;  %v2309_v42 = vadd.f32 %v2293_v63, %v2252_v18  ;;  %v2707_v21 = vadd.f32 %v2691_v52, %v2650_v16  ;;  %v16046_v10 = vld [vmem:[#allocation22_spill] sm:$0xff]  ;;  %v1209_v52 = vpop.permute.xlu1 %1208 }
 0x12a   : > { %v3100_v37 = vadd.f32 %v3084_v9, %v3044_v3  ;;  %v4347_v60 = vadd.f32 %v16043_v28, %v4290_v36  ;;  %v4403_v27 = vadd.f32 %v4387_v1, %v4346_v26  ;;  %v3496_v46 = vadd.f32 %v3480_v53, %v3439_v47  ;;  %v16047_v3 = vld [vmem:[#allocation40_spill] sm:$0xff]  ;;  %v1145_v47 = vpop.permute.xlu0 %1144  ;;  %v16048_v63 = vld [vmem:[#allocation30_spill] sm:$0xff] }
 0x12b   : > { %v3894_v17 = vadd.f32 %v3878_v57, %v3837_v29  ;;  %v1969_v35 = vadd.f32 %v16044_v7, %v1913_v40  ;;  %v2009_v19 = vmul.f32 %v10557_v48, %v11220_v2  ;;  %v2366_v23 = vadd.f32 %v16045_v34, %v2309_v42  ;;  %v11249_v48 = vld [vmem:[%s15435_s3 + $0x1b] ss:$0 sm:$0xff] }
 0x12c   : > { %v2407_v50 = vmul.f32 %v10734_v24, %v11220_v2  ;;  %v4404_v59 = vadd.f32 %v4388_v39, %v4347_v60  ;;  %v2764_v18 = vadd.f32 %v16046_v10, %v2707_v21  ;;  %v2805_v16 = vmul.f32 %v10908_v54, %v11220_v2  ;;  %v16049_v26 = vld [vmem:[#allocation42_spill] sm:$0xff] }
 0x12d   : > { %v3156_v1 = vadd.f32 %v16047_v3, %v3100_v37  ;;  %v2025_v29 = vadd.f32 %v2009_v19, %v1969_v35  ;;  %v3196_v6 = vmul.f32 %v11249_v48, %v11220_v2  ;;  %v3553_v39 = vadd.f32 %v16048_v63, %v3496_v46  ;;  %v11283_v19 = vld [vmem:[%s15435_s3 + $0x1c] ss:$0 sm:$0xff] }
 0x12e   : > { %v2423_v13 = vadd.f32 %v2407_v50, %v2366_v23  ;;  %v4516_v9 = vpack.c.bf16 %v4404_v59, %v4403_v27  ;;  %v2821_v36 = vadd.f32 %v2805_v16, %v2764_v18  ;;  %v3594_v20 = vmul.f32 %v10642_v4, %v11220_v2  ;;  %v11268_v4 = vld [vmem:[%s15435_s3] ss:$0 sm:$0xff]  ;;  %16054 = vst [vmem:[#allocation50_spill] sm:$0xff] %v11283_v19  ;;  %v11293_v16 = vld [vmem:[%s15435_s3 + $0x2] ss:$0 sm:$0xff] }
 0x12f   : > { %v3951_v53 = vadd.f32 %v16049_v26, %v3894_v17  ;;  %v3212_v57 = vadd.f32 %v3196_v6, %v3156_v1  ;;  %v3992_v40 = vmul.f32 %v11014_v41, %v11220_v2  ;;  %v942_v42 = vsel %vm934_vm3, 0.0, %v901_v11  ;;  %16051 = vst [vmem:[#allocation35_spill] sm:$0xff] %v11268_v4  ;;  %v16055_v50 = vld [vmem:[#allocation43_spill] sm:$0xff] }
 0x130   : > { %v1185_v21 = vsel %vm983_vm0, 0.0, %v1145_v47  ;;  %4732 = vmatmul.mubr.bf16.vlgmr.msra.gmra.mxu0 %v4516_v9  ;;  %4785 = vmatmul.mubr.bf16.vlgmr.msra.gmra.mxu1 %v4516_v9  ;;  %v3610_v37 = vadd.f32 %v3594_v20, %v3553_v39  ;;  %v1072_v28 = vsel %vm1064_vm4, %v942_v42, %v1031_v25  ;;  %v16052_v7 = vmov 0   ;;  %v11277_v25 = vld [vmem:[%s15435_s3 + $0x15] ss:$0 sm:$0xff]  ;;  %v16059_v42 = vld [vmem:[#allocation58_spill] sm:$0xff] }
 0x131   : > { %v11263_v60 = vsel %vm1064_vm4, %v1185_v21, %v1209_v52  ;;  %v4008_v27 = vadd.f32 %v3992_v40, %v3951_v53  ;;  %v1674_v46 = vmul.f32 %v11268_v4, %v1072_v28  ;;  %v2066_v11 = vmul.f32 %v10588_v49, %v1072_v28  ;;  %4741 = vmatprep.mubr.bf16.mxu0 %v16052_v7  ;;  %v16056_v39 = vld [vmem:[#allocation49_spill] sm:$0xff]  ;;  %v16058_v53 = vld [vmem:[#allocation56_spill] sm:$0xff] }
 0x132   : > { %16050 = vst [vmem:[#allocation71_spill] sm:$0xff] %v11263_v60  ;;  %v2464_v17 = vmul.f32 %v10796_v33, %v1072_v28  ;;  %16053 = vst [vmem:[#allocation72_spill] sm:$0xff] %v11277_v25  ;;  %v2861_v35 = vmul.f32 %v11277_v25, %v1072_v28  ;;  %v3253_v34 = vmul.f32 %v11283_v19, %v1072_v28  ;;  %4794 = vmatprep.mubr.bf16.mxu1 %v16052_v7 }
 0x133   : > { %v3651_v49 = vmul.f32 %v10665_v32, %v1072_v28  ;;  %v4049_v23 = vmul.f32 %v11055_v62, %v1072_v28  ;;  %v1746_v59 = vadd.f32 %v16055_v50, %v1674_v46  ;;  %v2082_v10 = vadd.f32 %v2066_v11, %v2025_v29  ;;  %v16057_v29 = vld [vmem:[#allocation54_spill] sm:$0xff] }
 0x134   : > { %v2480_v18 = vadd.f32 %v2464_v17, %v2423_v13  ;;  %v1786_v3 = vmul.f32 %v11293_v16, %v11263_v60  ;;  %v2877_v1 = vadd.f32 %v2861_v35, %v2821_v36  ;;  %v3269_v47 = vadd.f32 %v3253_v34, %v3212_v57  ;;  %v11312_v36 = vld [vmem:[%s15435_s3 + $0xa] ss:$0 sm:$0xff]  ;;  %v16060_v57 = vld [vmem:[#allocation23_spill] sm:$0xff]  ;;  %v16062_v11 = vld [vmem:[#allocation62_spill] sm:$0xff] }
 0x135   : > { %v3667_v6 = vadd.f32 %v3651_v49, %v3610_v37  ;;  %v4065_v32 = vadd.f32 %v4049_v23, %v4008_v27  ;;  %v2139_v9 = vadd.f32 %v16056_v39, %v2082_v10  ;;  %v2180_v20 = vmul.f32 %v10612_v55, %v11263_v60  ;;  %v16061_v55 = vld [vmem:[#allocation119_spill] sm:$0xff]  ;;  %v16063_v34 = vld [vmem:[#allocation65_spill] sm:$0xff]  ;;  %v1388_v23 = vpop.permute.xlu0 %1387  ;;  %v16065_v50 = vld [vmem:[#allocation66_spill] sm:$0xff] }
 0x136   : > { %v1802_v63 = vadd.f32 %v1786_v3, %v1746_v59  ;;  %v2537_v13 = vadd.f32 %v16057_v29, %v2480_v18  ;;  %v2578_v26 = vmul.f32 %v10834_v45, %v11263_v60  ;;  %v11304_v40 = vadd.f32 %v16058_v53, %v2877_v1  ;;  %v11330_v10 = vld [vmem:[%s15435_s3 + $0x11] ss:$0 sm:$0xff]  ;;  %v11337_v3 = vld [vmem:[%s15435_s3 + $0x26] ss:$0 sm:$0xff]  ;;  %v16067_v1 = vld [vmem:[#allocation12_spill] sm:$0xff] }
 0x137   : > { %v11307_v21 = vadd.f32 %v16059_v42, %v3269_v47  ;;  %v2237_v37 = vmul.f32 %v11312_v36, %v16060_v57  ;;  %v3722_v28 = vadd.f32 %v16061_v55, %v11194_v0  ;;  %v3763_v27 = vmul.f32 %v10688_v44, %v11050_v22  ;;  %16066 = vst [vmem:[#allocation64_spill] sm:$0xff] %v11337_v3  ;;  %v11347_v39 = vld [vmem:[%s15435_s3 + $0x4] ss:$0 sm:$0xff]  ;;  %v16069_v53 = vld [vmem:[#allocation33_spill] sm:$0xff] }
 0x138   : > { %v2196_v46 = vadd.f32 %v2180_v20, %v2139_v9  ;;  %v11321_v17 = vadd.f32 %v16062_v11, %v3667_v6  ;;  %v2594_v35 = vadd.f32 %v2578_v26, %v2537_v13  ;;  %v11324_v49 = vadd.f32 %v16063_v34, %v4065_v32  ;;  %v1567_v13 = vpop.permute.xlu1 %1566  ;;  %v16072_v11 = vld [vmem:[#allocation39_spill] sm:$0xff] }
 0x139   : > { %v1858_v59 = vadd.f32 %v16065_v50, %v1802_v63  ;;  %v2635_v0 = vmul.f32 %v11330_v10, %v16060_v57  ;;  %v3779_v18 = vadd.f32 %v3763_v27, %v3722_v28  ;;  %v3820_v47 = vmul.f32 %v11337_v3, %v16067_v1  ;;  %v16071_v27 = vld [vmem:[#allocation37_spill] sm:$0xff]  ;;  %v903_v34 = vpop.permute.xlu0 %902  ;;  %v11366_v50 = vld [vmem:[%s15435_s3 + $0x28] ss:$0 sm:$0xff] }
 0x13a   : > { %16064 = vst [vmem:[#allocation74_spill] sm:$0xff] %v11324_v49  ;;  %v2253_v6 = vadd.f32 %v2237_v37, %v2196_v46  ;;  %v11342_v32 = vsel %vm1064_vm4, %v1209_v52, %v1388_v23  ;;  %v16070_v52 = vld [vmem:[#allocation19_spill] sm:$0xff]  ;;  %v2351_v46 = vmul.f32 %v16071_v27, %v16069_v53  ;;  %16073 = vst [vmem:[#allocation75_spill] sm:$0xff] %v11366_v50  ;;  %v16077_v49 = vld [vmem:[#allocation45_spill] sm:$0xff] }
 0x13b   : > { %16068 = vst [vmem:[#allocation44_spill] sm:$0xff] %v11342_v32  ;;  %v2651_v63 = vadd.f32 %v2635_v0, %v2594_v35  ;;  %v1898_v9 = vmul.f32 %v11347_v39, %v11342_v32  ;;  %v2294_v20 = vmul.f32 %v10720_v30, %v11342_v32  ;;  %v2692_v29 = vmul.f32 %v10875_v12, %v11342_v32 }
 0x13c   : > { %v1954_v42 = vmul.f32 %v16070_v52, %v16069_v53  ;;  %v3836_v37 = vadd.f32 %v3820_v47, %v3779_v18  ;;  %v2749_v35 = vmul.f32 %v16072_v11, %v16069_v53  ;;  %v3877_v30 = vmul.f32 %v16042_v14, %v11090_v15 }
 0x13d   : > { %v1914_v26 = vadd.f32 %v1898_v9, %v1858_v59  ;;  %v2310_v55 = vadd.f32 %v2294_v20, %v2253_v6  ;;  %v2708_v28 = vadd.f32 %v2692_v29, %v2651_v63  ;;  %v16074_v59 = vld [vmem:[#allocation21_spill] sm:$0xff]  ;;  %v11371_v18 = vsel %vm1064_vm4, %v1388_v23, %v1567_v13  ;;  %v11376_v20 = vld [vmem:[%s15435_s3 + $0x6] ss:$0 sm:$0xff]  ;;  %v1033_v23 = vpop.permute.xlu1 %1032 }
 0x13e   : > { %v3934_v0 = vmul.f32 %v11366_v50, %v16074_v59  ;;  %16075 = vst [vmem:[#allocation52_spill] sm:$0xff] %v11371_v18  ;;  %v3893_v9 = vadd.f32 %v3877_v30, %v3836_v37  ;;  %v2010_v14 = vmul.f32 %v11376_v20, %v11371_v18  ;;  %v2408_v29 = vmul.f32 %v10734_v24, %v11371_v18  ;;  %v11391_v24 = vld [vmem:[%s15435_s3 + $0x1] ss:$0 sm:$0xff] }
 0x13f   : > { %v1970_v47 = vadd.f32 %v1954_v42, %v1914_v26  ;;  %v2367_v6 = vadd.f32 %v2351_v46, %v2310_v55  ;;  %v2765_v63 = vadd.f32 %v2749_v35, %v2708_v28  ;;  %v2806_v7 = vmul.f32 %v10908_v54, %v11371_v18  ;;  %v1147_v28 = vpop.permute.xlu0 %1146  ;;  %v16076_v46 = vld [vmem:[#allocation63_spill] sm:$0xff] }
 0x140   : > { %v943_v13 = vsel %vm934_vm3, 0.0, %v903_v34  ;;  %v3990_v26 = vmul.f32 %v11014_v41, %v10999_v58  ;;  %v3950_v30 = vadd.f32 %v3934_v0, %v3893_v9  ;;  %v1731_v19 = vmul.f32 %v11391_v24, %v16077_v49 }
 0x141   : > { %v2026_v42 = vadd.f32 %v2010_v14, %v1970_v47  ;;  %v2424_v37 = vadd.f32 %v2408_v29, %v2367_v6  ;;  %v2822_v55 = vadd.f32 %v2806_v7, %v2765_v63  ;;  %v11396_v34 = vsel %vm1064_vm4, %v943_v13, %v1033_v23  ;;  %v11403_v7 = vld [vmem:[%s15435_s3 + $0x7] ss:$0 sm:$0xff]  ;;  %v16080_v14 = vld [vmem:[#allocation48_spill] sm:$0xff] }
 0x142   : > { %v4006_v35 = vadd.f32 %v3990_v26, %v16076_v46  ;;  %16078 = vst [vmem:[#allocation78_spill] sm:$0xff] %v11396_v34  ;;  %v1675_v58 = vmul.f32 %v11268_v4, %v11396_v34  ;;  %16079 = vst [vmem:[#allocation79_spill] sm:$0xff] %v11403_v7  ;;  %v2067_v0 = vmul.f32 %v11403_v7, %v11396_v34  ;;  %v1186_v9 = vsel %vm983_vm0, 0.0, %v1147_v28  ;;  %v16081_v23 = vld [vmem:[#allocation51_spill] sm:$0xff]  ;;  %v11418_v26 = vpop.permute.xlu1 %1210 }
 0x143   : > { %v2465_v47 = vmul.f32 %v10796_v33, %v11396_v34  ;;  %v2862_v6 = vmul.f32 %v11277_v25, %v11396_v34  ;;  %v3991_v63 = vmul.f32 %v11014_v41, %v11120_v51  ;;  %v2124_v29 = vmul.f32 %v16080_v14, %v16077_v49  ;;  %v16082_v28 = vld [vmem:[#allocation55_spill] sm:$0xff] }
 0x144   : > { %v2522_v13 = vmul.f32 %v16081_v23, %v16077_v49  ;;  %v4047_v46 = vmul.f32 %v11055_v62, %v11047_v43  ;;  %v2083_v33 = vadd.f32 %v2067_v0, %v2026_v42  ;;  %v4048_v41 = vmul.f32 %v11055_v62, %v11145_v31  ;;  %v11429_v23 = vld [vmem:[%s15435_s3 + $0x17] ss:$0 sm:$0xff] }
 0x145   : > { %v2481_v7 = vadd.f32 %v2465_v47, %v2424_v37  ;;  %v2878_v4 = vadd.f32 %v2862_v6, %v2822_v55  ;;  %v4007_v25 = vadd.f32 %v3991_v63, %v3950_v30  ;;  %v1747_v34 = vadd.f32 %v1731_v19, %v1675_v58  ;;  %16083 = vst [vmem:[#allocation80_spill] sm:$0xff] %v11429_v23  ;;  %v11442_v37 = vld [vmem:[%s15435_s3 + $0x9] ss:$0 sm:$0xff]  ;;  %v11449_v30 = vld [vmem:[%s15435_s3 + $0x1e] ss:$0 sm:$0xff] }
 0x146   : > { %v2918_v50 = vmul.f32 %v16082_v28, %v16077_v49  ;;  %v4063_v14 = vadd.f32 %v4047_v46, %v4006_v35  ;;  %v2973_v43 = vmul.f32 %v11429_v23, %v11263_v60  ;;  %v11435_v42 = vsel %vm1064_vm4, %v1186_v9, %v11418_v26  ;;  %v11463_v46 = vld [vmem:[%s15435_s3 + $0x18] ss:$0 sm:$0xff] }
 0x147   : > { %v1787_v31 = vmul.f32 %v11293_v16, %v11435_v42  ;;  %v2140_v19 = vadd.f32 %v2124_v29, %v2083_v33  ;;  %v2181_v55 = vmul.f32 %v11442_v37, %v11435_v42  ;;  %v2538_v35 = vadd.f32 %v2522_v13, %v2481_v7  ;;  %16084 = vst [vmem:[#allocation81_spill] sm:$0xff] %v11463_v46 }
 0x148   : > { %v3367_v58 = vmul.f32 %v11449_v30, %v11263_v60  ;;  %v2579_v0 = vmul.f32 %v10834_v45, %v11435_v42  ;;  %v2934_v47 = vadd.f32 %v2918_v50, %v2878_v4  ;;  %v2974_v6 = vmul.f32 %v11429_v23, %v11435_v42 }
 0x149   : > { %v4064_v63 = vadd.f32 %v4048_v41, %v4007_v25  ;;  %v3765_v9 = vmul.f32 %v10688_v44, %v11263_v60  ;;  %v1803_v7 = vadd.f32 %v1787_v31, %v1747_v34  ;;  %v2197_v29 = vadd.f32 %v2181_v55, %v2140_v19  ;;  %v11472_v44 = vld [vmem:[%s15435_s3 + $0x2b] ss:$0 sm:$0xff]  ;;  %v16086_v25 = vld [vmem:[#allocation17_spill] sm:$0xff] }
 0x14a   : > { %v2989_v13 = vadd.f32 %v2973_v43, %v11304_v40  ;;  %v3029_v45 = vmul.f32 %v11463_v46, %v16060_v57  ;;  %v2595_v4 = vadd.f32 %v2579_v0, %v2538_v35  ;;  %v2990_v50 = vadd.f32 %v2974_v6, %v2934_v47  ;;  %16085 = vst [vmem:[#allocation68_spill] sm:$0xff] %v11472_v44  ;;  %v16087_v34 = vld [vmem:[#allocation25_spill] sm:$0xff]  ;;  %v16089_v0 = vld [vmem:[#allocation18_spill] sm:$0xff] }
 0x14b   : > { %v4162_v41 = vmul.f32 %v11095_v61, %v11165_v8  ;;  %v4104_v40 = vmul.f32 %v11472_v44, %v16086_v25  ;;  %v4105_v33 = vmul.f32 %v11472_v44, %v16087_v34  ;;  %v4161_v43 = vmul.f32 %v11095_v61, %v11050_v22  ;;  %v11484_v8 = vld [vmem:[%s15435_s3 + $0x2d] ss:$0 sm:$0xff]  ;;  %v11494_v22 = vld [vmem:[%s15435_s3 + $0x1f] ss:$0 sm:$0xff]  ;;  %v11525_v61 = vld [vmem:[%s15435_s3 + $0x19] ss:$0 sm:$0xff] }
 0x14c   : > { %v3383_v31 = vadd.f32 %v3367_v58, %v11307_v21  ;;  %16088 = vst [vmem:[#allocation32_spill] sm:$0xff] %v11484_v8  ;;  %v4218_v35 = vmul.f32 %v11484_v8, %v16067_v1  ;;  %v4219_v47 = vmul.f32 %v11484_v8, %v16089_v0  ;;  %v3781_v6 = vadd.f32 %v3765_v9, %v11321_v17  ;;  %v16091_v17 = vld [vmem:[#allocation31_spill] sm:$0xff]  ;;  %v8689_v0 = vld [vmem:[%s15435_s3 + $0x2f] ss:$0 sm:$0xff]  ;;  %v16095_v44 = vld [vmem:[#allocation46_spill] sm:$0xff] }
 0x14d   : > { %v4120_v19 = vadd.f32 %v4104_v40, %v4063_v14  ;;  %v4121_v55 = vadd.f32 %v4105_v33, %v4064_v63  ;;  %v3045_v25 = vadd.f32 %v3029_v45, %v2989_v13  ;;  %v3424_v21 = vmul.f32 %v11494_v22, %v16060_v57  ;;  %v11503_v40 = vld [vmem:[%s15435_s3 + $0x3] ss:$0 sm:$0xff]  ;;  %16093 = vst [vmem:[#allocation83_spill] sm:$0xff] %v11525_v61 }
 0x14e   : > { %v3822_v14 = vmul.f32 %v11337_v3, %v16060_v57  ;;  %16090 = vst [vmem:[#allocation113_spill] sm:$0xff] %v11503_v40  ;;  %v1843_v9 = vmul.f32 %v11503_v40, %v16091_v17  ;;  %v2238_v13 = vmul.f32 %v11312_v36, %v16091_v17  ;;  %v4275_v45 = vmul.f32 %v11184_v5, %v11090_v15  ;;  %v16092_v3 = vld [vmem:[#allocation26_spill] sm:$0xff] }
 0x14f   : > { %v4177_v58 = vadd.f32 %v4161_v43, %v4120_v19  ;;  %v4178_v63 = vadd.f32 %v4162_v41, %v4121_v55  ;;  %v4276_v34 = vmul.f32 %v11184_v5, %v11217_v56  ;;  %v2636_v41 = vmul.f32 %v11330_v10, %v16091_v17  ;;  %v1390_v43 = vpop.permute.xlu0 %1389 }
 0x150   : > { %v3030_v33 = vmul.f32 %v11463_v46, %v16091_v17  ;;  %v4332_v1 = vmul.f32 %v8689_v0, %v16074_v59  ;;  %v4333_v15 = vmul.f32 %v8689_v0, %v16092_v3  ;;  %v1859_v8 = vadd.f32 %v1843_v9, %v1803_v7  ;;  %v11538_v59 = vld [vmem:[%s15435_s3 + $0xb] ss:$0 sm:$0xff] }
 0x151   : > { %v4234_v19 = vadd.f32 %v4218_v35, %v4177_v58  ;;  %v4235_v55 = vadd.f32 %v4219_v47, %v4178_v63  ;;  %v2254_v57 = vadd.f32 %v2238_v13, %v2197_v29  ;;  %v2652_v56 = vadd.f32 %v2636_v41, %v2595_v4 }
 0x152   : > { %v3046_v5 = vadd.f32 %v3030_v33, %v2990_v50  ;;  %v3085_v35 = vmul.f32 %v11525_v61, %v11342_v32  ;;  %v11531_v63 = vsel %vm1064_vm4, %v11418_v26, %v1390_v43  ;;  %v4389_v0 = vmul.f32 %v11192_v38, %v11120_v51  ;;  %v1569_v33 = vpop.permute.xlu1 %1568 }
 0x153   : > { %v4291_v47 = vadd.f32 %v4275_v45, %v4234_v19  ;;  %v4292_v58 = vadd.f32 %v4276_v34, %v4235_v55  ;;  %16094 = vst [vmem:[#allocation84_spill] sm:$0xff] %v11531_v63  ;;  %v1899_v3 = vmul.f32 %v11347_v39, %v11531_v63  ;;  %v2295_v7 = vmul.f32 %v11538_v59, %v11531_v63 }
 0x154   : > { %v2693_v29 = vmul.f32 %v10875_v12, %v11531_v63  ;;  %v3086_v4 = vmul.f32 %v11525_v61, %v11531_v63  ;;  %v4390_v9 = vmul.f32 %v11192_v38, %v11220_v2  ;;  %v3440_v19 = vadd.f32 %v3424_v21, %v3383_v31 }
 0x155   : > { %v4348_v50 = vadd.f32 %v4332_v1, %v4291_v47  ;;  %v4349_v26 = vadd.f32 %v4333_v15, %v4292_v58  ;;  %v1915_v13 = vadd.f32 %v1899_v3, %v1859_v8  ;;  %v2311_v45 = vadd.f32 %v2295_v7, %v2254_v57  ;;  %v905_v15 = vpop.permute.xlu0 %904  ;;  %v11575_v8 = vld [vmem:[%s15435_s3 + $0x27] ss:$0 sm:$0xff] }
 0x156   : > { %v2709_v34 = vadd.f32 %v2693_v29, %v2652_v56  ;;  %v3102_v41 = vadd.f32 %v3086_v4, %v3046_v5  ;;  %v3838_v12 = vadd.f32 %v3822_v14, %v3781_v6  ;;  %v1955_v63 = vmul.f32 %v16070_v52, %v16095_v44  ;;  %v11559_v5 = vld [vmem:[%s15435_s3 + $0x1a] ss:$0 sm:$0xff]  ;;  %16097 = vst [vmem:[#allocation86_spill] sm:$0xff] %v11575_v8  ;;  %v11587_v56 = vld [vmem:[%s15435_s3 + $0xd] ss:$0 sm:$0xff]  ;;  %v1035_v7 = vpop.permute.xlu1 %1034 }
 0x157   : > { %v4405_v55 = vadd.f32 %v4389_v0, %v4348_v50  ;;  %v4406_v60 = vadd.f32 %v4390_v9, %v4349_v26  ;;  %v2352_v1 = vmul.f32 %v16071_v27, %v16095_v44  ;;  %v2750_v51 = vmul.f32 %v16072_v11, %v16095_v44  ;;  %16096 = vst [vmem:[#allocation85_spill] sm:$0xff] %v11559_v5  ;;  %v11568_v27 = vld [vmem:[%s15435_s3 + $0x20] ss:$0 sm:$0xff]  ;;  %v11601_v9 = vld [vmem:[%s15435_s3 + $0x21] ss:$0 sm:$0xff] }
 0x158   : > { %v3101_v2 = vadd.f32 %v3085_v35, %v3045_v25  ;;  %v3141_v57 = vmul.f32 %v11559_v5, %v16069_v53  ;;  %v3142_v52 = vmul.f32 %v11559_v5, %v16095_v44  ;;  %v3481_v11 = vmul.f32 %v11568_v27, %v11342_v32 }
 0x159   : > { %v4517_v31 = vpack.c.bf16 %v4406_v60, %v4405_v55  ;;  %v3879_v6 = vmul.f32 %v11575_v8, %v11342_v32  ;;  %v11580_v60 = vsel %vm1064_vm4, %v1390_v43, %v1569_v33  ;;  %v1971_v25 = vadd.f32 %v1955_v63, %v1915_v13 }
 0x15a   : > { %16098 = vst [vmem:[#allocation87_spill] sm:$0xff] %v11580_v60  ;;  %v2011_v21 = vmul.f32 %v11376_v20, %v11580_v60  ;;  %v2368_v14 = vadd.f32 %v2352_v1, %v2311_v45  ;;  %v2409_v35 = vmul.f32 %v11587_v56, %v11580_v60  ;;  %v944_v47 = vsel %vm934_vm3, 0.0, %v905_v15  ;;  %v1149_v1 = vpop.permute.xlu0 %1148  ;;  %v16102_v15 = vld [vmem:[#allocation35_spill] sm:$0xff] }
 0x15b   : > { %4742 = vmatmul.mubr.bf16.gmra.mxu0 %v4517_v31  ;;  %4795 = vmatmul.mubr.bf16.gmra.mxu1 %v4517_v31  ;;  %v2766_v58 = vadd.f32 %v2750_v51, %v2709_v34  ;;  %v2807_v43 = vmul.f32 %v10908_v54, %v11580_v60  ;;  %v3158_v63 = vadd.f32 %v3142_v52, %v3102_v41  ;;  %v16099_v41 = vld [vmem:[#allocation47_spill] sm:$0xff] }
 0x15c   : > { %v3198_v3 = vmul.f32 %v11249_v48, %v11580_v60  ;;  %v3157_v29 = vadd.f32 %v3141_v57, %v3101_v2  ;;  %v3197_v4 = vmul.f32 %v11249_v48, %v11371_v18  ;;  %v2027_v50 = vadd.f32 %v2011_v21, %v1971_v25  ;;  %v16103_v57 = vld [vmem:[#allocation79_spill] sm:$0xff]  ;;  %v16106_v25 = vld [vmem:[#allocation50_spill] sm:$0xff] }
 0x15d   : > { %v2425_v26 = vadd.f32 %v2409_v35, %v2368_v14  ;;  %v3497_v0 = vadd.f32 %v3481_v11, %v3440_v19  ;;  %v3538_v54 = vmul.f32 %v11601_v9, %v16069_v53  ;;  %v2823_v13 = vadd.f32 %v2807_v43, %v2766_v58  ;;  %v16101_v19 = vld [vmem:[#allocation75_spill] sm:$0xff]  ;;  %v16107_v14 = vld [vmem:[#allocation72_spill] sm:$0xff] }
 0x15e   : > { %v3214_v45 = vadd.f32 %v3198_v3, %v3158_v63  ;;  %v3895_v34 = vadd.f32 %v3879_v6, %v3838_v12  ;;  %v1732_v33 = vmul.f32 %v11391_v24, %v16099_v41  ;;  %v11608_v55 = vsel %vm1064_vm4, %v944_v47, %v1035_v7  ;;  %v11619_v12 = vld [vmem:[%s15435_s3 + $0xe] ss:$0 sm:$0xff]  ;;  %v16105_v6 = vld [vmem:[#allocation78_spill] sm:$0xff]  ;;  %v1213_v7 = vpop.permute.xlu1 %1212  ;;  %v1392_v44 = vpop.permute.xlu0 %1391 }
 0x15f   : > { %16100 = vst [vmem:[#allocation8_spill] sm:$0xff] %v11608_v55  ;;  %v3936_v51 = vmul.f32 %v16101_v19, %v16069_v53  ;;  %v1676_v2 = vmul.f32 %v16102_v15, %v11608_v55  ;;  %v2068_v31 = vmul.f32 %v16103_v57, %v11608_v55  ;;  %16104 = vst [vmem:[#allocation89_spill] sm:$0xff] %v11619_v12  ;;  %v1187_v3 = vsel %vm983_vm0, 0.0, %v1149_v1  ;;  %v11633_v53 = vld [vmem:[%s15435_s3 + $0x22] ss:$0 sm:$0xff] }
 0x160   : > { %v2466_v52 = vmul.f32 %v11619_v12, %v11608_v55  ;;  %v3213_v11 = vadd.f32 %v3197_v4, %v3157_v29  ;;  %v3254_v21 = vmul.f32 %v16106_v25, %v16105_v6  ;;  %v2863_v35 = vmul.f32 %v16107_v14, %v11608_v55 }
 0x161   : > { %v3255_v47 = vmul.f32 %v16106_v25, %v11608_v55  ;;  %v3554_v58 = vadd.f32 %v3538_v54, %v3497_v0  ;;  %v2084_v43 = vadd.f32 %v2068_v31, %v2027_v50  ;;  %v3595_v29 = vmul.f32 %v11633_v53, %v11371_v18  ;;  %v11640_v0 = vld [vmem:[%s15435_s3 + $0x8] ss:$0 sm:$0xff]  ;;  %v16109_v31 = vld [vmem:[#allocation57_spill] sm:$0xff] }
 0x162   : > { %v2482_v63 = vadd.f32 %v2466_v52, %v2425_v26  ;;  %v1748_v4 = vadd.f32 %v1732_v33, %v1676_v2  ;;  %v2879_v19 = vadd.f32 %v2863_v35, %v2823_v13  ;;  %v2125_v50 = vmul.f32 %v11640_v0, %v16099_v41  ;;  %v16108_v26 = vld [vmem:[#allocation51_spill] sm:$0xff]  ;;  %v16110_v2 = vld [vmem:[#allocation41_spill] sm:$0xff] }
 0x163   : > { %v3271_v38 = vadd.f32 %v3255_v47, %v3214_v45  ;;  %v2523_v54 = vmul.f32 %v16108_v26, %v16099_v41  ;;  %v2919_v1 = vmul.f32 %v16082_v28, %v16099_v41  ;;  %v3312_v52 = vmul.f32 %v16109_v31, %v16099_v41 }
 0x164   : > { %v3270_v33 = vadd.f32 %v3254_v21, %v3213_v11  ;;  %v3311_v13 = vmul.f32 %v16109_v31, %v16077_v49  ;;  %v11653_v45 = vsel %vm1064_vm4, %v1187_v3, %v1213_v7  ;;  %v1844_v35 = vmul.f32 %v11503_v40, %v16110_v2  ;;  %v11664_v11 = vld [vmem:[%s15435_s3 + $0x10] ss:$0 sm:$0xff] }
 0x165   : > { %v1788_v47 = vmul.f32 %v11293_v16, %v11653_v45  ;;  %v2141_v26 = vadd.f32 %v2125_v50, %v2084_v43  ;;  %v2182_v28 = vmul.f32 %v11442_v37, %v11653_v45  ;;  %v2539_v8 = vadd.f32 %v2523_v54, %v2482_v63  ;;  %v16111_v54 = vld [vmem:[#allocation60_spill] sm:$0xff] }
 0x166   : > { %v2580_v21 = vmul.f32 %v11664_v11, %v11653_v45  ;;  %v2935_v3 = vadd.f32 %v2919_v1, %v2879_v19  ;;  %v2975_v31 = vmul.f32 %v11429_v23, %v11653_v45  ;;  %v3328_v32 = vadd.f32 %v3312_v52, %v3271_v38 }
 0x167   : > { %v1804_v41 = vadd.f32 %v1788_v47, %v1748_v4  ;;  %v2198_v55 = vadd.f32 %v2182_v28, %v2141_v26  ;;  %v3369_v43 = vmul.f32 %v11449_v30, %v11653_v45  ;;  %v2239_v63 = vmul.f32 %v11312_v36, %v16110_v2 }
 0x168   : > { %v3952_v50 = vadd.f32 %v3936_v51, %v3895_v34  ;;  %v3993_v60 = vmul.f32 %v16111_v54, %v11371_v18  ;;  %v2596_v49 = vadd.f32 %v2580_v21, %v2539_v8  ;;  %v2991_v40 = vadd.f32 %v2975_v31, %v2935_v3 }
 0x169   : > { %v11676_v19 = vadd.f32 %v3595_v29, %v3554_v58  ;;  %v3327_v1 = vadd.f32 %v3311_v13, %v3270_v33  ;;  %v3385_v23 = vadd.f32 %v3369_v43, %v3328_v32  ;;  %v2637_v38 = vmul.f32 %v11330_v10, %v16110_v2  ;;  %v11692_v32 = vld [vmem:[%s15435_s3 + $0x5] ss:$0 sm:$0xff]  ;;  %v16113_v29 = vld [vmem:[#allocation53_spill] sm:$0xff] }
 0x16a   : > { %v3368_v4 = vmul.f32 %v11449_v30, %v11435_v42  ;;  %v1860_v52 = vadd.f32 %v1844_v35, %v1804_v41  ;;  %v3031_v34 = vmul.f32 %v11463_v46, %v16110_v2  ;;  %v3426_v51 = vmul.f32 %v11494_v22, %v16110_v2  ;;  %v11723_v43 = vld [vmem:[%s15435_s3 + $0x13] ss:$0 sm:$0xff]  ;;  %v907_v46 = vpop.permute.xlu0 %906 }
 0x16b   : > { %v2255_v8 = vadd.f32 %v2239_v63, %v2198_v55  ;;  %v2653_v47 = vadd.f32 %v2637_v38, %v2596_v49  ;;  %v11687_v58 = vsel %vm1064_vm4, %v1213_v7, %v1392_v44  ;;  %v1956_v33 = vmul.f32 %v11692_v32, %v16113_v29  ;;  %v11701_v49 = vld [vmem:[%s15435_s3 + $0xc] ss:$0 sm:$0xff]  ;;  %v1571_v7 = vpop.permute.xlu1 %1570  ;;  %16115 = vst [vmem:[#allocation93_spill] sm:$0xff] %v11723_v43 }
 0x16c   : > { %16112 = vst [vmem:[#allocation90_spill] sm:$0xff] %v11687_v58  ;;  %v3047_v41 = vadd.f32 %v3031_v34, %v2991_v40  ;;  %v3442_v13 = vadd.f32 %v3426_v51, %v3385_v23  ;;  %v1900_v35 = vmul.f32 %v11347_v39, %v11687_v58  ;;  %v2353_v55 = vmul.f32 %v11701_v49, %v16113_v29  ;;  %v11710_v40 = vld [vmem:[%s15435_s3 + $0x12] ss:$0 sm:$0xff] }
 0x16d   : > { %v2296_v26 = vmul.f32 %v11538_v59, %v11687_v58  ;;  %16114 = vst [vmem:[#allocation91_spill] sm:$0xff] %v11710_v40  ;;  %v2694_v23 = vmul.f32 %v11710_v40, %v11687_v58  ;;  %v3087_v28 = vmul.f32 %v11525_v61, %v11687_v58  ;;  %v3483_v21 = vmul.f32 %v11568_v27, %v11687_v58  ;;  %v16123_v58 = vld [vmem:[#allocation61_spill] sm:$0xff] }
 0x16e   : > { %v11718_v3 = vadd.f32 %v3993_v60, %v3952_v50  ;;  %v1916_v31 = vadd.f32 %v1900_v35, %v1860_v52  ;;  %v2751_v63 = vmul.f32 %v11723_v43, %v16113_v29  ;;  %v3143_v54 = vmul.f32 %v11559_v5, %v16113_v29 }
 0x16f   : > { %v2312_v38 = vadd.f32 %v2296_v26, %v2255_v8  ;;  %v2710_v34 = vadd.f32 %v2694_v23, %v2653_v47  ;;  %v3103_v51 = vadd.f32 %v3087_v28, %v3047_v41  ;;  %v3499_v61 = vadd.f32 %v3483_v21, %v3442_v13  ;;  %v11752_v13 = vld [vmem:[%s15435_s3 + $0x23] ss:$0 sm:$0xff]  ;;  %v16118_v21 = vld [vmem:[#allocation84_spill] sm:$0xff] }
 0x170   : > { %v3384_v40 = vadd.f32 %v3368_v4, %v3327_v1  ;;  %v3425_v60 = vmul.f32 %v11494_v22, %v16091_v17  ;;  %v3540_v50 = vmul.f32 %v11601_v9, %v16113_v29  ;;  %v11734_v52 = vsel %vm1064_vm4, %v1392_v44, %v1571_v7  ;;  %v11743_v1 = vld [vmem:[%s15435_s3 + $0x14] ss:$0 sm:$0xff]  ;;  %v16119_v29 = vld [vmem:[#allocation76_spill] sm:$0xff] }
 0x171   : > { %16116 = vst [vmem:[#allocation82_spill] sm:$0xff] %v11734_v52  ;;  %v1972_v35 = vadd.f32 %v1956_v33, %v1916_v31  ;;  %v2012_v43 = vmul.f32 %v11376_v20, %v11734_v52  ;;  %v2369_v5 = vadd.f32 %v2353_v55, %v2312_v38  ;;  %v2410_v8 = vmul.f32 %v11587_v56, %v11734_v52  ;;  %v1037_v33 = vpop.permute.xlu1 %1036 }
 0x172   : > { %v2767_v47 = vadd.f32 %v2751_v63, %v2710_v34  ;;  %16117 = vst [vmem:[#allocation10_spill] sm:$0xff] %v11743_v1  ;;  %v2808_v4 = vmul.f32 %v11743_v1, %v11734_v52  ;;  %v3159_v41 = vadd.f32 %v3143_v54, %v3103_v51  ;;  %v3199_v44 = vmul.f32 %v11249_v48, %v11734_v52  ;;  %v1151_v1 = vpop.permute.xlu0 %1150 }
 0x173   : > { %v3652_v55 = vmul.f32 %v11752_v13, %v16105_v6  ;;  %v11758_v7 = vmul.f32 %v11055_v62, %v16105_v6  ;;  %v3556_v26 = vadd.f32 %v3540_v50, %v3499_v61  ;;  %v3597_v23 = vmul.f32 %v11633_v53, %v11734_v52 }
 0x174   : > { %v3441_v28 = vadd.f32 %v3425_v60, %v3384_v40  ;;  %v3482_v48 = vmul.f32 %v11568_v27, %v16118_v21  ;;  %v2028_v31 = vadd.f32 %v2012_v43, %v1972_v35  ;;  %v2426_v63 = vadd.f32 %v2410_v8, %v2369_v5  ;;  %v11775_v40 = vld [vmem:[%s15435_s3 + $0xf] ss:$0 sm:$0xff] }
 0x175   : > { %v2824_v54 = vadd.f32 %v2808_v4, %v2767_v47  ;;  %v3215_v38 = vadd.f32 %v3199_v44, %v3159_v41  ;;  %v3613_v34 = vadd.f32 %v3597_v23, %v3556_v26  ;;  %v945_v51 = vsel %vm934_vm3, 0.0, %v907_v46  ;;  %v11795_v4 = vld [vmem:[%s15435_s3 + $0x16] ss:$0 sm:$0xff]  ;;  %v1215_v44 = vpop.permute.xlu1 %1214 }
 0x176   : > { %v1733_v62 = vmul.f32 %v11391_v24, %v16119_v29  ;;  %v11768_v61 = vsel %vm1064_vm4, %v945_v51, %v1037_v33  ;;  %v2126_v6 = vmul.f32 %v11640_v0, %v16119_v29  ;;  %v2524_v5 = vmul.f32 %v11775_v40, %v16119_v29  ;;  %16121 = vst [vmem:[#allocation96_spill] sm:$0xff] %v11795_v4 }
 0x177   : > { %16120 = vst [vmem:[#allocation95_spill] sm:$0xff] %v11768_v61  ;;  %v1677_v46 = vmul.f32 %v16102_v15, %v11768_v61  ;;  %v2069_v43 = vmul.f32 %v16103_v57, %v11768_v61  ;;  %v2467_v60 = vmul.f32 %v11619_v12, %v11768_v61  ;;  %v2864_v50 = vmul.f32 %v16107_v14, %v11768_v61 }
 0x178   : > { %v3256_v35 = vmul.f32 %v16106_v25, %v11768_v61  ;;  %v3654_v8 = vmul.f32 %v11752_v13, %v11768_v61  ;;  %v1188_v47 = vsel %vm983_vm0, 0.0, %v1151_v1  ;;  %v2920_v41 = vmul.f32 %v11795_v4, %v16119_v29  ;;  %v11802_v1 = vld [vmem:[%s15435_s3 + $0x1d] ss:$0 sm:$0xff] }
 0x179   : > { %v3498_v33 = vadd.f32 %v3482_v48, %v3441_v28  ;;  %v2085_v26 = vadd.f32 %v2069_v43, %v2028_v31  ;;  %v2483_v23 = vadd.f32 %v2467_v60, %v2426_v63  ;;  %v2880_v51 = vadd.f32 %v2864_v50, %v2824_v54  ;;  %16122 = vst [vmem:[#allocation97_spill] sm:$0xff] %v11802_v1  ;;  %v11826_v50 = vld [vmem:[%s15435_s3 + $0x25] ss:$0 sm:$0xff] }
 0x17a   : > { %v1749_v14 = vadd.f32 %v1733_v62, %v1677_v46  ;;  %v3272_v25 = vadd.f32 %v3256_v35, %v3215_v38  ;;  %v3670_v52 = vadd.f32 %v3654_v8, %v3613_v34  ;;  %v3313_v61 = vmul.f32 %v11802_v1, %v16119_v29  ;;  %v16125_v34 = vld [vmem:[#allocation80_spill] sm:$0xff]  ;;  %v1394_v8 = vpop.permute.xlu0 %1393 }
 0x17b   : > { %v3711_v18 = vmul.f32 %v16123_v58, %v16119_v29  ;;  %v11809_v4 = vsel %vm1064_vm4, %v1188_v47, %v1215_v44  ;;  %v2142_v28 = vadd.f32 %v2126_v6, %v2085_v26  ;;  %v2540_v48 = vadd.f32 %v2524_v5, %v2483_v23  ;;  %v16127_v47 = vld [vmem:[#allocation46_spill] sm:$0xff]  ;;  %v16135_v29 = vld [vmem:[#allocation67_spill] sm:$0xff] }
 0x17c   : > { %16124 = vst [vmem:[#allocation99_spill] sm:$0xff] %v11809_v4  ;;  %v1789_v31 = vmul.f32 %v11293_v16, %v11809_v4  ;;  %v2183_v63 = vmul.f32 %v11442_v37, %v11809_v4  ;;  %v2581_v54 = vmul.f32 %v11664_v11, %v11809_v4  ;;  %v2936_v38 = vadd.f32 %v2920_v41, %v2880_v51 }
 0x17d   : > { %v2976_v62 = vmul.f32 %v16125_v34, %v11809_v4  ;;  %v3329_v46 = vadd.f32 %v3313_v61, %v3272_v25  ;;  %v3370_v58 = vmul.f32 %v11449_v30, %v11809_v4  ;;  %v3727_v43 = vadd.f32 %v3711_v18, %v3670_v52  ;;  %v16129_v18 = vld [vmem:[#allocation59_spill] sm:$0xff] }
 0x17e   : > { %v1805_v6 = vadd.f32 %v1789_v31, %v1749_v14  ;;  %v2199_v5 = vadd.f32 %v2183_v63, %v2142_v28  ;;  %v11821_v60 = vadd.f32 %v2581_v54, %v2540_v48  ;;  %v3768_v35 = vmul.f32 %v11826_v50, %v11809_v4  ;;  %v16130_v14 = vld [vmem:[#allocation113_spill] sm:$0xff]  ;;  %v11844_v25 = vld [vmem:[%s15435_s3 + $0x24] ss:$0 sm:$0xff] }
 0x17f   : > { %v3539_v61 = vmul.f32 %v11601_v9, %v16127_v47  ;;  %v11832_v41 = vadd.f32 %v2976_v62, %v2936_v38  ;;  %v3386_v30 = vadd.f32 %v3370_v58, %v3329_v46  ;;  %v1845_v52 = vmul.f32 %v16130_v14, %v16129_v18  ;;  %v16131_v28 = vld [vmem:[#allocation45_spill] sm:$0xff] }
 0x180   : > { %16126 = vst [vmem:[#allocation100_spill] sm:$0xff] %v11821_v60  ;;  %v3668_v26 = vadd.f32 %v3652_v55, %v11676_v19  ;;  %v11837_v23 = vadd.f32 %v3768_v35, %v3727_v43  ;;  %v2240_v51 = vmul.f32 %v11312_v36, %v16129_v18  ;;  %v3709_v48 = vmul.f32 %v11844_v25, %v16131_v28  ;;  %v16132_v55 = vld [vmem:[#allocation68_spill] sm:$0xff]  ;;  %v16133_v43 = vld [vmem:[#allocation87_spill] sm:$0xff] }
 0x181   : > { %16128 = vst [vmem:[#allocation101_spill] sm:$0xff] %v11832_v41  ;;  %v1861_v31 = vadd.f32 %v1845_v52, %v1805_v6  ;;  %v3427_v63 = vmul.f32 %v11494_v22, %v16129_v18  ;;  %v11851_v54 = vsel %vm1064_vm4, %v1215_v44, %v1394_v8  ;;  %v4066_v19 = vadd.f32 %v11758_v7, %v11718_v3  ;;  %v1573_v44 = vpop.permute.xlu1 %1572  ;;  %v16134_v52 = vld [vmem:[#allocation71_spill] sm:$0xff] }
 0x182   : > { %v4107_v38 = vmul.f32 %v16132_v55, %v16131_v28  ;;  %v2256_v62 = vadd.f32 %v2240_v51, %v2199_v5  ;;  %v1901_v46 = vmul.f32 %v11347_v39, %v11851_v54  ;;  %v3555_v58 = vadd.f32 %v3539_v61, %v3498_v33  ;;  %v16136_v28 = vld [vmem:[#allocation77_spill] sm:$0xff]  ;;  %v16137_v55 = vld [vmem:[#allocation8_spill] sm:$0xff] }
 0x183   : > { %v3596_v6 = vmul.f32 %v11633_v53, %v16133_v43  ;;  %v3443_v35 = vadd.f32 %v3427_v63, %v3386_v30  ;;  %v2297_v22 = vmul.f32 %v11538_v59, %v11851_v54  ;;  %v4163_v1 = vmul.f32 %v16135_v29, %v16134_v52 }
 0x184   : > { %v1917_v3 = vadd.f32 %v1901_v46, %v1861_v31  ;;  %v3484_v7 = vmul.f32 %v11568_v27, %v11851_v54  ;;  %v3725_v5 = vadd.f32 %v3709_v48, %v3668_v26  ;;  %v1957_v33 = vmul.f32 %v11692_v32, %v16136_v28  ;;  %v909_v31 = vpop.permute.xlu0 %908 }
 0x185   : > { %v2313_v51 = vadd.f32 %v2297_v22, %v2256_v62  ;;  %v2354_v61 = vmul.f32 %v11701_v49, %v16136_v28  ;;  %v3766_v30 = vmul.f32 %v11826_v50, %v11435_v42  ;;  %v4123_v63 = vadd.f32 %v4107_v38, %v4066_v19  ;;  %v16138_v38 = vld [vmem:[#allocation74_spill] sm:$0xff] }
 0x186   : > { %v4164_v4 = vmul.f32 %v16135_v29, %v11435_v42  ;;  %v3500_v52 = vadd.f32 %v3484_v7, %v3443_v35  ;;  %v3612_v46 = vadd.f32 %v3596_v6, %v3555_v58  ;;  %v3653_v27 = vmul.f32 %v11752_v13, %v16137_v55  ;;  %v1039_v29 = vpop.permute.xlu1 %1038  ;;  %v16139_v7 = vld [vmem:[#allocation23_spill] sm:$0xff] }
 0x187   : > { %v3541_v26 = vmul.f32 %v11601_v9, %v16136_v28  ;;  %v11880_v48 = vsel %vm1064_vm4, %v1394_v8, %v1573_v44  ;;  %v1973_v62 = vadd.f32 %v1957_v33, %v1917_v3  ;;  %v2370_v19 = vadd.f32 %v2354_v61, %v2313_v51  ;;  %v16140_v9 = vld [vmem:[#allocation32_spill] sm:$0xff]  ;;  %v16141_v33 = vld [vmem:[#allocation47_spill] sm:$0xff] }
 0x188   : > { %v2013_v22 = vmul.f32 %v11376_v20, %v11880_v48  ;;  %v2411_v42 = vmul.f32 %v11587_v56, %v11880_v48  ;;  %v4179_v58 = vadd.f32 %v4163_v1, %v16138_v38  ;;  %v3598_v35 = vmul.f32 %v11633_v53, %v11880_v48  ;;  %v1153_v60 = vpop.permute.xlu0 %1152  ;;  %v16142_v1 = vld [vmem:[#allocation64_spill] sm:$0xff] }
 0x189   : > { %v3557_v6 = vadd.f32 %v3541_v26, %v3500_v52  ;;  %v4220_v55 = vmul.f32 %v16140_v9, %v16139_v7  ;;  %v3782_v8 = vadd.f32 %v3766_v30, %v3725_v5  ;;  %v4180_v44 = vadd.f32 %v4164_v4, %v4123_v63  ;;  %v16143_v38 = vld [vmem:[#allocation92_spill] sm:$0xff] }
 0x18a   : > { %v3669_v3 = vadd.f32 %v3653_v27, %v3612_v46  ;;  %v3710_v34 = vmul.f32 %v11844_v25, %v16141_v33  ;;  %v2029_v51 = vadd.f32 %v2013_v22, %v1973_v62  ;;  %v2427_v61 = vadd.f32 %v2411_v42, %v2370_v19  ;;  %v1217_v62 = vpop.permute.xlu1 %1216  ;;  %v16146_v33 = vld [vmem:[#allocation69_spill] sm:$0xff] }
 0x18b   : > { %v946_v41 = vsel %vm934_vm3, 0.0, %v909_v31  ;;  %v3823_v52 = vmul.f32 %v16142_v1, %v16091_v17  ;;  %v3614_v26 = vadd.f32 %v3598_v35, %v3557_v6  ;;  %v1734_v53 = vmul.f32 %v11391_v24, %v16143_v38  ;;  %v16145_v35 = vld [vmem:[#allocation44_spill] sm:$0xff] }
 0x18c   : > { %v11899_v7 = vsel %vm1064_vm4, %v946_v41, %v1039_v29  ;;  %v2127_v63 = vmul.f32 %v11640_v0, %v16143_v38  ;;  %v4221_v31 = vmul.f32 %v16140_v9, %v16091_v17  ;;  %v1189_v41 = vsel %vm983_vm0, 0.0, %v1153_v60 }
 0x18d   : > { %16144 = vst [vmem:[#allocation102_spill] sm:$0xff] %v11899_v7  ;;  %v1678_v4 = vmul.f32 %v16102_v15, %v11899_v7  ;;  %v2070_v5 = vmul.f32 %v16103_v57, %v11899_v7  ;;  %v2468_v30 = vmul.f32 %v11619_v12, %v11899_v7  ;;  %v3655_v46 = vmul.f32 %v11752_v13, %v11899_v7 }
 0x18e   : > { %v2525_v27 = vmul.f32 %v11775_v40, %v16143_v38  ;;  %v3726_v22 = vadd.f32 %v3710_v34, %v3669_v3  ;;  %v3767_v19 = vmul.f32 %v11826_v50, %v11653_v45  ;;  %v4236_v6 = vadd.f32 %v4220_v55, %v4179_v58 }
 0x18f   : > { %v2086_v42 = vadd.f32 %v2070_v5, %v2029_v51  ;;  %v2484_v29 = vadd.f32 %v2468_v30, %v2427_v61  ;;  %v4277_v12 = vmul.f32 %v16146_v33, %v16145_v35  ;;  %v3839_v17 = vadd.f32 %v3823_v52, %v3782_v8  ;;  %v16147_v51 = vld [vmem:[#allocation86_spill] sm:$0xff] }
 0x190   : > { %v1750_v9 = vadd.f32 %v1734_v53, %v1678_v4  ;;  %v3671_v57 = vadd.f32 %v3655_v46, %v3614_v26  ;;  %v3712_v13 = vmul.f32 %v11844_v25, %v16143_v38  ;;  %v11923_v60 = vsel %vm1064_vm4, %v1189_v41, %v1217_v62 }
 0x191   : > { %v2143_v7 = vadd.f32 %v2127_v63, %v2086_v42  ;;  %v1790_v34 = vmul.f32 %v11293_v16, %v11923_v60  ;;  %v2184_v3 = vmul.f32 %v11442_v37, %v11923_v60  ;;  %v2541_v55 = vadd.f32 %v2525_v27, %v2484_v29  ;;  %v16153_v42 = vld [vmem:[#allocation90_spill] sm:$0xff] }
 0x192   : > { %v2582_v58 = vmul.f32 %v11664_v11, %v11923_v60  ;;  %v4237_v8 = vadd.f32 %v4221_v31, %v4180_v44  ;;  %v3880_v61 = vmul.f32 %v16147_v51, %v16118_v21  ;;  %v4278_v25 = vmul.f32 %v16146_v33, %v16118_v21  ;;  %v16148_v31 = vld [vmem:[#allocation73_spill] sm:$0xff] }
 0x193   : > { %v3783_v52 = vadd.f32 %v3767_v19, %v3726_v22  ;;  %v3824_v26 = vmul.f32 %v16142_v1, %v16110_v2  ;;  %v1806_v53 = vadd.f32 %v1790_v34, %v1750_v9  ;;  %v2200_v4 = vadd.f32 %v2184_v3, %v2143_v7  ;;  %v16149_v7 = vld [vmem:[#allocation52_spill] sm:$0xff]  ;;  %v16150_v9 = vld [vmem:[#allocation70_spill] sm:$0xff]  ;;  %v1396_v22 = vpop.permute.xlu0 %1395 }
 0x194   : > { %v2598_v5 = vadd.f32 %v2582_v58, %v2541_v55  ;;  %v3825_v30 = vmul.f32 %v16142_v1, %v16129_v18  ;;  %v3728_v63 = vadd.f32 %v3712_v13, %v3671_v57  ;;  %v3769_v44 = vmul.f32 %v11826_v50, %v11923_v60 }
 0x195   : > { %v1846_v46 = vmul.f32 %v16130_v14, %v16148_v31  ;;  %v2241_v21 = vmul.f32 %v11312_v36, %v16148_v31  ;;  %v2639_v33 = vmul.f32 %v11330_v10, %v16148_v31  ;;  %v11947_v41 = vadd.f32 %v4277_v12, %v4236_v6 }
 0x196   : > { %v11951_v27 = vmul.f32 %v16150_v9, %v16149_v7  ;;  %v3896_v57 = vadd.f32 %v3880_v61, %v3839_v17  ;;  %v11953_v19 = vadd.f32 %v4278_v25, %v4237_v8  ;;  %v3840_v50 = vadd.f32 %v3824_v26, %v3783_v52  ;;  %v16156_v25 = vld [vmem:[#allocation98_spill] sm:$0xff]  ;;  %v1575_v26 = vpop.permute.xlu1 %1574  ;;  %v16160_v7 = vld [vmem:[#allocation81_spill] sm:$0xff] }
 0x197   : > { %v3881_v29 = vmul.f32 %v16147_v51, %v16153_v42  ;;  %v3841_v35 = vadd.f32 %v3825_v30, %v11837_v23  ;;  %v1862_v13 = vadd.f32 %v1846_v46, %v1806_v53  ;;  %v2257_v34 = vadd.f32 %v2241_v21, %v2200_v4  ;;  %v16155_v23 = vld [vmem:[#allocation91_spill] sm:$0xff] }
 0x198   : > { %16151 = vst [vmem:[#allocation103_spill] sm:$0xff] %v11951_v27  ;;  %16152 = vst [vmem:[#allocation104_spill] sm:$0xff] %v11953_v19  ;;  %v2655_v3 = vadd.f32 %v2639_v33, %v2598_v5  ;;  %v3882_v12 = vmul.f32 %v16147_v51, %v11851_v54  ;;  %v3785_v6 = vadd.f32 %v3769_v44, %v3728_v63  ;;  %v16157_v53 = vld [vmem:[#allocation75_spill] sm:$0xff]  ;;  %v16158_v5 = vld [vmem:[#allocation93_spill] sm:$0xff] }
 0x199   : > { %v3826_v55 = vmul.f32 %v16142_v1, %v16148_v31  ;;  %v11963_v17 = vsel %vm1064_vm4, %v1217_v62, %v1396_v22  ;;  %v1958_v52 = vmul.f32 %v11692_v32, %v16156_v25  ;;  %v3937_v4 = vmul.f32 %v16157_v53, %v16127_v47  ;;  %v16159_v63 = vld [vmem:[#allocation53_spill] sm:$0xff] }
 0x19a   : > { %16154 = vst [vmem:[#allocation105_spill] sm:$0xff] %v11963_v17  ;;  %v1902_v58 = vmul.f32 %v11347_v39, %v11963_v17  ;;  %v2298_v8 = vmul.f32 %v11538_v59, %v11963_v17  ;;  %v2696_v61 = vmul.f32 %v16155_v23, %v11963_v17  ;;  %v3897_v1 = vadd.f32 %v3881_v29, %v3840_v50 }
 0x19b   : > { %v2355_v62 = vmul.f32 %v11701_v49, %v16156_v25  ;;  %v2753_v30 = vmul.f32 %v16158_v5, %v16156_v25  ;;  %v3938_v44 = vmul.f32 %v16157_v53, %v16159_v63  ;;  %v2638_v32 = vmul.f32 %v11330_v10, %v16129_v18  ;;  %v911_v49 = vpop.permute.xlu0 %910 }
 0x19c   : > { %v1918_v46 = vadd.f32 %v1902_v58, %v1862_v13  ;;  %v2314_v21 = vadd.f32 %v2298_v8, %v2257_v34  ;;  %v2712_v33 = vadd.f32 %v2696_v61, %v2655_v3  ;;  %v3032_v9 = vmul.f32 %v16160_v7, %v16129_v18  ;;  %v16162_v61 = vld [vmem:[#allocation82_spill] sm:$0xff] }
 0x19d   : > { %v3898_v42 = vadd.f32 %v3882_v12, %v3841_v35  ;;  %v3939_v50 = vmul.f32 %v16157_v53, %v16136_v28  ;;  %v3842_v29 = vadd.f32 %v3826_v55, %v3785_v6  ;;  %v3883_v27 = vmul.f32 %v16147_v51, %v11963_v17  ;;  %v8712_v6 = vld [vmem:[%s15435_s3 + $0x29] ss:$0 sm:$0xff]  ;;  %v16161_v55 = vld [vmem:[#allocation10_spill] sm:$0xff] }
 0x19e   : > { %v11990_v63 = vsel %vm1064_vm4, %v1396_v22, %v1575_v26  ;;  %v1974_v13 = vadd.f32 %v1958_v52, %v1918_v46  ;;  %v2371_v3 = vadd.f32 %v2355_v62, %v2314_v21  ;;  %v2769_v35 = vadd.f32 %v2753_v30, %v2712_v33  ;;  %v16163_v26 = vld [vmem:[#allocation100_spill] sm:$0xff] }
 0x19f   : > { %v2014_v34 = vmul.f32 %v11376_v20, %v11990_v63  ;;  %v2412_v58 = vmul.f32 %v11587_v56, %v11990_v63  ;;  %v11996_v12 = vadd.f32 %v3937_v4, %v3896_v57  ;;  %v12002_v51 = vmul.f32 %v8712_v6, %v16133_v43  ;;  %v1041_v20 = vpop.permute.xlu1 %1040  ;;  %v16164_v4 = vld [vmem:[#allocation101_spill] sm:$0xff]  ;;  %v1155_v2 = vpop.permute.xlu0 %1154 }
 0x1a0   : > { %v12004_v22 = vadd.f32 %v3938_v44, %v3897_v1  ;;  %v2810_v8 = vmul.f32 %v16161_v55, %v11990_v63  ;;  %v3995_v52 = vmul.f32 %v8712_v6, %v16162_v61  ;;  %v2654_v56 = vadd.f32 %v2638_v32, %v16163_v26  ;;  %v16165_v44 = vld [vmem:[#allocation83_spill] sm:$0xff] }
 0x1a1   : > { %v2030_v62 = vadd.f32 %v2014_v34, %v1974_v13  ;;  %v2428_v57 = vadd.f32 %v2412_v58, %v2371_v3  ;;  %v3048_v30 = vadd.f32 %v3032_v9, %v16164_v4  ;;  %v3899_v46 = vadd.f32 %v3883_v27, %v3842_v29  ;;  %v16166_v13 = vld [vmem:[#allocation136_spill] sm:$0xff]  ;;  %v16168_v34 = vld [vmem:[#allocation79_spill] sm:$0xff] }
 0x1a2   : > { %v3940_v21 = vmul.f32 %v16157_v53, %v16156_v25  ;;  %v2826_v33 = vadd.f32 %v2810_v8, %v2769_v35  ;;  %v2695_v1 = vmul.f32 %v16155_v23, %v11851_v54  ;;  %v3088_v18 = vmul.f32 %v16165_v44, %v11851_v54  ;;  %v16170_v3 = vld [vmem:[#allocation72_spill] sm:$0xff] }
 0x1a3   : > { %v3955_v19 = vadd.f32 %v3939_v50, %v3898_v42  ;;  %v947_v61 = vsel %vm934_vm3, 0.0, %v911_v49  ;;  %v3996_v32 = vmul.f32 %v8712_v6, %v11880_v48  ;;  %v1735_v9 = vmul.f32 %v11391_v24, %v16166_v13  ;;  %v16169_v50 = vld [vmem:[#allocation89_spill] sm:$0xff]  ;;  %v16171_v4 = vld [vmem:[#allocation96_spill] sm:$0xff] }
 0x1a4   : > { %v12022_v27 = vsel %vm1064_vm4, %v947_v61, %v1041_v20  ;;  %v2128_v53 = vmul.f32 %v11640_v0, %v16166_v13  ;;  %v3956_v35 = vadd.f32 %v3940_v21, %v3899_v46  ;;  %v3997_v24 = vmul.f32 %v8712_v6, %v11990_v63  ;;  %v1219_v20 = vpop.permute.xlu1 %1218  ;;  %v16172_v6 = vld [vmem:[#allocation102_spill] sm:$0xff] }
 0x1a5   : > { %16167 = vst [vmem:[#allocation106_spill] sm:$0xff] %v12022_v27  ;;  %v1679_v29 = vmul.f32 %v16102_v15, %v12022_v27  ;;  %v2071_v42 = vmul.f32 %v16168_v34, %v12022_v27  ;;  %v2469_v49 = vmul.f32 %v16169_v50, %v12022_v27  ;;  %v2866_v58 = vmul.f32 %v16170_v3, %v12022_v27 }
 0x1a6   : > { %v1190_v8 = vsel %vm983_vm0, 0.0, %v1155_v2  ;;  %v2526_v0 = vmul.f32 %v11775_v40, %v16166_v13  ;;  %v2922_v34 = vmul.f32 %v16171_v4, %v16166_v13  ;;  %v2711_v25 = vadd.f32 %v2695_v1, %v2654_v56  ;;  %v8713_v2 = vld [vmem:[%s15435_s3 + $0x2a] ss:$0 sm:$0xff] }
 0x1a7   : > { %v2087_v61 = vadd.f32 %v2071_v42, %v2030_v62  ;;  %v2485_v15 = vadd.f32 %v2469_v49, %v2428_v57  ;;  %v2882_v26 = vadd.f32 %v2866_v58, %v2826_v33  ;;  %v3104_v50 = vadd.f32 %v3088_v18, %v3048_v30 }
 0x1a8   : > { %v2752_v3 = vmul.f32 %v16158_v5, %v16136_v28  ;;  %v1751_v46 = vadd.f32 %v1735_v9, %v1679_v29  ;;  %v4012_v21 = vadd.f32 %v3996_v32, %v3955_v19  ;;  %v4053_v40 = vmul.f32 %v8713_v2, %v16172_v6  ;;  %v16174_v5 = vld [vmem:[#allocation85_spill] sm:$0xff]  ;;  %v16175_v9 = vld [vmem:[#allocation80_spill] sm:$0xff] }
 0x1a9   : > { %v12047_v62 = vsel %vm1064_vm4, %v1190_v8, %v1219_v20  ;;  %v2144_v57 = vadd.f32 %v2128_v53, %v2087_v61  ;;  %v2542_v56 = vadd.f32 %v2526_v0, %v2485_v15  ;;  %v3144_v30 = vmul.f32 %v16174_v5, %v16136_v28  ;;  %v16177_v15 = vld [vmem:[#allocation109_spill] sm:$0xff] }
 0x1aa   : > { %16173 = vst [vmem:[#allocation15_spill] sm:$0xff] %v12047_v62  ;;  %v1791_v33 = vmul.f32 %v11293_v16, %v12047_v62  ;;  %v2185_v18 = vmul.f32 %v11442_v37, %v12047_v62  ;;  %v2583_v19 = vmul.f32 %v11664_v11, %v12047_v62  ;;  %v4013_v1 = vadd.f32 %v3997_v24, %v3956_v35  ;;  %v16176_v11 = vld [vmem:[#allocation68_spill] sm:$0xff] }
 0x1ab   : > { %v2938_v32 = vadd.f32 %v2922_v34, %v2882_v26  ;;  %v2978_v29 = vmul.f32 %v16175_v9, %v12047_v62  ;;  %v4054_v53 = vmul.f32 %v8713_v2, %v12022_v27  ;;  %v2768_v58 = vadd.f32 %v2752_v3, %v2711_v25  ;;  %v16178_v34 = vld [vmem:[#allocation8_spill] sm:$0xff] }
 0x1ac   : > { %v1807_v42 = vadd.f32 %v1791_v33, %v1751_v46  ;;  %v2201_v49 = vadd.f32 %v2185_v18, %v2144_v57  ;;  %v2599_v16 = vadd.f32 %v2583_v19, %v2542_v56  ;;  %v2809_v37 = vmul.f32 %v16161_v55, %v11880_v48  ;;  %v8716_v19 = vld [vmem:[%s15435_s3 + $0x2c] ss:$0 sm:$0xff] }
 0x1ad   : > { %v4069_v8 = vadd.f32 %v4053_v40, %v4012_v21  ;;  %v2994_v0 = vadd.f32 %v2978_v29, %v2938_v32  ;;  %v4110_v61 = vmul.f32 %v16176_v11, %v16143_v38  ;;  %v1847_v35 = vmul.f32 %v16130_v14, %v16177_v15  ;;  %v12076_v21 = vpop.permute.xlu0 %1397  ;;  %v16181_v29 = vld [vmem:[#allocation95_spill] sm:$0xff] }
 0x1ae   : > { %v2242_v24 = vmul.f32 %v11312_v36, %v16177_v15  ;;  %v2640_v26 = vmul.f32 %v11330_v10, %v16177_v15  ;;  %v4010_v25 = vadd.f32 %v12002_v51, %v11996_v12  ;;  %v4051_v3 = vmul.f32 %v8713_v2, %v16178_v34  ;;  %v12081_v36 = vld [vmem:[%s15435_s3 + $0x1b] ss:$0 sm:$0xff]  ;;  %v16187_v34 = vld [vmem:[#allocation32_spill] sm:$0xff] }
 0x1af   : > { %v4011_v55 = vadd.f32 %v3995_v52, %v12004_v22  ;;  %v3034_v46 = vmul.f32 %v16160_v7, %v16177_v15  ;;  %v3160_v40 = vadd.f32 %v3144_v30, %v3104_v50  ;;  %16179 = vst [vmem:[#allocation107_spill] sm:$0xff] %v12081_v36  ;;  %v3200_v10 = vmul.f32 %v12081_v36, %v11880_v48  ;;  %v8715_v50 = vld [vmem:[%s15435_s3 + $0x15] ss:$0 sm:$0xff] }
 0x1b0   : > { %v4070_v14 = vadd.f32 %v4054_v53, %v4013_v1  ;;  %v4111_v12 = vmul.f32 %v16176_v11, %v16166_v13  ;;  %v2825_v51 = vadd.f32 %v2809_v37, %v2768_v58  ;;  %v1863_v22 = vadd.f32 %v1847_v35, %v1807_v42  ;;  %v12132_v35 = vld [vmem:[%s15435_s3 + $0x30] ss:$0 sm:$0xff] }
 0x1b1   : > { %v2258_v52 = vadd.f32 %v2242_v24, %v2201_v49  ;;  %v2656_v7 = vadd.f32 %v2640_v26, %v2599_v16  ;;  %v2865_v57 = vmul.f32 %v8715_v50, %v16172_v6  ;;  %v4126_v33 = vadd.f32 %v4110_v61, %v4069_v8  ;;  %v296_v16 = vld [vmem:[%s9078_s12 + $0x68] sm:$0xff] }
 0x1b2   : > { %v3050_v18 = vadd.f32 %v3034_v46, %v2994_v0  ;;  %v12093_v56 = vsel %vm1064_vm4, %v1219_v20, %v12076_v21  ;;  %v4167_v5 = vmul.f32 %v8716_v19, %v11923_v60  ;;  %v4052_v53 = vmul.f32 %v8713_v2, %v16181_v29  ;;  %v7644_v61 = vld [vmem:[%s9078_s12 + $0x188] sm:$0xff]  ;;  %v8348_v29 = vld [vmem:[%s15438_s6 + $0xf8] sm:$0xff]  }
 0x1b3   : > { %16180 = vst [vmem:[#allocation108_spill] sm:$0xff] %v12093_v56  ;;  %v1903_v30 = vmul.f32 %v11347_v39, %v12093_v56  ;;  %v2299_v1 = vmul.f32 %v11538_v59, %v12093_v56  ;;  %v2697_v32 = vmul.f32 %v16155_v23, %v12093_v56  ;;  %v4127_v20 = vadd.f32 %v4111_v12, %v4070_v14  ;;  %v7626_v59 = vld [vmem:[%s9078_s12 + $0xf8] sm:$0xff]  ;;  %v12153_v14 = vld [vmem:[%s15434_s2 + $0x1] ss:$0 sm:$0xff] }
 0x1b4   : > { %v4168_v42 = vmul.f32 %v8716_v19, %v12047_v62  ;;  %v3090_v49 = vmul.f32 %v16165_v44, %v12093_v56  ;;  %v3216_v58 = vadd.f32 %v3200_v10, %v3160_v40  ;;  %v2881_v0 = vadd.f32 %v2865_v57, %v2825_v51  ;;  %v12120_v23 = vld [vmem:[%s15435_s3 + $0x1c] ss:$0 sm:$0xff]  ;;  %v7662_v51 = vld [vmem:[%s9078_s12 + $0x70] sm:$0xff]  ;;  %v7680_v57 = vld [vmem:[%s9078_s12 + $0x100] sm:$0xff]  ;;  %8092 = vmatprep.subr.bf16.mxu1 %v8348_v29 }
 0x1b5   : > { %v12110_v37 = vadd.f32 %v1903_v30, %v1863_v22  ;;  %v12112_v39 = vadd.f32 %v2299_v1, %v2258_v52  ;;  %v12114_v8 = vadd.f32 %v2697_v32, %v2656_v7  ;;  %16185 = vst [vmem:[#allocation133_spill] sm:$0xff] %v12120_v23  ;;  %v3257_v2 = vmul.f32 %v12120_v23, %v16172_v6  ;;  %v8721_v7 = vld [vmem:[%s15434_s2 + $0x2] ss:$0 sm:$0xff]  ;;  %v16189_v30 = vld [vmem:[#allocation97_spill] sm:$0xff]  ;;  %v7734_v1 = vld [vmem:[%s9078_s12 + $0x108] sm:$0xff] }
 0x1b6   : > { %v2921_v44 = vmul.f32 %v16171_v4, %v16143_v38  ;;  %v12126_v11 = vadd.f32 %v3090_v49, %v3050_v18  ;;  %v12136_v24 = vmul.f32 %v12132_v35, %v16133_v43  ;;  %v4183_v26 = vadd.f32 %v4167_v5, %v4126_v33  ;;  %v12143_v4 = vld [vmem:[%s15434_s2] ss:$0 sm:$0xff]  ;;  %v7698_v33 = vld [vmem:[%s9078_s12 + $0x190] sm:$0xff]  ;;  %v7716_v18 = vld [vmem:[%s9078_s12 + $0x78] sm:$0xff] }
 0x1b7   : > { %16182 = vst [vmem:[#allocation110_spill] sm:$0xff] %v12110_v37  ;;  %16183 = vst [vmem:[#allocation111_spill] sm:$0xff] %v12112_v39  ;;  %v4224_v6 = vmul.f32 %v16187_v34, %v16148_v31  ;;  %v319_v46 = vmul.f32 %v12143_v4, %v296_v16  ;;  %v12146_v40 = vadd.f32 %v4051_v3, %v4010_v25  ;;  %v16188_v25 = vld [vmem:[#allocation99_spill] sm:$0xff]  ;;  %v8347_v32 = vld [vmem:[%s15438_s6 + $0x78] sm:$0xff]  }
 0x1b8   : > { %16184 = vst [vmem:[#allocation112_spill] sm:$0xff] %v12114_v8  ;;  %16186 = vst [vmem:[#allocation13_spill] sm:$0xff] %v12126_v11  ;;  %v4184_v10 = vadd.f32 %v4168_v42, %v4127_v20  ;;  %v4225_v43 = vmul.f32 %v16187_v34, %v16177_v15  ;;  %v376_v12 = vmul.f32 %v12153_v14, %v7626_v59  ;;  %v8723_v42 = vld [vmem:[%s15434_s2 + $0x3] ss:$0 sm:$0xff]  ;;  %v7752_v16 = vld [vmem:[%s9078_s12 + $0x198] sm:$0xff]  ;;  %8064 = vmatprep.subr.bf16.mxu0 %v8347_v32 }
 0x1b9   : > { %v12158_v22 = vmul.f32 %v8716_v19, %v11653_v45  ;;  %v12160_v52 = vadd.f32 %v4052_v53, %v4011_v55  ;;  %v12163_v3 = vmul.f32 %v8716_v19, %v16188_v25  ;;  %v433_v50 = vmul.f32 %v8721_v7, %v7644_v61  ;;  %v8350_v59 = vld [vmem:[%s15438_s6 + $0xb8] sm:$0xff]   ;;  %v7717_v25 = vld [vmem:[%s9078_s12 + $0x80] sm:$0xff]  ;;  %v12252_v8 = vld [vmem:[%s9078_s12 + $0x110] sm:$0xff] }
 0x1ba   : > { %v12171_v5 = vadd.f32 %v3257_v2, %v3216_v58  ;;  %v12175_v45 = vmul.f32 %v16189_v30, %v16143_v38  ;;  %v12177_v55 = vadd.f32 %v2921_v44, %v2881_v0  ;;  %v12181_v19 = vmul.f32 %v16175_v9, %v11923_v60  ;;  %v12195_v38 = vld [vmem:[%s15435_s3 + $0x2e] ss:$0 sm:$0xff]  ;;  %v8349_v58 = vld [vmem:[%s15438_s6 + $0x38] sm:$0xff]   ;;  %v8724_v44 = vld [vmem:[%s15434_s2 + $0x4] ss:$0 sm:$0xff]  ;;  %8093 = vmatpush3.bf16.msra.mxu1 %v8350_v59 }
 0x1bb   : > { %v12190_v53 = vadd.f32 %v4224_v6, %v4183_v26  ;;  %v12199_v9 = vmul.f32 %v12195_v38, %v11963_v17  ;;  %v392_v20 = vadd.f32 %v376_v12, %v319_v46  ;;  %v490_v49 = vmul.f32 %v8723_v42, %v7662_v51  ;;  %v8725_v26 = vld [vmem:[%s15434_s2 + $0x5] ss:$0 sm:$0xff]  ;;  %v8726_v46 = vld [vmem:[%s15434_s2 + $0x6] ss:$0 sm:$0xff]  ;;  %v12232_v30 = vld [vmem:[%s15434_s2 + $0x7] ss:$0 sm:$0xff]  ;;  %8065 = vmatpush3.bf16.msra.mxu0 %v8349_v58 }
 0x1bc   : > { %16190 = vst [vmem:[#allocation88_spill] sm:$0xff] %v12181_v19  ;;  %v12211_v0 = vadd.f32 %v4225_v43, %v4184_v10  ;;  %v12215_v2 = vmul.f32 %v12195_v38, %v12093_v56  ;;  %v547_v61 = vmul.f32 %v8724_v44, %v7680_v57  ;;  %v604_v34 = vmul.f32 %v8725_v26, %v7698_v33  ;;  %v8351_v39 = vld [vmem:[%s15438_s6 + $0x70] sm:$0xff]   ;;  %v7753_v23 = vld [vmem:[%s9078_s12 + $0x1a0] sm:$0xff]  ;;  %v7718_v59 = vld [vmem:[%s9078_s12 + $0x88] sm:$0xff] }
 0x1bd   : > { %v449_v6 = vadd.f32 %v433_v50, %v392_v20  ;;  %v661_v10 = vmul.f32 %v8726_v46, %v7716_v18  ;;  %v320_v43 = vmul.f32 %v12143_v4, %v7662_v51  ;;  %v377_v12 = vmul.f32 %v12153_v14, %v7680_v57  ;;  %v12238_v50 = vld [vmem:[%s15434_s2 + $0x8] ss:$0 sm:$0xff]  ;;  %v12246_v51 = vld [vmem:[%s15433_s1] ss:$0 sm:$0xff]  ;;  %v8352_v37 = vld [vmem:[%s15438_s6 + $0xf0] sm:$0xff]   ;;  %8066 = vmatprep.subr.bf16.mxu0 %v8351_v39 }
 0x1be   : > { %v718_v32 = vmul.f32 %v12232_v30, %v7734_v1  ;;  %v12241_v20 = vmul.f32 %v12238_v50, %v7752_v16  ;;  %v12249_v29 = vmul.f32 %v12246_v51, %v7680_v57  ;;  %v434_v11 = vmul.f32 %v8721_v7, %v7698_v33  ;;  %v8353_v57 = vld [vmem:[%s15438_s6 + $0x30] sm:$0xff]   ;;  %8094 = vmatprep.subr.bf16.mxu1 %v8352_v37 }
 0x1bf   : > { %v506_v56 = vadd.f32 %v490_v49, %v449_v6  ;;  %v393_v15 = vadd.f32 %v377_v12, %v320_v43  ;;  %v491_v62 = vmul.f32 %v8723_v42, %v7716_v18  ;;  %v548_v13 = vmul.f32 %v8724_v44, %v7734_v1  ;;  %v8354_v33 = vld [vmem:[%s15438_s6 + $0xb0] sm:$0xff]   ;;  %8067 = vmatpush3.bf16.msra.mxu0 %v8353_v57 }
 0x1c0   : > { %v605_v58 = vmul.f32 %v8725_v26, %v7752_v16  ;;  %v662_v27 = vmul.f32 %v8726_v46, %v7717_v25  ;;  %v321_v49 = vmul.f32 %v12143_v4, %v7716_v18  ;;  %v378_v12 = vmul.f32 %v12153_v14, %v7734_v1  ;;  %8095 = vmatpush3.bf16.msra.mxu1 %v8354_v33  ;;  %v8358_v18 = vld [vmem:[%s15438_s6 + $0xa8] sm:$0xff]  }
 0x1c1   : > { %v563_v6 = vadd.f32 %v547_v61, %v506_v56  ;;  %v450_v43 = vadd.f32 %v434_v11, %v393_v15  ;;  %v435_v36 = vmul.f32 %v8721_v7, %v7752_v16  ;;  %v719_v17 = vmul.f32 %v12232_v30, %v12252_v8  ;;  %v8355_v56 = vld [vmem:[%s15438_s6 + $0x68] sm:$0xff]   ;;  %v16191_v16 = vld [vmem:[#allocation33_spill] sm:$0xff] }
 0x1c2   : > { %v12273_v31 = vmul.f32 %v12238_v50, %v7753_v23  ;;  %v12276_v19 = vmul.f32 %v12246_v51, %v7734_v1  ;;  %v492_v39 = vmul.f32 %v8723_v42, %v7717_v25  ;;  %v8356_v15 = vld [vmem:[%s15438_s6 + $0xe8] sm:$0xff]   ;;  %v394_v4 = vadd.f32 %v378_v12, %v321_v49  ;;  %8068 = vmatprep.subr.bf16.mxu0 %v8355_v56 }
 0x1c3   : > { %v620_v37 = vadd.f32 %v604_v34, %v563_v6  ;;  %v507_v11 = vadd.f32 %v491_v62, %v450_v43  ;;  %v549_v14 = vmul.f32 %v8724_v44, %v12252_v8  ;;  %v8357_v7 = vld [vmem:[%s15438_s6 + $0x28] sm:$0xff]   ;;  %v606_v1 = vmul.f32 %v8725_v26, %v7753_v23  ;;  %8096 = vmatprep.subr.bf16.mxu1 %v8356_v15  ;;  %v8359_v23 = vld [vmem:[%s15438_s6 + $0x60] sm:$0xff]   ;;  %v16194_v6 = vld [vmem:[#allocation41_spill] sm:$0xff] }
 0x1c4   : > { %v12291_v42 = vmul.f32 %v8726_v46, %v7718_v59  ;;  %v12296_v62 = vld [vmem:[%s15435_s3 + $0x2f] ss:$0 sm:$0xff]  ;;  %v451_v25 = vadd.f32 %v435_v36, %v394_v4  ;;  %8069 = vmatpush3.bf16.msra.mxu0 %v8357_v7  ;;  %v8360_v26 = vld [vmem:[%s15438_s6 + $0xe0] sm:$0xff]   ;;  %8097 = vmatpush3.bf16.msra.mxu1 %v8358_v18 }
 0x1c5   : > { %v4334_v44 = vmul.f32 %v12296_v62, %v16191_v16  ;;  %v677_v61 = vadd.f32 %v661_v10, %v620_v37  ;;  %v564_v34 = vadd.f32 %v548_v13, %v507_v11  ;;  %v4335_v57 = vmul.f32 %v12296_v62, %v16127_v47  ;;  %v8731_v10 = vld [vmem:[%s15435_s3 + $0x2b] ss:$0 sm:$0xff]  ;;  %v16192_v13 = vld [vmem:[#allocation47_spill] sm:$0xff]  ;;  %v8732_v47 = vld [vmem:[%s15435_s3 + $0x2d] ss:$0 sm:$0xff]  ;;  %8070 = vmatprep.subr.bf16.mxu0 %v8359_v23 }
 0x1c6   : > { %v4108_v36 = vmul.f32 %v8731_v10, %v16192_v13  ;;  %v16193_v33 = vld [vmem:[#allocation76_spill] sm:$0xff]  ;;  %v4222_v43 = vmul.f32 %v8732_v47, %v16194_v6  ;;  %v508_v56 = vadd.f32 %v492_v39, %v451_v25  ;;  %v8362_v15 = vld [vmem:[%s15438_s6 + $0xa0] sm:$0xff]   ;;  %8098 = vmatprep.subr.bf16.mxu1 %v8360_v26  ;;  %v8364_v25 = vld [vmem:[%s15438_s6 + $0xd8] sm:$0xff]  }
 0x1c7   : > { %v4350_v46 = vadd.f32 %v4334_v44, %v11947_v41  ;;  %v4109_v49 = vmul.f32 %v8731_v10, %v16193_v33  ;;  %v734_v12 = vadd.f32 %v718_v32, %v677_v61  ;;  %v621_v59 = vadd.f32 %v605_v58, %v564_v34  ;;  %v8361_v41 = vld [vmem:[%s15438_s6 + $0x20] sm:$0xff]   ;;  %v16195_v37 = vld [vmem:[#allocation104_spill] sm:$0xff]  ;;  %v1577_v61 = vpop.permute.xlu1 %1576  ;;  %v8363_v34 = vld [vmem:[%s15438_s6 + $0x58] sm:$0xff]  }
 0x1c8   : > { %v4351_v11 = vadd.f32 %v4335_v57, %v16195_v37  ;;  %v16196_v4 = vld [vmem:[#allocation103_spill] sm:$0xff]  ;;  %v4124_v16 = vadd.f32 %v4108_v36, %v12146_v40  ;;  %v565_v18 = vadd.f32 %v549_v14, %v508_v56  ;;  %8071 = vmatpush3.bf16.msra.mxu0 %v8361_v41  ;;  %v16198_v14 = vld [vmem:[#allocation90_spill] sm:$0xff]  ;;  %8099 = vmatpush3.bf16.msra.mxu1 %v8362_v15  ;;  %v7754_v15 = vld [vmem:[%s9078_s12 + $0x1a8] sm:$0xff] }
 0x1c9   : > { %v4407_v7 = vadd.f32 %v16196_v4, %v4350_v46  ;;  %v4125_v32 = vadd.f32 %v4109_v49, %v12160_v52  ;;  %v791_v58 = vadd.f32 %v12241_v20, %v734_v12  ;;  %v678_v39 = vadd.f32 %v662_v27, %v621_v59  ;;  %v16197_v20 = vld [vmem:[#allocation59_spill] sm:$0xff]  ;;  %v8365_v46 = vld [vmem:[%s15438_s6 + $0x18] sm:$0xff]   ;;  %8072 = vmatprep.subr.bf16.mxu0 %v8363_v34  ;;  %v8369_v37 = vld [vmem:[%s15438_s6 + $0x10] sm:$0xff]  }
 0x1ca   : > { %v4408_v44 = vadd.f32 %v12136_v24, %v4351_v11  ;;  %v4181_v40 = vadd.f32 %v12158_v22, %v4124_v16  ;;  %v4223_v27 = vmul.f32 %v8732_v47, %v16197_v20  ;;  %v4279_v24 = vmul.f32 %v12195_v38, %v16198_v14  ;;  %v8366_v22 = vld [vmem:[%s15438_s6 + $0x98] sm:$0xff]   ;;  %8100 = vmatprep.subr.bf16.mxu1 %v8364_v25  ;;  %v16202_v47 = vld [vmem:[#allocation53_spill] sm:$0xff]  ;;  %v8374_v25 = vld [vmem:[%s15438_s6 + $0x88] sm:$0xff]  }
 0x1cb   : > { %v4182_v52 = vadd.f32 %v12163_v3, %v4125_v32  ;;  %v829_v57 = vadd.f32 %v12249_v29, %v791_v58  ;;  %v735_v23 = vadd.f32 %v719_v17, %v678_v39  ;;  %v622_v26 = vadd.f32 %v606_v1, %v565_v18  ;;  %v7736_v3 = vld [vmem:[%s9078_s12 + $0x118] sm:$0xff]  ;;  %v12360_v1 = vld [vmem:[%s15433_s1 + $0x1] ss:$0 sm:$0xff]  ;;  %v8370_v11 = vld [vmem:[%s15438_s6 + $0x90] sm:$0xff]  }
 0x1cc   : > { %v12348_v10 = vpack.c.bf16 %v4408_v44, %v4407_v7  ;;  %v4238_v13 = vadd.f32 %v4222_v43, %v4181_v40  ;;  %v4280_v17 = vmul.f32 %v12195_v38, %v11851_v54  ;;  %v12355_v29 = vsel %vm1064_vm4, %v12076_v21, %v1577_v61  ;;  %8073 = vmatpush3.bf16.msra.mxu0 %v8365_v46  ;;  %v8367_v21 = vld [vmem:[%s15438_s6 + $0x50] sm:$0xff]   ;;  %v16204_v32 = vld [vmem:[#allocation82_spill] sm:$0xff]  ;;  %v8371_v39 = vld [vmem:[%s15438_s6 + $0x48] sm:$0xff]  }
 0x1cd   : > { %v4239_v36 = vadd.f32 %v4223_v27, %v4182_v52  ;;  %16200 = vst [vmem:[#allocation115_spill] sm:$0xff] %v12355_v29  ;;  %v12363_v33 = vadd.f32 %v12360_v1, %v829_v57  ;;  %v792_v49 = vadd.f32 %v12273_v31, %v735_v23  ;;  %v4336_v43 = vmul.f32 %v12296_v62, %v16202_v47  ;;  %v8368_v38 = vld [vmem:[%s15438_s6 + $0xd0] sm:$0xff]   ;;  %v8372_v18 = vld [vmem:[%s15438_s6 + $0xc8] sm:$0xff]   ;;  %v16206_v40 = vld [vmem:[#allocation98_spill] sm:$0xff] }
 0x1ce   : > { %16199 = vst [vmem:[#allocation114_spill] sm:$0xff] %v12348_v10  ;;  %v4297_v54 = vadd.f32 %v12199_v9, %v12190_v53  ;;  %v4295_v12 = vadd.f32 %v4279_v24, %v4238_v13  ;;  %v4337_v31 = vmul.f32 %v12296_v62, %v16136_v28  ;;  %v679_v53 = vadd.f32 %v12291_v42, %v622_v26  ;;  %v16207_v27 = vld [vmem:[#allocation138_spill] sm:$0xff]  ;;  %v16210_v47 = vld [vmem:[#allocation88_spill] sm:$0xff] }
 0x1cf   : > { %16201 = vst [vmem:[#allocation116_spill] sm:$0xff] %v12363_v33  ;;  %v4296_v59 = vadd.f32 %v4280_v17, %v4239_v36  ;;  %v883_v56 = vrot.slane %v12363_v33, 6  ;;  %v964_v41 = vrot.slane %v12363_v33, 7  ;;  %v720_v9 = vmul.f32 %v12232_v30, %v7736_v3  ;;  %8101 = vmatpush3.bf16.msra.mxu1 %v8366_v22  ;;  %8074 = vmatprep.subr.bf16.mxu0 %v8367_v21  ;;  %v12431_v24 = vld [vmem:[%s15435_s3 + $0x1e] ss:$0 sm:$0xff]  ;;  %v8376_v3 = vld [vmem:[%s15438_s6 + $0xc0] sm:$0xff]  }
 0x1d0   : > { %v4298_v28 = vadd.f32 %v12215_v2, %v12211_v0  ;;  %v4396_v4 = vmul.f32 %v12132_v35, %v12355_v29  ;;  %v830_v42 = vadd.f32 %v12276_v19, %v792_v49  ;;  %8102 = vmatprep.subr.bf16.mxu1 %v8368_v38  ;;  %v4352_v7 = vadd.f32 %v4336_v43, %v4295_v12  ;;  %v8377_v17 = vld [vmem:[%s15438_s6] sm:$0xff]   ;;  %v16211_v21 = vld [vmem:[#allocation73_spill] sm:$0xff] }
 0x1d1   : > { %912 = vrot.lane.b32.xlu0 %v883_v56, %s9007_s8  ;;  %v12396_v30 = vsel %vm983_vm0, 0.0, %v964_v41  ;;  %v4353_v16 = vadd.f32 %v4337_v31, %v4296_v59  ;;  %v4393_v58 = vmul.f32 %v12132_v35, %v16204_v32  ;;  %v1321_v0 = vrot.slane %v12363_v33, 1  ;;  %8075 = vmatpush3.bf16.msra.mxu0 %v8369_v37  ;;  %v12470_v56 = vld [vmem:[%s15435_s3 + $0x1f] ss:$0 sm:$0xff]  ;;  %v8737_v37 = vld [vmem:[%s15436_s4 + $0xe4] ss:$16 sps:$4 sm:$0xff]  }
 0x1d2   : > { %16203 = vst [vmem:[#allocation117_spill] sm:$0xff] %v12396_v30  ;;  %1042 = vrot.lane.b32.xlu1 %v12396_v30, %s9007_s8  ;;  %v1500_v2 = vrot.slane %v12363_v33, 2  ;;  %v777_v19 = vmul.f32 %v12238_v50, %v7754_v15  ;;  %v4394_v44 = vmul.f32 %v12132_v35, %v11880_v48  ;;  %v12414_v61 = vadd.f32 %v12360_v1, %v830_v42  ;;  %v8373_v50 = vld [vmem:[%s15438_s6 + $0x8] sm:$0xff]  }
 0x1d3   : > { %v736_v34 = vadd.f32 %v720_v9, %v679_v53  ;;  %8103 = vmatpush3.bf16.msra.mxu1 %v8370_v11  ;;  %v4338_v52 = vmul.f32 %v12296_v62, %v16206_v40  ;;  %v4339_v14 = vmul.f32 %v12296_v62, %v16207_v27  ;;  %v3330_v48 = vadd.f32 %v12175_v45, %v12171_v5 }
 0x1d4   : > { %16205 = vst [vmem:[#allocation118_spill] sm:$0xff] %v12414_v61  ;;  %v3371_v57 = vmul.f32 %v12431_v24, %v11923_v60  ;;  %v4395_v23 = vmul.f32 %v12132_v35, %v11990_v63  ;;  %8076 = vmatprep.subr.bf16.mxu0 %v8371_v39  ;;  %8104 = vmatprep.subr.bf16.mxu1 %v8372_v18  ;;  %v12441_v5 = vsel %vm1340_vm1, %v1321_v0, 0.0  ;;  %v1533_v45 = vsel %vm1519_vm2, %v1500_v2, 0.0  ;;  %v8375_v35 = vld [vmem:[%s15438_s6 + $0x40] sm:$0xff]  }
 0x1d5   : > { %1156 = vrot.lane.b32.xlu0 %v964_v41, %s9007_s8  ;;  %v4409_v26 = vadd.f32 %v4393_v58, %v4352_v7  ;;  %v4410_v62 = vadd.f32 %v4394_v44, %v4353_v16  ;;  %v4354_v46 = vadd.f32 %v4338_v52, %v4297_v54  ;;  %v4355_v22 = vadd.f32 %v4339_v14, %v4298_v28  ;;  %v8735_v54 = vld [vmem:[%s15435_s3 + $0x18] ss:$0 sm:$0xff]  ;;  %v8738_v28 = vld [vmem:[%s15435_s3 + $0x19] ss:$0 sm:$0xff]  ;;  %v8739_v16 = vld [vmem:[%s15436_s4 + $0xec] ss:$16 sps:$4 sm:$0xff]  }
 0x1d6   : > { %1220 = vrot.lane.b32.xlu1 %v12363_v33, %s9007_s8  ;;  %16208 = vst [vmem:[#allocation94_spill] sm:$0xff] %v12441_v5  ;;  %v815_v60 = vmul.f32 %v12246_v51, %v12252_v8  ;;  %8077 = vmatpush3.bf16.msra.mxu0 %v8373_v50  ;;  %v965_v13 = vrot.slane %v12414_v61, 7  ;;  %v793_v36 = vadd.f32 %v777_v19, %v736_v34  ;;  %v8378_v8 = vld [vmem:[%s15438_s6 + $0x80] sm:$0xff]   ;;  %v4519_v12 = vlaneseq  ;;  %v12511_v44 = vld [vmem:[%s15435_s3 + $0x1a] ss:$0 sm:$0xff] }
 0x1d7   : > { %8105 = vmatpush3.bf16.msra.mxu1 %v8374_v25  ;;  %v12459_v51 = vpack.c.bf16 %v4410_v62, %v4409_v26  ;;  %v4412_v49 = vadd.f32 %v4396_v4, %v4355_v22  ;;  %v2993_v43 = vadd.f32 %v16210_v47, %v12177_v55  ;;  %v3033_v38 = vmul.f32 %v8735_v54, %v16211_v21  ;;  %v16214_v4 = vld [vmem:[#allocation105_spill] sm:$0xff]  ;;  %v12496_v58 = vld [vmem:[%s15435_s3 + $0x20] ss:$0 sm:$0xff]  ;;  %v12518_v14 = vld [vmem:[%s15435_s3 + $0x21] ss:$0 sm:$0xff] }
 0x1d8   : > { %8078 = vmatprep.subr.bf16.mxu0 %v8375_v35  ;;  %8106 = vmatprep.subr.bf16.mxu1 %v8376_v3  ;;  %v4411_v59 = vadd.f32 %v4395_v23, %v4354_v46  ;;  %v3387_v31 = vadd.f32 %v3371_v57, %v3330_v48  ;;  %v3428_v41 = vmul.f32 %v12470_v56, %v16211_v21  ;;  %v884_v55 = vrot.slane %v12414_v61, 6  ;;  %v4515_v48 = vld [vmem:[%s15437_s5] sm:$0xf] }
 0x1d9   : > { %16209 = vst [vmem:[#allocation120_spill] sm:$0xff] %v12459_v51  ;;  %1399 = vrot.lane.b32.xlu0 %v12441_v5, %s9007_s8  ;;  %v12481_v9 = vsel %vm983_vm0, 0.0, %v965_v13  ;;  %v831_v15 = vadd.f32 %v815_v60, %v793_v36  ;;  %v3049_v11 = vadd.f32 %v3033_v38, %v2993_v43  ;;  %v3089_v42 = vmul.f32 %v8738_v28, %v16214_v4 }
 0x1da   : > { %1578 = vrot.lane.b32.xlu1 %v1533_v45, %s9007_s8  ;;  %8079 = vmatpush3.bf16.msra.mxu0 %v8377_v17  ;;  %v12478_v53 = vpack.c.bf16 %v4412_v49, %v4411_v59  ;;  %16213 = vst [vmem:[#allocation122_spill] sm:$0xff] %v12481_v9  ;;  %v4520_v7 = vshrl.u32 %v4519_v12, 7  ;;  %v3444_v32 = vadd.f32 %v3428_v41, %v3387_v31  ;;  %v1322_v2 = vrot.slane %v12414_v61, 1  ;;  %v16223_v12 = vld [vmem:[#allocation106_spill] sm:$0xff]  ;;  %v16224_v59 = vld [vmem:[#allocation133_spill] sm:$0xff] }
 0x1db   : > { %8107 = vmatpush3.bf16.msra.mxu1 %v8378_v8  ;;  %5559 = vmatprep.subr.bf16.mxu0 %v8737_v37  ;;  %v3485_v0 = vmul.f32 %v12496_v58, %v16214_v4  ;;  %v1501_v19 = vrot.slane %v12414_v61, 2  ;;  %v12506_v39 = vadd.f32 %v12360_v1, %v831_v15  ;;  %v3105_v18 = vadd.f32 %v3089_v42, %v3049_v11  ;;  %v8744_v11 = vld [vmem:[%s15435_s3 + $0x23] ss:$0 sm:$0xff] }
 0x1dc   : > { %16212 = vst [vmem:[#allocation121_spill] sm:$0xff] %v12478_v53  ;;  %5612 = vmatprep.subr.bf16.mxu1 %v8739_v16  ;;  %v3145_v34 = vmul.f32 %v12511_v44, %v16206_v40  ;;  %v4521_v50 = vsub.s32 0, %v4520_v7  ;;  %v4529_v25 = vsub.s32 2, %v4520_v7  ;;  %v3542_v1 = vmul.f32 %v12518_v14, %v16206_v40  ;;  %v16217_v40 = vld [vmem:[#allocation107_spill] sm:$0xff] }
 0x1dd   : > { %914 = vrot.lane.b32.xlu0 %v884_v55, %s9007_s8  ;;  %16215 = vst [vmem:[#allocation123_spill] sm:$0xff] %v12506_v39  ;;  %v3501_v52 = vadd.f32 %v3485_v0, %v3444_v32  ;;  %v12529_v57 = vsel %vm1340_vm1, %v1322_v2, 0.0  ;;  %v4525_v23 = vsub.s32 1, %v4520_v7  ;;  %v4533_v26 = vsub.s32 3, %v4520_v7 }
 0x1de   : > { %1044 = vrot.lane.b32.xlu1 %v12481_v9, %s9007_s8  ;;  %16216 = vst [vmem:[#allocation124_spill] sm:$0xff] %v12529_v57  ;;  %v1534_v62 = vsel %vm1519_vm2, %v1501_v19, 0.0  ;;  %v966_v46 = vrot.slane %v12506_v39, 7  ;;  %v3161_v22 = vadd.f32 %v3145_v34, %v3105_v18  ;;  %v3201_v45 = vmul.f32 %v16217_v40, %v11990_v63  ;;  %v12589_v19 = vld [vmem:[%s15435_s3 + $0x1d] ss:$0 sm:$0xff]  ;;  %v16225_v18 = vld [vmem:[#allocation136_spill] sm:$0xff] }
 0x1df   : > { %v12535_v60 = vrot.slane %v4515_v48, %v4521_v50  ;;  %v12537_v35 = vrot.slane %v4515_v48, %v4529_v25  ;;  %v3558_v3 = vadd.f32 %v3542_v1, %v3501_v52  ;;  %v885_v17 = vrot.slane %v12506_v39, 6 }
 0x1e0   : > { %v12550_v47 = vrot.slane %v4515_v48, %v4525_v23  ;;  %v12552_v43 = vrot.slane %v4515_v48, %v4533_v26  ;;  %v12555_v54 = vsel %vm983_vm0, 0.0, %v966_v46  ;;  %v3217_v38 = vadd.f32 %v3201_v45, %v3161_v22  ;;  %v12610_v45 = vld [vmem:[%s15435_s3 + $0x24] ss:$0 sm:$0xff] }
 0x1e1   : > { %1158 = vrot.lane.b32.xlu0 %v965_v13, %s9007_s8  ;;  %16218 = vst [vmem:[#allocation125_spill] sm:$0xff] %v12535_v60  ;;  %16219 = vst [vmem:[#allocation126_spill] sm:$0xff] %v12537_v35  ;;  %v12542_v13 = vld [vmem:[%s15435_s3 + $0x22] ss:$0 sm:$0xff]  ;;  %v3656_v28 = vmul.f32 %v8744_v11, %v16223_v12  ;;  %v1323_v7 = vrot.slane %v12506_v39, 1  ;;  %v1502_v0 = vrot.slane %v12506_v39, 2  ;;  %v3315_v34 = vmul.f32 %v12589_v19, %v16225_v18 }
 0x1e2   : > { %1222 = vrot.lane.b32.xlu1 %v12414_v61, %s9007_s8  ;;  %v3599_v36 = vmul.f32 %v12542_v13, %v11990_v63  ;;  %16220 = vst [vmem:[#allocation127_spill] sm:$0xff] %v12550_v47  ;;  %16221 = vst [vmem:[#allocation128_spill] sm:$0xff] %v12552_v43  ;;  %v3258_v63 = vmul.f32 %v16224_v59, %v16223_v12 }
 0x1e3   : > { %16222 = vst [vmem:[#allocation129_spill] sm:$0xff] %v12555_v54  ;;  %v12605_v22 = vsel %vm1340_vm1, %v1323_v7, 0.0  ;;  %16227 = vst [vmem:[#allocation139_spill] sm:$0xff] %v12610_v45 }
 0x1e4   : > { %v3615_v55 = vadd.f32 %v3599_v36, %v3558_v3  ;;  %v3274_v2 = vadd.f32 %v3258_v63, %v3217_v38  ;;  %16226 = vst [vmem:[#allocation130_spill] sm:$0xff] %v12605_v22  ;;  %v3713_v3 = vmul.f32 %v12610_v45, %v16225_v18 }
 0x1e5   : > { %1401 = vrot.lane.b32.xlu0 %v12529_v57, %s9007_s8 }
 0x1e6   : > { %1580 = vrot.lane.b32.xlu1 %v1534_v62, %s9007_s8  ;;  %v3672_v48 = vadd.f32 %v3656_v28, %v3615_v55 }
 0x1e8   : > { %v3729_v7 = vadd.f32 %v3713_v3, %v3672_v48 }
 0x1e9   : > { %916 = vrot.lane.b32.xlu0 %v885_v17, %s9007_s8  ;;  %v1535_v17 = vsel %vm1519_vm2, %v1502_v0, 0.0 }
 0x1ea   : > { %1046 = vrot.lane.b32.xlu1 %v12555_v54, %s9007_s8 }
 0x1ed   : > { %1160 = vrot.lane.b32.xlu0 %v966_v46, %s9007_s8 }
 0x1ee   : > { %1224 = vrot.lane.b32.xlu1 %v12506_v39, %s9007_s8 }
 0x1f0   : > { %v4733_v8 = vpop.f32.mrf.mxu0  ;;  %v4786_v49 = vpop.f32.mrf.mxu1 }
 0x1f1   : > { %v12560_v31 = vadd.f32 %v4733_v8, %v12535_v60  ;;  %v12563_v41 = vadd.f32 %v4786_v49, %v12537_v35  ;;  %v3331_v8 = vadd.f32 %v3315_v34, %v3274_v2  ;;  %v16228_v49 = vld [vmem:[#allocation15_spill] sm:$0xff]  ;;  %1403 = vrot.lane.b32.xlu0 %v12605_v22, %s9007_s8  ;;  %v16229_v34 = vld [vmem:[#allocation109_spill] sm:$0xff] }
 0x1f2   : > { %v4735_v15 = vpop.f32.mrf.mxu0  ;;  %v4788_v37 = vpop.f32.mrf.mxu1  ;;  %v3372_v38 = vmul.f32 %v12431_v24, %v16228_v49  ;;  %1582 = vrot.lane.b32.xlu1 %v1535_v17, %s9007_s8  ;;  %v8747_v24 = vld [vmem:[%s15435_s3 + $0x25] ss:$0 sm:$0xff] }
 0x1f3   : > { %v12571_v4 = vmul.f32 0.70710677, %v12560_v31  ;;  %v12574_v42 = vmul.f32 0.70710677, %v12563_v41  ;;  %v12580_v16 = vadd.f32 %v4735_v15, %v12550_v47  ;;  %v12583_v32 = vadd.f32 %v4788_v37, %v12552_v43 }
 0x1f4   : > { %v4737_v62 = vpop.f32.mrf.mxu0  ;;  %v4790_v11 = vpop.f32.mrf.mxu1  ;;  %v3770_v0 = vmul.f32 %v8747_v24, %v16228_v49  ;;  %v3388_v18 = vadd.f32 %v3372_v38, %v3331_v8 }
 0x1f5   : > { %v4821_v50 = vand.u32 2147483647, %v12571_v4  ;;  %v4823_v25 = vand.u32 2147483647, %v12574_v42  ;;  %v12596_v52 = vmul.f32 0.70710677, %v12580_v16  ;;  %v12625_v37 = vadd.f32 %v4737_v62, %v12535_v60 }
 0x1f6   : > { %v12599_v1 = vmul.f32 0.70710677, %v12583_v32  ;;  %v4739_v28 = vpop.f32.mrf.mxu0  ;;  %v12638_v17 = vadd.f32 %v4790_v11, %v12537_v35  ;;  %vm5141_vm5 = vcmp.ge.f32.partialorder %v12571_v4, 0.0  ;;  %vm5143_vm6 = vcmp.ge.f32.partialorder %v12574_v42, 0.0  ;;  %v12867_v42 = vld [vmem:[%s15435_s3 + $0xf] ss:$0 sm:$0xff] }
 0x1f7   : > { %v4837_v23 = vmul.f32 0.3275911, %v4821_v50  ;;  %v4839_v26 = vmul.f32 0.3275911, %v4823_v25  ;;  %v4822_v46 = vand.u32 2147483647, %v12596_v52  ;;  %v12641_v48 = vadd.f32 %v4739_v28, %v12550_v47 }
 0x1f8   : > { %v12616_v36 = vand.u32 2147483647, %v12599_v1  ;;  %v5045_v15 = vsub.f32 0.0, %v4821_v50  ;;  %v12635_v62 = vmul.f32 0.70710677, %v12625_v37  ;;  %vm5142_vm8 = vcmp.ge.f32.partialorder %v12596_v52, 0.0 }
 0x1f9   : > { %v4853_v12 = vadd.f32 1.0, %v4837_v23  ;;  %v4855_v59 = vadd.f32 1.0, %v4839_v26  ;;  %v4838_v63 = vmul.f32 0.3275911, %v4822_v46  ;;  %v3429_v23 = vmul.f32 %v12470_v56, %v16229_v34  ;;  %v8748_v56 = vld [vmem:[%s15435_s3 + $0x26] ss:$0 sm:$0xff] }
 0x1fa   : > { %v4840_v55 = vmul.f32 0.3275911, %v12616_v36  ;;  %v5061_v3 = vmul.f32 %v5045_v15, %v4821_v50  ;;  %v4825_v49 = vand.u32 2147483647, %v12635_v62  ;;  %v3827_v8 = vmul.f32 %v8748_v56, %v16229_v34  ;;  %v16230_v15 = vld [vmem:[#allocation108_spill] sm:$0xff] }
 0x1fb   : > { %8379 = vrcp.f32 %v4853_v12  ;;  %v4854_v2 = vadd.f32 1.0, %v4838_v63  ;;  %v5047_v12 = vsub.f32 0.0, %v4823_v25  ;;  %v12649_v38 = vmul.f32 0.70710677, %v12638_v17 }
 0x1fc   : > { %8381 = vrcp.f32 %v4855_v59  ;;  %v4856_v26 = vadd.f32 1.0, %v4840_v55  ;;  %v3786_v59 = vadd.f32 %v3770_v0, %v3729_v7  ;;  %v12652_v63 = vmul.f32 0.70710677, %v12641_v48  ;;  %v4792_v55 = vpop.f32.mrf.mxu1 }
 0x1fd   : > { %8383 = vrcp.f32 %v4854_v2  ;;  %v3445_v11 = vadd.f32 %v3429_v23, %v3388_v18  ;;  %v5046_v28 = vsub.f32 0.0, %v4822_v46  ;;  %v4841_v50 = vmul.f32 0.3275911, %v4825_v49 }
 0x1fe   : > { %8385 = vrcp.f32 %v4856_v26  ;;  %v3486_v7 = vmul.f32 %v12496_v58, %v16230_v15  ;;  %v5063_v24 = vmul.f32 %v5047_v12, %v4823_v25  ;;  %v12657_v0 = vand.u32 2147483647, %v12649_v38  ;;  %v8749_v58 = vld [vmem:[%s15435_s3 + $0x27] ss:$0 sm:$0xff]  ;;  %v8750_v12 = vld [vmem:[%s15435_s3 + $0x6] ss:$0 sm:$0xff] }
 0x1ff   : > { %v12660_v2 = vand.u32 2147483647, %v12652_v63  ;;  %v5077_v56 = vmul.f32 1.442695, %v5061_v3  ;;  %v5048_v34 = vsub.f32 0.0, %v12616_v36  ;;  %v4857_v21 = vadd.f32 1.0, %v4841_v50 }
 0x200   : > { %v12664_v20 = vadd.f32 %v4792_v55, %v12552_v43  ;;  %v12666_v18 = vadd.f32 %v3827_v8, %v3786_v59  ;;  %v12672_v25 = vmul.f32 %v8749_v58, %v16230_v15  ;;  %v4843_v23 = vmul.f32 0.3275911, %v12657_v0 }
 0x201   : > { %v4842_v26 = vmul.f32 0.3275911, %v12660_v2  ;;  %v2015_v3 = vmul.f32 %v8750_v12, %v12355_v29  ;;  %v5062_v55 = vmul.f32 %v5046_v28, %v4822_v46  ;;  %8387 = vrcp.f32 %v4857_v21  ;;  %v8751_v21 = vld [vmem:[%s15435_s3 + $0xd] ss:$0 sm:$0xff]  ;;  %v8753_v12 = vld [vmem:[%s15435_s3 + $0x5] ss:$0 sm:$0xff] }
 0x202   : > { %16231 = vst [vmem:[#allocation131_spill] sm:$0xff] %v12666_v18  ;;  %16232 = vst [vmem:[#allocation132_spill] sm:$0xff] %v12672_v25  ;;  %v12681_v59 = vmul.f32 0.70710677, %v12664_v20  ;;  %v12683_v8 = vadd.f32 %v3486_v7, %v3445_v11  ;;  %v5049_v50 = vsub.f32 0.0, %v4825_v49  ;;  %v4859_v15 = vadd.f32 1.0, %v4843_v23 }
 0x203   : > { %v4858_v58 = vadd.f32 1.0, %v4842_v26  ;;  %8389 = vpow2.f32 %v5077_v56  ;;  %v5081_v6 = vmul.f32 1.442695, %v5063_v24  ;;  %v5064_v53 = vmul.f32 %v5048_v34, %v12616_v36  ;;  %v8752_v11 = vld [vmem:[%s15435_s3 + $0x14] ss:$0 sm:$0xff]  ;;  %v16234_v25 = vld [vmem:[#allocation111_spill] sm:$0xff] }
 0x204   : > { %v12687_v22 = vand.u32 2147483647, %v12681_v59  ;;  %v2413_v46 = vmul.f32 %v8751_v21, %v12355_v29  ;;  %v2811_v28 = vmul.f32 %v8752_v11, %v12355_v29  ;;  %v3202_v36 = vmul.f32 %v16217_v40, %v12355_v29  ;;  %v8754_v40 = vld [vmem:[%s15435_s3 + $0xc] ss:$0 sm:$0xff] }
 0x205   : > { %8391 = vrcp.f32 %v4859_v15  ;;  %v5079_v24 = vmul.f32 1.442695, %v5062_v55  ;;  %v5065_v26 = vmul.f32 %v5049_v50, %v4825_v49  ;;  %v1959_v21 = vmul.f32 %v8753_v12, %v16207_v27  ;;  %v8755_v12 = vld [vmem:[%s15435_s3 + $0x13] ss:$0 sm:$0xff] }
 0x206   : > { %8393 = vrcp.f32 %v4858_v58  ;;  %v4844_v56 = vmul.f32 0.3275911, %v12687_v22  ;;  %v2356_v15 = vmul.f32 %v8754_v40, %v16207_v27  ;;  %v5083_v55 = vmul.f32 1.442695, %v5064_v53  ;;  %v16233_v40 = vld [vmem:[#allocation110_spill] sm:$0xff] }
 0x207   : > { %8395 = vpow2.f32 %v5081_v6  ;;  %v5051_v49 = vsub.f32 0.0, %v12657_v0  ;;  %v5050_v50 = vsub.f32 0.0, %v12660_v2  ;;  %v2754_v57 = vmul.f32 %v8755_v12, %v16207_v27 }
 0x208   : > { %v12689_v39 = vpop.eup %8379  ;;  %v4860_v58 = vadd.f32 1.0, %v4844_v56  ;;  %v3146_v6 = vmul.f32 %v12511_v44, %v16207_v27  ;;  %v1975_v10 = vadd.f32 %v1959_v21, %v16233_v40  ;;  %v2372_v18 = vadd.f32 %v2356_v15, %v16234_v25  ;;  %v16235_v44 = vld [vmem:[#allocation112_spill] sm:$0xff]  ;;  %v16236_v21 = vld [vmem:[#allocation13_spill] sm:$0xff] }
 0x209   : > { %v12701_v34 = vpop.eup %8381  ;;  %v4901_v7 = vmul.f32 1.0614054, %v12689_v39  ;;  %v2770_v45 = vadd.f32 %v2754_v57, %v16235_v44  ;;  %v5066_v15 = vmul.f32 %v5050_v50, %v12660_v2  ;;  %vm5145_vm7 = vcmp.ge.f32.partialorder %v12635_v62, 0.0  ;;  %v12876_v62 = vld [vmem:[%s15435_s3 + $0x16] ss:$0 sm:$0xff] }
 0x20a   : > { %v4903_v23 = vmul.f32 1.0614054, %v12701_v34  ;;  %v12714_v54 = vpop.eup %8383  ;;  %8397 = vrcp.f32 %v4860_v58  ;;  %v12732_v33 = vadd.f32 %v2015_v3, %v1975_v10  ;;  %v12734_v58 = vadd.f32 %v2413_v46, %v2372_v18 }
 0x20b   : > { %v7888_v11 = vadd.f32 -1.4531521, %v4901_v7  ;;  %v4902_v7 = vmul.f32 1.0614054, %v12714_v54  ;;  %v12726_v53 = vpop.eup %8385  ;;  %8399 = vpow2.f32 %v5079_v24  ;;  %v3162_v40 = vadd.f32 %v3146_v6, %v16236_v21 }
 0x20c   : > { %v7890_v51 = vadd.f32 -1.4531521, %v4903_v23  ;;  %v5085_v23 = vmul.f32 1.442695, %v5065_v26  ;;  %8401 = vpow2.f32 %v5083_v55  ;;  %v5067_v24 = vmul.f32 %v5051_v49, %v12657_v0 }
 0x20d   : > { %v4933_v61 = vmul.f32 %v12689_v39, %v7888_v11  ;;  %v7889_v5 = vadd.f32 -1.4531521, %v4902_v7  ;;  %v4904_v11 = vmul.f32 1.0614054, %v12726_v53  ;;  %v12744_v10 = vadd.f32 %v2811_v28, %v2770_v45 }
 0x20e   : > { %v4935_v56 = vmul.f32 %v12701_v34, %v7890_v51  ;;  %v12740_v25 = vpop.eup %8387  ;;  %8403 = vpow2.f32 %v5085_v23  ;;  %v12749_v7 = vadd.f32 %v3202_v36, %v3162_v40  ;;  %v5052_v23 = vsub.f32 0.0, %v12687_v22 }
 0x20f   : > { %v4949_v9 = vadd.f32 1.4214138, %v4933_v61  ;;  %v4934_v51 = vmul.f32 %v12714_v54, %v7889_v5  ;;  %v7891_v26 = vadd.f32 -1.4531521, %v4904_v11  ;;  %v5089_v11 = vmul.f32 1.442695, %v5067_v24 }
 0x210   : > { %v4951_v12 = vadd.f32 1.4214138, %v4935_v56  ;;  %v8390_v46 = vpop.eup %8389  ;;  %v5087_v40 = vmul.f32 1.442695, %v5066_v15  ;;  %vm5144_vm9 = vcmp.ge.f32.partialorder %v12599_v1, 0.0  ;;  %vm5147_vm10 = vcmp.ge.f32.partialorder %v12649_v38, 0.0 }
 0x211   : > { %v4965_v43 = vmul.f32 %v12689_v39, %v4949_v9  ;;  %v4950_v3 = vadd.f32 1.4214138, %v4934_v51  ;;  %v4936_v57 = vmul.f32 %v12726_v53, %v7891_v26  ;;  %v4905_v9 = vmul.f32 1.0614054, %v12740_v25 }
 0x212   : > { %v4967_v61 = vmul.f32 %v12701_v34, %v4951_v12  ;;  %v12751_v6 = vpop.eup %8391  ;;  %v12764_v51 = vmul.f32 %v12542_v13, %v12355_v29  ;;  %8405 = vpow2.f32 %v5089_v11  ;;  %vm5146_vm11 = vcmp.ge.f32.partialorder %v12652_v63, 0.0 }
 0x213   : > { %v7904_v18 = vadd.f32 -0.28449672, %v4965_v43  ;;  %v4966_v45 = vmul.f32 %v12714_v54, %v4950_v3  ;;  %v4952_v0 = vadd.f32 1.4214138, %v4936_v57  ;;  %v7892_v43 = vadd.f32 -1.4531521, %v4905_v9  ;;  %v12755_v28 = vpop.eup %8393 }
 0x214   : > { %v7906_v5 = vadd.f32 -0.28449672, %v4967_v61  ;;  %v4907_v56 = vmul.f32 1.0614054, %v12751_v6  ;;  %v8396_v44 = vpop.eup %8395  ;;  %v4906_v21 = vmul.f32 1.0614054, %v12755_v28  ;;  %8407 = vpow2.f32 %v5087_v40 }
 0x215   : > { %v4997_v55 = vmul.f32 %v12689_v39, %v7904_v18  ;;  %v7905_v36 = vadd.f32 -0.28449672, %v4966_v45  ;;  %v4968_v50 = vmul.f32 %v12726_v53, %v4952_v0  ;;  %v4937_v12 = vmul.f32 %v12740_v25, %v7892_v43 }
 0x216   : > { %v4999_v49 = vmul.f32 %v12701_v34, %v7906_v5  ;;  %v7894_v26 = vadd.f32 -1.4531521, %v4907_v56  ;;  %v7893_v5 = vadd.f32 -1.4531521, %v4906_v21  ;;  %vm5148_vm12 = vcmp.ge.f32.partialorder %v12681_v59, 0.0 }
 0x217   : > { %v5013_v2 = vadd.f32 0.2548296, %v4997_v55  ;;  %v4998_v24 = vmul.f32 %v12714_v54, %v7905_v36  ;;  %v7907_v18 = vadd.f32 -0.28449672, %v4968_v50  ;;  %v4953_v3 = vadd.f32 1.4214138, %v4937_v12  ;;  %v12768_v57 = vpop.eup %8397 }
 0x218   : > { %v5015_v61 = vadd.f32 0.2548296, %v4999_v49  ;;  %v4939_v9 = vmul.f32 %v12751_v6, %v7894_v26  ;;  %v5068_v55 = vmul.f32 %v5052_v23, %v12687_v22  ;;  %v8400_v43 = vpop.eup %8399  ;;  %v4938_v56 = vmul.f32 %v12755_v28, %v7893_v5 }
 0x219   : > { %v5029_v13 = vmul.f32 %v12689_v39, %v5013_v2  ;;  %v5014_v45 = vadd.f32 0.2548296, %v4998_v24  ;;  %v5000_v0 = vmul.f32 %v12726_v53, %v7907_v18  ;;  %v4969_v15 = vmul.f32 %v12740_v25, %v4953_v3  ;;  %v8402_v21 = vpop.eup %8401 }
 0x21a   : > { %v4955_v49 = vadd.f32 1.4214138, %v4939_v9  ;;  %v4908_v36 = vmul.f32 1.0614054, %v12768_v57  ;;  %v12778_v50 = vmul.f32 0.5, %v12560_v31  ;;  %v5031_v11 = vmul.f32 %v12701_v34, %v5015_v61 }
 0x21b   : > { %v5016_v22 = vadd.f32 0.2548296, %v5000_v0  ;;  %v7908_v23 = vadd.f32 -0.28449672, %v4969_v15  ;;  %v12782_v39 = vmul.f32 0.5, %v12563_v41  ;;  %v5109_v24 = vmul.f32 %v8390_v46, %v5029_v13  ;;  %v8404_v41 = vpop.eup %8403 }
 0x21c   : > { %v4971_v2 = vmul.f32 %v12751_v6, %v4955_v49  ;;  %v4954_v12 = vadd.f32 1.4214138, %v4938_v56  ;;  %v7895_v26 = vadd.f32 -1.4531521, %v4908_v36  ;;  %v5030_v40 = vmul.f32 %v12714_v54, %v5014_v45  ;;  %v4743_v36 = vpop.f32.mrf.mxu0 }
 0x21d   : > { %v5001_v18 = vmul.f32 %v12740_v25, %v7908_v23  ;;  %v5091_v3 = vmul.f32 1.442695, %v5068_v55  ;;  %v5032_v31 = vmul.f32 %v12726_v53, %v5016_v22  ;;  %v5111_v5 = vmul.f32 %v8396_v44, %v5031_v11  ;;  %v4796_v11 = vpop.f32.mrf.mxu1 }
 0x21e   : > { %v7910_v9 = vadd.f32 -0.28449672, %v4971_v2  ;;  %v4970_v34 = vmul.f32 %v12755_v28, %v4954_v12  ;;  %v4940_v61 = vmul.f32 %v12768_v57, %v7895_v26  ;;  %v12791_v0 = vmul.f32 0.5, %v12580_v16 }
 0x21f   : > { %v12794_v15 = vmul.f32 0.5, %v12583_v32  ;;  %v5017_v46 = vadd.f32 0.2548296, %v5001_v18  ;;  %v12798_v54 = vmul.f32 0.5, %v12625_v37  ;;  %v3543_v13 = vmul.f32 %v12518_v14, %v16207_v27  ;;  %v8406_v26 = vpop.eup %8405 }
 0x220   : > { %v5003_v53 = vmul.f32 %v12751_v6, %v7910_v9  ;;  %v7909_v55 = vadd.f32 -0.28449672, %v4970_v34  ;;  %v5125_v45 = vsub.f32 1.0, %v5109_v24  ;;  %v12803_v44 = vmul.f32 %v8400_v43, %v5030_v40 }
 0x221   : > { %v5033_v16 = vmul.f32 %v12740_v25, %v5017_v46  ;;  %8409 = vpow2.f32 %v5091_v3  ;;  %v12807_v32 = vmul.f32 %v8402_v21, %v5032_v31  ;;  %v4956_v56 = vadd.f32 1.4214138, %v4940_v61  ;;  %v8408_v31 = vpop.eup %8407 }
 0x222   : > { %v5019_v49 = vadd.f32 0.2548296, %v5003_v53  ;;  %v5002_v37 = vmul.f32 %v12755_v28, %v7909_v55  ;;  %v5127_v22 = vsub.f32 1.0, %v5111_v5  ;;  %v12812_v14 = vmul.f32 0.5, %v12638_v17 }
 0x223   : > { %v5113_v23 = vmul.f32 %v8404_v41, %v5033_v16  ;;  %v4972_v2 = vmul.f32 %v12768_v57, %v4956_v56  ;;  %v3559_v12 = vadd.f32 %v3543_v13, %v12683_v8  ;;  %v5157_v21 = vsub.f32 0.0, %v5125_v45 }
 0x224   : > { %v5035_v25 = vmul.f32 %v12751_v6, %v5019_v49  ;;  %v5018_v43 = vadd.f32 0.2548296, %v5002_v37  ;;  %v12820_v40 = vadd.f32 %v4743_v36, %v12535_v60  ;;  %v12823_v17 = vadd.f32 %v4796_v11, %v12537_v35  ;;  %v8756_v49 = vld [vmem:[%s15435_s3 + $0x8] ss:$0 sm:$0xff]  ;;  %v4745_v36 = vpop.f32.mrf.mxu0 }
 0x225   : > { %v5129_v24 = vsub.f32 1.0, %v5113_v23  ;;  %v5126_v6 = vsub.f32 1.0, %v12803_v44  ;;  %v5128_v18 = vsub.f32 1.0, %v12807_v32  ;;  %v12829_v8 = vmul.f32 0.5, %v12641_v48 }
 0x226   : > { %v5034_v3 = vmul.f32 %v12755_v28, %v5018_v43  ;;  %v5159_v9 = vsub.f32 0.0, %v5127_v22  ;;  %v5115_v34 = vmul.f32 %v8406_v26, %v5035_v25  ;;  %v7911_v61 = vadd.f32 -0.28449672, %v4972_v2  ;;  %v4798_v2 = vpop.f32.mrf.mxu1 }
 0x227   : > { %v12832_v41 = vmul.f32 0.70710677, %v12820_v40  ;;  %v5161_v5 = vsub.f32 0.0, %v5129_v24  ;;  %v12835_v53 = vmul.f32 0.5, %v12664_v20  ;;  %v12838_v55 = vmul.f32 0.70710677, %v12823_v17 }
 0x228   : > { %v5114_v46 = vmul.f32 %v8408_v31, %v5034_v3  ;;  %v5173_v28 = vsel %vm5141_vm5, %v5125_v45, %v5157_v21  ;;  %v5004_v48 = vmul.f32 %v12768_v57, %v7911_v61  ;;  %v12845_v44 = vadd.f32 %v12764_v51, %v3559_v12 }
 0x229   : > { %v4829_v13 = vand.u32 2147483647, %v12832_v41  ;;  %v5158_v16 = vsub.f32 0.0, %v5126_v6  ;;  %v5160_v32 = vsub.f32 0.0, %v5128_v18  ;;  %v12849_v20 = vand.u32 2147483647, %v12838_v55 }
 0x22a   : > { %v12855_v4 = vmul.f32 %v8756_v49, %v12396_v30  ;;  %v5175_v45 = vsel %vm5143_vm6, %v5127_v22, %v5159_v9  ;;  %v5131_v37 = vsub.f32 1.0, %v5115_v34  ;;  %v5020_v51 = vadd.f32 0.2548296, %v5004_v48  ;;  %v4800_v49 = vpop.f32.mrf.mxu1 }
 0x22b   : > { %v4845_v56 = vmul.f32 0.3275911, %v4829_v13  ;;  %v5205_v11 = vadd.f32 1.0, %v5173_v28  ;;  %v5177_v23 = vsel %vm5145_vm7, %v5129_v24, %v5161_v5  ;;  %v5130_v25 = vsub.f32 1.0, %v5114_v46  ;;  %v4747_v46 = vpop.f32.mrf.mxu0 }
 0x22c   : > { %v4847_v43 = vmul.f32 0.3275911, %v12849_v20  ;;  %v5036_v12 = vmul.f32 %v12768_v57, %v5020_v51  ;;  %v12871_v22 = vmul.f32 %v12867_v42, %v12396_v30  ;;  %v12880_v21 = vmul.f32 %v12876_v62, %v12396_v30  ;;  %v16237_v51 = vld [vmem:[#allocation128_spill] sm:$0xff] }
 0x22d   : > { %v4861_v26 = vadd.f32 1.0, %v4845_v56  ;;  %v5207_v24 = vadd.f32 1.0, %v5175_v45  ;;  %v5174_v3 = vsel %vm5142_vm8, %v5126_v6, %v5158_v16  ;;  %v5176_v31 = vsel %vm5144_vm9, %v5128_v18, %v5160_v32 }
 0x22e   : > { %v8410_v57 = vpop.eup %8409  ;;  %v4863_v9 = vadd.f32 1.0, %v4847_v43  ;;  %v5209_v34 = vadd.f32 1.0, %v5177_v23  ;;  %v5163_v61 = vsub.f32 0.0, %v5131_v37  ;;  %v12888_v28 = vmul.f32 %v5205_v11, %v12778_v50 }
 0x22f   : > { %v5116_v5 = vmul.f32 %v8410_v57, %v5036_v12  ;;  %8411 = vrcp.f32 %v4861_v26  ;;  %v5162_v48 = vsub.f32 0.0, %v5130_v25  ;;  %v12892_v52 = vmul.f32 %v12589_v19, %v12396_v30 }
 0x230   : > { %8413 = vrcp.f32 %v4863_v9  ;;  %v5206_v1 = vadd.f32 1.0, %v5174_v3  ;;  %v5208_v6 = vadd.f32 1.0, %v5176_v31  ;;  %v12895_v16 = vadd.f32 %v4745_v36, %v12550_v47 }
 0x231   : > { %v5132_v18 = vsub.f32 1.0, %v5116_v5  ;;  %v12898_v32 = vmul.f32 %v5207_v24, %v12782_v39  ;;  %v5053_v45 = vsub.f32 0.0, %v4829_v13  ;;  %v12901_v50 = vadd.f32 %v4798_v2, %v16237_v51 }
 0x232   : > { %v12904_v56 = vadd.f32 %v4747_v46, %v12535_v60  ;;  %v12907_v11 = vmul.f32 %v5209_v34, %v12798_v54  ;;  %v5179_v19 = vsel %vm5147_vm10, %v5131_v37, %v5163_v61  ;;  %v12912_v23 = vmul.f32 0.70710677, %v12895_v16 }
 0x233   : > { %v12915_v36 = vadd.f32 %v4800_v49, %v12537_v35  ;;  %v5178_v39 = vsel %vm5146_vm11, %v5130_v25, %v5162_v48  ;;  %v5164_v43 = vsub.f32 0.0, %v5132_v18  ;;  %v12920_v2 = vmul.f32 0.70710677, %v12901_v50 }
 0x234   : > { %v12923_v12 = vmul.f32 0.70710677, %v12904_v56  ;;  %v5222_v54 = vmul.f32 %v5206_v1, %v12791_v0  ;;  %v12927_v38 = vmul.f32 %v5208_v6, %v12794_v15  ;;  %v12930_v37 = vmul.f32 0.5, %v12820_v40 }
 0x235   : > { %v4830_v26 = vand.u32 2147483647, %v12912_v23  ;;  %v5211_v57 = vadd.f32 1.0, %v5179_v19  ;;  %v5069_v63 = vmul.f32 %v5053_v45, %v4829_v13  ;;  %v4832_v25 = vand.u32 2147483647, %v12920_v2 }
 0x236   : > { %v4833_v24 = vand.u32 2147483647, %v12923_v12  ;;  %v5237_v3 = vpack.c.bf16 %v12907_v11, %v12888_v28  ;;  %v5210_v31 = vadd.f32 1.0, %v5178_v39  ;;  %v12938_v0 = vmul.f32 0.70710677, %v12915_v36  ;;  %v4749_v11 = vpop.f32.mrf.mxu0 }
 0x237   : > { %v4846_v9 = vmul.f32 0.3275911, %v4830_v26  ;;  %v5180_v15 = vsel %vm5148_vm12, %v5132_v18, %v5164_v43  ;;  %v5055_v40 = vsub.f32 0.0, %v12849_v20  ;;  %v4848_v34 = vmul.f32 0.3275911, %v4832_v25 }
 0x238   : > { %v4849_v61 = vmul.f32 0.3275911, %v4833_v24  ;;  %v5054_v5 = vsub.f32 0.0, %v4830_v26  ;;  %v5056_v46 = vsub.f32 0.0, %v4832_v25  ;;  %v4835_v48 = vand.u32 2147483647, %v12938_v0 }
 0x239   : > { %v4862_v13 = vadd.f32 1.0, %v4846_v9  ;;  %v12945_v49 = vmul.f32 %v5211_v57, %v12812_v14  ;;  %v5093_v28 = vmul.f32 1.442695, %v5069_v63  ;;  %v4864_v1 = vadd.f32 1.0, %v4848_v34  ;;  %v4802_v14 = vpop.f32.mrf.mxu1 }
 0x23a   : > { %v5057_v6 = vsub.f32 0.0, %v4833_v24  ;;  %v5226_v45 = vmul.f32 %v5210_v31, %v12829_v8  ;;  %v4865_v59 = vadd.f32 1.0, %v4849_v61  ;;  %v4851_v18 = vmul.f32 0.3275911, %v4835_v48 }
 0x23b   : > { %8415 = vrcp.f32 %v4862_v13  ;;  %v5212_v39 = vadd.f32 1.0, %v5180_v15  ;;  %v5071_v43 = vmul.f32 %v5055_v40, %v12849_v20  ;;  %v12952_v9 = vmul.f32 0.5, %v12823_v17 }
 0x23c   : > { %v12948_v19 = vpop.eup %8411  ;;  %8417 = vrcp.f32 %v4864_v1  ;;  %v5070_v34 = vmul.f32 %v5054_v5, %v4830_v26  ;;  %v5072_v8 = vmul.f32 %v5056_v46, %v4832_v25  ;;  %v4867_v31 = vadd.f32 1.0, %v4851_v18 }
 0x23d   : > { %v12954_v57 = vpop.eup %8413  ;;  %v4909_v63 = vmul.f32 1.0614054, %v12948_v19  ;;  %v5073_v13 = vmul.f32 %v5057_v6, %v4833_v24  ;;  %v5059_v35 = vsub.f32 0.0, %v4835_v48  ;;  %v12959_v15 = vadd.f32 %v4749_v11, %v12550_v47  ;;  %v8759_v11 = vld [vmem:[%s15436_s4 + $0xe0] ss:$16 sps:$4 sm:$0xff]  }
 0x23e   : > { %v4911_v61 = vmul.f32 1.0614054, %v12954_v57  ;;  %8419 = vrcp.f32 %v4865_v59  ;;  %v12962_v17 = vadd.f32 %v4802_v14, %v16237_v51  ;;  %v5238_v40 = vpack.c.bf16 %v5226_v45, %v5222_v54 }
 0x23f   : > { %v7896_v20 = vadd.f32 -1.4531521, %v4909_v63  ;;  %v5228_v1 = vmul.f32 %v5212_v39, %v12835_v53  ;;  %v5097_v29 = vmul.f32 1.442695, %v5071_v43  ;;  %v12966_v26 = vmul.f32 0.70710677, %v12959_v15 }
 0x240   : > { %v7898_v60 = vadd.f32 -1.4531521, %v4911_v61  ;;  %v5095_v24 = vmul.f32 1.442695, %v5070_v34  ;;  %8421 = vrcp.f32 %v4867_v31  ;;  %v12970_v5 = vmul.f32 0.70710677, %v12962_v17  ;;  %5469 = vmatprep.mubr.bf16.mxu0 %v5238_v40 }
 0x241   : > { %v4941_v25 = vmul.f32 %v12948_v19, %v7896_v20  ;;  %v5099_v6 = vmul.f32 1.442695, %v5072_v8  ;;  %v5075_v59 = vmul.f32 %v5059_v35, %v4835_v48  ;;  %v12974_v54 = vand.u32 2147483647, %v12966_v26  ;;  %5470 = vmatmul.mubr.bf16.vlgmr.msra.gmra.mxu0 %v5237_v3  ;;  %v8760_v3 = vld [vmem:[%s15436_s4 + $0xc4] ss:$16 sps:$4 sm:$0xff]  }
 0x242   : > { %v4943_v46 = vmul.f32 %v12954_v57, %v7898_v60  ;;  %8423 = vpow2.f32 %v5093_v28  ;;  %v5101_v45 = vmul.f32 1.442695, %v5073_v13  ;;  %v12977_v18 = vand.u32 2147483647, %v12970_v5  ;;  %5560 = vmatpush1.bf16.msra.mxu0 %v8759_v11  ;;  %v8763_v20 = vld [vmem:[%s15436_s4 + $0xa4] ss:$16 sps:$4 sm:$0xff]  }
 0x243   : > { %v4957_v53 = vadd.f32 1.4214138, %v4941_v25  ;;  %8425 = vpow2.f32 %v5097_v29  ;;  %v4850_v60 = vmul.f32 0.3275911, %v12974_v54  ;;  %v5240_v35 = vpack.c.bf16 %v5228_v1, %v12927_v38  ;;  %5561 = vmatprep.subr.bf16.mxu0 %v8760_v3  ;;  %v8764_v25 = vld [vmem:[%s15436_s4 + $0xcc] ss:$16 sps:$4 sm:$0xff]  }
 0x244   : > { %v4959_v39 = vadd.f32 1.4214138, %v4943_v46  ;;  %v5239_v48 = vpack.c.bf16 %v12945_v49, %v12898_v32  ;;  %8427 = vpow2.f32 %v5095_v24  ;;  %v4852_v43 = vmul.f32 0.3275911, %v12977_v18  ;;  %v8761_v32 = vld [vmem:[%s15436_s4 + $0xc0] ss:$16 sps:$4 sm:$0xff]  }
 0x245   : > { %v4973_v28 = vmul.f32 %v12948_v19, %v4957_v53  ;;  %8429 = vpow2.f32 %v5099_v6  ;;  %v5105_v29 = vmul.f32 1.442695, %v5075_v59  ;;  %v4866_v63 = vadd.f32 1.0, %v4850_v60  ;;  %5518 = vmatprep.mubr.bf16.mxu1 %v5240_v35  ;;  %v913_v59 = vpop.permute.xlu0 %912  ;;  %v8765_v11 = vld [vmem:[%s15436_s4 + $0xa0] ss:$16 sps:$4 sm:$0xff]   ;;  %v1043_v60 = vpop.permute.xlu1 %1042 }
 0x246   : > { %v4975_v14 = vmul.f32 %v12954_v57, %v4959_v39  ;;  %v12993_v34 = vmul.f32 0.5, %v12895_v16  ;;  %8431 = vpow2.f32 %v5101_v45  ;;  %v4868_v8 = vadd.f32 1.0, %v4852_v43  ;;  %5519 = vmatmul.mubr.bf16.vlgmr.msra.gmra.mxu1 %v5239_v48  ;;  %5562 = vmatpush1.bf16.msra.mxu0 %v8761_v32  ;;  %v8762_v16 = vld [vmem:[%s15436_s4 + $0xe8] ss:$16 sps:$4 sm:$0xff]  }
 0x247   : > { %v7912_v38 = vadd.f32 -0.28449672, %v4973_v28  ;;  %v13001_v61 = vmul.f32 0.5, %v12901_v50  ;;  %v13004_v13 = vmul.f32 0.5, %v12904_v56  ;;  %8433 = vrcp.f32 %v4866_v63  ;;  %5613 = vmatpush1.bf16.msra.mxu1 %v8762_v16  ;;  %5563 = vmatprep.subr.bf16.mxu0 %v8763_v20  ;;  %v8766_v28 = vld [vmem:[%s15436_s4 + $0xc8] ss:$16 sps:$4 sm:$0xff]  }
 0x248   : > { %v12998_v49 = vpop.eup %8415  ;;  %v7914_v31 = vadd.f32 -0.28449672, %v4975_v14  ;;  %v13017_v56 = vmul.f32 0.5, %v12915_v36  ;;  %8435 = vrcp.f32 %v4868_v8  ;;  %5614 = vmatprep.subr.bf16.mxu1 %v8764_v25  ;;  %v13025_v6 = vmul.f32 0.5, %v12959_v15  ;;  %v8769_v8 = vld [vmem:[%s15435_s3 + $0x7] ss:$0 sm:$0xff] }
 0x249   : > { %v13012_v40 = vpop.eup %8417  ;;  %v5005_v1 = vmul.f32 %v12948_v19, %v7912_v38  ;;  %v4910_v50 = vmul.f32 1.0614054, %v12998_v49  ;;  %8437 = vpow2.f32 %v5105_v29  ;;  %v13028_v36 = vmul.f32 0.5, %v12962_v17  ;;  %v8767_v17 = vld [vmem:[%s15436_s4 + $0x84] ss:$16 sps:$4 sm:$0xff]   ;;  %v13185_v27 = vpop.permute.xlu1 %1220 }
 0x24a   : > { %v5007_v24 = vmul.f32 %v12954_v57, %v7914_v31  ;;  %v4912_v46 = vmul.f32 1.0614054, %v13012_v40  ;;  %5564 = vmatpush1.bf16.msra.mxu0 %v8765_v11  ;;  %v948_v39 = vsel %vm934_vm3, 0.0, %v913_v59  ;;  %v5058_v15 = vsub.f32 0.0, %v12974_v54  ;;  %v8768_v38 = vld [vmem:[%s15436_s4 + $0xac] ss:$16 sps:$4 sm:$0xff]  }
 0x24b   : > { %v5021_v53 = vadd.f32 0.2548296, %v5005_v1  ;;  %v7897_v45 = vadd.f32 -1.4531521, %v4910_v50  ;;  %v13034_v35 = vpop.eup %8419  ;;  %5615 = vmatpush1.bf16.msra.mxu1 %v8766_v28  ;;  %5565 = vmatprep.subr.bf16.mxu0 %v8767_v17  ;;  %v13044_v43 = vsel %vm1064_vm4, %v948_v39, %v1043_v60  ;;  %v13063_v20 = vld [vmem:[%s15435_s3 + $0xe] ss:$0 sm:$0xff] }
 0x24c   : > { %v5023_v3 = vadd.f32 0.2548296, %v5007_v24  ;;  %v7899_v48 = vadd.f32 -1.4531521, %v4912_v46  ;;  %v4913_v63 = vmul.f32 1.0614054, %v13034_v35  ;;  %5616 = vmatprep.subr.bf16.mxu1 %v8768_v38  ;;  %v2072_v32 = vmul.f32 %v8769_v8, %v13044_v43 }
 0x24d   : > { %v5037_v14 = vmul.f32 %v12948_v19, %v5021_v53  ;;  %v4942_v29 = vmul.f32 %v12998_v49, %v7897_v45  ;;  %v13056_v31 = vpop.eup %8421  ;;  %v5060_v19 = vsub.f32 0.0, %v12977_v18  ;;  %v2470_v1 = vmul.f32 %v13063_v20, %v13044_v43  ;;  %v13070_v50 = vld [vmem:[%s15435_s3 + $0x15] ss:$0 sm:$0xff]  ;;  %v8772_v45 = vld [vmem:[%s15436_s4 + $0x80] ss:$16 sps:$4 sm:$0xff]  }
 0x24e   : > { %v4944_v16 = vmul.f32 %v13012_v40, %v7899_v48  ;;  %v2867_v25 = vmul.f32 %v13070_v50, %v13044_v43  ;;  %v5039_v24 = vmul.f32 %v12954_v57, %v5023_v3  ;;  %v7900_v59 = vadd.f32 -1.4531521, %v4913_v63  ;;  %5566 = vmatpush1.bf16.msra.mxu0 %v8772_v45  ;;  %v8773_v48 = vld [vmem:[%s15436_s4 + $0xa8] ss:$16 sps:$4 sm:$0xff]   ;;  %v8774_v57 = vld [vmem:[%s15436_s4 + $0x64] ss:$16 sps:$4 sm:$0xff]  }
 0x24f   : > { %v4958_v46 = vadd.f32 1.4214138, %v4942_v29  ;;  %v4915_v53 = vmul.f32 1.0614054, %v13056_v31  ;;  %v8424_v11 = vpop.eup %8423  ;;  %v5074_v60 = vmul.f32 %v5058_v15, %v12974_v54  ;;  %5617 = vmatpush1.bf16.msra.mxu1 %v8773_v48  ;;  %5567 = vmatprep.subr.bf16.mxu0 %v8774_v57  ;;  %v13087_v3 = vadd.f32 %v2072_v32, %v12732_v33  ;;  %v8775_v38 = vld [vmem:[%s15436_s4 + $0x8c] ss:$16 sps:$4 sm:$0xff]  }
 0x250   : > { %v4960_v39 = vadd.f32 1.4214138, %v4944_v16  ;;  %v13090_v28 = vadd.f32 %v2470_v1, %v12734_v58  ;;  %v8426_v17 = vpop.eup %8425  ;;  %v13092_v29 = vmul.f32 %v8424_v11, %v5037_v14  ;;  %v4945_v15 = vmul.f32 %v13034_v35, %v7900_v59  ;;  %5618 = vmatprep.subr.bf16.mxu1 %v8775_v38  ;;  %v13109_v14 = vld [vmem:[%s15435_s3 + $0x1c] ss:$0 sm:$0xff]  ;;  %v8779_v11 = vld [vmem:[%s15436_s4 + $0x44] ss:$16 sps:$4 sm:$0xff]  }
 0x251   : > { %v4974_v54 = vmul.f32 %v12998_v49, %v4958_v46  ;;  %v7902_v63 = vadd.f32 -1.4531521, %v4915_v53  ;;  %v13099_v8 = vpop.eup %8427  ;;  %v5076_v58 = vmul.f32 %v5060_v19, %v12977_v18  ;;  %v13104_v32 = vadd.f32 %v2867_v25, %v12744_v10  ;;  %v8777_v10 = vld [vmem:[%s15436_s4 + $0x60] ss:$16 sps:$4 sm:$0xff]   ;;  %v8780_v38 = vld [vmem:[%s15436_s4 + $0x6c] ss:$16 sps:$4 sm:$0xff]  }
 0x252   : > { %v4976_v33 = vmul.f32 %v13012_v40, %v4960_v39  ;;  %v3259_v16 = vmul.f32 %v13109_v14, %v13044_v43  ;;  %v13113_v1 = vpop.eup %8429  ;;  %v13115_v46 = vmul.f32 %v8426_v17, %v5039_v24  ;;  %v4961_v53 = vadd.f32 1.4214138, %v4945_v15  ;;  %5568 = vmatpush1.bf16.msra.mxu0 %v8777_v10  ;;  %v8778_v24 = vld [vmem:[%s15436_s4 + $0x88] ss:$16 sps:$4 sm:$0xff]   ;;  %v16238_v48 = vld [vmem:[#allocation139_spill] sm:$0xff] }
 0x253   : > { %v7913_v59 = vadd.f32 -0.28449672, %v4974_v54  ;;  %v4947_v45 = vmul.f32 %v13056_v31, %v7902_v63  ;;  %v13121_v18 = vpop.eup %8431  ;;  %vm5149_vm13 = vcmp.ge.f32.partialorder %v12832_v41, 0.0  ;;  %v5103_v25 = vmul.f32 1.442695, %v5074_v60  ;;  %5619 = vmatpush1.bf16.msra.mxu1 %v8778_v24  ;;  %5569 = vmatprep.subr.bf16.mxu0 %v8779_v11 }
 0x254   : > { %v7915_v19 = vadd.f32 -0.28449672, %v4976_v33  ;;  %v13131_v39 = vadd.f32 %v3259_v16, %v12749_v7  ;;  %v13135_v57 = vmul.f32 %v16238_v48, %v12396_v30  ;;  %v13137_v17 = vpop.eup %8433  ;;  %v5133_v60 = vsub.f32 1.0, %v13092_v29  ;;  %5620 = vmatprep.subr.bf16.mxu1 %v8780_v38  ;;  %v8781_v29 = vld [vmem:[%s15435_s3 + $0xa] ss:$0 sm:$0xff] }
 0x255   : > { %v5006_v54 = vmul.f32 %v12998_v49, %v7913_v59  ;;  %v4977_v15 = vmul.f32 %v13034_v35, %v4961_v53  ;;  %v4963_v63 = vadd.f32 1.4214138, %v4947_v45  ;;  %v13145_v7 = vpop.eup %8435  ;;  %v4914_v16 = vmul.f32 1.0614054, %v13137_v17  ;;  %v16239_v59 = vld [vmem:[#allocation116_spill] sm:$0xff] }
 0x256   : > { %v5008_v33 = vmul.f32 %v13012_v40, %v7915_v19  ;;  %v5107_v10 = vmul.f32 1.442695, %v5076_v58  ;;  %v13153_v24 = vmul.f32 %v8781_v29, %v16239_v59  ;;  %v13155_v53 = vpop.eup %8437  ;;  %v8782_v19 = vld [vmem:[%s15436_s4 + $0x40] ss:$16 sps:$4 sm:$0xff]   ;;  %vm5151_vm14 = vcmp.ge.f32.partialorder %v12838_v55, 0.0 }
 0x257   : > { %v5022_v11 = vadd.f32 0.2548296, %v5006_v54  ;;  %v7916_v48 = vadd.f32 -0.28449672, %v4977_v15  ;;  %v4979_v38 = vmul.f32 %v13056_v31, %v4963_v63  ;;  %5570 = vmatpush1.bf16.msra.mxu0 %v8782_v19  ;;  %v7901_v51 = vadd.f32 -1.4531521, %v4914_v16  ;;  %v1157_v16 = vpop.permute.xlu0 %1156 }
 0x258   : > { %v5024_v58 = vadd.f32 0.2548296, %v5008_v33  ;;  %8439 = vpow2.f32 %v5103_v25  ;;  %v4916_v29 = vmul.f32 1.0614054, %v13145_v7  ;;  %v8783_v45 = vld [vmem:[%s15436_s4 + $0x68] ss:$16 sps:$4 sm:$0xff]  }
 0x259   : > { %5621 = vmatpush1.bf16.msra.mxu1 %v8783_v45  ;;  %v8784_v54 = vld [vmem:[%s15436_s4 + $0x24] ss:$16 sps:$4 sm:$0xff]   ;;  %v5165_v15 = vsub.f32 0.0, %v5133_v60  ;;  %v5038_v63 = vmul.f32 %v12998_v49, %v5022_v11  ;;  %v5009_v19 = vmul.f32 %v13034_v35, %v7916_v48  ;;  %v7918_v33 = vadd.f32 -0.28449672, %v4979_v38 }
 0x25a   : > { %5571 = vmatprep.subr.bf16.mxu0 %v8784_v54  ;;  %v8785_v25 = vld [vmem:[%s15436_s4 + $0x4c] ss:$16 sps:$4 sm:$0xff]   ;;  %vm5150_vm15 = vcmp.ge.f32.partialorder %v12912_v23, 0.0  ;;  %v5040_v45 = vmul.f32 %v13012_v40, %v5024_v58  ;;  %v4946_v47 = vmul.f32 %v13137_v17, %v7901_v51  ;;  %v7903_v30 = vadd.f32 -1.4531521, %v4916_v29 }
 0x25b   : > { %5622 = vmatprep.subr.bf16.mxu1 %v8785_v25  ;;  %8441 = vpow2.f32 %v5107_v10  ;;  %v16240_v54 = vsub.f32 1.0, %v13115_v46  ;;  %v5118_v11 = vmul.f32 %v13099_v8, %v5038_v63  ;;  %v5025_v48 = vadd.f32 0.2548296, %v5009_v19  ;;  %v8786_v25 = vld [vmem:[%s15436_s4 + $0x20] ss:$16 sps:$4 sm:$0xff]  }
 0x25c   : > { %v5011_v38 = vmul.f32 %v13056_v31, %v7918_v33  ;;  %5572 = vmatpush1.bf16.msra.mxu0 %v8786_v25  ;;  %v13188_v40 = vmul.f32 %v13113_v1, %v5040_v45  ;;  %vm5153_vm1 = vcmp.ge.f32.partialorder %v12923_v12, 0.0  ;;  %v4962_v51 = vadd.f32 1.4214138, %v4946_v47  ;;  %v8787_v8 = vld [vmem:[%s15436_s4 + $0x48] ss:$16 sps:$4 sm:$0xff]  }
 0x25d   : > { %v5167_v49 = vsub.f32 0.0, %v16240_v54  ;;  %v4948_v10 = vmul.f32 %v13145_v7, %v7903_v30  ;;  %5623 = vmatpush1.bf16.msra.mxu1 %v8787_v8  ;;  %v8788_v58 = vld [vmem:[%s15436_s4 + $0x4] ss:$16 sps:$4 sm:$0xff]   ;;  %v1191_v29 = vsel %vm983_vm0, 0.0, %v1157_v16  ;;  %v5181_v1 = vsel %vm5149_vm13, %v5133_v60, %v5165_v15  ;;  %v8789_v30 = vld [vmem:[%s15436_s4 + $0x2c] ss:$16 sps:$4 sm:$0xff]  }
 0x25e   : > { %5573 = vmatprep.subr.bf16.mxu0 %v8788_v58  ;;  %v5134_v63 = vsub.f32 1.0, %v5118_v11  ;;  %v5041_v47 = vmul.f32 %v13034_v35, %v5025_v48  ;;  %v5027_v19 = vadd.f32 0.2548296, %v5011_v38  ;;  %5624 = vmatprep.subr.bf16.mxu1 %v8789_v30  ;;  %v5136_v33 = vsub.f32 1.0, %v13188_v40  ;;  %v8790_v16 = vld [vmem:[%s15436_s4] ss:$16 sps:$4 sm:$0xff]  }
 0x25f   : > { %vm5152_vm2 = vcmp.ge.f32.partialorder %v12920_v2, 0.0  ;;  %v4978_v45 = vmul.f32 %v13137_v17, %v4962_v51  ;;  %v4964_v54 = vadd.f32 1.4214138, %v4948_v10  ;;  %v13210_v41 = vsel %vm1064_vm4, %v1191_v29, %v13185_v27  ;;  %v8791_v25 = vld [vmem:[%s15436_s4 + $0x28] ss:$16 sps:$4 sm:$0xff]  }
 0x260   : > { %v5166_v60 = vsub.f32 0.0, %v5134_v63  ;;  %v5121_v35 = vmul.f32 %v13121_v18, %v5041_v47  ;;  %v5043_v15 = vmul.f32 %v13056_v31, %v5027_v19  ;;  %vm5155_vm5 = vcmp.ge.f32.partialorder %v12938_v0, 0.0  ;;  %5574 = vmatpush1.bf16.msra.mxu0 %v8790_v16  ;;  %v13227_v31 = vld [vmem:[%s15435_s3 + $0x23] ss:$0 sm:$0xff]  ;;  %v8794_v40 = vld [vmem:[%s15438_s6 + $0x78] sm:$0xff]  }
 0x261   : > { %v2145_v11 = vadd.f32 %v12855_v4, %v13087_v3  ;;  %v7917_v48 = vadd.f32 -0.28449672, %v4978_v45  ;;  %v4980_v38 = vmul.f32 %v13145_v7, %v4964_v54  ;;  %5625 = vmatpush1.bf16.msra.mxu1 %v8791_v25  ;;  %v3657_v18 = vmul.f32 %v13227_v31, %v13044_v43  ;;  %v8793_v4 = vld [vmem:[%s15435_s3 + $0x9] ss:$0 sm:$0xff]  ;;  %8120 = vmatprep.subr.bf16.mxu0 %v8794_v40  ;;  %v8795_v47 = vld [vmem:[%s15436_s4 + $0xc] ss:$16 sps:$4 sm:$0xff]  }
 0x262   : > { %v2186_v3 = vmul.f32 %v8793_v4, %v13210_v41  ;;  %v5213_v51 = vadd.f32 1.0, %v5181_v1  ;;  %v16241_v10 = vsub.f32 1.0, %v13115_v46  ;;  %v5137_v58 = vsub.f32 1.0, %v5121_v35  ;;  %5626 = vmatprep.subr.bf16.mxu1 %v8795_v47  ;;  %v8796_v16 = vld [vmem:[%s15436_s4 + $0x8] ss:$16 sps:$4 sm:$0xff]  }
 0x263   : > { %v5123_v29 = vmul.f32 %v13155_v53, %v5043_v15  ;;  %v5168_v19 = vsub.f32 0.0, %v5136_v33  ;;  %v5010_v30 = vmul.f32 %v13137_v17, %v7917_v48  ;;  %v7919_v45 = vadd.f32 -0.28449672, %v4980_v38  ;;  %v13258_v48 = vld [vmem:[%s15435_s3 + $0x10] ss:$0 sm:$0xff]  ;;  %v8798_v38 = vld [vmem:[%s15438_s6 + $0xf8] sm:$0xff]  }
 0x264   : > { %v5183_v8 = vsel %vm5151_vm14, %v16241_v10, %v5167_v49  ;;  %v2543_v1 = vadd.f32 %v12871_v22, %v13090_v28  ;;  %v5182_v46 = vsel %vm5150_vm15, %v5134_v63, %v5166_v60  ;;  %v5169_v55 = vsub.f32 0.0, %v5137_v58 }
 0x265   : > { %v5139_v49 = vsub.f32 1.0, %v5123_v29  ;;  %v2202_v54 = vadd.f32 %v2186_v3, %v2145_v11  ;;  %v5215_v35 = vadd.f32 1.0, %v5183_v8  ;;  %v5026_v53 = vadd.f32 0.2548296, %v5010_v30  ;;  %5627 = vmatpush1.bf16.msra.mxu1 %v8796_v16  ;;  %v8440_v23 = vpop.eup %8439  ;;  %v1400_v30 = vpop.permute.xlu0 %1399 }
 0x266   : > { %v5012_v15 = vmul.f32 %v13145_v7, %v7919_v45  ;;  %v2584_v22 = vmul.f32 %v13258_v48, %v13210_v41  ;;  %v5185_v28 = vsel %vm5153_vm1, %v5137_v58, %v5169_v55  ;;  %vm5154_vm6 = vcmp.ge.f32.partialorder %v12966_v26, 0.0  ;;  %8148 = vmatprep.subr.bf16.mxu1 %v8798_v38  ;;  %v13346_v26 = vld [vmem:[%s15435_s3 + $0x12] ss:$0 sm:$0xff] }
 0x267   : > { %v5171_v63 = vsub.f32 0.0, %v5139_v49  ;;  %v3673_v60 = vadd.f32 %v3657_v18, %v12845_v44  ;;  %v2939_v11 = vadd.f32 %v12880_v21, %v13104_v32  ;;  %v5214_v25 = vadd.f32 1.0, %v5182_v46  ;;  %v13278_v44 = vld [vmem:[%s15435_s3 + $0x17] ss:$0 sm:$0xff]  ;;  %v13314_v46 = vld [vmem:[%s15435_s3 + $0x1f] ss:$0 sm:$0xff] }
 0x268   : > { %v5042_v4 = vmul.f32 %v13137_v17, %v5026_v53  ;;  %v5028_v3 = vadd.f32 0.2548296, %v5012_v15  ;;  %v2600_v40 = vadd.f32 %v2584_v22, %v2543_v1  ;;  %v8442_v12 = vpop.eup %8441  ;;  %v5184_v10 = vsel %vm5152_vm2, %v5136_v33, %v5168_v19  ;;  %v13287_v17 = vld [vmem:[%s15435_s3 + $0x1e] ss:$0 sm:$0xff]  ;;  %v13304_v19 = vld [vmem:[%s15435_s3 + $0x18] ss:$0 sm:$0xff] }
 0x269   : > { %vm5156_vm7 = vcmp.ge.f32.partialorder %v12970_v5, 0.0  ;;  %v2979_v21 = vmul.f32 %v13278_v44, %v13210_v41  ;;  %v3332_v32 = vadd.f32 %v12892_v52, %v13131_v39  ;;  %v3373_v2 = vmul.f32 %v13287_v17, %v13210_v41  ;;  %v13297_v52 = vld [vmem:[%s15435_s3 + $0x11] ss:$0 sm:$0xff] }
 0x26a   : > { %v5217_v33 = vadd.f32 1.0, %v5185_v28  ;;  %v5187_v18 = vsel %vm5155_vm5, %v5139_v49, %v5171_v63  ;;  %v5122_v8 = vmul.f32 %v8440_v23, %v5042_v4  ;;  %v5044_v58 = vmul.f32 %v13145_v7, %v5028_v3  ;;  %v13327_v28 = vld [vmem:[%s15435_s3 + $0x25] ss:$0 sm:$0xff]  ;;  %v8805_v3 = vld [vmem:[%s15435_s3 + $0xb] ss:$0 sm:$0xff] }
 0x26b   : > { %v2995_v29 = vadd.f32 %v2979_v21, %v2939_v11  ;;  %v3389_v47 = vadd.f32 %v3373_v2, %v3332_v32  ;;  %v2641_v39 = vmul.f32 %v13297_v52, %v16239_v59  ;;  %v3035_v0 = vmul.f32 %v13304_v19, %v16239_v59  ;;  %v1579_v11 = vpop.permute.xlu1 %1578  ;;  %v13363_v21 = vld [vmem:[%s15435_s3 + $0x20] ss:$0 sm:$0xff] }
 0x26c   : > { %v13309_v7 = vmul.f32 %v5213_v51, %v12930_v37  ;;  %v5138_v45 = vsub.f32 1.0, %v5122_v8  ;;  %v5124_v1 = vmul.f32 %v8442_v12, %v5044_v58  ;;  %v3430_v55 = vmul.f32 %v13314_v46, %v16239_v59  ;;  %v13356_v12 = vld [vmem:[%s15435_s3 + $0x19] ss:$0 sm:$0xff] }
 0x26d   : > { %v13319_v49 = vmul.f32 %v5215_v35, %v12952_v9  ;;  %v5230_v53 = vmul.f32 %v5214_v25, %v12993_v34  ;;  %v5216_v15 = vadd.f32 1.0, %v5184_v10  ;;  %v5219_v16 = vadd.f32 1.0, %v5187_v18 }
 0x26e   : > { %v5233_v37 = vmul.f32 %v5217_v33, %v13004_v13  ;;  %v5170_v51 = vsub.f32 0.0, %v5138_v45  ;;  %v5140_v22 = vsub.f32 1.0, %v5124_v1  ;;  %v3730_v23 = vadd.f32 %v13135_v57, %v3673_v60 }
 0x26f   : > { %v3771_v63 = vmul.f32 %v13327_v28, %v13210_v41  ;;  %v2259_v9 = vadd.f32 %v13153_v24, %v2202_v54  ;;  %v2657_v35 = vadd.f32 %v2641_v39, %v2600_v40  ;;  %v3051_v34 = vadd.f32 %v3035_v0, %v2995_v29  ;;  %v915_v40 = vpop.permute.xlu0 %914  ;;  %v1045_v1 = vpop.permute.xlu1 %1044 }
 0x270   : > { %v5186_v13 = vsel %vm5154_vm6, %v5138_v45, %v5170_v51  ;;  %v5172_v38 = vsub.f32 0.0, %v5140_v22  ;;  %v3446_v25 = vadd.f32 %v3430_v55, %v3389_v47  ;;  %v13336_v57 = vsel %vm1064_vm4, %v13185_v27, %v1400_v30  ;;  %v8810_v55 = vld [vmem:[%s15435_s3 + $0xd] ss:$0 sm:$0xff] }
 0x271   : > { %v5235_v60 = vmul.f32 %v5219_v16, %v13017_v56  ;;  %v5218_v4 = vadd.f32 1.0, %v5186_v13  ;;  %v2300_v24 = vmul.f32 %v8805_v3, %v13336_v57  ;;  %v2698_v54 = vmul.f32 %v13346_v26, %v13336_v57  ;;  %v8812_v16 = vld [vmem:[%s15435_s3 + $0xc] ss:$0 sm:$0xff]  ;;  %v13421_v13 = vld [vmem:[%s15435_s3 + $0x22] ss:$0 sm:$0xff] }
 0x272   : > { %v5232_v27 = vmul.f32 %v5216_v15, %v13001_v61  ;;  %v5188_v56 = vsel %vm5156_vm7, %v5140_v22, %v5172_v38  ;;  %v3091_v10 = vmul.f32 %v13356_v12, %v13336_v57  ;;  %v3487_v32 = vmul.f32 %v13363_v21, %v13336_v57  ;;  %v13400_v22 = vld [vmem:[%s15435_s3 + $0x13] ss:$0 sm:$0xff] }
 0x273   : > { %v5234_v61 = vmul.f32 %v5218_v4, %v13025_v6  ;;  %v5220_v5 = vadd.f32 1.0, %v5188_v56  ;;  %v2316_v2 = vadd.f32 %v2300_v24, %v2259_v9  ;;  %v2714_v33 = vadd.f32 %v2698_v54, %v2657_v35  ;;  %v13377_v6 = vld [vmem:[%s15435_s3 + $0x26] ss:$0 sm:$0xff]  ;;  %v1159_v35 = vpop.permute.xlu0 %1158 }
 0x274   : > { %v5241_v18 = vpack.c.bf16 %v5233_v37, %v13309_v7  ;;  %v3787_v8 = vadd.f32 %v3771_v63, %v3730_v23  ;;  %v3107_v58 = vadd.f32 %v3091_v10, %v3051_v34  ;;  %v3503_v29 = vadd.f32 %v3487_v32, %v3446_v25  ;;  %v16242_v37 = vld [vmem:[#allocation94_spill] sm:$0xff]  ;;  %v13428_v25 = vld [vmem:[%s15435_s3 + $0x21] ss:$0 sm:$0xff] }
 0x275   : > { %v5236_v47 = vmul.f32 %v5220_v5, %v13028_v36  ;;  %v5242_v39 = vpack.c.bf16 %v5234_v61, %v5230_v53  ;;  %v5243_v0 = vpack.c.bf16 %v5235_v60, %v13319_v49  ;;  %v13372_v45 = vsel %vm1064_vm4, %v1400_v30, %v1579_v11  ;;  %v13388_v30 = vld [vmem:[%s15435_s3 + $0x14] ss:$0 sm:$0xff]  ;;  %v13407_v63 = vld [vmem:[%s15435_s3 + $0x1a] ss:$0 sm:$0xff]  ;;  %v13414_v34 = vld [vmem:[%s15435_s3 + $0x1b] ss:$0 sm:$0xff] }
 0x276   : > { %v3828_v7 = vmul.f32 %v13377_v6, %v16239_v59  ;;  %v2414_v36 = vmul.f32 %v8810_v55, %v13372_v45  ;;  %v2812_v49 = vmul.f32 %v13388_v30, %v13372_v45  ;;  %v949_v53 = vsel %vm934_vm3, 0.0, %v915_v40 }
 0x277   : > { %5477 = vmatprep.mubr.bf16.mxu0 %v5242_v39  ;;  %v5244_v15 = vpack.c.bf16 %v5236_v47, %v5232_v27  ;;  %v2357_v51 = vmul.f32 %v8812_v16, %v16242_v37  ;;  %v2755_v23 = vmul.f32 %v13400_v22, %v16242_v37  ;;  %v3147_v9 = vmul.f32 %v13407_v63, %v16242_v37  ;;  %v16244_v39 = vld [vmem:[#allocation122_spill] sm:$0xff]  ;;  %v13467_v16 = vld [vmem:[%s15435_s3 + $0x24] ss:$0 sm:$0xff] }
 0x278   : > { %5478 = vmatmul.mubr.bf16.gmra.mxu0 %v5241_v18  ;;  %v3203_v11 = vmul.f32 %v13414_v34, %v13372_v45  ;;  %v3601_v38 = vmul.f32 %v13421_v13, %v13372_v45  ;;  %v3544_v60 = vmul.f32 %v13428_v25, %v16242_v37  ;;  %v13433_v4 = vsel %vm1064_vm4, %v949_v53, %v1045_v1 }
 0x279   : > { %5526 = vmatprep.mubr.bf16.mxu1 %v5244_v15  ;;  %v16243_v3 = vmov 0   ;;  %v2373_v24 = vadd.f32 %v2357_v51, %v2316_v2  ;;  %v2471_v54 = vmul.f32 %v13063_v20, %v13433_v4  ;;  %v2771_v40 = vadd.f32 %v2755_v23, %v2714_v33  ;;  %v16246_v23 = vld [vmem:[#allocation132_spill] sm:$0xff] }
 0x27a   : > { %5591 = vmatprep.mubr.bf16.mxu0 %v16243_v3  ;;  %5527 = vmatmul.mubr.bf16.gmra.mxu1 %v5243_v0  ;;  %v2868_v27 = vmul.f32 %v13070_v50, %v13433_v4  ;;  %v3163_v56 = vadd.f32 %v3147_v9, %v3107_v58  ;;  %v3260_v10 = vmul.f32 %v13109_v14, %v13433_v4  ;;  %v1192_v33 = vsel %vm983_vm0, 0.0, %v1159_v35  ;;  %v1223_v58 = vpop.permute.xlu1 %1222 }
 0x27b   : > { %v3560_v32 = vadd.f32 %v3544_v60, %v3503_v29  ;;  %5644 = vmatprep.mubr.bf16.mxu1 %v16243_v3  ;;  %v3844_v61 = vadd.f32 %v3828_v7, %v3787_v8  ;;  %v2430_v5 = vadd.f32 %v2414_v36, %v2373_v24  ;;  %v2828_v18 = vadd.f32 %v2812_v49, %v2771_v40  ;;  %v13451_v29 = vld [vmem:[%s15435_s3 + $0x27] ss:$0 sm:$0xff]  ;;  %v1402_v36 = vpop.permute.xlu0 %1401 }
 0x27c   : > { %v3658_v2 = vmul.f32 %v13227_v31, %v13433_v4  ;;  %v3219_v47 = vadd.f32 %v3203_v11, %v3163_v56  ;;  %v2528_v0 = vmul.f32 %v12867_v42, %v16244_v39  ;;  %v3885_v8 = vmul.f32 %v13451_v29, %v13336_v57  ;;  %v13460_v42 = vld [vmem:[%s15435_s3 + $0x1d] ss:$0 sm:$0xff]  ;;  %v13487_v56 = vld [vmem:[%s15435_s3 + $0x28] ss:$0 sm:$0xff] }
 0x27d   : > { %v3617_v20 = vadd.f32 %v3601_v38, %v3560_v32  ;;  %v2487_v1 = vadd.f32 %v2471_v54, %v2430_v5  ;;  %v2884_v7 = vadd.f32 %v2868_v27, %v2828_v18  ;;  %v2924_v55 = vmul.f32 %v12876_v62, %v16244_v39  ;;  %v16245_v62 = vld [vmem:[#allocation131_spill] sm:$0xff]  ;;  %v16247_v38 = vld [vmem:[#allocation114_spill] sm:$0xff] }
 0x27e   : > { %v3276_v49 = vadd.f32 %v3260_v10, %v3219_v47  ;;  %v3317_v15 = vmul.f32 %v13460_v42, %v16244_v39  ;;  %v3715_v51 = vmul.f32 %v13467_v16, %v16244_v39  ;;  %v13473_v9 = vadd.f32 %v16246_v23, %v16245_v62  ;;  %v1581_v27 = vpop.permute.xlu1 %1580  ;;  %v16248_v10 = vld [vmem:[#allocation138_spill] sm:$0xff] }
 0x27f   : > { %v3674_v53 = vadd.f32 %v3658_v2, %v3617_v20  ;;  %v13476_v35 = vsel %vm1064_vm4, %v1192_v33, %v1223_v58  ;;  %v2544_v11 = vadd.f32 %v2528_v0, %v2487_v1  ;;  %v2940_v24 = vadd.f32 %v2924_v55, %v2884_v7  ;;  %v16249_v33 = vld [vmem:[#allocation118_spill] sm:$0xff] }
 0x280   : > { %5592 = vmatmul.mubr.bf16.vlgmr.msra.gmra.mxu0 %v16247_v38  ;;  %v2585_v60 = vmul.f32 %v13258_v48, %v13476_v35  ;;  %v2980_v54 = vmul.f32 %v13278_v44, %v13476_v35  ;;  %v3333_v40 = vadd.f32 %v3317_v15, %v3276_v49  ;;  %v3941_v32 = vmul.f32 %v13487_v56, %v16248_v10 }
 0x281   : > { %5601 = vmatprep.mubr.bf16.mxu0 %v16243_v3  ;;  %v3374_v5 = vmul.f32 %v13287_v17, %v13476_v35  ;;  %v3731_v48 = vadd.f32 %v3715_v51, %v3674_v53  ;;  %v3772_v18 = vmul.f32 %v13327_v28, %v13476_v35  ;;  %v13496_v2 = vadd.f32 %v3885_v8, %v3844_v61  ;;  %v917_v53 = vpop.permute.xlu0 %916  ;;  %v8822_v51 = vld [vmem:[%s15438_s6 + $0x38] sm:$0xff]  }
 0x282   : > { %5645 = vmatmul.mubr.bf16.vlgmr.msra.gmra.mxu1 %v16247_v38  ;;  %v2601_v47 = vadd.f32 %v2585_v60, %v2544_v11  ;;  %v2996_v20 = vadd.f32 %v2980_v54, %v2940_v24  ;;  %v2642_v0 = vmul.f32 %v13297_v52, %v16249_v33  ;;  %v3036_v55 = vmul.f32 %v13304_v19, %v16249_v33  ;;  %v8823_v60 = vld [vmem:[%s15438_s6 + $0xb8] sm:$0xff]   ;;  %v1047_v10 = vpop.permute.xlu1 %1046 }
 0x283   : > { %5654 = vmatprep.mubr.bf16.mxu1 %v16243_v3  ;;  %v3390_v1 = vadd.f32 %v3374_v5, %v3333_v40  ;;  %v3788_v7 = vadd.f32 %v3772_v18, %v3731_v48  ;;  %v3431_v49 = vmul.f32 %v13314_v46, %v16249_v33  ;;  %v3942_v61 = vmul.f32 %v13487_v56, %v16242_v37 }
 0x284   : > { %v2658_v8 = vadd.f32 %v2642_v0, %v2601_v47  ;;  %v3829_v15 = vmul.f32 %v13377_v6, %v16249_v33  ;;  %v13510_v52 = vsel %vm1064_vm4, %v1223_v58, %v1402_v36  ;;  %8121 = vmatpush3.bf16.msra.mxu0 %v8822_v51  ;;  %v3052_v62 = vadd.f32 %v3036_v55, %v2996_v20  ;;  %v16250_v47 = vld [vmem:[#allocation124_spill] sm:$0xff]  ;;  %v8825_v0 = vld [vmem:[%s15438_s6 + $0xf0] sm:$0xff]  }
 0x285   : > { %v3447_v23 = vadd.f32 %v3431_v49, %v3390_v1  ;;  %v2699_v11 = vmul.f32 %v13346_v26, %v13510_v52  ;;  %v3092_v38 = vmul.f32 %v13356_v12, %v13510_v52  ;;  %8149 = vmatpush3.bf16.msra.mxu1 %v8823_v60  ;;  %v3488_v24 = vmul.f32 %v13363_v21, %v13510_v52  ;;  %v8824_v26 = vld [vmem:[%s15438_s6 + $0x70] sm:$0xff]   ;;  %v16251_v1 = vld [vmem:[#allocation120_spill] sm:$0xff]  ;;  %v16252_v60 = vld [vmem:[#allocation115_spill] sm:$0xff] }
 0x286   : > { %v3845_v58 = vadd.f32 %v3829_v15, %v3788_v7  ;;  %v3886_v54 = vmul.f32 %v13451_v29, %v13510_v52  ;;  %v950_v40 = vsel %vm934_vm3, 0.0, %v917_v53  ;;  %8122 = vmatprep.subr.bf16.mxu0 %v8824_v26  ;;  %v13531_v18 = vsel %vm1064_vm4, %v1402_v36, %v1581_v27  ;;  %8150 = vmatprep.subr.bf16.mxu1 %v8825_v0  ;;  %v1161_v15 = vpop.permute.xlu0 %1160  ;;  %v8827_v51 = vld [vmem:[%s15438_s6 + $0x30] sm:$0xff]  }
 0x287   : > { %v2715_v5 = vadd.f32 %v2699_v11, %v2658_v8  ;;  %v3108_v48 = vadd.f32 %v3092_v38, %v3052_v62  ;;  %v2756_v20 = vmul.f32 %v13400_v22, %v16250_v47  ;;  %v3504_v7 = vadd.f32 %v3488_v24, %v3447_v23  ;;  %v13548_v22 = vld [vmem:[%s15435_s3 + $0x29] ss:$0 sm:$0xff]  ;;  %v8829_v0 = vld [vmem:[%s15438_s6 + $0xb0] sm:$0xff]  }
 0x288   : > { %5602 = vmatmul.mubr.bf16.gmra.mxu0 %v16251_v1  ;;  %v3902_v55 = vadd.f32 %v3886_v54, %v3845_v58  ;;  %v2813_v49 = vmul.f32 %v13388_v30, %v13531_v18  ;;  %v3204_v53 = vmul.f32 %v13414_v34, %v13531_v18  ;;  %v3602_v36 = vmul.f32 %v13421_v13, %v13531_v18  ;;  %v8828_v38 = vld [vmem:[%s15438_s6 + $0x68] sm:$0xff]  }
 0x289   : > { %v4000_v27 = vmul.f32 %v13548_v22, %v13531_v18  ;;  %v3148_v8 = vmul.f32 %v13407_v63, %v16250_v47  ;;  %v3545_v30 = vmul.f32 %v13428_v25, %v16250_v47  ;;  %8123 = vmatpush3.bf16.msra.mxu0 %v8827_v51  ;;  %v3943_v62 = vmul.f32 %v13487_v56, %v16250_v47 }
 0x28a   : > { %5655 = vmatmul.mubr.bf16.gmra.mxu1 %v16251_v1  ;;  %v13563_v23 = vsel %vm1064_vm4, %v950_v40, %v1047_v10  ;;  %v2772_v11 = vadd.f32 %v2756_v20, %v2715_v5  ;;  %8124 = vmatprep.subr.bf16.mxu0 %v8828_v38  ;;  %v3998_v58 = vmul.f32 %v13548_v22, %v16252_v60  ;;  %v1193_v20 = vsel %vm983_vm0, 0.0, %v1161_v15  ;;  %v1225_v1 = vpop.permute.xlu1 %1224  ;;  %v8832_v15 = vld [vmem:[%s15438_s6 + $0x60] sm:$0xff]  }
 0x28b   : > { %v3957_v24 = vadd.f32 %v3941_v32, %v13473_v9  ;;  %v3164_v54 = vadd.f32 %v3148_v8, %v3108_v48  ;;  %v3561_v26 = vadd.f32 %v3545_v30, %v3504_v7  ;;  %8151 = vmatpush3.bf16.msra.mxu1 %v8829_v0  ;;  %v3659_v10 = vmul.f32 %v13227_v31, %v13563_v23  ;;  %v8830_v9 = vld [vmem:[%s15438_s6 + $0xe8] sm:$0xff]   ;;  %v16253_v8 = vld [vmem:[#allocation129_spill] sm:$0xff]  ;;  %v8835_v38 = vld [vmem:[%s15438_s6 + $0xe0] sm:$0xff]  }
 0x28c   : > { %v13574_v40 = vadd.f32 %v2813_v49, %v2772_v11  ;;  %v3959_v5 = vadd.f32 %v3943_v62, %v3902_v55  ;;  %8152 = vmatprep.subr.bf16.mxu1 %v8830_v9  ;;  %v3999_v32 = vmul.f32 %v13548_v22, %v13372_v45  ;;  %v3958_v48 = vadd.f32 %v3942_v61, %v13496_v2  ;;  %v8831_v31 = vld [vmem:[%s15438_s6 + $0x28] sm:$0xff]   ;;  %v1404_v11 = vpop.permute.xlu0 %1403 }
 0x28d   : > { %v13585_v7 = vadd.f32 %v3204_v53, %v3164_v54  ;;  %v3618_v49 = vadd.f32 %v3602_v36, %v3561_v26  ;;  %8125 = vmatpush3.bf16.msra.mxu0 %v8831_v31  ;;  %v3716_v30 = vmul.f32 %v13467_v16, %v16253_v8  ;;  %v13596_v2 = vsel %vm1064_vm4, %v1193_v20, %v1225_v1  ;;  %v8833_v61 = vld [vmem:[%s15438_s6 + $0xa8] sm:$0xff]   ;;  %v16254_v26 = vld [vmem:[#allocation123_spill] sm:$0xff] }
 0x28e   : > { %v4016_v55 = vadd.f32 %v4000_v27, %v3959_v5  ;;  %8126 = vmatprep.subr.bf16.mxu0 %v8832_v15  ;;  %v4014_v53 = vadd.f32 %v3998_v58, %v3957_v24  ;;  %v13604_v36 = vld [vmem:[%s15435_s3 + $0x2a] ss:$0 sm:$0xff]  ;;  %v4015_v60 = vadd.f32 %v3999_v32, %v3958_v48  ;;  %v3773_v54 = vmul.f32 %v13327_v28, %v13596_v2  ;;  %v8838_v28 = vld [vmem:[%s15438_s6 + $0xa0] sm:$0xff]   ;;  %v8839_v9 = vld [vmem:[%s15435_s3 + $0x2b] ss:$0 sm:$0xff] }
 0x28f   : > { %v3675_v51 = vadd.f32 %v3659_v10, %v3618_v49  ;;  %8153 = vmatpush3.bf16.msra.mxu1 %v8833_v61  ;;  %v4055_v27 = vmul.f32 %v13604_v36, %v13044_v43  ;;  %v4057_v62 = vmul.f32 %v13604_v36, %v13563_v23  ;;  %v4056_v58 = vmul.f32 %v13604_v36, %v13433_v4  ;;  %v8836_v43 = vld [vmem:[%s15438_s6 + $0x20] sm:$0xff]   ;;  %v8837_v10 = vld [vmem:[%s15438_s6 + $0x58] sm:$0xff]   ;;  %v8842_v61 = vld [vmem:[%s15438_s6 + $0x50] sm:$0xff]  }
 0x290   : > { %8154 = vmatprep.subr.bf16.mxu1 %v8835_v38  ;;  %v3830_v0 = vmul.f32 %v13377_v6, %v16254_v26  ;;  %v13626_v4 = vsel %vm1064_vm4, %v1225_v1, %v1404_v11  ;;  %v4114_v6 = vmul.f32 %v8839_v9, %v16253_v8  ;;  %v8840_v32 = vld [vmem:[%s15438_s6 + $0xd8] sm:$0xff]   ;;  %v16255_v1 = vld [vmem:[#allocation117_spill] sm:$0xff] }
 0x291   : > { %v3732_v24 = vadd.f32 %v3716_v30, %v3675_v51  ;;  %8127 = vmatpush3.bf16.msra.mxu0 %v8836_v43  ;;  %v4073_v20 = vadd.f32 %v4057_v62, %v4016_v55  ;;  %v4071_v48 = vadd.f32 %v4055_v27, %v4014_v53  ;;  %v4112_v49 = vmul.f32 %v8839_v9, %v16255_v1  ;;  %v8841_v55 = vld [vmem:[%s15438_s6 + $0x18] sm:$0xff]   ;;  %v8844_v27 = vld [vmem:[%s15435_s3 + $0x2c] ss:$0 sm:$0xff] }
 0x292   : > { %8128 = vmatprep.subr.bf16.mxu0 %v8837_v10  ;;  %v4072_v31 = vadd.f32 %v4056_v58, %v4015_v60  ;;  %v4113_v30 = vmul.f32 %v8839_v9, %v16244_v39  ;;  %v3887_v51 = vmul.f32 %v13451_v29, %v13626_v4  ;;  %v8843_v53 = vld [vmem:[%s15438_s6 + $0x98] sm:$0xff]   ;;  %v4171_v62 = vmul.f32 %v8844_v27, %v13596_v2  ;;  %v8845_v29 = vld [vmem:[%s15438_s6 + $0xd0] sm:$0xff]  }
 0x293   : > { %v3789_v5 = vadd.f32 %v3773_v54, %v3732_v24  ;;  %8155 = vmatpush3.bf16.msra.mxu1 %v8838_v28  ;;  %v4130_v39 = vadd.f32 %v4114_v6, %v4073_v20  ;;  %v4128_v38 = vadd.f32 %v4112_v49, %v4071_v48  ;;  %v4169_v60 = vmul.f32 %v8844_v27, %v13210_v41  ;;  %v8846_v54 = vld [vmem:[%s15438_s6 + $0x10] sm:$0xff]   ;;  %v8847_v28 = vld [vmem:[%s15438_s6 + $0x48] sm:$0xff]  }
 0x294   : > { %8156 = vmatprep.subr.bf16.mxu1 %v8840_v32  ;;  %v4129_v58 = vadd.f32 %v4113_v30, %v4072_v31  ;;  %v4170_v24 = vmul.f32 %v8844_v27, %v13476_v35  ;;  %v8848_v41 = vld [vmem:[%s15438_s6 + $0x90] sm:$0xff]   ;;  %v8849_v20 = vld [vmem:[%s15435_s3 + $0x2d] ss:$0 sm:$0xff]  ;;  %v13685_v31 = vmul.f32 0.0, %v13604_v36 }
 0x295   : > { %8129 = vmatpush3.bf16.msra.mxu0 %v8841_v55  ;;  %v3846_v15 = vadd.f32 %v3830_v0, %v3789_v5  ;;  %v16256_v0 = vld [vmem:[#allocation130_spill] sm:$0xff]  ;;  %v1583_v5 = vpop.permute.xlu1 %1582  ;;  %v4187_v35 = vadd.f32 %v4171_v62, %v4130_v39  ;;  %v4228_v6 = vmul.f32 %v8849_v20, %v16254_v26  ;;  %v4185_v32 = vadd.f32 %v4169_v60, %v4128_v38  ;;  %v8851_v49 = vld [vmem:[%s15438_s6 + $0x8] sm:$0xff]  }
 0x296   : > { %8130 = vmatprep.subr.bf16.mxu0 %v8842_v61  ;;  %v3944_v10 = vmul.f32 %v13487_v56, %v16256_v0  ;;  %v8850_v56 = vld [vmem:[%s15438_s6 + $0xc8] sm:$0xff]   ;;  %v4186_v48 = vadd.f32 %v4170_v24, %v4129_v58  ;;  %v13679_v1 = vsel %vm1064_vm4, %v1404_v11, %v1583_v5  ;;  %16257 = vst [vmem:[#allocation134_spill] sm:$0xff] %v13685_v31  ;;  %v8858_v5 = vld [vmem:[%s15436_s4 + $0xe4] ss:$16 sps:$4 sm:$0xff]  }
 0x297   : > { %8157 = vmatpush3.bf16.msra.mxu1 %v8843_v53  ;;  %v3903_v43 = vadd.f32 %v3887_v51, %v3846_v15  ;;  %v4001_v55 = vmul.f32 %v13548_v22, %v13679_v1  ;;  %v8852_v15 = vld [vmem:[%s15438_s6 + $0x40] sm:$0xff]   ;;  %v8853_v11 = vld [vmem:[%s15435_s3 + $0x2e] ss:$0 sm:$0xff]  ;;  %v4226_v22 = vmul.f32 %v8849_v20, %v16239_v59  ;;  %v4227_v53 = vmul.f32 %v8849_v20, %v16249_v33  ;;  %v8857_v24 = vld [vmem:[%s15435_s3 + $0x2f] ss:$0 sm:$0xff] }
 0x298   : > { %8158 = vmatprep.subr.bf16.mxu1 %v8845_v29  ;;  %v4283_v51 = vmul.f32 %v8853_v11, %v13336_v57  ;;  %v4284_v61 = vmul.f32 %v8853_v11, %v13510_v52  ;;  %v8854_v36 = vld [vmem:[%s15438_s6 + $0x88] sm:$0xff]   ;;  %v4244_v39 = vadd.f32 %v4228_v6, %v4187_v35  ;;  %v4285_v62 = vmul.f32 %v8853_v11, %v13626_v4  ;;  %v8855_v57 = vld [vmem:[%s15438_s6 + $0xc0] sm:$0xff]  }
 0x299   : > { %8131 = vmatpush3.bf16.msra.mxu0 %v8846_v54  ;;  %v3960_v30 = vadd.f32 %v3944_v10, %v3903_v43  ;;  %v13703_v29 = vmul.f32 0.0, %v8839_v9  ;;  %v8856_v52 = vld [vmem:[%s15438_s6] sm:$0xff]   ;;  %v4242_v60 = vadd.f32 %v4226_v22, %v4185_v32  ;;  %v4243_v58 = vadd.f32 %v4227_v53, %v4186_v48 }
 0x29a   : > { %8132 = vmatprep.subr.bf16.mxu0 %v8847_v28  ;;  %v4340_v9 = vmul.f32 %v8857_v24, %v16242_v37  ;;  %v4341_v54 = vmul.f32 %v8857_v24, %v16250_v47  ;;  %v13716_v43 = vmul.f32 0.0, %v8844_v27  ;;  %v8859_v28 = vld [vmem:[%s15438_s6 + $0x80] sm:$0xff]   ;;  %v8860_v37 = vld [vmem:[%s15435_s3 + $0x30] ss:$0 sm:$0xff]  ;;  %v4301_v6 = vadd.f32 %v4285_v62, %v4244_v39 }
 0x29b   : > { %8159 = vmatpush3.bf16.msra.mxu1 %v8848_v41  ;;  %16258 = vst [vmem:[#allocation135_spill] sm:$0xff] %v13703_v29  ;;  %v4017_v38 = vadd.f32 %v4001_v55, %v3960_v30  ;;  %v4299_v41 = vadd.f32 %v4283_v51, %v4242_v60  ;;  %v4300_v35 = vadd.f32 %v4284_v61, %v4243_v58  ;;  %v13740_v61 = vmul.f32 0.0, %v8857_v24 }
 0x29c   : > { %8160 = vmatprep.subr.bf16.mxu1 %v8850_v56  ;;  %16259 = vst [vmem:[#allocation137_spill] sm:$0xff] %v13716_v43  ;;  %v4397_v47 = vmul.f32 %v8860_v37, %v13372_v45  ;;  %v4398_v27 = vmul.f32 %v8860_v37, %v13531_v18  ;;  %v13730_v56 = vmul.f32 0.0, %v8849_v20  ;;  %v4342_v32 = vmul.f32 %v8857_v24, %v16256_v0 }
 0x29d   : > { %8133 = vmatpush3.bf16.msra.mxu0 %v8851_v49  ;;  %v4074_v10 = vadd.f32 %v13685_v31, %v4017_v38  ;;  %v8861_v49 = vld [vmem:[%s15436_s4 + $0xec] ss:$16 sps:$4 sm:$0xff]   ;;  %v4356_v30 = vadd.f32 %v4340_v9, %v4299_v41  ;;  %v4357_v55 = vadd.f32 %v4341_v54, %v4300_v35  ;;  %16262 = vst [vmem:[#allocation34_spill] sm:$0xff] %v13740_v61  ;;  %v13746_v39 = vmul.f32 0.0, %v8860_v37 }
 0x29e   : > { %8134 = vmatprep.subr.bf16.mxu0 %v8852_v15  ;;  %16260 = vst [vmem:[#allocation140_spill] sm:$0xff] %v13730_v56  ;;  %v13737_v15 = vmul.f32 0.0, %v8853_v11  ;;  %v4399_v22 = vmul.f32 %v8860_v37, %v13679_v1 }
 0x29f   : > { %8161 = vmatpush3.bf16.msra.mxu1 %v8854_v36  ;;  %v4131_v48 = vadd.f32 %v13703_v29, %v4074_v10  ;;  %v4413_v51 = vadd.f32 %v4397_v47, %v4356_v30  ;;  %v4414_v18 = vadd.f32 %v4398_v27, %v4357_v55  ;;  %v4358_v36 = vadd.f32 %v4342_v32, %v4301_v6  ;;  %v7952_v47 = vld [vmem:[%s15433_s1 + $0x2] ss:$0 sm:$0xff]  ;;  %v16267_v55 = vld [vmem:[#allocation4_spill] sm:$0xff] }
 0x2a0   : > { %8162 = vmatprep.subr.bf16.mxu1 %v8855_v57  ;;  %16261 = vst [vmem:[#allocation9_spill] sm:$0xff] %v13737_v15  ;;  %16264 = vst [vmem:[#allocation24_spill] sm:$0xff] %v13746_v39  ;;  %v16266_v6 = vld [vmem:[#allocation3_spill] sm:$0xff] }
 0x2a1   : > { %8135 = vmatpush3.bf16.msra.mxu0 %v8856_v52  ;;  %v4188_v45 = vadd.f32 %v13716_v43, %v4131_v48  ;;  %v13744_v53 = vpack.c.bf16 %v4414_v18, %v4413_v51  ;;  %v4415_v38 = vadd.f32 %v4399_v22, %v4358_v36 }
 0x2a2   : > { %6223 = vmatprep.subr.bf16.mxu0 %v8858_v5 }
 0x2a3   : > { %8163 = vmatpush3.bf16.msra.mxu1 %v8859_v28  ;;  %v4245_v20 = vadd.f32 %v13730_v56, %v4188_v45  ;;  %16263 = vst [vmem:[#allocation11_spill] sm:$0xff] %v13744_v53 }
 0x2a4   : > { %6276 = vmatprep.subr.bf16.mxu1 %v8861_v49 }
 0x2a5   : > { %v4302_v62 = vadd.f32 %v13737_v15, %v4245_v20  ;;  %v13900_v15 = vmul.f32 0.0, %v13287_v17 }
 0x2a7   : > { %v4359_v11 = vadd.f32 %v13740_v61, %v4302_v62 }
 0x2a9   : > { %v4416_v57 = vadd.f32 %v13746_v39, %v4359_v11 }
 0x2ab   : > { %v13751_v52 = vpack.c.bf16 %v4416_v57, %v4415_v38  ;;  %v2869_v57 = vmul.f32 %v13070_v50, %v13563_v23 }
 0x2ad   : > { %16265 = vst [vmem:[#allocation16_spill] sm:$0xff] %v13751_v52 }
 0x301   : > { %v8080_v60 = vpop.f32.mrf.mxu0 }
 0x303   : > { %v8081_v58 = vpop.f32.mrf.mxu0 }
 0x304   : > { %v8082_v54 = vadd.f32 %v8081_v58, %v8080_v60 }
 0x305   : > { %v8083_v24 = vpop.f32.mrf.mxu0 }
 0x306   : > { %v8108_v9 = vpop.f32.mrf.mxu1 }
 0x307   : > { %v8084_v5 = vpop.f32.mrf.mxu0 }
 0x308   : > { %v8109_v10 = vpop.f32.mrf.mxu1  ;;  %v8085_v37 = vadd.f32 %v8084_v5, %v8083_v24  ;;  %v16268_v5 = vld [vmem:[#allocation5_spill] sm:$0xff] }
 0x309   : > { %v8110_v28 = vadd.f32 %v8109_v10, %v8108_v9 }
 0x30a   : > { %v8111_v41 = vpop.f32.mrf.mxu1 }
 0x30b   : > { %v5521_v35 = vadd.f32 %v8110_v28, %v8082_v54 }
 0x30c   : > { %v8112_v27 = vpop.f32.mrf.mxu1 }
 0x30d   : > { %v5539_v32 = vadd.f32 %v5521_v35, %v16266_v6  ;;  %v8113_v48 = vadd.f32 %v8112_v27, %v8111_v41  ;;  %v16269_v35 = vld [vmem:[#allocation125_spill] sm:$0xff]  ;;  %v2885_v27 = vadd.f32 %v2869_v57, %v13574_v40 }
 0x30e   : > { %v8862_v6 = vld [vmem:[%s15435_s3 + $0x16] ss:$0 sm:$0xff] }
 0x30f   : > { %v5549_v49 = vadd.f32 %v7952_v47, %v5539_v32  ;;  %v5524_v30 = vadd.f32 %v8113_v48, %v8085_v37  ;;  %v2925_v50 = vmul.f32 %v8862_v6, %v16253_v8 }
 0x311   : > { %5553 = vst [vmem:[%s13761_s27] sm:$0xff] %v5549_v49  ;;  %v5540_v45 = vadd.f32 %v5524_v30, %v16267_v55 }
 0x313   : > { %v5550_v51 = vadd.f32 %v7952_v47, %v5540_v45  ;;  %v16270_v45 = vld [vmem:[#allocation126_spill] sm:$0xff] }
 0x315   : > { %5554 = vst [vmem:[%s13761_s27 + $0x8] sm:$0xff] %v5550_v51 }
 0x338   : > { %v8086_v18 = vpop.f32.mrf.mxu0 }
 0x33a   : > { %v8114_v20 = vpop.f32.mrf.mxu1  ;;  %v8087_v36 = vpop.f32.mrf.mxu0 }
 0x33b   : > { %v8088_v22 = vadd.f32 %v8087_v36, %v8086_v18  ;;  %v16271_v18 = vld [vmem:[#allocation127_spill] sm:$0xff]  ;;  %v3261_v36 = vmul.f32 %v13109_v14, %v13563_v23 }
 0x33c   : > { %v8115_v62 = vpop.f32.mrf.mxu1  ;;  %v8089_v11 = vpop.f32.mrf.mxu0 }
 0x33d   : > { %v8116_v38 = vadd.f32 %v8115_v62, %v8114_v20 }
 0x33e   : > { %v8117_v60 = vpop.f32.mrf.mxu1  ;;  %v8090_v58 = vpop.f32.mrf.mxu0 }
 0x33f   : > { %v5529_v24 = vadd.f32 %v8116_v38, %v8088_v22  ;;  %v8091_v9 = vadd.f32 %v8090_v58, %v8089_v11  ;;  %v16272_v22 = vld [vmem:[#allocation6_spill] sm:$0xff]  ;;  %v16273_v38 = vld [vmem:[#allocation128_spill] sm:$0xff]  ;;  %v2981_v58 = vmul.f32 %v13278_v44, %v13596_v2  ;;  %v3277_v44 = vadd.f32 %v3261_v36, %v13585_v7 }
 0x340   : > { %v8118_v54 = vpop.f32.mrf.mxu1  ;;  %v5593_v10 = vpop.f32.mrf.mxu0 }
 0x341   : > { %v5541_v28 = vadd.f32 %v5529_v24, %v16268_v5  ;;  %v8119_v41 = vadd.f32 %v8118_v54, %v8117_v60  ;;  %v13770_v37 = vadd.f32 %v5593_v10, %v16269_v35  ;;  %v2941_v60 = vadd.f32 %v2925_v50, %v2885_v27 }
 0x342   : > { %v5646_v32 = vpop.f32.mrf.mxu1  ;;  %v5595_v48 = vpop.f32.mrf.mxu0 }
 0x343   : > { %v5551_v49 = vadd.f32 %v7952_v47, %v5541_v28  ;;  %v5532_v30 = vadd.f32 %v8119_v41, %v8091_v9  ;;  %v13778_v55 = vmul.f32 0.70710677, %v13770_v37  ;;  %v13781_v51 = vadd.f32 %v5646_v32, %v16270_v45 }
 0x344   : > { %v13784_v20 = vadd.f32 %v5595_v48, %v16271_v18  ;;  %v5648_v40 = vpop.f32.mrf.mxu1  ;;  %v5597_v28 = vpop.f32.mrf.mxu0  ;;  %v3318_v41 = vmul.f32 %v13460_v42, %v16253_v8  ;;  %v2997_v50 = vadd.f32 %v2981_v58, %v2941_v60  ;;  %v3037_v32 = vmul.f32 %v13304_v19, %v16254_v26 }
 0x345   : > { %5555 = vst [vmem:[%s13761_s27 + $0x10] sm:$0xff] %v5551_v49  ;;  %v5542_v62 = vadd.f32 %v5532_v30, %v16272_v22  ;;  %v13791_v11 = vand.u32 2147483647, %v13778_v55  ;;  %v13794_v57 = vadd.f32 %v5648_v40, %v16273_v38  ;;  %v13799_v24 = vmul.f32 0.70710677, %v13781_v51 }
 0x346   : > { %v13802_v9 = vmul.f32 0.70710677, %v13784_v20  ;;  %v5650_v6 = vpop.f32.mrf.mxu1  ;;  %v5599_v8 = vpop.f32.mrf.mxu0  ;;  %v3334_v36 = vadd.f32 %v3318_v41, %v3277_v44  ;;  %v3375_v22 = vmul.f32 %v13287_v17, %v13596_v2  ;;  %v13829_v19 = vadd.f32 %v5597_v28, %v16269_v35 }
 0x347   : > { %v5552_v14 = vadd.f32 %v7952_v47, %v5542_v62  ;;  %v5697_v23 = vmul.f32 0.3275911, %v13791_v11  ;;  %v13806_v54 = vmul.f32 0.70710677, %v13794_v57  ;;  %v13809_v10 = vand.u32 2147483647, %v13799_v24 }
 0x348   : > { %v13812_v5 = vand.u32 2147483647, %v13802_v9  ;;  %v5652_v62 = vpop.f32.mrf.mxu1  ;;  %v3093_v58 = vmul.f32 %v13356_v12, %v13626_v4  ;;  %v13840_v44 = vmul.f32 0.70710677, %v13829_v19  ;;  %v3391_v12 = vadd.f32 %v3375_v22, %v3334_v36 }
 0x349   : > { %5556 = vst [vmem:[%s13761_s27 + $0x18] sm:$0xff] %v5552_v14  ;;  %v5713_v27 = vadd.f32 1.0, %v5697_v23  ;;  %v13819_v47 = vand.u32 2147483647, %v13806_v54  ;;  %v5699_v48 = vmul.f32 0.3275911, %v13809_v10  ;;  %v3053_v14 = vadd.f32 %v3037_v32, %v2997_v50 }
 0x34a   : > { %v5698_v49 = vmul.f32 0.3275911, %v13812_v5  ;;  %v13834_v23 = vadd.f32 %v5650_v6, %v16270_v45  ;;  %v13843_v2 = vadd.f32 %v5652_v62, %v16273_v38  ;;  %v3432_v6 = vmul.f32 %v13314_v46, %v16254_v26 }
 0x34b   : > { %8443 = vrcp.f32 %v5713_v27  ;;  %v5700_v7 = vmul.f32 0.3275911, %v13819_v47  ;;  %v5715_v30 = vadd.f32 1.0, %v5699_v48  ;;  %v13837_v27 = vadd.f32 %v5599_v8, %v16271_v18 }
 0x34c   : > { %v5714_v40 = vadd.f32 1.0, %v5698_v49  ;;  %v13846_v41 = vmul.f32 0.70710677, %v13834_v23  ;;  %v13854_v50 = vand.u32 2147483647, %v13840_v44  ;;  %v3109_v32 = vadd.f32 %v3093_v58, %v3053_v14 }
 0x34d   : > { %8445 = vrcp.f32 %v5715_v30  ;;  %v5716_v60 = vadd.f32 1.0, %v5700_v7  ;;  %v13849_v28 = vmul.f32 0.70710677, %v13837_v27  ;;  %v3149_v48 = vmul.f32 %v13407_v63, %v16256_v0 }
 0x34e   : > { %8447 = vrcp.f32 %v5714_v40  ;;  %v13859_v49 = vand.u32 2147483647, %v13846_v41  ;;  %v5701_v30 = vmul.f32 0.3275911, %v13854_v50  ;;  %v13866_v40 = vmul.f32 0.70710677, %v13843_v2 }
 0x34f   : > { %8449 = vrcp.f32 %v5716_v60  ;;  %v13862_v7 = vand.u32 2147483647, %v13849_v28  ;;  %v3489_v22 = vmul.f32 %v13363_v21, %v13626_v4  ;;  %v3448_v14 = vadd.f32 %v3432_v6, %v3391_v12 }
 0x350   : > { %v5703_v8 = vmul.f32 0.3275911, %v13859_v49  ;;  %v5717_v62 = vadd.f32 1.0, %v5701_v30  ;;  %v13873_v63 = vand.u32 2147483647, %v13866_v40  ;;  %v3165_v60 = vadd.f32 %v3149_v48, %v3109_v32 }
 0x351   : > { %v5702_v36 = vmul.f32 0.3275911, %v13862_v7  ;;  %v3205_v58 = vmul.f32 %v13414_v34, %v13679_v1  ;;  %v5905_v59 = vsub.f32 0.0, %v13791_v11  ;;  %v5907_v30 = vsub.f32 0.0, %v13809_v10  ;;  %v8863_v48 = vld [vmem:[%s15435_s3 + $0x1c] ss:$0 sm:$0xff] }
 0x352   : > { %v5719_v26 = vadd.f32 1.0, %v5703_v8  ;;  %8451 = vrcp.f32 %v5717_v62  ;;  %v5704_v53 = vmul.f32 0.3275911, %v13873_v63  ;;  %v5906_v12 = vsub.f32 0.0, %v13812_v5 }
 0x353   : > { %v5718_v52 = vadd.f32 1.0, %v5702_v36  ;;  %v3505_v34 = vadd.f32 %v3489_v22, %v3448_v14  ;;  %v3262_v8 = vmul.f32 0.0, %v8863_v48  ;;  %v3546_v36 = vmul.f32 %v13428_v25, %v16256_v0 }
 0x354   : > { %8453 = vrcp.f32 %v5719_v26  ;;  %v5720_v6 = vadd.f32 1.0, %v5704_v53  ;;  %v3221_v62 = vadd.f32 %v3205_v58, %v3165_v60  ;;  %v5921_v61 = vmul.f32 %v5905_v59, %v13791_v11 }
 0x355   : > { %v5908_v53 = vsub.f32 0.0, %v13819_v47  ;;  %8455 = vrcp.f32 %v5718_v52  ;;  %v3319_v22 = vmul.f32 0.0, %v13460_v42  ;;  %v5923_v3 = vmul.f32 %v5907_v30, %v13809_v10 }
 0x356   : > { %v5922_v60 = vmul.f32 %v5906_v12, %v13812_v5  ;;  %8457 = vrcp.f32 %v5720_v6  ;;  %v13906_v11 = vmul.f32 0.0, %v13314_v46  ;;  %v3278_v52 = vadd.f32 %v3262_v8, %v3221_v62 }
 0x357   : > { %v13908_v58 = vadd.f32 %v3546_v36, %v3505_v34  ;;  %v5937_v10 = vmul.f32 1.442695, %v5921_v61  ;;  %v5924_v17 = vmul.f32 %v5908_v53, %v13819_v47  ;;  %v13915_v5 = vmul.f32 %v13421_v13, %v13679_v1  ;;  %v5656_v34 = vpop.f32.mrf.mxu1 }
 0x358   : > { %v13877_v33 = vpop.eup %8443  ;;  %v5941_v46 = vmul.f32 1.442695, %v5923_v3  ;;  %v5911_v6 = vsub.f32 0.0, %v13859_v49  ;;  %v5939_v36 = vmul.f32 1.442695, %v5922_v60  ;;  %v13923_v47 = vadd.f32 %v3319_v22, %v3278_v52 }
 0x359   : > { %v5761_v4 = vmul.f32 1.0614054, %v13877_v33  ;;  %v5910_v1 = vsub.f32 0.0, %v13862_v7  ;;  %8459 = vpow2.f32 %v5937_v10  ;;  %v5943_v3 = vmul.f32 1.442695, %v5924_v17 }
 0x35a   : > { %v13884_v32 = vpop.eup %8445  ;;  %v13930_v56 = vadd.f32 %v5656_v34, %v16270_v45  ;;  %8461 = vpow2.f32 %v5941_v46  ;;  %v5927_v52 = vmul.f32 %v5911_v6, %v13859_v49  ;;  %vm6001_vm0 = vcmp.ge.f32.partialorder %v13778_v55, 0.0 }
 0x35b   : > { %v13891_v39 = vpop.eup %8447  ;;  %v5763_v26 = vmul.f32 1.0614054, %v13884_v32  ;;  %v7953_v14 = vadd.f32 -1.4531521, %v5761_v4  ;;  %v5603_v4 = vpop.f32.mrf.mxu0  ;;  %8463 = vpow2.f32 %v5939_v36  ;;  %vm6003_vm3 = vcmp.ge.f32.partialorder %v13799_v24, 0.0 }
 0x35c   : > { %v5762_v48 = vmul.f32 1.0614054, %v13891_v39  ;;  %v13903_v59 = vpop.eup %8449  ;;  %v13921_v62 = vadd.f32 %v5603_v4, %v16269_v35  ;;  %16275 = vst [vmem:[#allocation36_spill] sm:$0xff] %v13930_v56  ;;  %8465 = vpow2.f32 %v5943_v3  ;;  %v13946_v49 = vmul.f32 0.70710677, %v13930_v56 }
 0x35d   : > { %v7955_v0 = vadd.f32 -1.4531521, %v5763_v26  ;;  %v5764_v30 = vmul.f32 1.0614054, %v13903_v59  ;;  %v5909_v26 = vsub.f32 0.0, %v13854_v50  ;;  %v5793_v12 = vmul.f32 %v13877_v33, %v7953_v14 }
 0x35e   : > { %v7954_v42 = vadd.f32 -1.4531521, %v5762_v48  ;;  %16274 = vst [vmem:[#allocation20_spill] sm:$0xff] %v13921_v62  ;;  %v5912_v48 = vsub.f32 0.0, %v13873_v63  ;;  %16277 = vst [vmem:[#allocation141_spill] sm:$0xff] %v13946_v49  ;;  %vm6002_vm4 = vcmp.ge.f32.partialorder %v13802_v9, 0.0 }
 0x35f   : > { %v5795_v8 = vmul.f32 %v13884_v32, %v7955_v0  ;;  %v7956_v61 = vadd.f32 -1.4531521, %v5764_v30  ;;  %v5925_v14 = vmul.f32 %v5909_v26, %v13854_v50  ;;  %v13932_v0 = vpop.eup %8451  ;;  %v5809_v60 = vadd.f32 1.4214138, %v5793_v12 }
 0x360   : > { %v5794_v53 = vmul.f32 %v13891_v39, %v7954_v42  ;;  %v5765_v10 = vmul.f32 1.0614054, %v13932_v0  ;;  %v13940_v30 = vmul.f32 0.70710677, %v13921_v62  ;;  %v5926_v26 = vmul.f32 %v5910_v1, %v13862_v7 }
 0x361   : > { %v5796_v22 = vmul.f32 %v13903_v59, %v7956_v61  ;;  %v13936_v42 = vpop.eup %8453  ;;  %v5811_v4 = vadd.f32 1.4214138, %v5795_v8  ;;  %v5928_v12 = vmul.f32 %v5912_v48, %v13873_v63  ;;  %v5945_v34 = vmul.f32 1.442695, %v5925_v14 }
 0x362   : > { %16276 = vst [vmem:[#allocation27_spill] sm:$0xff] %v13940_v30  ;;  %v5810_v50 = vadd.f32 1.4214138, %v5794_v53  ;;  %v5767_v17 = vmul.f32 1.0614054, %v13936_v42  ;;  %v13948_v6 = vpop.eup %8455  ;;  %v5825_v8 = vmul.f32 %v13877_v33, %v5809_v60  ;;  %vm6005_vm8 = vcmp.ge.f32.partialorder %v13840_v44, 0.0 }
 0x363   : > { %v7957_v46 = vadd.f32 -1.4531521, %v5765_v10  ;;  %v5812_v36 = vadd.f32 1.4214138, %v5796_v22  ;;  %v5949_v43 = vmul.f32 1.442695, %v5927_v52  ;;  %v5827_v53 = vmul.f32 %v13884_v32, %v5811_v4  ;;  %v13957_v1 = vpop.eup %8457 }
 0x364   : > { %v7959_v61 = vadd.f32 -1.4531521, %v5767_v17  ;;  %v5766_v7 = vmul.f32 1.0614054, %v13948_v6  ;;  %v13955_v63 = vand.u32 2147483647, %v13940_v30  ;;  %v5826_v48 = vmul.f32 %v13891_v39, %v5810_v50 }
 0x365   : > { %v5797_v29 = vmul.f32 %v13932_v0, %v7957_v46  ;;  %v5947_v14 = vmul.f32 1.442695, %v5926_v26  ;;  %v5951_v60 = vmul.f32 1.442695, %v5928_v12  ;;  %8467 = vpow2.f32 %v5945_v34 }
 0x366   : > { %v5799_v3 = vmul.f32 %v13936_v42, %v7959_v61  ;;  %v7958_v52 = vadd.f32 -1.4531521, %v5766_v7  ;;  %v13962_v4 = vand.u32 2147483647, %v13946_v49  ;;  %v7969_v10 = vadd.f32 -0.28449672, %v5825_v8 }
 0x367   : > { %v5813_v22 = vadd.f32 1.4214138, %v5797_v29  ;;  %v5828_v17 = vmul.f32 %v13903_v59, %v5812_v36  ;;  %v5768_v31 = vmul.f32 1.0614054, %v13957_v1  ;;  %v7971_v56 = vadd.f32 -0.28449672, %v5827_v53  ;;  %v8460_v36 = vpop.eup %8459 }
 0x368   : > { %v5815_v46 = vadd.f32 1.4214138, %v5799_v3  ;;  %v5798_v50 = vmul.f32 %v13948_v6, %v7958_v52  ;;  %v5705_v26 = vmul.f32 0.3275911, %v13955_v63  ;;  %v7970_v12 = vadd.f32 -0.28449672, %v5826_v48  ;;  %v8462_v52 = vpop.eup %8461 }
 0x369   : > { %v5829_v30 = vmul.f32 %v13932_v0, %v5813_v22  ;;  %8469 = vpow2.f32 %v5949_v43  ;;  %v7960_v34 = vadd.f32 -1.4531521, %v5768_v31  ;;  %v5707_v8 = vmul.f32 0.3275911, %v13962_v4  ;;  %v8464_v43 = vpop.eup %8463 }
 0x36a   : > { %v5831_v29 = vmul.f32 %v13936_v42, %v5815_v46  ;;  %v5814_v7 = vadd.f32 1.4214138, %v5798_v50  ;;  %8471 = vpow2.f32 %v5947_v14  ;;  %v5857_v3 = vmul.f32 %v13877_v33, %v7969_v10 }
 0x36b   : > { %v7973_v61 = vadd.f32 -0.28449672, %v5829_v30  ;;  %v7972_v53 = vadd.f32 -0.28449672, %v5828_v17  ;;  %v5800_v22 = vmul.f32 %v13957_v1, %v7960_v34  ;;  %v3392_v48 = vadd.f32 %v13900_v15, %v13923_v47  ;;  %v8864_v15 = vld [vmem:[%s15435_s3 + $0x23] ss:$0 sm:$0xff] }
 0x36c   : > { %v7975_v49 = vadd.f32 -0.28449672, %v5831_v29  ;;  %v5859_v46 = vmul.f32 %v13884_v32, %v7971_v56  ;;  %8473 = vpow2.f32 %v5951_v60  ;;  %v5721_v31 = vadd.f32 1.0, %v5705_v26  ;;  %v8466_v60 = vpop.eup %8465 }
 0x36d   : > { %v5858_v30 = vmul.f32 %v13891_v39, %v7970_v12  ;;  %v5861_v14 = vmul.f32 %v13932_v0, %v7973_v61  ;;  %v5830_v50 = vmul.f32 %v13948_v6, %v5814_v7  ;;  %v5816_v10 = vadd.f32 1.4214138, %v5800_v22  ;;  %v5605_v7 = vpop.f32.mrf.mxu0 }
 0x36e   : > { %v3490_v17 = vmul.f32 0.0, %v13363_v21  ;;  %v13981_v29 = vmul.f32 0.0, %v13428_v25  ;;  %v13986_v56 = vmul.f32 0.0, %v8864_v15  ;;  %v5863_v47 = vmul.f32 %v13936_v42, %v7975_v49 }
 0x36f   : > { %v5873_v26 = vadd.f32 0.2548296, %v5857_v3  ;;  %v5860_v12 = vmul.f32 %v13903_v59, %v7972_v53  ;;  %v7974_v34 = vadd.f32 -0.28449672, %v5830_v50  ;;  %v5723_v61 = vadd.f32 1.0, %v5707_v8 }
 0x370   : > { %16278 = vst [vmem:[#allocation14_spill] sm:$0xff] %v13981_v29  ;;  %v3449_v21 = vadd.f32 %v13906_v11, %v3392_v48  ;;  %v3619_v25 = vadd.f32 %v13915_v5, %v13908_v58  ;;  %v5875_v22 = vadd.f32 0.2548296, %v5859_v46  ;;  %v5832_v62 = vmul.f32 %v13957_v1, %v5816_v10 }
 0x371   : > { %v5874_v29 = vadd.f32 0.2548296, %v5858_v30  ;;  %v5877_v15 = vadd.f32 0.2548296, %v5861_v14  ;;  %v5862_v45 = vmul.f32 %v13948_v6, %v7974_v34  ;;  %8475 = vrcp.f32 %v5721_v31  ;;  %v5658_v34 = vpop.f32.mrf.mxu1 }
 0x372   : > { %v13996_v49 = vmul.f32 0.0, %v13421_v13  ;;  %v5879_v3 = vadd.f32 0.2548296, %v5863_v47  ;;  %v7976_v53 = vadd.f32 -0.28449672, %v5832_v62  ;;  %v13999_v8 = vadd.f32 %v5605_v7, %v16271_v18  ;;  %v8468_v11 = vpop.eup %8467 }
 0x373   : > { %v5889_v48 = vmul.f32 %v13877_v33, %v5873_v26  ;;  %v5876_v58 = vadd.f32 0.2548296, %v5860_v12  ;;  %v5878_v5 = vadd.f32 0.2548296, %v5862_v45  ;;  %8477 = vrcp.f32 %v5723_v61 }
 0x374   : > { %v14003_v46 = vmul.f32 0.0, %v13467_v16  ;;  %v14006_v30 = vadd.f32 %v13986_v56, %v3619_v25  ;;  %v5891_v13 = vmul.f32 %v13884_v32, %v5875_v22  ;;  %v5864_v31 = vmul.f32 %v13957_v1, %v7976_v53 }
 0x375   : > { %v14010_v62 = vadd.f32 %v3490_v17, %v3449_v21  ;;  %v5890_v14 = vmul.f32 %v13891_v39, %v5874_v29  ;;  %v5893_v50 = vmul.f32 %v13932_v0, %v5877_v15  ;;  %v5894_v33 = vmul.f32 %v13948_v6, %v5878_v5 }
 0x376   : > { %v8470_v45 = vpop.eup %8469  ;;  %v14016_v10 = vmul.f32 0.5, %v13770_v37  ;;  %v14019_v16 = vmul.f32 0.5, %v13781_v51  ;;  %v5895_v47 = vmul.f32 %v13936_v42, %v5879_v3  ;;  %v5880_v32 = vadd.f32 0.2548296, %v5864_v31 }
 0x377   : > { %v8472_v26 = vpop.eup %8471  ;;  %v5969_v12 = vmul.f32 %v8460_v36, %v5889_v48  ;;  %v14023_v17 = vmul.f32 0.5, %v13784_v20  ;;  %v5892_v39 = vmul.f32 %v13903_v59, %v5876_v58  ;;  %v14027_v0 = vmul.f32 0.70710677, %v13999_v8 }
 0x378   : > { %v5971_v6 = vmul.f32 %v8462_v52, %v5891_v13  ;;  %v14030_v37 = vmul.f32 0.5, %v13794_v57  ;;  %v5974_v29 = vmul.f32 %v8472_v26, %v5894_v33  ;;  %v5896_v51 = vmul.f32 %v13957_v1, %v5880_v32 }
 0x379   : > { %v8474_v42 = vpop.eup %8473  ;;  %v5970_v61 = vmul.f32 %v8464_v43, %v5890_v14  ;;  %v5973_v7 = vmul.f32 %v8468_v11, %v5893_v50  ;;  %v14034_v36 = vmul.f32 0.5, %v13829_v19  ;;  %v14037_v20 = vmul.f32 0.5, %v13834_v23  ;;  %v5607_v50 = vpop.f32.mrf.mxu0 }
 0x37a   : > { %v5975_v59 = vmul.f32 %v8470_v45, %v5895_v47  ;;  %v14041_v52 = vmul.f32 0.5, %v13837_v27  ;;  %v5976_v57 = vmul.f32 %v8474_v42, %v5896_v51  ;;  %v14044_v21 = vand.u32 2147483647, %v14027_v0 }
 0x37b   : > { %v5985_v1 = vsub.f32 1.0, %v5969_v12  ;;  %v5972_v43 = vmul.f32 %v8466_v60, %v5892_v39  ;;  %v5913_v19 = vsub.f32 0.0, %v13955_v63  ;;  %v14049_v25 = vadd.f32 %v5658_v34, %v16273_v38  ;;  %v5660_v12 = vpop.f32.mrf.mxu1 }
 0x37c   : > { %v5987_v23 = vsub.f32 1.0, %v5971_v6  ;;  %v5990_v27 = vsub.f32 1.0, %v5974_v29  ;;  %v5915_v22 = vsub.f32 0.0, %v13962_v4  ;;  %v5706_v15 = vmul.f32 0.3275911, %v14044_v21 }
 0x37d   : > { %v5986_v3 = vsub.f32 1.0, %v5970_v61  ;;  %v5989_v53 = vsub.f32 1.0, %v5973_v7  ;;  %vm6007_vm9 = vcmp.ge.f32.partialorder %v13846_v41, 0.0  ;;  %vm6006_vm10 = vcmp.ge.f32.partialorder %v13849_v28, 0.0  ;;  %v16279_v7 = vld [vmem:[#allocation126_spill] sm:$0xff] }
 0x37e   : > { %v14057_v60 = vpop.eup %8475  ;;  %vm6004_vm11 = vcmp.ge.f32.partialorder %v13806_v54, 0.0  ;;  %v5991_v11 = vsub.f32 1.0, %v5975_v59  ;;  %v5992_v48 = vsub.f32 1.0, %v5976_v57  ;;  %vm6008_vm12 = vcmp.ge.f32.partialorder %v13866_v40, 0.0 }
 0x37f   : > { %v14062_v58 = vmul.f32 0.5, %v13843_v2  ;;  %v6017_v5 = vsub.f32 0.0, %v5985_v1  ;;  %v5988_v13 = vsub.f32 1.0, %v5972_v43  ;;  %v5722_v31 = vadd.f32 1.0, %v5706_v15 }
 0x380   : > { %v14065_v14 = vmul.f32 0.70710677, %v14049_v25  ;;  %v14067_v33 = vpop.eup %8477  ;;  %v6019_v45 = vsub.f32 0.0, %v5987_v23  ;;  %v6022_v47 = vsub.f32 0.0, %v5990_v27  ;;  %v14070_v32 = vmul.f32 %v5913_v19, %v13955_v63 }
 0x381   : > { %v14073_v26 = vmul.f32 %v5915_v22, %v13962_v4  ;;  %v6018_v2 = vsub.f32 0.0, %v5986_v3  ;;  %v6021_v39 = vsub.f32 0.0, %v5989_v53  ;;  %v5769_v6 = vmul.f32 1.0614054, %v14057_v60 }
 0x382   : > { %8479 = vrcp.f32 %v5722_v31  ;;  %v6023_v29 = vsub.f32 0.0, %v5991_v11  ;;  %v6024_v51 = vsub.f32 0.0, %v5992_v48  ;;  %v14077_v34 = vand.u32 2147483647, %v14065_v14 }
 0x383   : > { %v14080_v42 = vadd.f32 %v5607_v50, %v16269_v35  ;;  %v6033_v63 = vsel %vm6001_vm0, %v5985_v1, %v6017_v5  ;;  %v6020_v61 = vsub.f32 0.0, %v5988_v13  ;;  %v5771_v4 = vmul.f32 1.0614054, %v14067_v33 }
 0x384   : > { %v14086_v59 = vadd.f32 %v5660_v12, %v16279_v7  ;;  %v6035_v57 = vsel %vm6003_vm3, %v5987_v23, %v6019_v45  ;;  %v6038_v43 = vsel %vm6006_vm10, %v5990_v27, %v6022_v47  ;;  %v5708_v19 = vmul.f32 0.3275911, %v14077_v34  ;;  %v5662_v12 = vpop.f32.mrf.mxu1 }
 0x385   : > { %v14094_v22 = vmul.f32 0.70710677, %v14080_v42  ;;  %v6034_v55 = vsel %vm6002_vm4, %v5986_v3, %v6018_v2  ;;  %v6037_v1 = vsel %vm6005_vm8, %v5989_v53, %v6021_v39  ;;  %v7961_v15 = vadd.f32 -1.4531521, %v5769_v6 }
 0x386   : > { %v14101_v5 = vmul.f32 0.70710677, %v14086_v59  ;;  %v6039_v24 = vsel %vm6007_vm9, %v5991_v11, %v6023_v29  ;;  %v6040_v28 = vsel %vm6008_vm12, %v5992_v48, %v6024_v51  ;;  %v5724_v23 = vadd.f32 1.0, %v5708_v19  ;;  %v5609_v11 = vpop.f32.mrf.mxu0 }
 0x387   : > { %v14108_v27 = vand.u32 2147483647, %v14094_v22  ;;  %v6036_v9 = vsel %vm6004_vm11, %v5988_v13, %v6020_v61  ;;  %v6070_v3 = vadd.f32 1.0, %v6038_v43  ;;  %v7963_v44 = vadd.f32 -1.4531521, %v5771_v4 }
 0x388   : > { %v14113_v53 = vand.u32 2147483647, %v14101_v5  ;;  %v6065_v31 = vadd.f32 1.0, %v6033_v63  ;;  %v6069_v50 = vadd.f32 1.0, %v6037_v1  ;;  %8481 = vrcp.f32 %v5724_v23 }
 0x389   : > { %v5709_v41 = vmul.f32 0.3275911, %v14108_v27  ;;  %v6066_v40 = vadd.f32 1.0, %v6034_v55  ;;  %v6071_v48 = vadd.f32 1.0, %v6039_v24  ;;  %v6072_v45 = vadd.f32 1.0, %v6040_v28 }
 0x38a   : > { %v5711_v47 = vmul.f32 0.3275911, %v14113_v53  ;;  %v6067_v2 = vadd.f32 1.0, %v6035_v57  ;;  %v6068_v54 = vadd.f32 1.0, %v6036_v9  ;;  %v5801_v13 = vmul.f32 %v14057_v60, %v7961_v15 }
 0x38b   : > { %v5725_v39 = vadd.f32 1.0, %v5709_v41  ;;  %v6086_v6 = vmul.f32 %v6070_v3, %v14041_v52  ;;  %v5803_v29 = vmul.f32 %v14067_v33, %v7963_v44  ;;  %v14121_v63 = vadd.f32 %v5609_v11, %v16271_v18 }
 0x38c   : > { %v5727_v51 = vadd.f32 1.0, %v5711_v47  ;;  %v6081_v61 = vmul.f32 %v6065_v31, %v14016_v10  ;;  %v6085_v4 = vmul.f32 %v6069_v50, %v14034_v36  ;;  %v14126_v43 = vadd.f32 %v5662_v12, %v16273_v38  ;;  %v16280_v47 = vld [vmem:[#allocation14_spill] sm:$0xff] }
 0x38d   : > { %8483 = vrcp.f32 %v5725_v39  ;;  %v6082_v57 = vmul.f32 %v6066_v40, %v14023_v17  ;;  %v6087_v19 = vmul.f32 %v6071_v48, %v14037_v20  ;;  %v6088_v52 = vmul.f32 %v6072_v45, %v14062_v58  ;;  %v8865_v48 = vld [vmem:[%s15435_s3 + $0x25] ss:$0 sm:$0xff] }
 0x38e   : > { %8485 = vrcp.f32 %v5727_v51  ;;  %v6083_v1 = vmul.f32 %v6067_v2, %v14019_v16  ;;  %v6084_v15 = vmul.f32 %v6068_v54, %v14030_v37  ;;  %v14136_v10 = vmul.f32 0.70710677, %v14121_v63 }
 0x38f   : > { %v14131_v55 = vpop.eup %8479  ;;  %v14139_v36 = vmul.f32 0.70710677, %v14126_v43  ;;  %v5817_v24 = vadd.f32 1.4214138, %v5801_v13  ;;  %v5819_v28 = vadd.f32 1.4214138, %v5803_v29  ;;  %v6098_v20 = vpack.c.bf16 %v6086_v6, %v6082_v57 }
 0x390   : > { %v5770_v17 = vmul.f32 1.0614054, %v14131_v55  ;;  %v6097_v23 = vpack.c.bf16 %v6085_v4, %v6081_v61  ;;  %v5914_v58 = vsub.f32 0.0, %v14044_v21  ;;  %v14144_v9 = vand.u32 2147483647, %v14136_v10 }
 0x391   : > { %v14147_v16 = vand.u32 2147483647, %v14139_v36  ;;  %v6099_v37 = vpack.c.bf16 %v6087_v19, %v6083_v1  ;;  %v5916_v44 = vsub.f32 0.0, %v14077_v34  ;;  %6137 = vmatprep.mubr.bf16.mxu0 %v6098_v20  ;;  %v6100_v31 = vpack.c.bf16 %v6088_v52, %v6084_v15  ;;  %v8866_v13 = vld [vmem:[%s15436_s4 + $0xe0] ss:$16 sps:$4 sm:$0xff]  }
 0x392   : > { %v7962_v3 = vadd.f32 -1.4531521, %v5770_v17  ;;  %v5917_v50 = vsub.f32 0.0, %v14108_v27  ;;  %v5919_v41 = vsub.f32 0.0, %v14113_v53  ;;  %v5710_v11 = vmul.f32 0.3275911, %v14144_v9  ;;  %6138 = vmatmul.mubr.bf16.vlgmr.msra.gmra.mxu0 %v6097_v23 }
 0x393   : > { %v5712_v40 = vmul.f32 0.3275911, %v14147_v16  ;;  %v14157_v45 = vmul.f32 0.0, %v8865_v48  ;;  %v3563_v12 = vadd.f32 %v16280_v47, %v14010_v62  ;;  %v5833_v2 = vmul.f32 %v14057_v60, %v5817_v24  ;;  %6186 = vmatprep.mubr.bf16.mxu1 %v6100_v31  ;;  %6224 = vmatpush1.bf16.msra.mxu0 %v8866_v13  ;;  %v8867_v62 = vld [vmem:[%s15436_s4 + $0xc4] ss:$16 sps:$4 sm:$0xff]  }
 0x394   : > { %v5802_v54 = vmul.f32 %v14131_v55, %v7962_v3  ;;  %v5953_v39 = vmul.f32 1.442695, %v14070_v32  ;;  %v5930_v6 = vmul.f32 %v5914_v58, %v14044_v21  ;;  %v5726_v29 = vadd.f32 1.0, %v5710_v11  ;;  %6187 = vmatmul.mubr.bf16.vlgmr.msra.gmra.mxu1 %v6099_v37  ;;  %6225 = vmatprep.subr.bf16.mxu0 %v8867_v62  ;;  %v8868_v21 = vld [vmem:[%s15436_s4 + $0xe8] ss:$16 sps:$4 sm:$0xff]  }
 0x395   : > { %v5728_v51 = vadd.f32 1.0, %v5712_v40  ;;  %v14171_v61 = vpop.eup %8481  ;;  %v5835_v4 = vmul.f32 %v14067_v33, %v5819_v28  ;;  %v5957_v57 = vmul.f32 1.442695, %v14073_v26  ;;  %v5932_v52 = vmul.f32 %v5916_v44, %v14077_v34  ;;  %6277 = vmatpush1.bf16.msra.mxu1 %v8868_v21  ;;  %v8869_v24 = vld [vmem:[%s15436_s4 + $0xcc] ss:$16 sps:$4 sm:$0xff]  }
 0x396   : > { %v5818_v19 = vadd.f32 1.4214138, %v5802_v54  ;;  %v5772_v32 = vmul.f32 1.0614054, %v14171_v61  ;;  %v5933_v1 = vmul.f32 %v5917_v50, %v14108_v27  ;;  %v5935_v15 = vmul.f32 %v5919_v41, %v14113_v53  ;;  %6278 = vmatprep.subr.bf16.mxu1 %v8869_v24  ;;  %v8870_v26 = vld [vmem:[%s15435_s3 + $0x26] ss:$0 sm:$0xff] }
 0x397   : > { %8487 = vrcp.f32 %v5726_v29  ;;  %v14188_v34 = vmul.f32 0.0, %v8870_v26  ;;  %v7977_v28 = vadd.f32 -0.28449672, %v5833_v2  ;;  %v8871_v27 = vld [vmem:[%s15436_s4 + $0xc0] ss:$16 sps:$4 sm:$0xff]   ;;  %v3733_v53 = vadd.f32 %v14003_v46, %v14006_v30 }
 0x398   : > { %v5834_v17 = vmul.f32 %v14131_v55, %v5818_v19  ;;  %8489 = vrcp.f32 %v5728_v51  ;;  %6226 = vmatpush1.bf16.msra.mxu0 %v8871_v27  ;;  %v5955_v20 = vmul.f32 1.442695, %v5930_v6  ;;  %v7964_v23 = vadd.f32 -1.4531521, %v5772_v32  ;;  %v8872_v58 = vld [vmem:[%s15436_s4 + $0xa4] ss:$16 sps:$4 sm:$0xff]  }
 0x399   : > { %8491 = vpow2.f32 %v5953_v39  ;;  %6227 = vmatprep.subr.bf16.mxu0 %v8872_v58  ;;  %v3620_v3 = vadd.f32 %v13996_v49, %v3563_v12  ;;  %v7979_v44 = vadd.f32 -0.28449672, %v5835_v4  ;;  %v5959_v31 = vmul.f32 1.442695, %v5932_v52  ;;  %v8873_v50 = vld [vmem:[%s15436_s4 + $0xc8] ss:$16 sps:$4 sm:$0xff]  }
 0x39a   : > { %v14199_v37 = vpop.eup %8483  ;;  %8493 = vpow2.f32 %v5957_v57  ;;  %6279 = vmatpush1.bf16.msra.mxu1 %v8873_v50  ;;  %v5804_v41 = vmul.f32 %v14171_v61, %v7964_v23  ;;  %v5961_v40 = vmul.f32 1.442695, %v5933_v1  ;;  %v5965_v48 = vmul.f32 1.442695, %v5935_v15  ;;  %v8874_v49 = vld [vmem:[%s15436_s4 + $0xac] ss:$16 sps:$4 sm:$0xff]  }
 0x39b   : > { %v14205_v30 = vpop.eup %8485  ;;  %v5773_v11 = vmul.f32 1.0614054, %v14199_v37  ;;  %6280 = vmatprep.subr.bf16.mxu1 %v8874_v49  ;;  %v5865_v47 = vmul.f32 %v14057_v60, %v7977_v28  ;;  %v7978_v12 = vadd.f32 -0.28449672, %v5834_v17  ;;  %v5918_v54 = vsub.f32 0.0, %v14144_v9 }
 0x39c   : > { %v5775_v2 = vmul.f32 1.0614054, %v14205_v30  ;;  %v8875_v13 = vld [vmem:[%s15436_s4 + $0xa0] ss:$16 sps:$4 sm:$0xff]   ;;  %8495 = vpow2.f32 %v5955_v20  ;;  %v5820_v39 = vadd.f32 1.4214138, %v5804_v41  ;;  %v3677_v62 = vadd.f32 %v13986_v56, %v3620_v3 }
 0x39d   : > { %6228 = vmatpush1.bf16.msra.mxu0 %v8875_v13  ;;  %v7965_v6 = vadd.f32 -1.4531521, %v5773_v11  ;;  %v5920_v29 = vsub.f32 0.0, %v14147_v16  ;;  %v8876_v51 = vld [vmem:[%s15436_s4 + $0x84] ss:$16 sps:$4 sm:$0xff]   ;;  %v3790_v4 = vadd.f32 %v14157_v45, %v3733_v53  ;;  %8497 = vpow2.f32 %v5959_v31 }
 0x39e   : > { %6229 = vmatprep.subr.bf16.mxu0 %v8876_v51  ;;  %v7967_v57 = vadd.f32 -1.4531521, %v5775_v2  ;;  %v8877_v19 = vld [vmem:[%s15436_s4 + $0xa8] ss:$16 sps:$4 sm:$0xff]   ;;  %v5867_v52 = vmul.f32 %v14067_v33, %v7979_v44  ;;  %v5836_v21 = vmul.f32 %v14171_v61, %v5820_v39  ;;  %8499 = vpow2.f32 %v5961_v40  ;;  %v8878_v56 = vld [vmem:[%s15436_s4 + $0x8c] ss:$16 sps:$4 sm:$0xff]  }
 0x39f   : > { %6281 = vmatpush1.bf16.msra.mxu1 %v8877_v19  ;;  %v5805_v32 = vmul.f32 %v14199_v37, %v7965_v6  ;;  %v5866_v1 = vmul.f32 %v14131_v55, %v7978_v12  ;;  %8501 = vpow2.f32 %v5965_v48  ;;  %v5934_v24 = vmul.f32 %v5918_v54, %v14144_v9  ;;  %v8879_v26 = vld [vmem:[%s15436_s4 + $0x80] ss:$16 sps:$4 sm:$0xff]   ;;  %v8880_v20 = vld [vmem:[%s15436_s4 + $0x64] ss:$16 sps:$4 sm:$0xff]   ;;  %v8882_v58 = vld [vmem:[%s15435_s3 + $0x28] ss:$0 sm:$0xff] }
 0x3a0   : > { %6282 = vmatprep.subr.bf16.mxu1 %v8878_v56  ;;  %v5807_v15 = vmul.f32 %v14205_v30, %v7967_v57  ;;  %v5881_v28 = vadd.f32 0.2548296, %v5865_v47  ;;  %v7980_v17 = vadd.f32 -0.28449672, %v5836_v21  ;;  %v5936_v53 = vmul.f32 %v5920_v29, %v14147_v16  ;;  %v8881_v23 = vld [vmem:[%s15435_s3 + $0x27] ss:$0 sm:$0xff] }
 0x3a1   : > { %6230 = vmatpush1.bf16.msra.mxu0 %v8879_v26  ;;  %v5821_v27 = vadd.f32 1.4214138, %v5805_v32  ;;  %v14246_v9 = vmul.f32 0.0, %v8881_v23  ;;  %v14251_v3 = vmul.f32 0.0, %v8882_v58  ;;  %v8883_v16 = vld [vmem:[%s15436_s4 + $0x88] ss:$16 sps:$4 sm:$0xff]   ;;  %v3734_v31 = vadd.f32 %v14003_v46, %v3677_v62 }
 0x3a2   : > { %6231 = vmatprep.subr.bf16.mxu0 %v8880_v20  ;;  %v5823_v44 = vadd.f32 1.4214138, %v5807_v15  ;;  %v5883_v50 = vadd.f32 0.2548296, %v5867_v52  ;;  %v5868_v41 = vmul.f32 %v14171_v61, %v7980_v17  ;;  %v8884_v40 = vld [vmem:[%s15436_s4 + $0x6c] ss:$16 sps:$4 sm:$0xff]   ;;  %v3847_v49 = vadd.f32 %v14188_v34, %v3790_v4 }
 0x3a3   : > { %6283 = vmatpush1.bf16.msra.mxu1 %v8883_v16  ;;  %v5837_v11 = vmul.f32 %v14199_v37, %v5821_v27  ;;  %v5882_v47 = vadd.f32 0.2548296, %v5866_v1  ;;  %v5963_v2 = vmul.f32 1.442695, %v5934_v24  ;;  %v8885_v46 = vld [vmem:[%s15436_s4 + $0x60] ss:$16 sps:$4 sm:$0xff]   ;;  %v5897_v13 = vmul.f32 %v14057_v60, %v5881_v28 }
 0x3a4   : > { %6284 = vmatprep.subr.bf16.mxu1 %v8884_v40  ;;  %v14262_v48 = vpop.eup %8487  ;;  %v5839_v12 = vmul.f32 %v14205_v30, %v5823_v44  ;;  %v5967_v29 = vmul.f32 1.442695, %v5936_v53  ;;  %v8886_v51 = vld [vmem:[%s15436_s4 + $0x44] ss:$16 sps:$4 sm:$0xff]   ;;  %v5884_v4 = vadd.f32 0.2548296, %v5868_v41  ;;  %v3791_v21 = vadd.f32 %v14157_v45, %v3734_v31 }
 0x3a5   : > { %6232 = vmatpush1.bf16.msra.mxu0 %v8885_v46  ;;  %v14269_v54 = vpop.eup %8489  ;;  %v7981_v39 = vadd.f32 -0.28449672, %v5837_v11  ;;  %v5774_v6 = vmul.f32 1.0614054, %v14262_v48  ;;  %v8887_v52 = vld [vmem:[%s15436_s4 + $0x68] ss:$16 sps:$4 sm:$0xff]   ;;  %v5899_v32 = vmul.f32 %v14067_v33, %v5883_v50  ;;  %v3904_v24 = vadd.f32 %v14246_v9, %v3847_v49 }
 0x3a6   : > { %6233 = vmatprep.subr.bf16.mxu0 %v8886_v51  ;;  %v8492_v62 = vpop.eup %8491  ;;  %v7983_v57 = vadd.f32 -0.28449672, %v5839_v12  ;;  %v5776_v19 = vmul.f32 1.0614054, %v14269_v54  ;;  %v8888_v15 = vld [vmem:[%s15436_s4 + $0x4c] ss:$16 sps:$4 sm:$0xff]   ;;  %v5898_v26 = vmul.f32 %v14131_v55, %v5882_v47  ;;  %8503 = vpow2.f32 %v5963_v2 }
 0x3a7   : > { %6285 = vmatpush1.bf16.msra.mxu1 %v8887_v52  ;;  %v8494_v60 = vpop.eup %8493  ;;  %v5869_v56 = vmul.f32 %v14199_v37, %v7981_v39  ;;  %v7966_v1 = vadd.f32 -1.4531521, %v5774_v6  ;;  %v8889_v45 = vld [vmem:[%s15436_s4 + $0x40] ss:$16 sps:$4 sm:$0xff]   ;;  %v14292_v33 = vmul.f32 %v8492_v62, %v5897_v13  ;;  %v8890_v20 = vld [vmem:[%s15436_s4 + $0x24] ss:$16 sps:$4 sm:$0xff]   ;;  %v5900_v23 = vmul.f32 %v14171_v61, %v5884_v4 }
 0x3a8   : > { %6286 = vmatprep.subr.bf16.mxu1 %v8888_v15  ;;  %v5871_v28 = vmul.f32 %v14205_v30, %v7983_v57  ;;  %v7968_v17 = vadd.f32 -1.4531521, %v5776_v19  ;;  %8505 = vpow2.f32 %v5967_v29  ;;  %v8891_v16 = vld [vmem:[%s15436_s4 + $0x48] ss:$16 sps:$4 sm:$0xff]   ;;  %v3848_v50 = vadd.f32 %v14188_v34, %v3791_v21  ;;  %v8892_v61 = vld [vmem:[%s15436_s4 + $0x2c] ss:$16 sps:$4 sm:$0xff]  }
 0x3a9   : > { %6234 = vmatpush1.bf16.msra.mxu0 %v8889_v45  ;;  %v5885_v27 = vadd.f32 0.2548296, %v5869_v56  ;;  %v5806_v53 = vmul.f32 %v14262_v48, %v7966_v1  ;;  %v8496_v55 = vpop.eup %8495  ;;  %v14304_v41 = vmul.f32 %v8494_v60, %v5899_v32  ;;  %v8893_v34 = vld [vmem:[%s15436_s4 + $0x20] ss:$16 sps:$4 sm:$0xff]   ;;  %v8894_v6 = vld [vmem:[%s15436_s4 + $0x4] ss:$16 sps:$4 sm:$0xff]   ;;  %v3961_v57 = vadd.f32 %v14251_v3, %v3904_v24 }
 0x3aa   : > { %6235 = vmatprep.subr.bf16.mxu0 %v8890_v20  ;;  %v5887_v58 = vadd.f32 0.2548296, %v5871_v28  ;;  %v5808_v44 = vmul.f32 %v14269_v54, %v7968_v17  ;;  %v8498_v31 = vpop.eup %8497  ;;  %v14310_v47 = vmul.f32 %v8496_v55, %v5898_v26  ;;  %v8895_v62 = vld [vmem:[%s15436_s4 + $0x28] ss:$16 sps:$4 sm:$0xff]   ;;  %v3905_v4 = vadd.f32 %v14246_v9, %v3848_v50  ;;  %v8896_v60 = vld [vmem:[%s15436_s4 + $0xc] ss:$16 sps:$4 sm:$0xff]  }
 0x3ab   : > { %6287 = vmatpush1.bf16.msra.mxu1 %v8891_v16  ;;  %v5901_v11 = vmul.f32 %v14199_v37, %v5885_v27  ;;  %v5822_v40 = vadd.f32 1.4214138, %v5806_v53  ;;  %v8500_v49 = vpop.eup %8499  ;;  %v5993_v37 = vsub.f32 1.0, %v14292_v33  ;;  %v14321_v29 = vmul.f32 %v8498_v31, %v5900_v23  ;;  %v16281_v21 = vld [vmem:[#allocation20_spill] sm:$0xff]  ;;  %v8897_v9 = vld [vmem:[%s15436_s4] ss:$16 sps:$4 sm:$0xff]  }
 0x3ac   : > { %6288 = vmatprep.subr.bf16.mxu1 %v8892_v61  ;;  %v5903_v12 = vmul.f32 %v14205_v30, %v5887_v58  ;;  %v5824_v2 = vadd.f32 1.4214138, %v5808_v44  ;;  %v8502_v46 = vpop.eup %8501  ;;  %v5995_v19 = vsub.f32 1.0, %v14304_v41  ;;  %v14334_v32 = vmul.f32 0.5, %v16281_v21  ;;  %v16282_v24 = vld [vmem:[#allocation27_spill] sm:$0xff]  ;;  %v8898_v45 = vld [vmem:[%s15438_s6 + $0x78] sm:$0xff]  }
 0x3ad   : > { %6236 = vmatpush1.bf16.msra.mxu0 %v8893_v34  ;;  %v5981_v13 = vmul.f32 %v8500_v49, %v5901_v11  ;;  %v5838_v39 = vmul.f32 %v14262_v48, %v5822_v40  ;;  %v5994_v56 = vsub.f32 1.0, %v14310_v47  ;;  %vm6009_vm13 = vcmp.ge.f32.partialorder %v16282_v24, 0.0  ;;  %v16283_v33 = vld [vmem:[#allocation141_spill] sm:$0xff]  ;;  %v16284_v27 = vld [vmem:[#allocation36_spill] sm:$0xff]  ;;  %v8900_v31 = vld [vmem:[%s15438_s6 + $0xf8] sm:$0xff]  }
 0x3ae   : > { %6237 = vmatprep.subr.bf16.mxu0 %v8894_v6  ;;  %v5983_v30 = vmul.f32 %v8502_v46, %v5903_v12  ;;  %v5840_v51 = vmul.f32 %v14269_v54, %v5824_v2  ;;  %v6025_v26 = vsub.f32 0.0, %v5993_v37  ;;  %vm6011_vm14 = vcmp.ge.f32.partialorder %v16283_v33, 0.0  ;;  %v8899_v23 = vld [vmem:[%s15436_s4 + $0x8] ss:$16 sps:$4 sm:$0xff]  }
 0x3af   : > { %6289 = vmatpush1.bf16.msra.mxu1 %v8895_v62  ;;  %v7982_v52 = vadd.f32 -0.28449672, %v5838_v39  ;;  %v5997_v1 = vsub.f32 1.0, %v5981_v13  ;;  %v14347_v53 = vmul.f32 0.5, %v16284_v27  ;;  %v5996_v20 = vsub.f32 1.0, %v14321_v29 }
 0x3b0   : > { %6290 = vmatprep.subr.bf16.mxu1 %v8896_v60  ;;  %v7984_v15 = vadd.f32 -0.28449672, %v5840_v51  ;;  %v5999_v28 = vsub.f32 1.0, %v5983_v30  ;;  %v6027_v58 = vsub.f32 0.0, %v5995_v19  ;;  %vm6010_vm15 = vcmp.ge.f32.partialorder %v14027_v0, 0.0 }
 0x3b1   : > { %6238 = vmatpush1.bf16.msra.mxu0 %v8897_v9  ;;  %v5870_v17 = vmul.f32 %v14262_v48, %v7982_v52  ;;  %v6058_v44 = vmul.f32 0.5, %v13999_v8  ;;  %v6026_v50 = vsub.f32 0.0, %v5994_v56  ;;  %v6060_v41 = vmul.f32 0.5, %v14049_v25 }
 0x3b2   : > { %8176 = vmatprep.subr.bf16.mxu0 %v8898_v45  ;;  %v5872_v55 = vmul.f32 %v14269_v54, %v7984_v15  ;;  %v6029_v11 = vsub.f32 0.0, %v5997_v1  ;;  %v6041_v61 = vsel %vm6009_vm13, %v5993_v37, %v6025_v26  ;;  %vm6012_vm1 = vcmp.ge.f32.partialorder %v14065_v14, 0.0  ;;  %v16285_v15 = vld [vmem:[#allocation134_spill] sm:$0xff]  ;;  %v16286_v45 = vld [vmem:[#allocation135_spill] sm:$0xff] }
 0x3b3   : > { %6291 = vmatpush1.bf16.msra.mxu1 %v8899_v23  ;;  %v5886_v16 = vadd.f32 0.2548296, %v5870_v17  ;;  %v6031_v49 = vsub.f32 0.0, %v5999_v28  ;;  %v8504_v8 = vpop.eup %8503  ;;  %v6028_v12 = vsub.f32 0.0, %v5996_v20  ;;  %v6061_v2 = vmul.f32 0.5, %v14080_v42 }
 0x3b4   : > { %8204 = vmatprep.subr.bf16.mxu1 %v8900_v31  ;;  %v5888_v40 = vadd.f32 0.2548296, %v5872_v55  ;;  %v6063_v34 = vmul.f32 0.5, %v14086_v59  ;;  %v6043_v25 = vsel %vm6011_vm14, %v5995_v19, %v6027_v58  ;;  %vm6013_vm2 = vcmp.ge.f32.partialorder %v14094_v22, 0.0  ;;  %v16287_v31 = vld [vmem:[#allocation137_spill] sm:$0xff] }
 0x3b5   : > { %v5902_v47 = vmul.f32 %v14262_v48, %v5886_v16  ;;  %v8506_v13 = vpop.eup %8505  ;;  %vm6015_vm5 = vcmp.ge.f32.partialorder %v14101_v5, 0.0  ;;  %v6073_v39 = vadd.f32 1.0, %v6041_v61  ;;  %v6042_v48 = vsel %vm6010_vm15, %v5994_v56, %v6026_v50 }
 0x3b6   : > { %v5904_v46 = vmul.f32 %v14269_v54, %v5888_v40  ;;  %v6045_v6 = vsel %vm6013_vm2, %v5997_v1, %v6029_v11  ;;  %v6047_v42 = vsel %vm6015_vm5, %v5999_v28, %v6031_v49  ;;  %v3962_v59 = vadd.f32 %v14251_v3, %v3905_v4  ;;  %v8901_v54 = vld [vmem:[%s15435_s3 + $0x29] ss:$0 sm:$0xff] }
 0x3b7   : > { %v5982_v37 = vmul.f32 %v8504_v8, %v5902_v47  ;;  %v4002_v51 = vmul.f32 0.0, %v8901_v54  ;;  %v6075_v62 = vadd.f32 1.0, %v6043_v25  ;;  %v6044_v22 = vsel %vm6012_vm1, %v5996_v20, %v6028_v12  ;;  %v16288_v49 = vld [vmem:[#allocation140_spill] sm:$0xff]  ;;  %v8907_v54 = vld [vmem:[%s15438_s6 + $0xb0] sm:$0xff]  }
 0x3b8   : > { %v5984_v29 = vmul.f32 %v8506_v13, %v5904_v46  ;;  %vm6014_vm6 = vcmp.ge.f32.partialorder %v14136_v10, 0.0  ;;  %v6077_v0 = vadd.f32 1.0, %v6045_v6  ;;  %v6074_v21 = vadd.f32 1.0, %v6042_v48  ;;  %v16292_v13 = vld [vmem:[#allocation24_spill] sm:$0xff]  ;;  %v16294_v48 = vld [vmem:[#allocation121_spill] sm:$0xff]  ;;  %v8902_v6 = vld [vmem:[%s15438_s6 + $0x38] sm:$0xff]  }
 0x3b9   : > { %v5998_v30 = vsub.f32 1.0, %v5982_v37  ;;  %v4018_v52 = vadd.f32 %v4002_v51, %v3961_v57  ;;  %v4019_v60 = vadd.f32 %v4002_v51, %v3962_v59  ;;  %v6079_v56 = vadd.f32 1.0, %v6047_v42  ;;  %v8904_v42 = vld [vmem:[%s15438_s6 + $0x70] sm:$0xff]   ;;  %v8908_v51 = vld [vmem:[%s15438_s6 + $0x68] sm:$0xff]  }
 0x3ba   : > { %v6000_v5 = vsub.f32 1.0, %v5984_v29  ;;  %vm6016_vm7 = vcmp.ge.f32.partialorder %v14139_v36, 0.0  ;;  %v6076_v4 = vadd.f32 1.0, %v6044_v22  ;;  %v6062_v14 = vmul.f32 0.5, %v14121_v63  ;;  %v8903_v29 = vld [vmem:[%s15438_s6 + $0xb8] sm:$0xff]   ;;  %v8906_v59 = vld [vmem:[%s15438_s6 + $0x30] sm:$0xff]  }
 0x3bb   : > { %v6030_v19 = vsub.f32 0.0, %v5998_v30  ;;  %v4075_v9 = vadd.f32 %v16285_v15, %v4018_v52  ;;  %v4076_v24 = vadd.f32 %v16285_v15, %v4019_v60  ;;  %v6064_v28 = vmul.f32 0.5, %v14126_v43  ;;  %v8909_v22 = vld [vmem:[%s15438_s6 + $0xe8] sm:$0xff]   ;;  %v8913_v52 = vld [vmem:[%s15438_s6 + $0xe0] sm:$0xff]   ;;  %v8920_v15 = vld [vmem:[%s15438_s6 + $0x50] sm:$0xff]  }
 0x3bc   : > { %v6032_v3 = vsub.f32 0.0, %v6000_v5  ;;  %v6093_v17 = vmul.f32 %v6077_v0, %v6061_v2  ;;  %v6089_v36 = vmul.f32 %v6073_v39, %v14334_v32  ;;  %v6090_v20 = vmul.f32 %v6074_v21, %v6058_v44  ;;  %v16289_v44 = vld [vmem:[#allocation9_spill] sm:$0xff]  ;;  %v8911_v0 = vld [vmem:[%s15438_s6 + $0xa8] sm:$0xff]   ;;  %v8914_v60 = vld [vmem:[%s15438_s6 + $0x20] sm:$0xff]  }
 0x3bd   : > { %v6046_v1 = vsel %vm6014_vm6, %v5998_v30, %v6030_v19  ;;  %v4132_v33 = vadd.f32 %v16286_v45, %v4075_v9  ;;  %v4133_v27 = vadd.f32 %v16286_v45, %v4076_v24  ;;  %v6095_v55 = vmul.f32 %v6079_v56, %v6063_v34  ;;  %v8905_v30 = vld [vmem:[%s15438_s6 + $0xf0] sm:$0xff]   ;;  %v8912_v19 = vld [vmem:[%s15438_s6 + $0x60] sm:$0xff]   ;;  %v8916_v56 = vld [vmem:[%s15438_s6 + $0x58] sm:$0xff]  }
 0x3be   : > { %v6078_v26 = vadd.f32 1.0, %v6046_v1  ;;  %v6048_v10 = vsel %vm6016_vm7, %v6000_v5, %v6032_v3  ;;  %v6092_v58 = vmul.f32 %v6076_v4, %v6060_v41  ;;  %v6091_v11 = vmul.f32 %v6075_v62, %v14347_v53  ;;  %v16291_v53 = vld [vmem:[#allocation34_spill] sm:$0xff]  ;;  %v16295_v62 = vld [vmem:[#allocation11_spill] sm:$0xff]  ;;  %v8910_v5 = vld [vmem:[%s15438_s6 + $0x28] sm:$0xff]  }
 0x3bf   : > { %v6080_v57 = vadd.f32 1.0, %v6048_v10  ;;  %v4189_v50 = vadd.f32 %v16287_v31, %v4132_v33  ;;  %v4190_v63 = vadd.f32 %v16287_v31, %v4133_v27  ;;  %v6101_v61 = vpack.c.bf16 %v6093_v17, %v6089_v36  ;;  %v8915_v21 = vld [vmem:[%s15438_s6 + $0xa0] sm:$0xff]   ;;  %v8917_v3 = vld [vmem:[%s15438_s6 + $0xd8] sm:$0xff]   ;;  %v8921_v9 = vld [vmem:[%s15438_s6 + $0xd0] sm:$0xff]  }
 0x3c0   : > { %v6094_v23 = vmul.f32 %v6078_v26, %v6062_v14  ;;  %v6103_v32 = vpack.c.bf16 %v6095_v55, %v6091_v11  ;;  %v16290_v2 = vmov 0   ;;  %v8918_v4 = vld [vmem:[%s15438_s6 + $0x18] sm:$0xff]   ;;  %v8922_v24 = vld [vmem:[%s15438_s6 + $0x10] sm:$0xff]   ;;  %v8924_v26 = vld [vmem:[%s15438_s6 + $0x48] sm:$0xff]  }
 0x3c1   : > { %v6096_v16 = vmul.f32 %v6080_v57, %v6064_v28  ;;  %v4246_v47 = vadd.f32 %v16288_v49, %v4189_v50  ;;  %v4247_v8 = vadd.f32 %v16288_v49, %v4190_v63  ;;  %v8919_v1 = vld [vmem:[%s15438_s6 + $0x98] sm:$0xff]   ;;  %v8923_v14 = vld [vmem:[%s15438_s6 + $0x90] sm:$0xff]   ;;  %v8925_v10 = vld [vmem:[%s15438_s6 + $0xc8] sm:$0xff]  }
 0x3c2   : > { %v6102_v43 = vpack.c.bf16 %v6094_v23, %v6090_v20  ;;  %v8926_v28 = vld [vmem:[%s15438_s6 + $0x8] sm:$0xff]   ;;  %v8928_v57 = vld [vmem:[%s15438_s6 + $0x40] sm:$0xff]  }
 0x3c3   : > { %v6104_v40 = vpack.c.bf16 %v6096_v16, %v6092_v58  ;;  %v4303_v41 = vadd.f32 %v16289_v44, %v4246_v47  ;;  %v4304_v12 = vadd.f32 %v16289_v44, %v4247_v8  ;;  %v8927_v17 = vld [vmem:[%s15438_s6 + $0x88] sm:$0xff]   ;;  %v8929_v45 = vld [vmem:[%s15438_s6 + $0xc0] sm:$0xff]  }
 0x3c4   : > { %6145 = vmatprep.mubr.bf16.mxu0 %v6102_v43  ;;  %v8930_v33 = vld [vmem:[%s15438_s6] sm:$0xff]   ;;  %v8933_v20 = vld [vmem:[%s15436_s4 + $0xec] ss:$16 sps:$4 sm:$0xff]  }
 0x3c5   : > { %6194 = vmatprep.mubr.bf16.mxu1 %v6104_v40  ;;  %6146 = vmatmul.mubr.bf16.gmra.mxu0 %v6101_v61  ;;  %v4360_v34 = vadd.f32 %v16291_v53, %v4303_v41  ;;  %v4361_v46 = vadd.f32 %v16291_v53, %v4304_v12  ;;  %v8931_v27 = vld [vmem:[%s15438_s6 + $0x80] sm:$0xff]   ;;  %v16297_v53 = vld [vmem:[#allocation12_spill] sm:$0xff] }
 0x3c6   : > { %6195 = vmatmul.mubr.bf16.gmra.mxu1 %v6103_v32  ;;  %6255 = vmatprep.mubr.bf16.mxu0 %v16290_v2  ;;  %v8932_v36 = vld [vmem:[%s15436_s4 + $0xe4] ss:$16 sps:$4 sm:$0xff]   ;;  %v8934_v44 = vld [vmem:[%s15433_s1 + $0x2] ss:$0 sm:$0xff] }
 0x3c7   : > { %6308 = vmatprep.mubr.bf16.mxu1 %v16290_v2  ;;  %v4417_v25 = vadd.f32 %v16292_v13, %v4360_v34  ;;  %v4418_v37 = vadd.f32 %v16292_v13, %v4361_v46  ;;  %v16296_v47 = vld [vmem:[#allocation7_spill] sm:$0xff] }
 0x3c9   : > { %v14401_v39 = vpack.c.bf16 %v4418_v37, %v4417_v25 }
 0x3cb   : > { %16293 = vst [vmem:[#allocation28_spill] sm:$0xff] %v14401_v39 }
 0x3cd   : > { %6256 = vmatmul.mubr.bf16.vlgmr.msra.gmra.mxu0 %v16294_v48 }
 0x3ce   : > { %6309 = vmatmul.mubr.bf16.vlgmr.msra.gmra.mxu1 %v16294_v48  ;;  %6265 = vmatprep.mubr.bf16.mxu0 %v16290_v2 }
 0x3cf   : > { %6318 = vmatprep.mubr.bf16.mxu1 %v16290_v2  ;;  %8177 = vmatpush3.bf16.msra.mxu0 %v8902_v6 }
 0x3d0   : > { %8205 = vmatpush3.bf16.msra.mxu1 %v8903_v29  ;;  %8178 = vmatprep.subr.bf16.mxu0 %v8904_v42 }
 0x3d1   : > { %8206 = vmatprep.subr.bf16.mxu1 %v8905_v30 }
 0x3d3   : > { %8179 = vmatpush3.bf16.msra.mxu0 %v8906_v59 }
 0x3d4   : > { %8207 = vmatpush3.bf16.msra.mxu1 %v8907_v54  ;;  %8180 = vmatprep.subr.bf16.mxu0 %v8908_v51 }
 0x3d5   : > { %6266 = vmatmul.mubr.bf16.gmra.mxu0 %v16295_v62  ;;  %8208 = vmatprep.subr.bf16.mxu1 %v8909_v22  ;;  %v16298_v22 = vld [vmem:[#allocation18_spill] sm:$0xff] }
 0x3d6   : > { %6319 = vmatmul.mubr.bf16.gmra.mxu1 %v16295_v62 }
 0x3d7   : > { %8181 = vmatpush3.bf16.msra.mxu0 %v8910_v5 }
 0x3d8   : > { %8209 = vmatpush3.bf16.msra.mxu1 %v8911_v0  ;;  %8182 = vmatprep.subr.bf16.mxu0 %v8912_v19 }
 0x3d9   : > { %8210 = vmatprep.subr.bf16.mxu1 %v8913_v52 }
 0x3db   : > { %8183 = vmatpush3.bf16.msra.mxu0 %v8914_v60 }
 0x3dc   : > { %8211 = vmatpush3.bf16.msra.mxu1 %v8915_v21  ;;  %8184 = vmatprep.subr.bf16.mxu0 %v8916_v56 }
 0x3dd   : > { %8212 = vmatprep.subr.bf16.mxu1 %v8917_v3 }
 0x3df   : > { %8185 = vmatpush3.bf16.msra.mxu0 %v8918_v4 }
 0x3e0   : > { %8213 = vmatpush3.bf16.msra.mxu1 %v8919_v1  ;;  %8186 = vmatprep.subr.bf16.mxu0 %v8920_v15 }
 0x3e1   : > { %8214 = vmatprep.subr.bf16.mxu1 %v8921_v9 }
 0x3e3   : > { %8187 = vmatpush3.bf16.msra.mxu0 %v8922_v24  ;;  %v16299_v24 = vld [vmem:[#allocation23_spill] sm:$0xff] }
 0x3e4   : > { %8215 = vmatpush3.bf16.msra.mxu1 %v8923_v14  ;;  %8188 = vmatprep.subr.bf16.mxu0 %v8924_v26 }
 0x3e5   : > { %8216 = vmatprep.subr.bf16.mxu1 %v8925_v10 }
 0x3e7   : > { %8189 = vmatpush3.bf16.msra.mxu0 %v8926_v28 }
 0x3e8   : > { %8217 = vmatpush3.bf16.msra.mxu1 %v8927_v17  ;;  %8190 = vmatprep.subr.bf16.mxu0 %v8928_v57 }
 0x3e9   : > { %8218 = vmatprep.subr.bf16.mxu1 %v8929_v45 }
 0x3eb   : > { %8191 = vmatpush3.bf16.msra.mxu0 %v8930_v33 }
 0x3ec   : > { %8219 = vmatpush3.bf16.msra.mxu1 %v8931_v27  ;;  %6887 = vmatprep.subr.bf16.mxu0 %v8932_v36 }
 0x3ed   : > { %6940 = vmatprep.subr.bf16.mxu1 %v8933_v20 }
 0x452   : > { %v8136_v55 = vpop.f32.mrf.mxu0 }
 0x454   : > { %v8164_v23 = vpop.f32.mrf.mxu1  ;;  %v8137_v58 = vpop.f32.mrf.mxu0 }
 0x455   : > { %v8138_v16 = vadd.f32 %v8137_v58, %v8136_v55 }
 0x456   : > { %v8165_v31 = vpop.f32.mrf.mxu1  ;;  %v8139_v50 = vpop.f32.mrf.mxu0 }
 0x457   : > { %v8166_v63 = vadd.f32 %v8165_v31, %v8164_v23 }
 0x458   : > { %v8167_v11 = vpop.f32.mrf.mxu1  ;;  %v8140_v43 = vpop.f32.mrf.mxu0 }
 0x459   : > { %v6189_v40 = vadd.f32 %v8166_v63, %v8138_v16  ;;  %v8141_v61 = vadd.f32 %v8140_v43, %v8139_v50 }
 0x45a   : > { %v8168_v49 = vpop.f32.mrf.mxu1 }
 0x45b   : > { %v6208_v8 = vadd.f32 %v6189_v40, %v16296_v47  ;;  %v8169_v32 = vadd.f32 %v8168_v49, %v8167_v11 }
 0x45d   : > { %v6212_v41 = vadd.f32 %v8934_v44, %v6208_v8  ;;  %v6192_v12 = vadd.f32 %v8169_v32, %v8141_v61 }
 0x45f   : > { %7985 = vst [vmem:[%s13761_s27 + $0x20] sm:$0xff] %v6212_v41  ;;  %v6209_v34 = vadd.f32 %v6192_v12, %v16297_v53 }
 0x461   : > { %v6213_v46 = vadd.f32 %v8934_v44, %v6209_v34 }
 0x463   : > { %7986 = vst [vmem:[%s13761_s27 + $0x28] sm:$0xff] %v6213_v46 }
 0x485   : > { %v8142_v13 = vpop.f32.mrf.mxu0 }
 0x486   : > { %v8170_v25 = vpop.f32.mrf.mxu1 }
 0x487   : > { %v8143_v37 = vpop.f32.mrf.mxu0 }
 0x488   : > { %v8144_v48 = vadd.f32 %v8143_v37, %v8142_v13  ;;  %v8171_v6 = vpop.f32.mrf.mxu1 }
 0x489   : > { %v8172_v29 = vadd.f32 %v8171_v6, %v8170_v25  ;;  %v8145_v42 = vpop.f32.mrf.mxu0 }
 0x48a   : > { %v8173_v30 = vpop.f32.mrf.mxu1 }
 0x48b   : > { %v6197_v59 = vadd.f32 %v8172_v29, %v8144_v48  ;;  %v8146_v54 = vpop.f32.mrf.mxu0 }
 0x48c   : > { %v8147_v51 = vadd.f32 %v8146_v54, %v8145_v42  ;;  %v8174_v62 = vpop.f32.mrf.mxu1 }
 0x48d   : > { %v6210_v5 = vadd.f32 %v6197_v59, %v16298_v22  ;;  %v8175_v0 = vadd.f32 %v8174_v62, %v8173_v30  ;;  %v6257_v19 = vpop.f32.mrf.mxu0 }
 0x48e   : > { %v14514_v52 = vadd.f32 %v6257_v19, %v16269_v35  ;;  %v6310_v60 = vpop.f32.mrf.mxu1 }
 0x48f   : > { %v6214_v21 = vadd.f32 %v8934_v44, %v6210_v5  ;;  %v6200_v56 = vadd.f32 %v8175_v0, %v8147_v51  ;;  %v14517_v3 = vadd.f32 %v6310_v60, %v16279_v7  ;;  %v6259_v4 = vpop.f32.mrf.mxu0 }
 0x490   : > { %v14520_v1 = vmul.f32 0.70710677, %v14514_v52  ;;  %v14523_v15 = vadd.f32 %v6259_v4, %v16271_v18  ;;  %v6312_v9 = vpop.f32.mrf.mxu1 }
 0x491   : > { %7987 = vst [vmem:[%s13761_s27 + $0x30] sm:$0xff] %v6214_v21  ;;  %v6211_v14 = vadd.f32 %v6200_v56, %v16299_v24  ;;  %v14528_v26 = vmul.f32 0.70710677, %v14517_v3  ;;  %v14531_v10 = vadd.f32 %v6312_v9, %v16273_v38  ;;  %v6261_v20 = vpop.f32.mrf.mxu0 }
 0x492   : > { %v6345_v28 = vand.u32 2147483647, %v14520_v1  ;;  %v14535_v17 = vmul.f32 0.70710677, %v14523_v15  ;;  %v6314_v58 = vpop.f32.mrf.mxu1  ;;  %v14551_v49 = vadd.f32 %v6261_v20, %v16269_v35  ;;  %vm6665_vm0 = vcmp.ge.f32.partialorder %v14520_v1, 0.0 }
 0x493   : > { %v6215_v57 = vadd.f32 %v8934_v44, %v6211_v14  ;;  %v6347_v45 = vand.u32 2147483647, %v14528_v26  ;;  %v14539_v33 = vmul.f32 0.70710677, %v14531_v10  ;;  %v6263_v43 = vpop.f32.mrf.mxu0  ;;  %v14554_v47 = vadd.f32 %v6314_v58, %v16279_v7 }
 0x494   : > { %v6361_v27 = vmul.f32 0.3275911, %v6345_v28  ;;  %v14542_v36 = vand.u32 2147483647, %v14535_v17  ;;  %v6316_v40 = vpop.f32.mrf.mxu1  ;;  %v14557_v8 = vadd.f32 %v6263_v43, %v16271_v18  ;;  %v14560_v32 = vmul.f32 0.70710677, %v14551_v49 }
 0x495   : > { %7988 = vst [vmem:[%s13761_s27 + $0x38] sm:$0xff] %v6215_v57  ;;  %v6363_v55 = vmul.f32 0.3275911, %v6347_v45  ;;  %v14546_v23 = vand.u32 2147483647, %v14539_v33  ;;  %v14563_v44 = vadd.f32 %v6316_v40, %v16273_v38  ;;  %v6569_v42 = vsub.f32 0.0, %v6345_v28 }
 0x496   : > { %v6377_v16 = vadd.f32 1.0, %v6361_v27  ;;  %v6362_v31 = vmul.f32 0.3275911, %v14542_v36  ;;  %v14566_v41 = vmul.f32 0.70710677, %v14554_v47  ;;  %v6571_v62 = vsub.f32 0.0, %v6347_v45 }
 0x497   : > { %v6379_v50 = vadd.f32 1.0, %v6363_v55  ;;  %v6364_v63 = vmul.f32 0.3275911, %v14546_v23  ;;  %v14569_v12 = vmul.f32 0.70710677, %v14557_v8  ;;  %v6585_v19 = vmul.f32 %v6569_v42, %v6345_v28 }
 0x498   : > { %8507 = vrcp.f32 %v6377_v16  ;;  %v6378_v11 = vadd.f32 1.0, %v6362_v31  ;;  %v6349_v53 = vand.u32 2147483647, %v14560_v32  ;;  %v6351_v34 = vand.u32 2147483647, %v14566_v41 }
 0x499   : > { %8509 = vrcp.f32 %v6379_v50  ;;  %v6380_v61 = vadd.f32 1.0, %v6364_v63  ;;  %v6350_v46 = vand.u32 2147483647, %v14569_v12  ;;  %v14575_v25 = vmul.f32 0.70710677, %v14563_v44 }
 0x49a   : > { %8511 = vrcp.f32 %v6378_v11  ;;  %v6365_v13 = vmul.f32 0.3275911, %v6349_v53  ;;  %v6367_v37 = vmul.f32 0.3275911, %v6351_v34  ;;  %v6587_v9 = vmul.f32 %v6571_v62, %v6347_v45 }
 0x49b   : > { %8513 = vrcp.f32 %v6380_v61  ;;  %v6366_v48 = vmul.f32 0.3275911, %v6350_v46  ;;  %v14578_v29 = vand.u32 2147483647, %v14575_v25  ;;  %v6570_v24 = vsub.f32 0.0, %v14542_v36 }
 0x49c   : > { %v6381_v6 = vadd.f32 1.0, %v6365_v13  ;;  %v6383_v30 = vadd.f32 1.0, %v6367_v37  ;;  %v6601_v20 = vmul.f32 1.442695, %v6585_v19  ;;  %v6572_v55 = vsub.f32 0.0, %v14546_v23 }
 0x49d   : > { %v6382_v59 = vadd.f32 1.0, %v6366_v48  ;;  %v6368_v54 = vmul.f32 0.3275911, %v14578_v29  ;;  %v6573_v31 = vsub.f32 0.0, %v6349_v53  ;;  %v6605_v50 = vmul.f32 1.442695, %v6587_v9 }
 0x49e   : > { %8515 = vrcp.f32 %v6381_v6  ;;  %v6586_v45 = vmul.f32 %v6570_v24, %v14542_v36  ;;  %v6575_v63 = vsub.f32 0.0, %v6351_v34  ;;  %v6588_v13 = vmul.f32 %v6572_v55, %v14546_v23  ;;  %v6320_v36 = vpop.f32.mrf.mxu1 }
 0x49f   : > { %8517 = vrcp.f32 %v6383_v30  ;;  %v6384_v0 = vadd.f32 1.0, %v6368_v54  ;;  %v6574_v37 = vsub.f32 0.0, %v6350_v46  ;;  %v6589_v48 = vmul.f32 %v6573_v31, %v6349_v53  ;;  %v6267_v54 = vpop.f32.mrf.mxu0 }
 0x4a0   : > { %8519 = vrcp.f32 %v6382_v59  ;;  %v6603_v42 = vmul.f32 1.442695, %v6586_v45  ;;  %v6591_v59 = vmul.f32 %v6575_v63, %v6351_v34  ;;  %v6576_v19 = vsub.f32 0.0, %v14578_v29 }
 0x4a1   : > { %8521 = vrcp.f32 %v6384_v0  ;;  %v6609_v24 = vmul.f32 1.442695, %v6589_v48  ;;  %v14611_v34 = vadd.f32 %v6267_v54, %v16269_v35  ;;  %vm6667_vm3 = vcmp.ge.f32.partialorder %v14528_v26, 0.0 }
 0x4a2   : > { %8523 = vpow2.f32 %v6601_v20  ;;  %v6613_v55 = vmul.f32 1.442695, %v6591_v59  ;;  %vm6666_vm4 = vcmp.ge.f32.partialorder %v14535_v17, 0.0  ;;  %vm6668_vm8 = vcmp.ge.f32.partialorder %v14539_v33, 0.0 }
 0x4a3   : > { %8525 = vpow2.f32 %v6605_v50  ;;  %vm6669_vm9 = vcmp.ge.f32.partialorder %v14560_v32, 0.0  ;;  %vm6671_vm10 = vcmp.ge.f32.partialorder %v14566_v41, 0.0  ;;  %vm6670_vm11 = vcmp.ge.f32.partialorder %v14569_v12, 0.0 }
 0x4a4   : > { %8527 = vpow2.f32 %v6603_v42  ;;  %vm6672_vm12 = vcmp.ge.f32.partialorder %v14575_v25, 0.0  ;;  %v6720_v1 = vmul.f32 0.5, %v14563_v44 }
 0x4a5   : > { %v14581_v51 = vpop.eup %8507  ;;  %8529 = vpow2.f32 %v6609_v24 }
 0x4a6   : > { %v14583_v22 = vpop.eup %8509  ;;  %v6425_v5 = vmul.f32 1.0614054, %v14581_v51 }
 0x4a7   : > { %v6427_v60 = vmul.f32 1.0614054, %v14583_v22  ;;  %v14587_v56 = vpop.eup %8511 }
 0x4a8   : > { %v7989_v21 = vadd.f32 -1.4531521, %v6425_v5  ;;  %v6426_v57 = vmul.f32 1.0614054, %v14587_v56  ;;  %v14592_v27 = vpop.eup %8513 }
 0x4a9   : > { %v7991_v4 = vadd.f32 -1.4531521, %v6427_v60  ;;  %v6428_v16 = vmul.f32 1.0614054, %v14592_v27  ;;  %v6607_v60 = vmul.f32 1.442695, %v6588_v13 }
 0x4aa   : > { %v6457_v14 = vmul.f32 %v14581_v51, %v7989_v21  ;;  %v7990_v58 = vadd.f32 -1.4531521, %v6426_v57 }
 0x4ab   : > { %v6459_v28 = vmul.f32 %v14583_v22, %v7991_v4  ;;  %v7992_v40 = vadd.f32 -1.4531521, %v6428_v16  ;;  %v14600_v6 = vpop.eup %8515  ;;  %v6590_v4 = vmul.f32 %v6574_v37, %v6350_v46  ;;  %v6592_v46 = vmul.f32 %v6576_v19, %v14578_v29 }
 0x4ac   : > { %v6473_v11 = vadd.f32 1.4214138, %v6457_v14  ;;  %v6458_v61 = vmul.f32 %v14587_v56, %v7990_v58  ;;  %v14603_v62 = vpop.eup %8517  ;;  %v6429_v23 = vmul.f32 1.0614054, %v14600_v6  ;;  %v14614_v14 = vadd.f32 %v6320_v36, %v16279_v7 }
 0x4ad   : > { %v6475_v43 = vadd.f32 1.4214138, %v6459_v28  ;;  %v6460_v30 = vmul.f32 %v14592_v27, %v7992_v40  ;;  %v6431_v21 = vmul.f32 1.0614054, %v14603_v62  ;;  %v14616_v57 = vpop.eup %8519  ;;  %v6615_v36 = vmul.f32 1.442695, %v6592_v46 }
 0x4ae   : > { %v6489_v5 = vmul.f32 %v14581_v51, %v6473_v11  ;;  %v6474_v53 = vadd.f32 1.4214138, %v6458_v61  ;;  %v7993_v9 = vadd.f32 -1.4531521, %v6429_v23  ;;  %v14620_v50 = vpop.eup %8521  ;;  %v6430_v11 = vmul.f32 1.0614054, %v14616_v57 }
 0x4af   : > { %v6491_v0 = vmul.f32 %v14583_v22, %v6475_v43  ;;  %v6476_v20 = vadd.f32 1.4214138, %v6460_v30  ;;  %v7995_v28 = vadd.f32 -1.4531521, %v6431_v21  ;;  %v6611_v43 = vmul.f32 1.442695, %v6590_v4 }
 0x4b0   : > { %v8005_v58 = vadd.f32 -0.28449672, %v6489_v5  ;;  %v6461_v31 = vmul.f32 %v14600_v6, %v7993_v9  ;;  %v6490_v45 = vmul.f32 %v14587_v56, %v6474_v53  ;;  %v14626_v61 = vmul.f32 0.70710677, %v14611_v34  ;;  %v8524_v9 = vpop.eup %8523 }
 0x4b1   : > { %v8007_v16 = vadd.f32 -0.28449672, %v6491_v0  ;;  %v6463_v63 = vmul.f32 %v14603_v62, %v7995_v28  ;;  %v14629_v13 = vmul.f32 0.70710677, %v14614_v14  ;;  %v6492_v37 = vmul.f32 %v14592_v27, %v6476_v20 }
 0x4b2   : > { %v6477_v40 = vadd.f32 1.4214138, %v6461_v31  ;;  %v7994_v48 = vadd.f32 -1.4531521, %v6430_v11  ;;  %v6432_v42 = vmul.f32 1.0614054, %v14620_v50  ;;  %v6521_v30 = vmul.f32 %v14581_v51, %v8005_v58 }
 0x4b3   : > { %v6479_v29 = vadd.f32 1.4214138, %v6463_v63  ;;  %v6523_v59 = vmul.f32 %v14583_v22, %v8007_v16  ;;  %v8006_v5 = vadd.f32 -0.28449672, %v6490_v45  ;;  %8531 = vpow2.f32 %v6611_v43  ;;  %v8526_v16 = vpop.eup %8525 }
 0x4b4   : > { %v6493_v54 = vmul.f32 %v14600_v6, %v6477_v40  ;;  %v6462_v23 = vmul.f32 %v14616_v57, %v7994_v48  ;;  %v7996_v19 = vadd.f32 -1.4531521, %v6432_v42  ;;  %v14639_v21 = vand.u32 2147483647, %v14626_v61 }
 0x4b5   : > { %v6495_v0 = vmul.f32 %v14603_v62, %v6479_v29  ;;  %v14642_v4 = vand.u32 2147483647, %v14629_v13  ;;  %v8008_v24 = vadd.f32 -0.28449672, %v6492_v37  ;;  %v6537_v31 = vadd.f32 0.2548296, %v6521_v30  ;;  %v6269_v30 = vpop.f32.mrf.mxu0 }
 0x4b6   : > { %v8009_v53 = vadd.f32 -0.28449672, %v6493_v54  ;;  %v6478_v28 = vadd.f32 1.4214138, %v6462_v23  ;;  %v6464_v58 = vmul.f32 %v14620_v50, %v7996_v19  ;;  %v6539_v46 = vadd.f32 0.2548296, %v6523_v59 }
 0x4b7   : > { %v8011_v20 = vadd.f32 -0.28449672, %v6495_v0  ;;  %8533 = vpow2.f32 %v6607_v60  ;;  %v6522_v45 = vmul.f32 %v14587_v56, %v8006_v5  ;;  %v6369_v43 = vmul.f32 0.3275911, %v14639_v21  ;;  %v8528_v60 = vpop.eup %8527 }
 0x4b8   : > { %v6525_v63 = vmul.f32 %v14600_v6, %v8009_v53  ;;  %8535 = vpow2.f32 %v6613_v55  ;;  %v6494_v11 = vmul.f32 %v14616_v57, %v6478_v28  ;;  %v6371_v40 = vmul.f32 0.3275911, %v14642_v4 }
 0x4b9   : > { %8537 = vpow2.f32 %v6615_v36  ;;  %v6524_v37 = vmul.f32 %v14592_v27, %v8008_v24  ;;  %v6527_v29 = vmul.f32 %v14603_v62, %v8011_v20  ;;  %v6480_v42 = vadd.f32 1.4214138, %v6464_v58  ;;  %v8530_v24 = vpop.eup %8529 }
 0x4ba   : > { %v8010_v48 = vadd.f32 -0.28449672, %v6494_v11  ;;  %v6553_v59 = vmul.f32 %v14581_v51, %v6537_v31  ;;  %v6555_v54 = vmul.f32 %v14583_v22, %v6539_v46  ;;  %v6538_v55 = vadd.f32 0.2548296, %v6522_v45 }
 0x4bb   : > { %v6541_v5 = vadd.f32 0.2548296, %v6525_v63  ;;  %v6496_v0 = vmul.f32 %v14620_v50, %v6480_v42  ;;  %v6385_v23 = vadd.f32 1.0, %v6369_v43  ;;  %v6387_v19 = vadd.f32 1.0, %v6371_v40 }
 0x4bc   : > { %v6526_v36 = vmul.f32 %v14616_v57, %v8010_v48  ;;  %v14657_v53 = vadd.f32 %v6269_v30, %v16271_v18  ;;  %v6540_v20 = vadd.f32 0.2548296, %v6524_v37  ;;  %v6543_v28 = vadd.f32 0.2548296, %v6527_v29  ;;  %v6322_v37 = vpop.f32.mrf.mxu1 }
 0x4bd   : > { %v6633_v11 = vmul.f32 %v8524_v9, %v6553_v59  ;;  %v6635_v39 = vmul.f32 %v8526_v16, %v6555_v54  ;;  %v8012_v51 = vadd.f32 -0.28449672, %v6496_v0  ;;  %v14660_v22 = vmul.f32 0.5, %v14514_v52 }
 0x4be   : > { %v6542_v58 = vadd.f32 0.2548296, %v6526_v36  ;;  %v6554_v31 = vmul.f32 %v14587_v56, %v6538_v55  ;;  %v6557_v46 = vmul.f32 %v14600_v6, %v6541_v5  ;;  %v14666_v63 = vmul.f32 0.5, %v14517_v3 }
 0x4bf   : > { %v6528_v43 = vmul.f32 %v14620_v50, %v8012_v51  ;;  %8539 = vrcp.f32 %v6385_v23  ;;  %v14670_v40 = vmul.f32 0.70710677, %v14657_v53  ;;  %v6556_v52 = vmul.f32 %v14592_v27, %v6540_v20 }
 0x4c0   : > { %v6558_v45 = vmul.f32 %v14616_v57, %v6542_v58  ;;  %v8532_v9 = vpop.eup %8531  ;;  %v6559_v56 = vmul.f32 %v14603_v62, %v6543_v28  ;;  %8541 = vrcp.f32 %v6387_v19  ;;  %v6649_v6 = vsub.f32 1.0, %v6633_v11  ;;  %v6271_v11 = vpop.f32.mrf.mxu0 }
 0x4c1   : > { %v6651_v16 = vsub.f32 1.0, %v6635_v39  ;;  %v6544_v57 = vadd.f32 0.2548296, %v6528_v43  ;;  %v14676_v3 = vand.u32 2147483647, %v14670_v40  ;;  %v6634_v48 = vmul.f32 %v8528_v60, %v6554_v31 }
 0x4c2   : > { %v14679_v42 = vmul.f32 0.5, %v14523_v15  ;;  %v6637_v30 = vmul.f32 %v8530_v24, %v6557_v46  ;;  %v6638_v59 = vmul.f32 %v8532_v9, %v6558_v45  ;;  %v14683_v27 = vmul.f32 0.5, %v14531_v10  ;;  %v6273_v33 = vpop.f32.mrf.mxu0 }
 0x4c3   : > { %v6560_v39 = vmul.f32 %v14620_v50, %v6544_v57  ;;  %v6370_v62 = vmul.f32 0.3275911, %v14676_v3  ;;  %v14688_v36 = vmul.f32 0.5, %v14551_v49  ;;  %v14691_v15 = vadd.f32 %v6322_v37, %v16273_v38  ;;  %v6324_v57 = vpop.f32.mrf.mxu1 }
 0x4c4   : > { %v8534_v29 = vpop.eup %8533  ;;  %v6681_v0 = vsub.f32 0.0, %v6649_v6  ;;  %v6683_v23 = vsub.f32 0.0, %v6651_v16  ;;  %v6650_v24 = vsub.f32 1.0, %v6634_v48  ;;  %v6653_v20 = vsub.f32 1.0, %v6637_v30 }
 0x4c5   : > { %v8536_v54 = vpop.eup %8535  ;;  %v6636_v5 = vmul.f32 %v8534_v29, %v6556_v52  ;;  %v6386_v10 = vadd.f32 1.0, %v6370_v62  ;;  %v14695_v50 = vmul.f32 0.5, %v14554_v47  ;;  %v6654_v28 = vsub.f32 1.0, %v6638_v59 }
 0x4c6   : > { %v8538_v55 = vpop.eup %8537  ;;  %v6639_v60 = vmul.f32 %v8536_v54, %v6559_v56  ;;  %v6718_v49 = vmul.f32 0.5, %v14557_v8  ;;  %v6577_v46 = vsub.f32 0.0, %v14639_v21  ;;  %v6697_v47 = vsel %vm6665_vm0, %v6649_v6, %v6681_v0 }
 0x4c7   : > { %v6640_v19 = vmul.f32 %v8538_v55, %v6560_v39  ;;  %v6652_v51 = vsub.f32 1.0, %v6636_v5  ;;  %8543 = vrcp.f32 %v6386_v10  ;;  %v6699_v45 = vsel %vm6667_vm3, %v6651_v16, %v6683_v23 }
 0x4c8   : > { %v6655_v31 = vsub.f32 1.0, %v6639_v60  ;;  %v14708_v43 = vmul.f32 0.70710677, %v14691_v15  ;;  %v6682_v9 = vsub.f32 0.0, %v6650_v24  ;;  %v6685_v8 = vsub.f32 0.0, %v6653_v20 }
 0x4c9   : > { %v6656_v58 = vsub.f32 1.0, %v6640_v19  ;;  %v6686_v52 = vsub.f32 0.0, %v6654_v28  ;;  %v14711_v56 = vadd.f32 %v6271_v11, %v16269_v35  ;;  %v6684_v16 = vsub.f32 0.0, %v6652_v51 }
 0x4ca   : > { %v14716_v26 = vand.u32 2147483647, %v14708_v43  ;;  %v6687_v29 = vsub.f32 0.0, %v6655_v31  ;;  %v14721_v48 = vmul.f32 %v6577_v46, %v14639_v21  ;;  %v6729_v54 = vadd.f32 1.0, %v6697_v47 }
 0x4cb   : > { %v6688_v37 = vsub.f32 0.0, %v6656_v58  ;;  %v14724_v30 = vmul.f32 0.70710677, %v14711_v56  ;;  %v6731_v39 = vadd.f32 1.0, %v6699_v45  ;;  %v14730_v44 = vadd.f32 %v6324_v57, %v16279_v7 }
 0x4cc   : > { %v14718_v6 = vpop.eup %8539  ;;  %v6372_v62 = vmul.f32 0.3275911, %v14716_v26  ;;  %v6698_v55 = vsel %vm6666_vm4, %v6650_v24, %v6682_v9  ;;  %v6701_v5 = vsel %vm6669_vm9, %v6653_v20, %v6685_v8  ;;  %v6702_v21 = vsel %vm6670_vm11, %v6654_v28, %v6686_v52  ;;  %v6326_v9 = vpop.f32.mrf.mxu1 }
 0x4cd   : > { %v14726_v59 = vpop.eup %8541  ;;  %v14739_v60 = vand.u32 2147483647, %v14724_v30  ;;  %v6704_v0 = vsel %vm6672_vm12, %v6656_v58, %v6688_v37  ;;  %v6433_v23 = vmul.f32 1.0614054, %v14718_v6  ;;  %v14745_v10 = vmul.f32 0.70710677, %v14730_v44 }
 0x4ce   : > { %v6388_v19 = vadd.f32 1.0, %v6372_v62  ;;  %v6700_v17 = vsel %vm6668_vm8, %v6652_v51, %v6684_v16  ;;  %v6703_v32 = vsel %vm6671_vm10, %v6655_v31, %v6687_v29  ;;  %v6435_v12 = vmul.f32 1.0614054, %v14726_v59 }
 0x4cf   : > { %v6373_v24 = vmul.f32 0.3275911, %v14739_v60  ;;  %v6733_v20 = vadd.f32 1.0, %v6701_v5  ;;  %v6734_v28 = vadd.f32 1.0, %v6702_v21  ;;  %v14754_v25 = vand.u32 2147483647, %v14745_v10 }
 0x4d0   : > { %8545 = vrcp.f32 %v6388_v19  ;;  %v6730_v58 = vadd.f32 1.0, %v6698_v55  ;;  %v6736_v11 = vadd.f32 1.0, %v6704_v0  ;;  %v6579_v46 = vsub.f32 0.0, %v14642_v4 }
 0x4d1   : > { %v6389_v47 = vadd.f32 1.0, %v6373_v24  ;;  %v6745_v51 = vmul.f32 %v6729_v54, %v14660_v22  ;;  %v6735_v41 = vadd.f32 1.0, %v6703_v32  ;;  %v7997_v31 = vadd.f32 -1.4531521, %v6433_v23 }
 0x4d2   : > { %v6375_v45 = vmul.f32 0.3275911, %v14754_v25  ;;  %v6747_v8 = vmul.f32 %v6731_v39, %v14666_v63  ;;  %v6732_v52 = vadd.f32 1.0, %v6700_v17  ;;  %v7999_v57 = vadd.f32 -1.4531521, %v6435_v12 }
 0x4d3   : > { %8547 = vrcp.f32 %v6389_v47  ;;  %v6749_v16 = vmul.f32 %v6733_v20, %v14688_v36  ;;  %v6750_v29 = vmul.f32 %v6734_v28, %v6718_v49  ;;  %v14764_v55 = vadd.f32 %v6273_v33, %v16271_v18 }
 0x4d4   : > { %v14760_v37 = vpop.eup %8543  ;;  %v6391_v62 = vadd.f32 1.0, %v6375_v45  ;;  %v6746_v22 = vmul.f32 %v6730_v58, %v14679_v42  ;;  %v6752_v54 = vmul.f32 %v6736_v11, %v6720_v1  ;;  %v14769_v21 = vadd.f32 %v6326_v9, %v16273_v38  ;;  %v8935_v9 = vld [vmem:[%s15436_s4 + $0xe0] ss:$16 sps:$4 sm:$0xff]  }
 0x4d5   : > { %v6434_v5 = vmul.f32 1.0614054, %v14760_v37  ;;  %v6751_v63 = vmul.f32 %v6735_v41, %v14695_v50  ;;  %v6465_v39 = vmul.f32 %v14718_v6, %v7997_v31  ;;  %v14774_v36 = vmul.f32 0.70710677, %v14764_v55 }
 0x4d6   : > { %8549 = vrcp.f32 %v6391_v62  ;;  %v6748_v49 = vmul.f32 %v6732_v52, %v14683_v27  ;;  %v6467_v0 = vmul.f32 %v14726_v59, %v7999_v57  ;;  %v14779_v42 = vmul.f32 0.70710677, %v14769_v21 }
 0x4d7   : > { %v7998_v23 = vadd.f32 -1.4531521, %v6434_v5  ;;  %v6761_v1 = vpack.c.bf16 %v6749_v16, %v6745_v51  ;;  %v6578_v19 = vsub.f32 0.0, %v14676_v3  ;;  %v14783_v17 = vand.u32 2147483647, %v14774_v36 }
 0x4d8   : > { %v6762_v50 = vpack.c.bf16 %v6750_v29, %v6746_v22  ;;  %v6581_v12 = vsub.f32 0.0, %v14739_v60  ;;  %v14788_v24 = vand.u32 2147483647, %v14779_v42  ;;  %v6764_v27 = vpack.c.bf16 %v6752_v54, %v6748_v49  ;;  %v8936_v16 = vld [vmem:[%s15436_s4 + $0xe8] ss:$16 sps:$4 sm:$0xff]  }
 0x4d9   : > { %v6466_v32 = vmul.f32 %v14760_v37, %v7998_v23  ;;  %v6763_v20 = vpack.c.bf16 %v6751_v63, %v6747_v8  ;;  %v6481_v28 = vadd.f32 1.4214138, %v6465_v39  ;;  %v6580_v58 = vsub.f32 0.0, %v14716_v26 }
 0x4da   : > { %v6374_v11 = vmul.f32 0.3275911, %v14783_v17  ;;  %6801 = vmatprep.mubr.bf16.mxu0 %v6762_v50  ;;  %v6595_v47 = vmul.f32 %v6579_v46, %v14642_v4  ;;  %v6583_v33 = vsub.f32 0.0, %v14754_v25  ;;  %v6376_v51 = vmul.f32 0.3275911, %v14788_v24  ;;  %6850 = vmatprep.mubr.bf16.mxu1 %v6764_v27 }
 0x4db   : > { %6802 = vmatmul.mubr.bf16.vlgmr.msra.gmra.mxu0 %v6761_v1  ;;  %v6482_v41 = vadd.f32 1.4214138, %v6466_v32  ;;  %v6594_v31 = vmul.f32 %v6578_v19, %v14676_v3  ;;  %6851 = vmatmul.mubr.bf16.vlgmr.msra.gmra.mxu1 %v6763_v20  ;;  %v6617_v4 = vmul.f32 1.442695, %v14721_v48  ;;  %v6483_v46 = vadd.f32 1.4214138, %v6467_v0 }
 0x4dc   : > { %v6390_v45 = vadd.f32 1.0, %v6374_v11  ;;  %6888 = vmatpush1.bf16.msra.mxu0 %v8935_v9  ;;  %v6597_v52 = vmul.f32 %v6581_v12, %v14739_v60  ;;  %v6392_v57 = vadd.f32 1.0, %v6376_v51  ;;  %6941 = vmatpush1.bf16.msra.mxu1 %v8936_v16  ;;  %v8937_v3 = vld [vmem:[%s15436_s4 + $0xc4] ss:$16 sps:$4 sm:$0xff]   ;;  %v6497_v29 = vmul.f32 %v14718_v6, %v6481_v28  ;;  %v8938_v60 = vld [vmem:[%s15436_s4 + $0xcc] ss:$16 sps:$4 sm:$0xff]  }
 0x4dd   : > { %v14799_v8 = vpop.eup %8545  ;;  %6889 = vmatprep.subr.bf16.mxu0 %v8937_v3  ;;  %v6596_v48 = vmul.f32 %v6580_v58, %v14716_v26  ;;  %6942 = vmatprep.subr.bf16.mxu1 %v8938_v60  ;;  %v6621_v22 = vmul.f32 1.442695, %v6595_v47  ;;  %v6599_v54 = vmul.f32 %v6583_v33, %v14754_v25  ;;  %v6498_v63 = vmul.f32 %v14760_v37, %v6482_v41  ;;  %v8939_v26 = vld [vmem:[%s15436_s4 + $0xc0] ss:$16 sps:$4 sm:$0xff]   ;;  %v8940_v25 = vld [vmem:[%s15436_s4 + $0xc8] ss:$16 sps:$4 sm:$0xff]  }
 0x4de   : > { %v6436_v62 = vmul.f32 1.0614054, %v14799_v8  ;;  %8551 = vrcp.f32 %v6390_v45  ;;  %v6619_v39 = vmul.f32 1.442695, %v6594_v31  ;;  %v6625_v23 = vmul.f32 1.442695, %v6597_v52 }
 0x4df   : > { %8553 = vrcp.f32 %v6392_v57  ;;  %v8941_v1 = vld [vmem:[%s15436_s4 + $0xa4] ss:$16 sps:$4 sm:$0xff]   ;;  %v8013_v19 = vadd.f32 -0.28449672, %v6497_v29  ;;  %v6499_v50 = vmul.f32 %v14726_v59, %v6483_v46  ;;  %v6623_v12 = vmul.f32 1.442695, %v6596_v48 }
 0x4e0   : > { %v14816_v5 = vpop.eup %8547  ;;  %v8000_v49 = vadd.f32 -1.4531521, %v6436_v62  ;;  %6890 = vmatpush1.bf16.msra.mxu0 %v8939_v26  ;;  %8555 = vpow2.f32 %v6617_v4  ;;  %6943 = vmatpush1.bf16.msra.mxu1 %v8940_v25  ;;  %v8942_v27 = vld [vmem:[%s15436_s4 + $0xac] ss:$16 sps:$4 sm:$0xff]   ;;  %v6629_v58 = vmul.f32 1.442695, %v6599_v54 }
 0x4e1   : > { %v6437_v0 = vmul.f32 1.0614054, %v14816_v5  ;;  %6891 = vmatprep.subr.bf16.mxu0 %v8941_v1  ;;  %6944 = vmatprep.subr.bf16.mxu1 %v8942_v27  ;;  %8557 = vpow2.f32 %v6621_v22  ;;  %v6582_v11 = vsub.f32 0.0, %v14783_v17  ;;  %v8014_v47 = vadd.f32 -0.28449672, %v6498_v63 }
 0x4e2   : > { %v6468_v32 = vmul.f32 %v14799_v8, %v8000_v49  ;;  %8559 = vpow2.f32 %v6619_v39  ;;  %v8943_v41 = vld [vmem:[%s15436_s4 + $0xa0] ss:$16 sps:$4 sm:$0xff]   ;;  %v6584_v45 = vsub.f32 0.0, %v14788_v24  ;;  %v8944_v9 = vld [vmem:[%s15436_s4 + $0xa8] ss:$16 sps:$4 sm:$0xff]   ;;  %v6529_v3 = vmul.f32 %v14718_v6, %v8013_v19 }
 0x4e3   : > { %v14834_v20 = vpop.eup %8549  ;;  %v8001_v28 = vadd.f32 -1.4531521, %v6437_v0  ;;  %8561 = vpow2.f32 %v6625_v23  ;;  %v8945_v4 = vld [vmem:[%s15436_s4 + $0x84] ss:$16 sps:$4 sm:$0xff]   ;;  %v8015_v46 = vadd.f32 -0.28449672, %v6499_v50  ;;  %v6530_v62 = vmul.f32 %v14760_v37, %v8014_v47 }
 0x4e4   : > { %v6484_v33 = vadd.f32 1.4214138, %v6468_v32  ;;  %v6439_v51 = vmul.f32 1.0614054, %v14834_v20  ;;  %6892 = vmatpush1.bf16.msra.mxu0 %v8943_v41  ;;  %6945 = vmatpush1.bf16.msra.mxu1 %v8944_v9  ;;  %8563 = vpow2.f32 %v6623_v12  ;;  %v8946_v16 = vld [vmem:[%s15436_s4 + $0x8c] ss:$16 sps:$4 sm:$0xff]   ;;  %v6598_v22 = vmul.f32 %v6582_v11, %v14783_v17 }
 0x4e5   : > { %v6469_v31 = vmul.f32 %v14816_v5, %v8001_v28  ;;  %6893 = vmatprep.subr.bf16.mxu0 %v8945_v4  ;;  %6946 = vmatprep.subr.bf16.mxu1 %v8946_v16  ;;  %8565 = vpow2.f32 %v6629_v58  ;;  %v8947_v54 = vld [vmem:[%s15436_s4 + $0x80] ss:$16 sps:$4 sm:$0xff]   ;;  %v6600_v39 = vmul.f32 %v6584_v45, %v14788_v24  ;;  %v8948_v49 = vld [vmem:[%s15436_s4 + $0x88] ss:$16 sps:$4 sm:$0xff]   ;;  %v8949_v26 = vld [vmem:[%s15436_s4 + $0x64] ss:$16 sps:$4 sm:$0xff]   ;;  %v6531_v17 = vmul.f32 %v14726_v59, %v8015_v46 }
 0x4e6   : > { %v6500_v52 = vmul.f32 %v14799_v8, %v6484_v33  ;;  %v8003_v57 = vadd.f32 -1.4531521, %v6439_v51  ;;  %v8950_v25 = vld [vmem:[%s15436_s4 + $0x6c] ss:$16 sps:$4 sm:$0xff]   ;;  %v6545_v1 = vadd.f32 0.2548296, %v6529_v3 }
 0x4e7   : > { %v6485_v29 = vadd.f32 1.4214138, %v6469_v31  ;;  %v6546_v32 = vadd.f32 0.2548296, %v6530_v62  ;;  %v6627_v28 = vmul.f32 1.442695, %v6598_v22 }
 0x4e8   : > { %v8016_v48 = vadd.f32 -0.28449672, %v6500_v52  ;;  %v6471_v60 = vmul.f32 %v14834_v20, %v8003_v57  ;;  %6894 = vmatpush1.bf16.msra.mxu0 %v8947_v54  ;;  %6947 = vmatpush1.bf16.msra.mxu1 %v8948_v49  ;;  %v8951_v58 = vld [vmem:[%s15436_s4 + $0x60] ss:$16 sps:$4 sm:$0xff]   ;;  %v6631_v51 = vmul.f32 1.442695, %v6600_v39  ;;  %v6561_v57 = vmul.f32 %v14718_v6, %v6545_v1 }
 0x4e9   : > { %v6501_v63 = vmul.f32 %v14816_v5, %v6485_v29  ;;  %6895 = vmatprep.subr.bf16.mxu0 %v8949_v26  ;;  %6948 = vmatprep.subr.bf16.mxu1 %v8950_v25  ;;  %v8952_v41 = vld [vmem:[%s15436_s4 + $0x68] ss:$16 sps:$4 sm:$0xff]   ;;  %v8953_v31 = vld [vmem:[%s15436_s4 + $0x44] ss:$16 sps:$4 sm:$0xff]   ;;  %v6547_v9 = vadd.f32 0.2548296, %v6531_v17  ;;  %v6562_v62 = vmul.f32 %v14760_v37, %v6546_v32  ;;  %8567 = vpow2.f32 %v6627_v28 }
 0x4ea   : > { %v6532_v0 = vmul.f32 %v14799_v8, %v8016_v48  ;;  %v6487_v23 = vadd.f32 1.4214138, %v6471_v60  ;;  %v8954_v52 = vld [vmem:[%s15436_s4 + $0x4c] ss:$16 sps:$4 sm:$0xff]   ;;  %v8955_v22 = vld [vmem:[%s15436_s4 + $0x40] ss:$16 sps:$4 sm:$0xff]   ;;  %8569 = vpow2.f32 %v6631_v51 }
 0x4eb   : > { %v14873_v24 = vpop.eup %8551  ;;  %v8017_v19 = vadd.f32 -0.28449672, %v6501_v63  ;;  %v8956_v37 = vld [vmem:[%s15436_s4 + $0x48] ss:$16 sps:$4 sm:$0xff]   ;;  %v8957_v49 = vld [vmem:[%s15436_s4 + $0x24] ss:$16 sps:$4 sm:$0xff]   ;;  %v6563_v17 = vmul.f32 %v14726_v59, %v6547_v9 }
 0x4ec   : > { %v14875_v50 = vpop.eup %8553  ;;  %v6503_v12 = vmul.f32 %v14834_v20, %v6487_v23  ;;  %v6438_v27 = vmul.f32 1.0614054, %v14873_v24  ;;  %6896 = vmatpush1.bf16.msra.mxu0 %v8951_v58  ;;  %v6548_v11 = vadd.f32 0.2548296, %v6532_v0  ;;  %6949 = vmatpush1.bf16.msra.mxu1 %v8952_v41  ;;  %v8959_v59 = vld [vmem:[%s15436_s4 + $0x20] ss:$16 sps:$4 sm:$0xff]  }
 0x4ed   : > { %v6533_v47 = vmul.f32 %v14816_v5, %v8017_v19  ;;  %v6440_v33 = vmul.f32 1.0614054, %v14875_v50  ;;  %6897 = vmatprep.subr.bf16.mxu0 %v8953_v31  ;;  %v8556_v45 = vpop.eup %8555  ;;  %6950 = vmatprep.subr.bf16.mxu1 %v8954_v52  ;;  %v8962_v31 = vld [vmem:[%s15436_s4 + $0xc] ss:$16 sps:$4 sm:$0xff]   ;;  %vm6673_vm13 = vcmp.ge.f32.partialorder %v14626_v61, 0.0  ;;  %vm6675_vm14 = vcmp.ge.f32.partialorder %v14629_v13, 0.0 }
 0x4ee   : > { %v8019_v4 = vadd.f32 -0.28449672, %v6503_v12  ;;  %v8002_v46 = vadd.f32 -1.4531521, %v6438_v27  ;;  %v8558_v29 = vpop.eup %8557  ;;  %v6564_v63 = vmul.f32 %v14799_v8, %v6548_v11  ;;  %v6641_v28 = vmul.f32 %v8556_v45, %v6561_v57  ;;  %v8963_v57 = vld [vmem:[%s15436_s4] ss:$16 sps:$4 sm:$0xff]  }
 0x4ef   : > { %v6549_v16 = vadd.f32 0.2548296, %v6533_v47  ;;  %v8004_v3 = vadd.f32 -1.4531521, %v6440_v33  ;;  %v8560_v54 = vpop.eup %8559  ;;  %v8960_v47 = vld [vmem:[%s15436_s4 + $0x28] ss:$16 sps:$4 sm:$0xff]   ;;  %v6643_v33 = vmul.f32 %v8558_v29, %v6563_v17 }
 0x4f0   : > { %v6535_v48 = vmul.f32 %v14834_v20, %v8019_v4  ;;  %v6470_v60 = vmul.f32 %v14873_v24, %v8002_v46  ;;  %6898 = vmatpush1.bf16.msra.mxu0 %v8955_v22  ;;  %6951 = vmatpush1.bf16.msra.mxu1 %v8956_v37  ;;  %v8562_v26 = vpop.eup %8561  ;;  %v6642_v32 = vmul.f32 %v8560_v54, %v6562_v62  ;;  %v8964_v62 = vld [vmem:[%s15436_s4 + $0x8] ss:$16 sps:$4 sm:$0xff]   ;;  %vm6677_vm15 = vcmp.ge.f32.partialorder %v14724_v30, 0.0 }
 0x4f1   : > { %v6565_v6 = vmul.f32 %v14816_v5, %v6549_v16  ;;  %v6472_v39 = vmul.f32 %v14875_v50, %v8004_v3  ;;  %6899 = vmatprep.subr.bf16.mxu0 %v8957_v49  ;;  %v8958_v5 = vld [vmem:[%s15436_s4 + $0x2c] ss:$16 sps:$4 sm:$0xff]   ;;  %v8564_v23 = vpop.eup %8563  ;;  %v6657_v16 = vsub.f32 1.0, %v6641_v28  ;;  %vm6674_vm1 = vcmp.ge.f32.partialorder %v14670_v40, 0.0 }
 0x4f2   : > { %v6551_v0 = vadd.f32 0.2548296, %v6535_v48  ;;  %v6486_v8 = vadd.f32 1.4214138, %v6470_v60  ;;  %6952 = vmatprep.subr.bf16.mxu1 %v8958_v5  ;;  %v8566_v19 = vpop.eup %8565  ;;  %v6644_v58 = vmul.f32 %v8564_v23, %v6564_v63  ;;  %v6658_v4 = vsub.f32 1.0, %v6642_v32  ;;  %v8965_v48 = vld [vmem:[%s15438_s6 + $0x78] sm:$0xff]  }
 0x4f3   : > { %v6645_v25 = vmul.f32 %v8562_v26, %v6565_v6  ;;  %v6488_v1 = vadd.f32 1.4214138, %v6472_v39  ;;  %v6659_v60 = vsub.f32 1.0, %v6643_v33  ;;  %v8966_v54 = vld [vmem:[%s15438_s6 + $0xf8] sm:$0xff]   ;;  %v6721_v63 = vmul.f32 0.5, %v14611_v34 }
 0x4f4   : > { %v6567_v12 = vmul.f32 %v14834_v20, %v6551_v0  ;;  %v6502_v27 = vmul.f32 %v14873_v24, %v6486_v8  ;;  %6900 = vmatpush1.bf16.msra.mxu0 %v8959_v59  ;;  %6953 = vmatpush1.bf16.msra.mxu1 %v8960_v47  ;;  %v8961_v20 = vld [vmem:[%s15436_s4 + $0x4] ss:$16 sps:$4 sm:$0xff]   ;;  %v6660_v3 = vsub.f32 1.0, %v6644_v58  ;;  %v6690_v37 = vsub.f32 0.0, %v6658_v4 }
 0x4f5   : > { %v6504_v11 = vmul.f32 %v14875_v50, %v6488_v1  ;;  %6901 = vmatprep.subr.bf16.mxu0 %v8961_v20  ;;  %6954 = vmatprep.subr.bf16.mxu1 %v8962_v31  ;;  %v6661_v45 = vsub.f32 1.0, %v6645_v25  ;;  %v6689_v0 = vsub.f32 0.0, %v6657_v16  ;;  %v6691_v25 = vsub.f32 0.0, %v6659_v60 }
 0x4f6   : > { %v6647_v51 = vmul.f32 %v8566_v19, %v6567_v12  ;;  %v8018_v41 = vadd.f32 -0.28449672, %v6502_v27  ;;  %v8568_v17 = vpop.eup %8567  ;;  %v6692_v8 = vsub.f32 0.0, %v6660_v3  ;;  %v6722_v1 = vmul.f32 0.5, %v14657_v53 }
 0x4f7   : > { %v8020_v9 = vadd.f32 -0.28449672, %v6504_v11  ;;  %v6693_v6 = vsub.f32 0.0, %v6661_v45  ;;  %v8570_v23 = vpop.eup %8569  ;;  %vm6679_vm2 = vcmp.ge.f32.partialorder %v14745_v10, 0.0  ;;  %v6706_v32 = vsel %vm6674_vm1, %v6658_v4, %v6690_v37  ;;  %v8975_v37 = vld [vmem:[%s15438_s6 + $0x28] sm:$0xff]  }
 0x4f8   : > { %v6663_v46 = vsub.f32 1.0, %v6647_v51  ;;  %v6534_v52 = vmul.f32 %v14873_v24, %v8018_v41  ;;  %6902 = vmatpush1.bf16.msra.mxu0 %v8963_v57  ;;  %6955 = vmatpush1.bf16.msra.mxu1 %v8964_v62  ;;  %vm6676_vm5 = vcmp.ge.f32.partialorder %v14708_v43, 0.0  ;;  %v6725_v53 = vmul.f32 0.5, %v14711_v56 }
 0x4f9   : > { %v6536_v29 = vmul.f32 %v14875_v50, %v8020_v9  ;;  %8232 = vmatprep.subr.bf16.mxu0 %v8965_v48  ;;  %8260 = vmatprep.subr.bf16.mxu1 %v8966_v54  ;;  %v6709_v19 = vsel %vm6677_vm15, %v6661_v45, %v6693_v6  ;;  %v6708_v59 = vsel %vm6676_vm5, %v6660_v3, %v6692_v8  ;;  %v6727_v58 = vmul.f32 0.5, %v14730_v44  ;;  %v8972_v54 = vld [vmem:[%s15438_s6 + $0xb0] sm:$0xff]   ;;  %v16301_v6 = vld [vmem:[#allocation28_spill] sm:$0xff]  ;;  %v8980_v8 = vld [vmem:[%s15438_s6 + $0xa0] sm:$0xff]  }
 0x4fa   : > { %v6550_v22 = vadd.f32 0.2548296, %v6534_v52  ;;  %v6695_v49 = vsub.f32 0.0, %v6663_v46  ;;  %v6707_v30 = vsel %vm6675_vm14, %v6659_v60, %v6691_v25  ;;  %v6741_v40 = vadd.f32 1.0, %v6709_v19  ;;  %v8969_v60 = vld [vmem:[%s15438_s6 + $0x70] sm:$0xff]   ;;  %v8983_v25 = vld [vmem:[%s15438_s6 + $0x18] sm:$0xff]  }
 0x4fb   : > { %v6552_v39 = vadd.f32 0.2548296, %v6536_v29  ;;  %v6738_v11 = vadd.f32 1.0, %v6706_v32  ;;  %vm6678_vm6 = vcmp.ge.f32.partialorder %v14774_v36, 0.0  ;;  %v6740_v33 = vadd.f32 1.0, %v6708_v59  ;;  %v8986_v19 = vld [vmem:[%s15438_s6 + $0xd0] sm:$0xff]  }
 0x4fc   : > { %v6566_v26 = vmul.f32 %v14873_v24, %v6550_v22  ;;  %v6711_v12 = vsel %vm6679_vm2, %v6663_v46, %v6695_v49  ;;  %vm6680_vm7 = vcmp.ge.f32.partialorder %v14779_v42, 0.0  ;;  %v6739_v51 = vadd.f32 1.0, %v6707_v30  ;;  %v8970_v22 = vld [vmem:[%s15438_s6 + $0xf0] sm:$0xff]   ;;  %v8976_v49 = vld [vmem:[%s15438_s6 + $0xa8] sm:$0xff]   ;;  %v8995_v30 = vld [vmem:[%s15438_s6] sm:$0xff]  }
 0x4fd   : > { %v6568_v5 = vmul.f32 %v14875_v50, %v6552_v39  ;;  %v6705_v50 = vsel %vm6673_vm13, %v6657_v16, %v6689_v0  ;;  %v6743_v47 = vadd.f32 1.0, %v6711_v12  ;;  %v6726_v56 = vmul.f32 0.5, %v14764_v55  ;;  %v8974_v39 = vld [vmem:[%s15438_s6 + $0xe8] sm:$0xff]   ;;  %v8979_v0 = vld [vmem:[%s15438_s6 + $0x20] sm:$0xff]   ;;  %v8988_v32 = vld [vmem:[%s15438_s6 + $0x90] sm:$0xff]  }
 0x4fe   : > { %v6646_v34 = vmul.f32 %v8568_v17, %v6566_v26  ;;  %v6737_v20 = vadd.f32 1.0, %v6705_v50  ;;  %v6724_v31 = vmul.f32 0.5, %v14691_v15  ;;  %v6757_v45 = vmul.f32 %v6741_v40, %v6725_v53  ;;  %v8967_v15 = vld [vmem:[%s15438_s6 + $0x38] sm:$0xff]   ;;  %v8977_v26 = vld [vmem:[%s15438_s6 + $0x60] sm:$0xff]   ;;  %v8989_v12 = vld [vmem:[%s15438_s6 + $0x48] sm:$0xff]  }
 0x4ff   : > { %v6648_v24 = vmul.f32 %v8570_v23, %v6568_v5  ;;  %v6728_v44 = vmul.f32 0.5, %v14769_v21  ;;  %v6723_v4 = vmul.f32 0.5, %v14614_v14  ;;  %v6754_v36 = vmul.f32 %v6738_v11, %v6722_v1  ;;  %v16300_v14 = vld [vmem:[#allocation16_spill] sm:$0xff]  ;;  %v8968_v21 = vld [vmem:[%s15438_s6 + $0xb8] sm:$0xff]   ;;  %v8978_v17 = vld [vmem:[%s15438_s6 + $0xe0] sm:$0xff]  }
 0x500   : > { %v6662_v27 = vsub.f32 1.0, %v6646_v34  ;;  %v6759_v46 = vmul.f32 %v6743_v47, %v6727_v58  ;;  %v6753_v57 = vmul.f32 %v6737_v20, %v6721_v63  ;;  %v6756_v16 = vmul.f32 %v6740_v33, %v6724_v31  ;;  %v8973_v63 = vld [vmem:[%s15438_s6 + $0x68] sm:$0xff]   ;;  %v8981_v5 = vld [vmem:[%s15438_s6 + $0x58] sm:$0xff]   ;;  %v8985_v34 = vld [vmem:[%s15438_s6 + $0x50] sm:$0xff]  }
 0x501   : > { %v6664_v28 = vsub.f32 1.0, %v6648_v24  ;;  %v6755_v42 = vmul.f32 %v6739_v51, %v6723_v4  ;;  %v8982_v23 = vld [vmem:[%s15438_s6 + $0xd8] sm:$0xff]   ;;  %v8987_v24 = vld [vmem:[%s15438_s6 + $0x10] sm:$0xff]   ;;  %v8991_v50 = vld [vmem:[%s15438_s6 + $0x8] sm:$0xff]  }
 0x502   : > { %v6694_v10 = vsub.f32 0.0, %v6662_v27  ;;  %v6765_v55 = vpack.c.bf16 %v6757_v45, %v6753_v57  ;;  %v8984_v1 = vld [vmem:[%s15438_s6 + $0x98] sm:$0xff]   ;;  %v8992_v59 = vld [vmem:[%s15438_s6 + $0x88] sm:$0xff]   ;;  %v8993_v53 = vld [vmem:[%s15438_s6 + $0x40] sm:$0xff]  }
 0x503   : > { %v6696_v43 = vsub.f32 0.0, %v6664_v28  ;;  %v6767_v48 = vpack.c.bf16 %v6759_v46, %v6755_v42  ;;  %v8996_v40 = vld [vmem:[%s15438_s6 + $0x80] sm:$0xff]   ;;  %v16303_v46 = vld [vmem:[#allocation41_spill] sm:$0xff] }
 0x504   : > { %v6710_v61 = vsel %vm6678_vm6, %v6662_v27, %v6694_v10  ;;  %v8990_v27 = vld [vmem:[%s15438_s6 + $0xc8] sm:$0xff]   ;;  %v16302_v31 = vld [vmem:[#allocation31_spill] sm:$0xff] }
 0x505   : > { %v6742_v41 = vadd.f32 1.0, %v6710_v61  ;;  %v6712_v13 = vsel %vm6680_vm7, %v6664_v28, %v6696_v43  ;;  %v8994_v28 = vld [vmem:[%s15438_s6 + $0xc0] sm:$0xff]  }
 0x506   : > { %v6744_v9 = vadd.f32 1.0, %v6712_v13 }
 0x507   : > { %v6758_v52 = vmul.f32 %v6742_v41, %v6726_v56 }
 0x508   : > { %v6760_v3 = vmul.f32 %v6744_v9, %v6728_v44  ;;  %v8997_v9 = vld [vmem:[%s15433_s1 + $0x2] ss:$0 sm:$0xff] }
 0x509   : > { %v6766_v29 = vpack.c.bf16 %v6758_v52, %v6754_v36 }
 0x50a   : > { %v6768_v62 = vpack.c.bf16 %v6760_v3, %v6756_v16 }
 0x50b   : > { %6809 = vmatprep.mubr.bf16.mxu0 %v6766_v29 }
 0x50c   : > { %6858 = vmatprep.mubr.bf16.mxu1 %v6768_v62  ;;  %6810 = vmatmul.mubr.bf16.gmra.mxu0 %v6765_v55 }
 0x50d   : > { %6859 = vmatmul.mubr.bf16.gmra.mxu1 %v6767_v48  ;;  %6919 = vmatprep.mubr.bf16.mxu0 %v16290_v2 }
 0x50e   : > { %6972 = vmatprep.mubr.bf16.mxu1 %v16290_v2 }
 0x514   : > { %6920 = vmatmul.mubr.bf16.vlgmr.msra.gmra.mxu0 %v16300_v14 }
 0x515   : > { %6973 = vmatmul.mubr.bf16.vlgmr.msra.gmra.mxu1 %v16300_v14  ;;  %6929 = vmatprep.mubr.bf16.mxu0 %v16290_v2 }
 0x516   : > { %6982 = vmatprep.mubr.bf16.mxu1 %v16290_v2  ;;  %8233 = vmatpush3.bf16.msra.mxu0 %v8967_v15  ;;  %v8971_v2 = vld [vmem:[%s15438_s6 + $0x30] sm:$0xff]  }
 0x517   : > { %8261 = vmatpush3.bf16.msra.mxu1 %v8968_v21  ;;  %8234 = vmatprep.subr.bf16.mxu0 %v8969_v60 }
 0x518   : > { %8262 = vmatprep.subr.bf16.mxu1 %v8970_v22 }
 0x51a   : > { %8235 = vmatpush3.bf16.msra.mxu0 %v8971_v2  ;;  %v16304_v2 = vld [vmem:[#allocation59_spill] sm:$0xff] }
 0x51b   : > { %8263 = vmatpush3.bf16.msra.mxu1 %v8972_v54  ;;  %8236 = vmatprep.subr.bf16.mxu0 %v8973_v63 }
 0x51c   : > { %6930 = vmatmul.mubr.bf16.gmra.mxu0 %v16301_v6  ;;  %8264 = vmatprep.subr.bf16.mxu1 %v8974_v39 }
 0x51d   : > { %6983 = vmatmul.mubr.bf16.gmra.mxu1 %v16301_v6 }
 0x51e   : > { %8237 = vmatpush3.bf16.msra.mxu0 %v8975_v37 }
 0x51f   : > { %8265 = vmatpush3.bf16.msra.mxu1 %v8976_v49  ;;  %8238 = vmatprep.subr.bf16.mxu0 %v8977_v26 }
 0x520   : > { %8266 = vmatprep.subr.bf16.mxu1 %v8978_v17 }
 0x522   : > { %8239 = vmatpush3.bf16.msra.mxu0 %v8979_v0 }
 0x523   : > { %8267 = vmatpush3.bf16.msra.mxu1 %v8980_v8  ;;  %8240 = vmatprep.subr.bf16.mxu0 %v8981_v5 }
 0x524   : > { %8268 = vmatprep.subr.bf16.mxu1 %v8982_v23 }
 0x526   : > { %8241 = vmatpush3.bf16.msra.mxu0 %v8983_v25  ;;  %v16305_v25 = vld [vmem:[#allocation73_spill] sm:$0xff] }
 0x527   : > { %8269 = vmatpush3.bf16.msra.mxu1 %v8984_v1  ;;  %8242 = vmatprep.subr.bf16.mxu0 %v8985_v34 }
 0x528   : > { %8270 = vmatprep.subr.bf16.mxu1 %v8986_v19 }
 0x52a   : > { %8243 = vmatpush3.bf16.msra.mxu0 %v8987_v24 }
 0x52b   : > { %8271 = vmatpush3.bf16.msra.mxu1 %v8988_v32  ;;  %8244 = vmatprep.subr.bf16.mxu0 %v8989_v12 }
 0x52c   : > { %8272 = vmatprep.subr.bf16.mxu1 %v8990_v27 }
 0x52e   : > { %8245 = vmatpush3.bf16.msra.mxu0 %v8991_v50 }
 0x52f   : > { %8273 = vmatpush3.bf16.msra.mxu1 %v8992_v59  ;;  %8246 = vmatprep.subr.bf16.mxu0 %v8993_v53 }
 0x530   : > { %8274 = vmatprep.subr.bf16.mxu1 %v8994_v28 }
 0x532   : > { %8247 = vmatpush3.bf16.msra.mxu0 %v8995_v30 }
 0x533   : > { %8275 = vmatpush3.bf16.msra.mxu1 %v8996_v40 }
 0x59b   : > { %v8192_v58 = vpop.f32.mrf.mxu0  ;;  %v8220_v10 = vpop.f32.mrf.mxu1 }
 0x59d   : > { %v8193_v11 = vpop.f32.mrf.mxu0  ;;  %v8221_v43 = vpop.f32.mrf.mxu1 }
 0x59e   : > { %v8194_v47 = vadd.f32 %v8193_v11, %v8192_v58  ;;  %v8222_v20 = vadd.f32 %v8221_v43, %v8220_v10 }
 0x59f   : > { %v8195_v33 = vpop.f32.mrf.mxu0  ;;  %v8223_v61 = vpop.f32.mrf.mxu1 }
 0x5a0   : > { %v6853_v51 = vadd.f32 %v8222_v20, %v8194_v47 }
 0x5a1   : > { %v8196_v56 = vpop.f32.mrf.mxu0  ;;  %v8224_v13 = vpop.f32.mrf.mxu1 }
 0x5a2   : > { %v8197_v41 = vadd.f32 %v8196_v56, %v8195_v33  ;;  %v6872_v45 = vadd.f32 %v6853_v51, %v16302_v31  ;;  %v8225_v44 = vadd.f32 %v8224_v13, %v8223_v61 }
 0x5a4   : > { %v6876_v4 = vadd.f32 %v8997_v9, %v6872_v45  ;;  %v6856_v36 = vadd.f32 %v8225_v44, %v8197_v41 }
 0x5a6   : > { %8021 = vst [vmem:[%s13761_s27 + $0x40] sm:$0xff] %v6876_v4  ;;  %v6873_v52 = vadd.f32 %v6856_v36, %v16303_v46 }
 0x5a8   : > { %v6877_v57 = vadd.f32 %v8997_v9, %v6873_v52 }
 0x5aa   : > { %8022 = vst [vmem:[%s13761_s27 + $0x48] sm:$0xff] %v6877_v57 }
 0x5cc   : > { %v8198_v16 = vpop.f32.mrf.mxu0 }
 0x5cd   : > { %v8226_v3 = vpop.f32.mrf.mxu1 }
 0x5ce   : > { %v8199_v42 = vpop.f32.mrf.mxu0 }
 0x5cf   : > { %v8200_v29 = vadd.f32 %v8199_v42, %v8198_v16  ;;  %v8227_v62 = vpop.f32.mrf.mxu1 }
 0x5d0   : > { %v8228_v55 = vadd.f32 %v8227_v62, %v8226_v3  ;;  %v8201_v48 = vpop.f32.mrf.mxu0 }
 0x5d1   : > { %v8229_v14 = vpop.f32.mrf.mxu1 }
 0x5d2   : > { %v6861_v15 = vadd.f32 %v8228_v55, %v8200_v29  ;;  %v8202_v21 = vpop.f32.mrf.mxu0 }
 0x5d3   : > { %v8203_v60 = vadd.f32 %v8202_v21, %v8201_v48  ;;  %v8230_v22 = vpop.f32.mrf.mxu1 }
 0x5d4   : > { %v6874_v54 = vadd.f32 %v6861_v15, %v16304_v2  ;;  %v8231_v63 = vadd.f32 %v8230_v22, %v8229_v14  ;;  %v6921_v6 = vpop.f32.mrf.mxu0 }
 0x5d5   : > { %v15071_v39 = vadd.f32 %v6921_v6, %v16269_v35  ;;  %v6974_v37 = vpop.f32.mrf.mxu1 }
 0x5d6   : > { %v6878_v49 = vadd.f32 %v8997_v9, %v6874_v54  ;;  %v6864_v26 = vadd.f32 %v8231_v63, %v8203_v60  ;;  %v15074_v17 = vadd.f32 %v6974_v37, %v16279_v7  ;;  %v6923_v0 = vpop.f32.mrf.mxu0 }
 0x5d7   : > { %v15077_v8 = vmul.f32 0.70710677, %v15071_v39  ;;  %v15080_v5 = vadd.f32 %v6923_v0, %v16271_v18  ;;  %v6976_v23 = vpop.f32.mrf.mxu1 }
 0x5d8   : > { %8023 = vst [vmem:[%s13761_s27 + $0x50] sm:$0xff] %v6878_v49  ;;  %v6875_v1 = vadd.f32 %v6864_v26, %v16305_v25  ;;  %v15085_v34 = vmul.f32 0.70710677, %v15074_v17  ;;  %v15088_v19 = vadd.f32 %v6976_v23, %v16273_v38  ;;  %v6925_v28 = vpop.f32.mrf.mxu0 }
 0x5d9   : > { %v7009_v24 = vand.u32 2147483647, %v15077_v8  ;;  %v15092_v32 = vmul.f32 0.70710677, %v15080_v5  ;;  %v6978_v58 = vpop.f32.mrf.mxu1  ;;  %v15108_v56 = vadd.f32 %v6925_v28, %v16269_v35  ;;  %vm7329_vm0 = vcmp.ge.f32.partialorder %v15077_v8, 0.0 }
 0x5da   : > { %v6879_v12 = vadd.f32 %v8997_v9, %v6875_v1  ;;  %v7011_v27 = vand.u32 2147483647, %v15085_v34  ;;  %v15096_v50 = vmul.f32 0.70710677, %v15088_v19  ;;  %v6927_v33 = vpop.f32.mrf.mxu0  ;;  %v15111_v41 = vadd.f32 %v6978_v58, %v16279_v7 }
 0x5db   : > { %v7025_v59 = vmul.f32 0.3275911, %v7009_v24  ;;  %v15099_v53 = vand.u32 2147483647, %v15092_v32  ;;  %v6980_v61 = vpop.f32.mrf.mxu1  ;;  %v15114_v13 = vadd.f32 %v6927_v33, %v16271_v18  ;;  %v15117_v31 = vmul.f32 0.70710677, %v15108_v56 }
 0x5dc   : > { %8024 = vst [vmem:[%s13761_s27 + $0x58] sm:$0xff] %v6879_v12  ;;  %v7027_v30 = vmul.f32 0.3275911, %v7011_v27  ;;  %v15103_v40 = vand.u32 2147483647, %v15096_v50  ;;  %v15120_v45 = vadd.f32 %v6980_v61, %v16273_v38  ;;  %v7233_v62 = vsub.f32 0.0, %v7009_v24 }
 0x5dd   : > { %v7041_v10 = vadd.f32 1.0, %v7025_v59  ;;  %v7026_v11 = vmul.f32 0.3275911, %v15099_v53  ;;  %v15123_v44 = vmul.f32 0.70710677, %v15111_v41  ;;  %v7235_v21 = vsub.f32 0.0, %v7011_v27 }
 0x5de   : > { %v7043_v47 = vadd.f32 1.0, %v7027_v30  ;;  %v7028_v43 = vmul.f32 0.3275911, %v15103_v40  ;;  %v15126_v9 = vmul.f32 0.70710677, %v15114_v13  ;;  %v7249_v54 = vmul.f32 %v7233_v62, %v7009_v24 }
 0x5df   : > { %8571 = vrcp.f32 %v7041_v10  ;;  %v7042_v20 = vadd.f32 1.0, %v7026_v11  ;;  %v7013_v4 = vand.u32 2147483647, %v15117_v31  ;;  %v7015_v36 = vand.u32 2147483647, %v15123_v44 }
 0x5e0   : > { %8573 = vrcp.f32 %v7043_v47  ;;  %v7044_v51 = vadd.f32 1.0, %v7028_v43  ;;  %v7014_v46 = vand.u32 2147483647, %v15126_v9  ;;  %v15132_v57 = vmul.f32 0.70710677, %v15120_v45 }
 0x5e1   : > { %8575 = vrcp.f32 %v7042_v20  ;;  %v7029_v52 = vmul.f32 0.3275911, %v7013_v4  ;;  %v7031_v16 = vmul.f32 0.3275911, %v7015_v36  ;;  %v7251_v26 = vmul.f32 %v7235_v21, %v7011_v27 }
 0x5e2   : > { %8577 = vrcp.f32 %v7044_v51  ;;  %v7030_v3 = vmul.f32 0.3275911, %v7014_v46  ;;  %v15135_v29 = vand.u32 2147483647, %v15132_v57  ;;  %v7234_v0 = vsub.f32 0.0, %v15099_v53 }
 0x5e3   : > { %v7045_v42 = vadd.f32 1.0, %v7029_v52  ;;  %v7047_v55 = vadd.f32 1.0, %v7031_v16  ;;  %v7265_v12 = vmul.f32 1.442695, %v7249_v54  ;;  %v7236_v59 = vsub.f32 0.0, %v15103_v40 }
 0x5e4   : > { %v7046_v48 = vadd.f32 1.0, %v7030_v3  ;;  %v7032_v14 = vmul.f32 0.3275911, %v15135_v29  ;;  %v7237_v58 = vsub.f32 0.0, %v7013_v4  ;;  %v7269_v10 = vmul.f32 1.442695, %v7251_v26 }
 0x5e5   : > { %8579 = vrcp.f32 %v7045_v42  ;;  %v7250_v27 = vmul.f32 %v7234_v0, %v15099_v53  ;;  %v7239_v11 = vsub.f32 0.0, %v7015_v36  ;;  %v7252_v61 = vmul.f32 %v7236_v59, %v15103_v40  ;;  %v6984_v53 = vpop.f32.mrf.mxu1 }
 0x5e6   : > { %8581 = vrcp.f32 %v7047_v55  ;;  %v7048_v2 = vadd.f32 1.0, %v7032_v14  ;;  %v7238_v51 = vsub.f32 0.0, %v7014_v46  ;;  %v7253_v52 = vmul.f32 %v7237_v58, %v7013_v4  ;;  %v6931_v55 = vpop.f32.mrf.mxu0 }
 0x5e7   : > { %8583 = vrcp.f32 %v7046_v48  ;;  %v7267_v3 = vmul.f32 1.442695, %v7250_v27  ;;  %v7255_v62 = vmul.f32 %v7239_v11, %v7015_v36  ;;  %v15168_v36 = vadd.f32 %v6931_v55, %v16269_v35 }
 0x5e8   : > { %8585 = vrcp.f32 %v7048_v2  ;;  %v7271_v2 = vmul.f32 1.442695, %v7252_v61  ;;  %v15171_v26 = vadd.f32 %v6984_v53, %v16279_v7  ;;  %vm7331_vm3 = vcmp.ge.f32.partialorder %v15085_v34, 0.0 }
 0x5e9   : > { %8587 = vpow2.f32 %v7265_v12  ;;  %v7277_v12 = vmul.f32 1.442695, %v7255_v62  ;;  %vm7330_vm4 = vcmp.ge.f32.partialorder %v15092_v32, 0.0  ;;  %vm7332_vm8 = vcmp.ge.f32.partialorder %v15096_v50, 0.0 }
 0x5ea   : > { %8589 = vpow2.f32 %v7269_v10  ;;  %vm7333_vm9 = vcmp.ge.f32.partialorder %v15117_v31, 0.0  ;;  %vm7335_vm10 = vcmp.ge.f32.partialorder %v15123_v44, 0.0  ;;  %vm7334_vm11 = vcmp.ge.f32.partialorder %v15126_v9, 0.0 }
 0x5eb   : > { %8591 = vpow2.f32 %v7267_v3  ;;  %vm7336_vm12 = vcmp.ge.f32.partialorder %v15132_v57, 0.0  ;;  %v7384_v8 = vmul.f32 0.5, %v15120_v45 }
 0x5ec   : > { %v15138_v15 = vpop.eup %8571 }
 0x5ed   : > { %v15140_v60 = vpop.eup %8573  ;;  %v7089_v22 = vmul.f32 1.0614054, %v15138_v15 }
 0x5ee   : > { %v7091_v63 = vmul.f32 1.0614054, %v15140_v60  ;;  %v15144_v37 = vpop.eup %8575 }
 0x5ef   : > { %v8025_v6 = vadd.f32 -1.4531521, %v7089_v22  ;;  %v7090_v25 = vmul.f32 1.0614054, %v15144_v37  ;;  %v15149_v1 = vpop.eup %8577  ;;  %v7240_v22 = vsub.f32 0.0, %v15135_v29 }
 0x5f0   : > { %v8027_v49 = vadd.f32 -1.4531521, %v7091_v63  ;;  %v7092_v30 = vmul.f32 1.0614054, %v15149_v1  ;;  %v7254_v63 = vmul.f32 %v7238_v51, %v7014_v46 }
 0x5f1   : > { %v7121_v23 = vmul.f32 %v15138_v15, %v8025_v6  ;;  %v8026_v28 = vadd.f32 -1.4531521, %v7090_v25  ;;  %v7256_v46 = vmul.f32 %v7240_v22, %v15135_v29 }
 0x5f2   : > { %v7123_v24 = vmul.f32 %v15140_v60, %v8027_v49  ;;  %v8028_v20 = vadd.f32 -1.4531521, %v7092_v30  ;;  %v15157_v16 = vpop.eup %8579  ;;  %v7273_v49 = vmul.f32 1.442695, %v7253_v52  ;;  %v7275_v11 = vmul.f32 1.442695, %v7254_v63 }
 0x5f3   : > { %v7137_v47 = vadd.f32 1.4214138, %v7121_v23  ;;  %v7122_v33 = vmul.f32 %v15144_v37, %v8026_v28  ;;  %v15160_v48 = vpop.eup %8581  ;;  %v7093_v40 = vmul.f32 1.0614054, %v15157_v16  ;;  %v7279_v62 = vmul.f32 1.442695, %v7256_v46 }
 0x5f4   : > { %v7139_v43 = vadd.f32 1.4214138, %v7123_v24  ;;  %v7124_v42 = vmul.f32 %v15149_v1, %v8028_v20  ;;  %v7095_v54 = vmul.f32 1.0614054, %v15160_v48  ;;  %v15173_v0 = vpop.eup %8583  ;;  %8593 = vpow2.f32 %v7273_v49 }
 0x5f5   : > { %v7153_v14 = vmul.f32 %v15138_v15, %v7137_v47  ;;  %v7138_v4 = vadd.f32 1.4214138, %v7122_v33  ;;  %v8029_v6 = vadd.f32 -1.4531521, %v7093_v40  ;;  %v15177_v30 = vpop.eup %8585  ;;  %v7094_v27 = vmul.f32 1.0614054, %v15173_v0 }
 0x5f6   : > { %v7155_v21 = vmul.f32 %v15140_v60, %v7139_v43  ;;  %v7140_v23 = vadd.f32 1.4214138, %v7124_v42  ;;  %v8031_v25 = vadd.f32 -1.4531521, %v7095_v54  ;;  %v15183_v43 = vmul.f32 0.70710677, %v15168_v36  ;;  %v8588_v54 = vpop.eup %8587 }
 0x5f7   : > { %v8041_v24 = vadd.f32 -0.28449672, %v7153_v14  ;;  %v7125_v28 = vmul.f32 %v15157_v16, %v8029_v6  ;;  %v7154_v58 = vmul.f32 %v15144_v37, %v7138_v4  ;;  %v15186_v20 = vmul.f32 0.70710677, %v15171_v26 }
 0x5f8   : > { %v8043_v59 = vadd.f32 -0.28449672, %v7155_v21  ;;  %v7127_v10 = vmul.f32 %v15160_v48, %v8031_v25  ;;  %v7156_v33 = vmul.f32 %v15149_v1, %v7140_v23  ;;  %v8030_v61 = vadd.f32 -1.4531521, %v7094_v27  ;;  %v8590_v25 = vpop.eup %8589 }
 0x5f9   : > { %v7141_v47 = vadd.f32 1.4214138, %v7125_v28  ;;  %v7096_v51 = vmul.f32 1.0614054, %v15177_v30  ;;  %v7185_v52 = vmul.f32 %v15138_v15, %v8041_v24  ;;  %v8042_v55 = vadd.f32 -0.28449672, %v7154_v58 }
 0x5fa   : > { %v7143_v29 = vadd.f32 1.4214138, %v7127_v10  ;;  %v7187_v3 = vmul.f32 %v15140_v60, %v8043_v59  ;;  %v7126_v14 = vmul.f32 %v15173_v0, %v8030_v61  ;;  %8595 = vpow2.f32 %v7275_v11  ;;  %v6933_v61 = vpop.f32.mrf.mxu0 }
 0x5fb   : > { %v7157_v42 = vmul.f32 %v15157_v16, %v7141_v47  ;;  %v8032_v21 = vadd.f32 -1.4531521, %v7096_v51  ;;  %v15196_v22 = vand.u32 2147483647, %v15183_v43  ;;  %v15199_v4 = vand.u32 2147483647, %v15186_v20 }
 0x5fc   : > { %v7159_v53 = vmul.f32 %v15160_v48, %v7143_v29  ;;  %v8044_v63 = vadd.f32 -0.28449672, %v7156_v33  ;;  %v7142_v49 = vadd.f32 1.4214138, %v7126_v14  ;;  %v7201_v24 = vadd.f32 0.2548296, %v7185_v52 }
 0x5fd   : > { %v8045_v40 = vadd.f32 -0.28449672, %v7157_v42  ;;  %v7128_v23 = vmul.f32 %v15177_v30, %v8032_v21  ;;  %v7203_v59 = vadd.f32 0.2548296, %v7187_v3  ;;  %8597 = vpow2.f32 %v7271_v2  ;;  %v8592_v2 = vpop.eup %8591 }
 0x5fe   : > { %v8047_v6 = vadd.f32 -0.28449672, %v7159_v53  ;;  %v7186_v28 = vmul.f32 %v15144_v37, %v8042_v55  ;;  %8599 = vpow2.f32 %v7277_v12  ;;  %v7158_v58 = vmul.f32 %v15173_v0, %v7142_v49 }
 0x5ff   : > { %v7189_v46 = vmul.f32 %v15157_v16, %v8045_v40  ;;  %8601 = vpow2.f32 %v7279_v62  ;;  %v7033_v10 = vmul.f32 0.3275911, %v15196_v22  ;;  %v7035_v27 = vmul.f32 0.3275911, %v15199_v4 }
 0x600   : > { %v7188_v11 = vmul.f32 %v15149_v1, %v8044_v63  ;;  %v7191_v47 = vmul.f32 %v15160_v48, %v8047_v6  ;;  %v8046_v33 = vadd.f32 -0.28449672, %v7158_v58  ;;  %v7144_v29 = vadd.f32 1.4214138, %v7128_v23 }
 0x601   : > { %v7217_v51 = vmul.f32 %v15138_v15, %v7201_v24  ;;  %v7219_v52 = vmul.f32 %v15140_v60, %v7203_v59  ;;  %v7202_v12 = vadd.f32 0.2548296, %v7186_v28  ;;  %v7205_v3 = vadd.f32 0.2548296, %v7189_v46  ;;  %v8594_v21 = vpop.eup %8593 }
 0x602   : > { %v7190_v42 = vmul.f32 %v15173_v0, %v8046_v33  ;;  %v7160_v62 = vmul.f32 %v15177_v30, %v7144_v29  ;;  %v7049_v55 = vadd.f32 1.0, %v7033_v10  ;;  %v7051_v53 = vadd.f32 1.0, %v7035_v27  ;;  %v6986_v27 = vpop.f32.mrf.mxu1 }
 0x603   : > { %v15214_v14 = vadd.f32 %v6933_v61, %v16271_v18  ;;  %v7204_v40 = vadd.f32 0.2548296, %v7188_v11  ;;  %v7207_v63 = vadd.f32 0.2548296, %v7191_v47  ;;  %v7297_v49 = vmul.f32 %v8588_v54, %v7217_v51 }
 0x604   : > { %v7206_v6 = vadd.f32 0.2548296, %v7190_v42  ;;  %v7299_v23 = vmul.f32 %v8590_v25, %v7219_v52  ;;  %v8048_v15 = vadd.f32 -0.28449672, %v7160_v62  ;;  %v15217_v60 = vmul.f32 0.5, %v15071_v39 }
 0x605   : > { %v7218_v24 = vmul.f32 %v15144_v37, %v7202_v12  ;;  %v7221_v59 = vmul.f32 %v15157_v16, %v7205_v3  ;;  %v15223_v46 = vmul.f32 0.5, %v15074_v17  ;;  %8603 = vrcp.f32 %v7049_v55 }
 0x606   : > { %v7222_v28 = vmul.f32 %v15173_v0, %v7206_v6  ;;  %v7192_v58 = vmul.f32 %v15177_v30, %v8048_v15  ;;  %v15227_v10 = vmul.f32 0.70710677, %v15214_v14  ;;  %v7220_v39 = vmul.f32 %v15149_v1, %v7204_v40 }
 0x607   : > { %v8596_v54 = vpop.eup %8595  ;;  %v7223_v37 = vmul.f32 %v15160_v48, %v7207_v63  ;;  %8605 = vrcp.f32 %v7051_v53  ;;  %v7313_v16 = vsub.f32 1.0, %v7297_v49  ;;  %v7315_v25 = vsub.f32 1.0, %v7299_v23  ;;  %v6935_v49 = vpop.f32.mrf.mxu0 }
 0x608   : > { %v7208_v0 = vadd.f32 0.2548296, %v7192_v58  ;;  %v15233_v17 = vand.u32 2147483647, %v15227_v10  ;;  %v7298_v47 = vmul.f32 %v8592_v2, %v7218_v24  ;;  %v15236_v33 = vmul.f32 0.5, %v15080_v5 }
 0x609   : > { %v7301_v29 = vmul.f32 %v8594_v21, %v7221_v59  ;;  %v7302_v61 = vmul.f32 %v8596_v54, %v7222_v28  ;;  %v15240_v1 = vmul.f32 0.5, %v15088_v19  ;;  %v15245_v42 = vmul.f32 0.5, %v15108_v56  ;;  %v6937_v50 = vpop.f32.mrf.mxu0 }
 0x60a   : > { %v8598_v11 = vpop.eup %8597  ;;  %v7224_v48 = vmul.f32 %v15177_v30, %v7208_v0  ;;  %v7034_v52 = vmul.f32 0.3275911, %v15233_v17  ;;  %v15248_v5 = vadd.f32 %v6986_v27, %v16273_v38  ;;  %v7345_v62 = vsub.f32 0.0, %v7313_v16 }
 0x60b   : > { %v8600_v51 = vpop.eup %8599  ;;  %v7300_v3 = vmul.f32 %v8598_v11, %v7220_v39  ;;  %v7347_v55 = vsub.f32 0.0, %v7315_v25  ;;  %v7314_v21 = vsub.f32 1.0, %v7298_v47  ;;  %v7317_v40 = vsub.f32 1.0, %v7301_v29 }
 0x60c   : > { %v8602_v12 = vpop.eup %8601  ;;  %v7303_v2 = vmul.f32 %v8600_v51, %v7223_v37  ;;  %v7050_v19 = vadd.f32 1.0, %v7034_v52  ;;  %v15252_v30 = vmul.f32 0.5, %v15111_v41  ;;  %v7318_v63 = vsub.f32 1.0, %v7302_v61  ;;  %v6988_v37 = vpop.f32.mrf.mxu1 }
 0x60d   : > { %v7304_v53 = vmul.f32 %v8602_v12, %v7224_v48  ;;  %v7382_v56 = vmul.f32 0.5, %v15114_v13  ;;  %v7316_v23 = vsub.f32 1.0, %v7300_v3  ;;  %v7241_v24 = vsub.f32 0.0, %v15196_v22 }
 0x60e   : > { %v7319_v15 = vsub.f32 1.0, %v7303_v2  ;;  %8607 = vrcp.f32 %v7050_v19  ;;  %v7361_v41 = vsel %vm7329_vm0, %v7313_v16, %v7345_v62  ;;  %v7363_v59 = vsel %vm7331_vm3, %v7315_v25, %v7347_v55 }
 0x60f   : > { %v7320_v6 = vsub.f32 1.0, %v7304_v53  ;;  %v15265_v28 = vmul.f32 0.70710677, %v15248_v5  ;;  %v7346_v58 = vsub.f32 0.0, %v7314_v21  ;;  %v7349_v13 = vsub.f32 0.0, %v7317_v40 }
 0x610   : > { %v7350_v54 = vsub.f32 0.0, %v7318_v63  ;;  %v15268_v39 = vadd.f32 %v6935_v49, %v16269_v35  ;;  %v7348_v25 = vsub.f32 0.0, %v7316_v23  ;;  %v7351_v27 = vsub.f32 0.0, %v7319_v15 }
 0x611   : > { %v7352_v0 = vsub.f32 0.0, %v7320_v6  ;;  %v15273_v34 = vand.u32 2147483647, %v15265_v28  ;;  %v15278_v11 = vmul.f32 %v7241_v24, %v15196_v22  ;;  %v7393_v29 = vadd.f32 1.0, %v7361_v41  ;;  %v6990_v24 = vpop.f32.mrf.mxu1 }
 0x612   : > { %v15275_v16 = vpop.eup %8603  ;;  %v15281_v47 = vmul.f32 0.70710677, %v15268_v39  ;;  %v7395_v61 = vadd.f32 1.0, %v7363_v59  ;;  %v15287_v45 = vadd.f32 %v6988_v37, %v16279_v7  ;;  %v7362_v48 = vsel %vm7330_vm4, %v7314_v21, %v7346_v58 }
 0x613   : > { %v7036_v51 = vmul.f32 0.3275911, %v15273_v34  ;;  %v7365_v52 = vsel %vm7333_vm9, %v7317_v40, %v7349_v13  ;;  %v7366_v22 = vsel %vm7334_vm11, %v7318_v63, %v7350_v54  ;;  %v7368_v3 = vsel %vm7336_vm12, %v7320_v6, %v7352_v0 }
 0x614   : > { %v15283_v35 = vpop.eup %8605  ;;  %v15296_v12 = vand.u32 2147483647, %v15281_v47  ;;  %v7097_v2 = vmul.f32 1.0614054, %v15275_v16  ;;  %v15302_v7 = vmul.f32 0.70710677, %v15287_v45  ;;  %v7364_v32 = vsel %vm7332_vm8, %v7316_v23, %v7348_v25 }
 0x615   : > { %v7052_v62 = vadd.f32 1.0, %v7036_v51  ;;  %v7367_v31 = vsel %vm7335_vm10, %v7319_v15, %v7351_v27  ;;  %v7099_v9 = vmul.f32 1.0614054, %v15283_v35  ;;  %v7397_v53 = vadd.f32 1.0, %v7365_v52 }
 0x616   : > { %v7037_v55 = vmul.f32 0.3275911, %v15296_v12  ;;  %v7398_v19 = vadd.f32 1.0, %v7366_v22  ;;  %v15311_v57 = vand.u32 2147483647, %v15302_v7  ;;  %v7394_v21 = vadd.f32 1.0, %v7362_v48 }
 0x617   : > { %8609 = vrcp.f32 %v7052_v62  ;;  %v7400_v40 = vadd.f32 1.0, %v7368_v3  ;;  %v7243_v63 = vsub.f32 0.0, %v15199_v4  ;;  %v7409_v49 = vmul.f32 %v7393_v29, %v15217_v60 }
 0x618   : > { %v7053_v6 = vadd.f32 1.0, %v7037_v55  ;;  %v7399_v44 = vadd.f32 1.0, %v7367_v31  ;;  %v8033_v23 = vadd.f32 -1.4531521, %v7097_v2  ;;  %v7039_v15 = vmul.f32 0.3275911, %v15311_v57 }
 0x619   : > { %v7411_v41 = vmul.f32 %v7395_v61, %v15223_v46  ;;  %v7396_v59 = vadd.f32 1.0, %v7364_v32  ;;  %v8035_v58 = vadd.f32 -1.4531521, %v7099_v9  ;;  %v7413_v54 = vmul.f32 %v7397_v53, %v15245_v42 }
 0x61a   : > { %8611 = vrcp.f32 %v7053_v6  ;;  %v7414_v37 = vmul.f32 %v7398_v19, %v7382_v56  ;;  %v7055_v0 = vadd.f32 1.0, %v7039_v15  ;;  %v15321_v25 = vadd.f32 %v6937_v50, %v16271_v18 }
 0x61b   : > { %v15317_v13 = vpop.eup %8607  ;;  %v7410_v60 = vmul.f32 %v7394_v21, %v15236_v33  ;;  %v7416_v27 = vmul.f32 %v7400_v40, %v7384_v8  ;;  %v15326_v51 = vadd.f32 %v6990_v24, %v16273_v38  ;;  %v7415_v46 = vmul.f32 %v7399_v44, %v15252_v30 }
 0x61c   : > { %v7098_v29 = vmul.f32 1.0614054, %v15317_v13  ;;  %v7129_v61 = vmul.f32 %v15275_v16, %v8033_v23  ;;  %8613 = vrcp.f32 %v7055_v0  ;;  %v15331_v42 = vmul.f32 0.70710677, %v15321_v25 }
 0x61d   : > { %v7412_v56 = vmul.f32 %v7396_v59, %v15240_v1  ;;  %v7131_v18 = vmul.f32 %v15283_v35, %v8035_v58  ;;  %v15336_v33 = vmul.f32 0.70710677, %v15326_v51  ;;  %v7425_v8 = vpack.c.bf16 %v7413_v54, %v7409_v49 }
 0x61e   : > { %v8034_v48 = vadd.f32 -1.4531521, %v7098_v29  ;;  %v7242_v38 = vsub.f32 0.0, %v15233_v17  ;;  %v15340_v52 = vand.u32 2147483647, %v15331_v42  ;;  %v7426_v30 = vpack.c.bf16 %v7414_v37, %v7410_v60 }
 0x61f   : > { %v7245_v3 = vsub.f32 0.0, %v15296_v12  ;;  %v15345_v2 = vand.u32 2147483647, %v15336_v33  ;;  %v7428_v1 = vpack.c.bf16 %v7416_v27, %v7412_v56  ;;  %v7427_v62 = vpack.c.bf16 %v7415_v46, %v7411_v41 }
 0x620   : > { %v7130_v22 = vmul.f32 %v15317_v13, %v8034_v48  ;;  %v7145_v32 = vadd.f32 1.4214138, %v7129_v61  ;;  %v7244_v31 = vsub.f32 0.0, %v15273_v34  ;;  %v7038_v9 = vmul.f32 0.3275911, %v15340_v52  ;;  %7465 = vmatprep.mubr.bf16.mxu0 %v7426_v30 }
 0x621   : > { %v7259_v55 = vmul.f32 %v7243_v63, %v15199_v4  ;;  %v7247_v53 = vsub.f32 0.0, %v15311_v57  ;;  %v7040_v19 = vmul.f32 0.3275911, %v15345_v2  ;;  %7514 = vmatprep.mubr.bf16.mxu1 %v7428_v1  ;;  %7466 = vmatmul.mubr.bf16.vlgmr.msra.gmra.mxu0 %v7425_v8  ;;  %v7258_v40 = vmul.f32 %v7242_v38, %v15233_v17 }
 0x622   : > { %v7146_v21 = vadd.f32 1.4214138, %v7130_v22  ;;  %v7054_v6 = vadd.f32 1.0, %v7038_v9  ;;  %7515 = vmatmul.mubr.bf16.vlgmr.msra.gmra.mxu1 %v7427_v62  ;;  %v7281_v49 = vmul.f32 1.442695, %v15278_v11  ;;  %v7261_v23 = vmul.f32 %v7245_v3, %v15296_v12 }
 0x623   : > { %v7147_v44 = vadd.f32 1.4214138, %v7131_v18  ;;  %v7056_v15 = vadd.f32 1.0, %v7040_v19  ;;  %v7161_v4 = vmul.f32 %v15275_v16, %v7145_v32  ;;  %v7260_v24 = vmul.f32 %v7244_v31, %v15273_v34 }
 0x624   : > { %v15353_v50 = vpop.eup %8609  ;;  %8615 = vrcp.f32 %v7054_v6  ;;  %v7285_v41 = vmul.f32 1.442695, %v7259_v55  ;;  %v7263_v17 = vmul.f32 %v7247_v53, %v15311_v57  ;;  %v7162_v58 = vmul.f32 %v15317_v13, %v7146_v21 }
 0x625   : > { %v7100_v63 = vmul.f32 1.0614054, %v15353_v50  ;;  %8617 = vrcp.f32 %v7056_v15  ;;  %v7283_v11 = vmul.f32 1.442695, %v7258_v40  ;;  %v7289_v37 = vmul.f32 1.442695, %v7261_v23 }
 0x626   : > { %8619 = vpow2.f32 %v7281_v49  ;;  %v8049_v0 = vadd.f32 -0.28449672, %v7161_v4  ;;  %v7163_v60 = vmul.f32 %v15283_v35, %v7147_v44  ;;  %v7287_v27 = vmul.f32 1.442695, %v7260_v24 }
 0x627   : > { %v15361_v59 = vpop.eup %8611  ;;  %v8036_v54 = vadd.f32 -1.4531521, %v7100_v63  ;;  %8621 = vpow2.f32 %v7285_v41  ;;  %v7293_v46 = vmul.f32 1.442695, %v7263_v17  ;;  %v7246_v61 = vsub.f32 0.0, %v15340_v52 }
 0x628   : > { %v7101_v12 = vmul.f32 1.0614054, %v15361_v59  ;;  %v8050_v56 = vadd.f32 -0.28449672, %v7162_v58  ;;  %8623 = vpow2.f32 %v7283_v11  ;;  %v7248_v38 = vsub.f32 0.0, %v15345_v2 }
 0x629   : > { %v7132_v34 = vmul.f32 %v15353_v50, %v8036_v54  ;;  %v15367_v29 = vpop.eup %8613  ;;  %8625 = vpow2.f32 %v7289_v37  ;;  %v8051_v30 = vadd.f32 -0.28449672, %v7163_v60  ;;  %v7193_v1 = vmul.f32 %v15275_v16, %v8049_v0 }
 0x62a   : > { %v8037_v57 = vadd.f32 -1.4531521, %v7101_v12  ;;  %v7103_v48 = vmul.f32 1.0614054, %v15367_v29  ;;  %8627 = vpow2.f32 %v7287_v27  ;;  %v7194_v32 = vmul.f32 %v15317_v13, %v8050_v56 }
 0x62b   : > { %v7148_v18 = vadd.f32 1.4214138, %v7132_v34  ;;  %8629 = vpow2.f32 %v7293_v46  ;;  %v7262_v55 = vmul.f32 %v7246_v61, %v15340_v52  ;;  %v7264_v19 = vmul.f32 %v7248_v38, %v15345_v2 }
 0x62c   : > { %v7133_v8 = vmul.f32 %v15361_v59, %v8037_v57  ;;  %v8039_v3 = vadd.f32 -1.4531521, %v7103_v48  ;;  %v7195_v21 = vmul.f32 %v15283_v35, %v8051_v30  ;;  %v7209_v44 = vadd.f32 0.2548296, %v7193_v1 }
 0x62d   : > { %v7164_v22 = vmul.f32 %v15353_v50, %v7148_v18  ;;  %v7210_v4 = vadd.f32 0.2548296, %v7194_v32  ;;  %v7291_v41 = vmul.f32 1.442695, %v7262_v55  ;;  %v7295_v58 = vmul.f32 1.442695, %v7264_v19 }
 0x62e   : > { %v7149_v62 = vadd.f32 1.4214138, %v7133_v8  ;;  %v7135_v9 = vmul.f32 %v15367_v29, %v8039_v3  ;;  %v7211_v54 = vadd.f32 0.2548296, %v7195_v21  ;;  %v7225_v0 = vmul.f32 %v15275_v16, %v7209_v44 }
 0x62f   : > { %v8052_v31 = vadd.f32 -0.28449672, %v7164_v22  ;;  %v7226_v57 = vmul.f32 %v15317_v13, %v7210_v4  ;;  %8631 = vpow2.f32 %v7291_v41  ;;  %vm7337_vm13 = vcmp.ge.f32.partialorder %v15183_v43, 0.0 }
 0x630   : > { %v7165_v53 = vmul.f32 %v15361_v59, %v7149_v62  ;;  %v7151_v6 = vadd.f32 1.4214138, %v7135_v9  ;;  %8633 = vpow2.f32 %v7295_v58  ;;  %v7227_v16 = vmul.f32 %v15283_v35, %v7211_v54 }
 0x631   : > { %v7196_v40 = vmul.f32 %v15353_v50, %v8052_v31  ;;  %v8616_v49 = vpop.eup %8615  ;;  %vm7339_vm14 = vcmp.ge.f32.partialorder %v15186_v20, 0.0  ;;  %vm7341_vm15 = vcmp.ge.f32.partialorder %v15281_v47, 0.0  ;;  %vm7338_vm1 = vcmp.ge.f32.partialorder %v15227_v10, 0.0 }
 0x632   : > { %v8053_v23 = vadd.f32 -0.28449672, %v7165_v53  ;;  %v15382_v15 = vpop.eup %8617  ;;  %v7167_v63 = vmul.f32 %v15367_v29, %v7151_v6  ;;  %v7102_v24 = vmul.f32 1.0614054, %v8616_v49  ;;  %vm7343_vm2 = vcmp.ge.f32.partialorder %v15302_v7, 0.0 }
 0x633   : > { %v7212_v52 = vadd.f32 0.2548296, %v7196_v40  ;;  %v7104_v2 = vmul.f32 1.0614054, %v15382_v15  ;;  %v8620_v11 = vpop.eup %8619  ;;  %vm7340_vm5 = vcmp.ge.f32.partialorder %v15265_v28, 0.0  ;;  %vm7342_vm6 = vcmp.ge.f32.partialorder %v15331_v42, 0.0 }
 0x634   : > { %v7197_v17 = vmul.f32 %v15361_v59, %v8053_v23  ;;  %v8055_v12 = vadd.f32 -0.28449672, %v7167_v63  ;;  %v8038_v37 = vadd.f32 -1.4531521, %v7102_v24  ;;  %v8622_v27 = vpop.eup %8621  ;;  %v7305_v55 = vmul.f32 %v8620_v11, %v7225_v0 }
 0x635   : > { %v8040_v34 = vadd.f32 -1.4531521, %v7104_v2  ;;  %v8624_v56 = vpop.eup %8623  ;;  %v7228_v18 = vmul.f32 %v15353_v50, %v7212_v52  ;;  %v7307_v53 = vmul.f32 %v8622_v27, %v7227_v16  ;;  %vm7344_vm7 = vcmp.ge.f32.partialorder %v15336_v33, 0.0 }
 0x636   : > { %v7213_v60 = vadd.f32 0.2548296, %v7197_v17  ;;  %v7199_v46 = vmul.f32 %v15367_v29, %v8055_v12  ;;  %v7134_v61 = vmul.f32 %v8616_v49, %v8038_v37  ;;  %v8626_v38 = vpop.eup %8625  ;;  %v7306_v32 = vmul.f32 %v8624_v56, %v7226_v57 }
 0x637   : > { %v7136_v8 = vmul.f32 %v15382_v15, %v8040_v34  ;;  %v8628_v3 = vpop.eup %8627  ;;  %v7321_v4 = vsub.f32 1.0, %v7305_v55  ;;  %v7323_v41 = vsub.f32 1.0, %v7307_v53  ;;  %v7386_v57 = vmul.f32 0.5, %v15214_v14 }
 0x638   : > { %v7229_v48 = vmul.f32 %v15361_v59, %v7213_v60  ;;  %v7215_v30 = vadd.f32 0.2548296, %v7199_v46  ;;  %v7150_v22 = vadd.f32 1.4214138, %v7134_v61  ;;  %v8630_v62 = vpop.eup %8629  ;;  %v7308_v50 = vmul.f32 %v8628_v3, %v7228_v18 }
 0x639   : > { %v7152_v13 = vadd.f32 1.4214138, %v7136_v8  ;;  %v7322_v35 = vsub.f32 1.0, %v7306_v32  ;;  %v7353_v37 = vsub.f32 0.0, %v7321_v4  ;;  %v7355_v27 = vsub.f32 0.0, %v7323_v41 }
 0x63a   : > { %v7309_v1 = vmul.f32 %v8626_v38, %v7229_v48  ;;  %v7231_v31 = vmul.f32 %v15367_v29, %v7215_v30  ;;  %v7166_v9 = vmul.f32 %v8616_v49, %v7150_v22  ;;  %v7324_v63 = vsub.f32 1.0, %v7308_v50 }
 0x63b   : > { %v7168_v59 = vmul.f32 %v15382_v15, %v7152_v13  ;;  %v7385_v29 = vmul.f32 0.5, %v15168_v36  ;;  %v7354_v58 = vsub.f32 0.0, %v7322_v35  ;;  %v7389_v14 = vmul.f32 0.5, %v15268_v39 }
 0x63c   : > { %v7311_v19 = vmul.f32 %v8630_v62, %v7231_v31  ;;  %v8054_v21 = vadd.f32 -0.28449672, %v7166_v9  ;;  %v7325_v40 = vsub.f32 1.0, %v7309_v1  ;;  %v8632_v12 = vpop.eup %8631  ;;  %v7356_v0 = vsub.f32 0.0, %v7324_v63 }
 0x63d   : > { %v8056_v6 = vadd.f32 -0.28449672, %v7168_v59  ;;  %v8634_v34 = vpop.eup %8633  ;;  %v7370_v61 = vsel %vm7338_vm1, %v7322_v35, %v7354_v58  ;;  %v7371_v47 = vsel %vm7339_vm14, %v7323_v41, %v7355_v27  ;;  %v7391_v38 = vmul.f32 0.5, %v15287_v45 }
 0x63e   : > { %v7327_v44 = vsub.f32 1.0, %v7311_v19  ;;  %v7198_v23 = vmul.f32 %v8616_v49, %v8054_v21  ;;  %v7357_v17 = vsub.f32 0.0, %v7325_v40  ;;  %v7372_v48 = vsel %vm7340_vm5, %v7324_v63, %v7356_v0 }
 0x63f   : > { %v7200_v24 = vmul.f32 %v15382_v15, %v8056_v6  ;;  %v7402_v16 = vadd.f32 1.0, %v7370_v61  ;;  %v7404_v3 = vadd.f32 1.0, %v7372_v48  ;;  %v7403_v1 = vadd.f32 1.0, %v7371_v47 }
 0x640   : > { %v7214_v52 = vadd.f32 0.2548296, %v7198_v23  ;;  %v7359_v11 = vsub.f32 0.0, %v7327_v44  ;;  %v7373_v46 = vsel %vm7341_vm15, %v7325_v40, %v7357_v17  ;;  %v7390_v39 = vmul.f32 0.5, %v15321_v25  ;;  %v16306_v17 = vld [vmem:[#allocation109_spill] sm:$0xff] }
 0x641   : > { %v7216_v2 = vadd.f32 0.2548296, %v7200_v24  ;;  %v7405_v10 = vadd.f32 1.0, %v7373_v46  ;;  %v7388_v62 = vmul.f32 0.5, %v15248_v5  ;;  %v7392_v45 = vmul.f32 0.5, %v15326_v51 }
 0x642   : > { %v7230_v54 = vmul.f32 %v8616_v49, %v7214_v52  ;;  %v7375_v56 = vsel %vm7343_vm2, %v7327_v44, %v7359_v11  ;;  %v7387_v9 = vmul.f32 0.5, %v15171_v26  ;;  %v7418_v42 = vmul.f32 %v7402_v16, %v7386_v57  ;;  %v8998_v11 = vld [vmem:[%s15433_s1 + $0x2] ss:$0 sm:$0xff] }
 0x643   : > { %v7232_v60 = vmul.f32 %v15382_v15, %v7216_v2  ;;  %v7369_v15 = vsel %vm7337_vm13, %v7321_v4, %v7353_v37  ;;  %v7407_v30 = vadd.f32 1.0, %v7375_v56  ;;  %v7421_v32 = vmul.f32 %v7405_v10, %v7389_v14  ;;  %v16307_v37 = vld [vmem:[#allocation116_spill] sm:$0xff]  ;;  %v16309_v16 = vld [vmem:[#allocation123_spill] sm:$0xff] }
 0x644   : > { %v7310_v36 = vmul.f32 %v8632_v12, %v7230_v54  ;;  %v7401_v22 = vadd.f32 1.0, %v7369_v15  ;;  %v7420_v53 = vmul.f32 %v7404_v3, %v7388_v62  ;;  %v7419_v33 = vmul.f32 %v7403_v1, %v7387_v9 }
 0x645   : > { %v7312_v49 = vmul.f32 %v8634_v34, %v7232_v60  ;;  %v7423_v55 = vmul.f32 %v7407_v30, %v7391_v38 }
 0x646   : > { %v7326_v18 = vsub.f32 1.0, %v7310_v36  ;;  %v7417_v59 = vmul.f32 %v7401_v22, %v7385_v29 }
 0x647   : > { %v7328_v8 = vsub.f32 1.0, %v7312_v49  ;;  %v7431_v6 = vpack.c.bf16 %v7423_v55, %v7419_v33 }
 0x648   : > { %v7358_v7 = vsub.f32 0.0, %v7326_v18  ;;  %v7429_v25 = vpack.c.bf16 %v7421_v32, %v7417_v59 }
 0x649   : > { %v7360_v28 = vsub.f32 0.0, %v7328_v8 }
 0x64a   : > { %v7374_v43 = vsel %vm7342_vm6, %v7326_v18, %v7358_v7 }
 0x64b   : > { %v7406_v13 = vadd.f32 1.0, %v7374_v43  ;;  %v7376_v20 = vsel %vm7344_vm7, %v7328_v8, %v7360_v28  ;;  %v16308_v8 = vld [vmem:[#allocation118_spill] sm:$0xff] }
 0x64c   : > { %v7408_v31 = vadd.f32 1.0, %v7376_v20 }
 0x64d   : > { %v7422_v50 = vmul.f32 %v7406_v13, %v7390_v39 }
 0x64e   : > { %v7424_v19 = vmul.f32 %v7408_v31, %v7392_v45 }
 0x64f   : > { %v7430_v21 = vpack.c.bf16 %v7422_v50, %v7418_v42 }
 0x650   : > { %v7432_v40 = vpack.c.bf16 %v7424_v19, %v7420_v53 }
 0x651   : > { %7473 = vmatprep.mubr.bf16.mxu0 %v7430_v21 }
 0x652   : > { %7522 = vmatprep.mubr.bf16.mxu1 %v7432_v40  ;;  %7474 = vmatmul.mubr.bf16.gmra.mxu0 %v7429_v25 }
 0x653   : > { %7523 = vmatmul.mubr.bf16.gmra.mxu1 %v7431_v6 }
 0x6e1   : > { %v8248_v5 = vpop.f32.mrf.mxu0 }
 0x6e2   : > { %v8276_v51 = vpop.f32.mrf.mxu1 }
 0x6e3   : > { %v8249_v35 = vpop.f32.mrf.mxu0 }
 0x6e4   : > { %v8250_v26 = vadd.f32 %v8249_v35, %v8248_v5  ;;  %v8277_v44 = vpop.f32.mrf.mxu1 }
 0x6e5   : > { %v8278_v23 = vadd.f32 %v8277_v44, %v8276_v51  ;;  %v8251_v4 = vpop.f32.mrf.mxu0 }
 0x6e6   : > { %v8279_v63 = vpop.f32.mrf.mxu1 }
 0x6e7   : > { %v7517_v24 = vadd.f32 %v8278_v23, %v8250_v26  ;;  %v8252_v41 = vpop.f32.mrf.mxu0 }
 0x6e8   : > { %v8253_v52 = vadd.f32 %v8252_v41, %v8251_v4  ;;  %v8280_v29 = vpop.f32.mrf.mxu1 }
 0x6e9   : > { %v7536_v2 = vadd.f32 %v7517_v24, %v16306_v17  ;;  %v8281_v58 = vadd.f32 %v8280_v29, %v8279_v63 }
 0x6eb   : > { %v7540_v54 = vadd.f32 %v8998_v11, %v7536_v2  ;;  %v7520_v12 = vadd.f32 %v8281_v58, %v8253_v52 }
 0x6ed   : > { %8057 = vst [vmem:[%s13761_s27 + $0x60] sm:$0xff] %v7540_v54  ;;  %v7537_v0 = vadd.f32 %v7520_v12, %v16307_v37 }
 0x6ef   : > { %v7541_v60 = vadd.f32 %v8998_v11, %v7537_v0 }
 0x6f1   : > { %8058 = vst [vmem:[%s13761_s27 + $0x68] sm:$0xff] %v7541_v60 }
 0x712   : > { %v8254_v34 = vpop.f32.mrf.mxu0 }
 0x713   : > { %v8282_v27 = vpop.f32.mrf.mxu1 }
 0x714   : > { %v8255_v57 = vpop.f32.mrf.mxu0 }
 0x715   : > { %v8256_v36 = vadd.f32 %v8255_v57, %v8254_v34  ;;  %v8283_v46 = vpop.f32.mrf.mxu1 }
 0x716   : > { %v8284_v49 = vadd.f32 %v8283_v46, %v8282_v27  ;;  %v8257_v61 = vpop.f32.mrf.mxu0 }
 0x717   : > { %v8285_v56 = vpop.f32.mrf.mxu1 }
 0x718   : > { %v7525_v18 = vadd.f32 %v8284_v49, %v8256_v36  ;;  %v8258_v15 = vpop.f32.mrf.mxu0 }
 0x719   : > { %v8259_v48 = vadd.f32 %v8258_v15, %v8257_v61  ;;  %v8286_v14 = vpop.f32.mrf.mxu1 }
 0x71a   : > { %v7538_v47 = vadd.f32 %v7525_v18, %v16308_v8  ;;  %v8287_v10 = vadd.f32 %v8286_v14, %v8285_v56 }
 0x71c   : > { %v7542_v38 = vadd.f32 %v8998_v11, %v7538_v47  ;;  %v7528_v7 = vadd.f32 %v8287_v10, %v8259_v48 }
 0x71e   : > { %8059 = vst [vmem:[%s13761_s27 + $0x70] sm:$0xff] %v7542_v38  ;;  %v7539_v30 = vadd.f32 %v7528_v7, %v16309_v16 }
 0x720   : > { %v7543_v28 = vadd.f32 %v8998_v11, %v7539_v30 }
 0x722   : > { %8060 = vst [vmem:[%s13761_s27 + $0x78] sm:$0xff] %v7543_v28 }
 0x723 PF: > { %s17_s24 = sadd.s32 1, %s9005_s24  }
 0x724   : > { %p14_p4 = scmp.ge.s32.totalorder %s17_s24, 4  }
 0x726   :  { %16 = sbr.rel (!%p14_p4) target bundleno = 1 (0x1), region = 203 }

</bundles_post_ra>
